<compile_context>
chip_gen: v7x
topology: tpu7x:2x2x1
jax: 0.10.0
libtpu: 0.0.40
codegen_flags: <defaults>
</compile_context>

<pallas_src>
import functools
import math

import jax
import jax.numpy as jnp
from jax.experimental import pallas as pl
from jax.experimental.pallas import tpu as pltpu


# ----------------------------------------------------------------------------
# helpers
# ----------------------------------------------------------------------------
def _round_up(n, m):
    return ((n + m - 1) // m) * m


def _seq_tile(t):
    """Row tile for a sequence of length t (multiple of 8, MXU friendly)."""
    if t >= 1024:
        return 256
    if t >= 128:
        return 128
    return _round_up(t, 8)


def _vmem_limit_bytes():
    # Size the scoped-VMEM limit to the part (64 MiB physical on v7x, 128 MiB
    # on v5e/v6e) and leave headroom for Mosaic internal scratch.
    try:
        cap = pltpu.get_tpu_info().vmem_capacity_bytes
    except Exception:
        cap = 128 * 1024 * 1024
    return int(min(cap * 3 // 4, 96 * 1024 * 1024))


_VMEM_LIMIT = _vmem_limit_bytes()


def _cparams(*sem):
    return pltpu.CompilerParams(dimension_semantics=sem,
                                vmem_limit_bytes=_VMEM_LIMIT)


def _layer_norm(x, w, b, eps=1e-5):
    mu = jnp.mean(x, axis=-1, keepdims=True)
    var = jnp.mean((x - mu) ** 2, axis=-1, keepdims=True)
    return (x - mu) * jax.lax.rsqrt(var + eps) * w + b


def _gelu_tanh(x):
    # tanh-approximate GELU: the transcendental goes to the EUP slot.
    c = math.sqrt(2.0 / math.pi)
    return 0.5 * x * (1.0 + jnp.tanh(c * (x + 0.044715 * x * x * x)))


# ----------------------------------------------------------------------------
# Conv1d (K=3, pad=1) as ONE matmul over a K*Cin contraction; optional fused
# position-embedding add (conv2).  Output is padded along T to out_t_pad.
# ----------------------------------------------------------------------------
def _conv_kernel(xcol_ref, w_ref, b_ref, o_ref):
    y = jnp.dot(xcol_ref[0], w_ref[...],
                preferred_element_type=jnp.float32) + b_ref[...]
    o_ref[0] = y.astype(o_ref.dtype)


def _conv_pos_kernel(xcol_ref, w_ref, b_ref, pos_ref, o_ref):
    y = jnp.dot(xcol_ref[0], w_ref[...],
                preferred_element_type=jnp.float32) + b_ref[...]
    o_ref[0] = (y + pos_ref[...]).astype(o_ref.dtype)


def conv1d(x, w, b, *, stride, pos=None, seq_tile=None, out_t_pad=None,
           out_dtype=jnp.bfloat16):
    """x: (B, T, Cin); w: (3*Cin, Cout) bf16; b: (1, Cout) f32."""
    B, T, Cin = x.shape
    K, pad = 3, 1
    Cout = w.shape[1]
    T_out = (T + 2 * pad - K) // stride + 1
    tt = seq_tile if seq_tile is not None else _seq_tile(T_out)
    T_pad = out_t_pad if out_t_pad is not None else _round_up(T_out, tt)
    # TODO(synk): im2col window extraction kept as XLA glue (pure data
    # movement); the kernel is a single MXU matmul over the K*Cin contraction.
    xp = jnp.pad(x.astype(jnp.bfloat16), ((0, 0), (pad, pad), (0, 0)))
    xcol = jnp.concatenate(
        [xp[:, k:k + stride * (T_out - 1) + 1:stride, :] for k in range(K)],
        axis=-1)                                           # (B, T_out, K*Cin)
    if T_pad != T_out:
        xcol = jnp.pad(xcol, ((0, 0), (0, T_pad - T_out), (0, 0)))

    in_specs = [
        pl.BlockSpec((1, tt, K * Cin), lambda bb, t: (bb, t, 0)),
        pl.BlockSpec((K * Cin, Cout), lambda bb, t: (0, 0)),
        pl.BlockSpec((1, Cout), lambda bb, t: (0, 0)),
    ]
    args = [xcol, w, b]
    if pos is None:
        kern = _conv_kernel
    else:
        pos_p = pos
        if pos_p.shape[0] != T_pad:
            pos_p = jnp.pad(pos_p, ((0, T_pad - pos_p.shape[0]), (0, 0)))
        in_specs.append(pl.BlockSpec((tt, Cout), lambda bb, t: (t, 0)))
        args.append(pos_p)
        kern = _conv_pos_kernel
    return pl.pallas_call(
        kern,
        out_shape=jax.ShapeDtypeStruct((B, T_pad, Cout), out_dtype),
        grid=(B, T_pad // tt),
        in_specs=in_specs,
        out_specs=pl.BlockSpec((1, tt, Cout), lambda bb, t: (bb, t, 0)),
        compiler_params=_cparams("parallel", "parallel"),
    )(*args)


# ----------------------------------------------------------------------------
# fused QKV projection (flattened rows, full D x D weights resident)
# ----------------------------------------------------------------------------
def _qkv_kernel(x_ref, wq_ref, bq_ref, wk_ref, wv_ref, bv_ref,
                q_out, k_out, v_out, *, scale):
    x = x_ref[...].astype(jnp.bfloat16)
    q = (jnp.dot(x, wq_ref[...], preferred_element_type=jnp.float32)
         + bq_ref[...]) * scale                     # fold 1/sqrt(d) into q
    k = jnp.dot(x, wk_ref[...], preferred_element_type=jnp.float32)
    v = jnp.dot(x, wv_ref[...], preferred_element_type=jnp.float32) + bv_ref[...]
    q_out[...] = q.astype(q_out.dtype)
    k_out[...] = k.astype(k_out.dtype)
    v_out[...] = v.astype(v_out.dtype)


def qkv_project(x2, wq, bq, wk, wv, bv, *, scale, tr):
    R, D = x2.shape
    row = pl.BlockSpec((tr, D), lambda r: (r, 0))
    wsp = pl.BlockSpec((D, D), lambda r: (0, 0))
    bsp = pl.BlockSpec((1, D), lambda r: (0, 0))
    out_sd = jax.ShapeDtypeStruct((R, D), jnp.bfloat16)
    return pl.pallas_call(
        functools.partial(_qkv_kernel, scale=scale),
        out_shape=(out_sd, out_sd, out_sd),
        grid=(R // tr,),
        in_specs=[row, wsp, bsp, wsp, wsp, bsp],
        out_specs=(row, row, row),
        compiler_params=_cparams("parallel"),
    )(x2, wq, bq, wk, wv, bv)


def _kv_kernel(x_ref, wk_ref, wv_ref, bv_ref, k_out, v_out):
    x = x_ref[...].astype(jnp.bfloat16)
    k_out[...] = jnp.dot(x, wk_ref[...],
                         preferred_element_type=jnp.float32).astype(k_out.dtype)
    v_out[...] = (jnp.dot(x, wv_ref[...], preferred_element_type=jnp.float32)
                  + bv_ref[...]).astype(v_out.dtype)


def kv_project(x2, wk, wv, bv, *, tr):
    R, D = x2.shape
    row = pl.BlockSpec((tr, D), lambda r: (r, 0))
    wsp = pl.BlockSpec((D, D), lambda r: (0, 0))
    bsp = pl.BlockSpec((1, D), lambda r: (0, 0))
    out_sd = jax.ShapeDtypeStruct((R, D), jnp.bfloat16)
    return pl.pallas_call(
        _kv_kernel,
        out_shape=(out_sd, out_sd),
        grid=(R // tr,),
        in_specs=[row, wsp, wsp, bsp],
        out_specs=(row, row),
        compiler_params=_cparams("parallel"),
    )(x2, wk, wv, bv)


# ----------------------------------------------------------------------------
# generic row-parallel linear (full weight resident, no Dout tiling)
# ----------------------------------------------------------------------------
def _linear_rows_kernel(x_ref, w_ref, b_ref, o_ref, *, scale):
    x = x_ref[...].astype(jnp.bfloat16)
    y = jnp.dot(x, w_ref[...], preferred_element_type=jnp.float32) + b_ref[...]
    if scale != 1.0:
        y = y * scale
    o_ref[...] = y.astype(o_ref.dtype)


def linear_rows(x2, w, b, *, scale=1.0, tr, out_dtype=jnp.bfloat16):
    R, Din = x2.shape
    Dout = w.shape[1]
    return pl.pallas_call(
        functools.partial(_linear_rows_kernel, scale=scale),
        out_shape=jax.ShapeDtypeStruct((R, Dout), out_dtype),
        grid=(R // tr,),
        in_specs=[pl.BlockSpec((tr, Din), lambda r: (r, 0)),
                  pl.BlockSpec((Din, Dout), lambda r: (0, 0)),
                  pl.BlockSpec((1, Dout), lambda r: (0, 0))],
        out_specs=pl.BlockSpec((tr, Dout), lambda r: (r, 0)),
        compiler_params=_cparams("parallel"),
    )(x2, w, b)


# ----------------------------------------------------------------------------
# attention: K/V for a batch fully resident (no kv grid axis / re-streaming),
# masked softmax over the padded key axis, EUP reciprocal for the denominator.
# ----------------------------------------------------------------------------
def _attn_kernel(q_ref, k_ref, v_ref, o_ref, *, kv_len):
    q = q_ref[0]                                       # (tq, D) bf16, pre-scaled
    k = k_ref[0]                                       # (Tk_pad, D) bf16
    s = jax.lax.dot_general(q, k, (((1,), (1,)), ((), ())),
                            preferred_element_type=jnp.float32)   # (tq, Tk_pad)
    if kv_len < k.shape[0]:
        col = jax.lax.broadcasted_iota(jnp.int32, s.shape, 1)
        s = jnp.where(col < kv_len, s, -1e30)          # mask padded key columns
    m = jnp.max(s, axis=-1, keepdims=True)
    p = jnp.exp(s - m)
    l = jnp.sum(p, axis=-1, keepdims=True)
    ctx = jnp.dot(p.astype(jnp.bfloat16), v_ref[0],
                  preferred_element_type=jnp.float32)
    o_ref[0] = (ctx * pl.reciprocal(l, approx=True)).astype(o_ref.dtype)


def attention(q, k, v, *, tq, kv_len):
    B, Tq, D = q.shape
    Tk = k.shape[1]
    return pl.pallas_call(
        functools.partial(_attn_kernel, kv_len=kv_len),
        out_shape=jax.ShapeDtypeStruct((B, Tq, D), jnp.bfloat16),
        grid=(B, Tq // tq),
        in_specs=[pl.BlockSpec((1, tq, D), lambda b, i: (b, i, 0)),
                  pl.BlockSpec((1, Tk, D), lambda b, i: (b, 0, 0)),
                  pl.BlockSpec((1, Tk, D), lambda b, i: (b, 0, 0))],
        out_specs=pl.BlockSpec((1, tq, D), lambda b, i: (b, i, 0)),
        compiler_params=_cparams("parallel", "parallel"),
    )(q, k, v)


# ----------------------------------------------------------------------------
# out-projection + residual + LayerNorm   (flattened rows, bf16 out)
# ----------------------------------------------------------------------------
def _attn_out_kernel(ctx_ref, x_ref, wo_ref, bo_ref, g_ref, be_ref, o_ref):
    attn = jnp.dot(ctx_ref[...], wo_ref[...],
                   preferred_element_type=jnp.float32) + bo_ref[...]
    y = _layer_norm(x_ref[...].astype(jnp.float32) + attn,
                    g_ref[...], be_ref[...])
    o_ref[...] = y.astype(o_ref.dtype)


def attn_out_ln(ctx2, x2, wo, bo, g, be, *, tr):
    R, D = x2.shape
    row = pl.BlockSpec((tr, D), lambda r: (r, 0))
    vec = pl.BlockSpec((1, D), lambda r: (0, 0))
    return pl.pallas_call(
        _attn_out_kernel,
        out_shape=jax.ShapeDtypeStruct((R, D), jnp.bfloat16),
        grid=(R // tr,),
        in_specs=[row, row, pl.BlockSpec((D, D), lambda r: (0, 0)),
                  vec, vec, vec],
        out_specs=row,
        compiler_params=_cparams("parallel"),
    )(ctx2, x2, wo, bo, g, be)


# ----------------------------------------------------------------------------
# FFN (+ residual + LayerNorm).  fc1/fc2 kept resident when they fit a 24 MiB
# budget (v5e/v6e and all small configs), else d_ff is a reduction grid axis
# with an f32 VMEM accumulator (required for whisper-large on v7x's 64 MiB).
# ----------------------------------------------------------------------------
def _ffn_kernel(x_ref, w1_ref, b1_ref, w2_ref, b2_ref, g_ref, be_ref,
                o_ref, acc_sc):
    fi = pl.program_id(1)

    @pl.when(fi == 0)
    def _():
        acc_sc[...] = jnp.zeros_like(acc_sc)

    xb = x_ref[...].astype(jnp.bfloat16)
    h = jnp.dot(xb, w1_ref[...], preferred_element_type=jnp.float32) + b1_ref[...]
    h = _gelu_tanh(h)
    acc_sc[...] += jnp.dot(h.astype(jnp.bfloat16), w2_ref[...],
                           preferred_element_type=jnp.float32)

    @pl.when(fi == pl.num_programs(1) - 1)
    def _():
        y = acc_sc[...] + b2_ref[...]
        o_ref[...] = _layer_norm(x_ref[...].astype(jnp.float32) + y,
                                 g_ref[...], be_ref[...]).astype(o_ref.dtype)


def ffn_ln(x2, w1, b1, w2, b2, g, be, *, tr):
    R, D = x2.shape
    F = w1.shape[1]
    if F <= 512 or F * D * 2 * 2 <= 24 * 1024 * 1024:
        tf = F
    else:
        tf = 512
        while F % tf:
            tf //= 2
    row = pl.BlockSpec((tr, D), lambda r, f: (r, 0))
    vec = pl.BlockSpec((1, D), lambda r, f: (0, 0))
    return pl.pallas_call(
        _ffn_kernel,
        out_shape=jax.ShapeDtypeStruct((R, D), jnp.bfloat16),
        grid=(R // tr, F // tf),
        in_specs=[row,
                  pl.BlockSpec((D, tf), lambda r, f: (0, f)),
                  pl.BlockSpec((1, tf), lambda r, f: (0, f)),
                  pl.BlockSpec((tf, D), lambda r, f: (f, 0)),
                  vec, vec, vec],
        out_specs=row,
        scratch_shapes=[pltpu.VMEM((tr, D), jnp.float32)],
        compiler_params=_cparams("parallel", "arbitrary"),
    )(x2, w1, b1, w2, b2, g, be)


# ----------------------------------------------------------------------------
# row-parallel LayerNorm
# ----------------------------------------------------------------------------
def _ln_kernel(x_ref, g_ref, b_ref, o_ref):
    o_ref[...] = _layer_norm(x_ref[...].astype(jnp.float32),
                             g_ref[...], b_ref[...]).astype(o_ref.dtype)


def layer_norm(x2, g, b, *, tr, out_dtype=jnp.bfloat16):
    R, D = x2.shape
    row = pl.BlockSpec((tr, D), lambda r: (r, 0))
    vec = pl.BlockSpec((1, D), lambda r: (0, 0))
    return pl.pallas_call(
        _ln_kernel,
        out_shape=jax.ShapeDtypeStruct((R, D), out_dtype),
        grid=(R // tr,),
        in_specs=[row, vec, vec],
        out_specs=row,
        compiler_params=_cparams("parallel"),
    )(x2, g, b)


# ----------------------------------------------------------------------------
# fused proj_out (bias-free) + cross-entropy.  Grid (row_tiles, vocab_tiles)
# with vocab innermost: online logsumexp + label-pick accumulated in f32 VMEM
# scratch; bf16 logits are emitted as a side output (written once, never read
# back).  Padded vocab columns are masked in-kernel.
# ----------------------------------------------------------------------------
def _proj_ce_kernel(y_ref, w_ref, lbl_ref, logits_ref, loss_ref,
                    m_sc, l_sc, p_sc, *, v_actual, tv):
    vi = pl.program_id(1)

    @pl.when(vi == 0)
    def _():
        m_sc[...] = jnp.full_like(m_sc, -jnp.inf)
        l_sc[...] = jnp.zeros_like(l_sc)
        p_sc[...] = jnp.zeros_like(p_sc)

    lg = jnp.dot(y_ref[...], w_ref[...], preferred_element_type=jnp.float32)
    logits_ref[...] = lg.astype(logits_ref.dtype)

    col = jax.lax.broadcasted_iota(jnp.int32, lg.shape, 1) + vi * tv
    lg_m = jnp.where(col < v_actual, lg, -1e30)       # mask padded vocab cols
    m_prev = m_sc[...]
    m_new = jnp.maximum(m_prev, jnp.max(lg_m, axis=-1, keepdims=True))
    l_sc[...] = (l_sc[...] * jnp.exp(m_prev - m_new)
                 + jnp.sum(jnp.exp(lg_m - m_new), axis=-1, keepdims=True))
    m_sc[...] = m_new
    p_sc[...] += jnp.sum(jnp.where(col == lbl_ref[...], lg, 0.0),
                         axis=-1, keepdims=True)

    @pl.when(vi == pl.num_programs(1) - 1)
    def _():
        loss_ref[...] = (m_sc[...] + jnp.log(l_sc[...])) - p_sc[...]


def proj_out_ce(y2, w, labels2, *, tr, v_actual):
    R, D = y2.shape
    V_pad = w.shape[1]
    tv = min(1024, V_pad)
    assert V_pad % tv == 0
    return pl.pallas_call(
        functools.partial(_proj_ce_kernel, v_actual=v_actual, tv=tv),
        out_shape=(jax.ShapeDtypeStruct((R, V_pad), jnp.bfloat16),
                   jax.ShapeDtypeStruct((R, 1), jnp.float32)),
        grid=(R // tr, V_pad // tv),
        in_specs=[pl.BlockSpec((tr, D), lambda r, v: (r, 0)),
                  pl.BlockSpec((D, tv), lambda r, v: (0, v)),
                  pl.BlockSpec((tr, 1), lambda r, v: (r, 0))],
        out_specs=(pl.BlockSpec((tr, tv), lambda r, v: (r, v)),
                   pl.BlockSpec((tr, 1), lambda r, v: (r, 0))),
        scratch_shapes=[pltpu.VMEM((tr, 1), jnp.float32)] * 3,
        compiler_params=_cparams("parallel", "arbitrary"),
    )(y2, w, labels2)


# ----------------------------------------------------------------------------
# layer / model orchestration
# ----------------------------------------------------------------------------
def encoder_layer(x, p, scale, t, kv_len):
    B, Tp, D = x.shape
    x2 = x.reshape(B * Tp, D)
    q2, k2, v2 = qkv_project(x2, p['q_w'], p['q_b'], p['k_w'], p['v_w'],
                             p['v_b'], scale=scale, tr=t)
    ctx = attention(q2.reshape(B, Tp, D), k2.reshape(B, Tp, D),
                    v2.reshape(B, Tp, D), tq=t, kv_len=kv_len)
    x2 = attn_out_ln(ctx.reshape(B * Tp, D), x2, p['o_w'], p['o_b'],
                     p['ln1_w'], p['ln1_b'], tr=t)
    x2 = ffn_ln(x2, p['fc1_w'], p['fc1_b'], p['fc2_w'], p['fc2_b'],
                p['ln2_w'], p['ln2_b'], tr=t)
    return x2.reshape(B, Tp, D)


def decoder_layer(x, enc2, p, scale, t_dec, t_enc, dec_len, enc_len):
    B, Tp, D = x.shape
    Tenc_pad = enc2.shape[0] // B
    x2 = x.reshape(B * Tp, D)
    # self-attention
    q2, k2, v2 = qkv_project(x2, p['self_q_w'], p['self_q_b'], p['self_k_w'],
                             p['self_v_w'], p['self_v_b'], scale=scale,
                             tr=t_dec)
    ctx = attention(q2.reshape(B, Tp, D), k2.reshape(B, Tp, D),
                    v2.reshape(B, Tp, D), tq=t_dec, kv_len=dec_len)
    x2 = attn_out_ln(ctx.reshape(B * Tp, D), x2, p['self_o_w'], p['self_o_b'],
                     p['sln_w'], p['sln_b'], tr=t_dec)
    # cross-attention (k, v from encoder output with per-layer projections)
    q2 = linear_rows(x2, p['cross_q_w'], p['cross_q_b'], scale=scale, tr=t_dec)
    k2, v2 = kv_project(enc2, p['cross_k_w'], p['cross_v_w'], p['cross_v_b'],
                        tr=t_enc)
    ctx = attention(q2.reshape(B, Tp, D), k2.reshape(B, Tenc_pad, D),
                    v2.reshape(B, Tenc_pad, D), tq=t_dec, kv_len=enc_len)
    x2 = attn_out_ln(ctx.reshape(B * Tp, D), x2, p['cross_o_w'], p['cross_o_b'],
                     p['cln_w'], p['cln_b'], tr=t_dec)
    # feed-forward
    x2 = ffn_ln(x2, p['fc1_w'], p['fc1_b'], p['fc2_w'], p['fc2_b'],
                p['fln_w'], p['fln_b'], tr=t_dec)
    return x2.reshape(B, Tp, D)


def whisper_forward(input_features, labels, params, *, vocab_size):
    # ---------------- encoder ----------------
    x = jnp.transpose(input_features, (0, 2, 1))              # NCW -> NWC
    B, T_in, _ = x.shape
    x = conv1d(x, params['conv1_w'], params['conv1_b'], stride=1)
    x = x[:, :T_in, :]                                        # drop pad rows
    T2 = (T_in + 2 - 3) // 2 + 1
    t_enc = _seq_tile(T2)
    T2_pad = _round_up(T2, t_enc)
    x = conv1d(x, params['conv2_w'], params['conv2_b'], stride=2,
               pos=params['enc_pos'][:T2], seq_tile=t_enc, out_t_pad=T2_pad)
    D = x.shape[-1]
    scale = 1.0 / math.sqrt(D)
    for lp in params['enc_layers']:
        x = encoder_layer(x, lp, scale, t_enc, kv_len=T2)
    enc2 = layer_norm(x.reshape(B * T2_pad, D), params['enc_ln_w'],
                      params['enc_ln_b'], tr=t_enc)            # bf16 rows

    # ---------------- decoder ----------------
    Td = labels.shape[1]
    t_dec = _seq_tile(Td)
    Td_pad = _round_up(Td, t_dec)
    # TODO(synk): token-embedding gather + positional add kept as XLA glue.
    y = params['dec_tok_emb'][labels] + params['dec_pos'][:Td]
    y = jnp.pad(y, ((0, 0), (0, Td_pad - Td), (0, 0))).astype(jnp.bfloat16)
    for lp in params['dec_layers']:
        y = decoder_layer(y, enc2, lp, scale, t_dec, t_enc,
                          dec_len=Td, enc_len=T2)
    y2 = layer_norm(y.reshape(B * Td_pad, D), params['dec_ln_w'],
                    params['dec_ln_b'], tr=t_dec)

    # ---------------- fused proj_out + cross-entropy ----------------
    lbl_pad = jnp.pad(labels.astype(jnp.int32), ((0, 0), (0, Td_pad - Td)))
    lbl2 = lbl_pad.reshape(B * Td_pad, 1)
    logits_pad, row_loss = proj_out_ce(y2, params['proj_w'], lbl2,
                                       tr=t_dec, v_actual=vocab_size)
    V_pad = logits_pad.shape[-1]
    logits = logits_pad.reshape(B, Td_pad, V_pad)[:, :Td, :vocab_size]
    loss = jnp.mean(row_loss.reshape(B, Td_pad)[:, :Td])
    return {'logits': logits, 'loss': loss}


# ----------------------------------------------------------------------------
# deterministic synthetic parameters (matmul weights stored in bf16,
# proj weight padded to a lane-friendly vocab size with zero columns)
# ----------------------------------------------------------------------------
def init_params(key, *, input_dim, d_model, n_layers, d_ff, max_len,
                vocab_size):
    keys = iter(jax.random.split(key, 1024))

    def w(shape, s=0.08):
        return (jax.random.normal(next(keys), shape, jnp.float32) * s
                ).astype(jnp.bfloat16)

    def bvec(n, s=0.02):
        return jax.random.normal(next(keys), (1, n), jnp.float32) * s

    def emb(shape, s=0.02):
        return jax.random.normal(next(keys), shape, jnp.float32) * s

    def attn_block(prefix):
        return {
            prefix + 'q_w': w((d_model, d_model)), prefix + 'q_b': bvec(d_model),
            prefix + 'k_w': w((d_model, d_model)),
            prefix + 'v_w': w((d_model, d_model)), prefix + 'v_b': bvec(d_model),
            prefix + 'o_w': w((d_model, d_model)), prefix + 'o_b': bvec(d_model),
        }

    ones = jnp.ones((1, d_model), jnp.float32)
    zeros = jnp.zeros((1, d_model), jnp.float32)

    if vocab_size >= 1024:
        v_store = _round_up(vocab_size, 1024)
    else:
        v_store = _round_up(vocab_size, 128)
    proj = w((d_model, vocab_size))
    proj = jnp.pad(proj, ((0, 0), (0, v_store - vocab_size)))

    params = {
        'conv1_w': w((3 * input_dim, d_model)), 'conv1_b': bvec(d_model),
        'conv2_w': w((3 * d_model, d_model)), 'conv2_b': bvec(d_model),
        'enc_pos': emb((max_len, d_model)),
        'enc_ln_w': ones, 'enc_ln_b': zeros, 'enc_layers': [],
        'dec_tok_emb': emb((vocab_size, d_model)),
        'dec_pos': emb((max_len, d_model)),
        'dec_ln_w': ones, 'dec_ln_b': zeros, 'dec_layers': [],
        'proj_w': proj,
    }
    for _ in range(n_layers):
        lp = attn_block('')
        lp.update({'ln1_w': ones, 'ln1_b': zeros,
                   'fc1_w': w((d_model, d_ff)), 'fc1_b': bvec(d_ff),
                   'fc2_w': w((d_ff, d_model)), 'fc2_b': bvec(d_model),
                   'ln2_w': ones, 'ln2_b': zeros})
        params['enc_layers'].append(lp)
    for _ in range(n_layers):
        lp = attn_block('self_')
        lp.update({'sln_w': ones, 'sln_b': zeros})
        lp.update(attn_block('cross_'))
        lp.update({'cln_w': ones, 'cln_b': zeros,
                   'fc1_w': w((d_model, d_ff)), 'fc1_b': bvec(d_ff),
                   'fc2_w': w((d_ff, d_model)), 'fc2_b': bvec(d_model),
                   'fln_w': ones, 'fln_b': zeros})
        params['dec_layers'].append(lp)
    return params


# ----------------------------------------------------------------------------
# pure-JAX reference (same bf16 matmuls / bf16 residual-stream rounding)
# ----------------------------------------------------------------------------
def _bf16(x):
    return x.astype(jnp.bfloat16).astype(jnp.float32)


def _ref_mm(a, b):
    return jnp.dot(a.astype(jnp.bfloat16), b.astype(jnp.bfloat16),
                   preferred_element_type=jnp.float32)


def _ref_ln(x, g, b, eps=1e-5):
    mu = jnp.mean(x, -1, keepdims=True)
    var = jnp.mean((x - mu) ** 2, -1, keepdims=True)
    return (x - mu) * jax.lax.rsqrt(var + eps) * g + b


def reference_forward(input_features, labels, params, *, vocab_size):
    x = jnp.transpose(input_features, (0, 2, 1))

    def conv_ref(xx, w, b, stride):
        K = 3
        T_out = (xx.shape[1] + 2 - K) // stride + 1
        xp = jnp.pad(xx.astype(jnp.bfloat16), ((0, 0), (1, 1), (0, 0)))
        xcol = jnp.concatenate(
            [xp[:, k:k + stride * (T_out - 1) + 1:stride, :] for k in range(K)],
            axis=-1)
        return _ref_mm(xcol, w) + b

    x = _bf16(conv_ref(x, params['conv1_w'], params['conv1_b'], 1))
    x = conv_ref(x, params['conv2_w'], params['conv2_b'], 2)
    x = _bf16(x + params['enc_pos'][:x.shape[1]])
    D = x.shape[-1]
    scale = 1.0 / math.sqrt(D)

    def attn(xq, xkv, p, pre):
        k = _ref_mm(xkv, p[pre + 'k_w'])
        v = _ref_mm(xkv, p[pre + 'v_w']) + p[pre + 'v_b']
        q = (_ref_mm(xq, p[pre + 'q_w']) + p[pre + 'q_b']) * scale
        s = jnp.einsum('btd,bsd->bts', q.astype(jnp.bfloat16),
                       k.astype(jnp.bfloat16),
                       preferred_element_type=jnp.float32)
        pr = jax.nn.softmax(s, axis=-1)
        ctx = jnp.einsum('bts,bsd->btd', pr.astype(jnp.bfloat16),
                         v.astype(jnp.bfloat16),
                         preferred_element_type=jnp.float32)
        return _ref_mm(ctx, p[pre + 'o_w']) + p[pre + 'o_b']

    def ffn(xx, p):
        h = _ref_mm(xx, p['fc1_w']) + p['fc1_b']
        h = jax.nn.gelu(h, approximate=True)
        return _ref_mm(h, p['fc2_w']) + p['fc2_b']

    for lp in params['enc_layers']:
        x = _bf16(_ref_ln(x + attn(x, x, lp, ''), lp['ln1_w'], lp['ln1_b']))
        x = _bf16(_ref_ln(x + ffn(x, lp), lp['ln2_w'], lp['ln2_b']))
    enc = _bf16(_ref_ln(x, params['enc_ln_w'], params['enc_ln_b']))

    y = _bf16(params['dec_tok_emb'][labels] + params['dec_pos'][:labels.shape[1]])
    for lp in params['dec_layers']:
        y = _bf16(_ref_ln(y + attn(y, y, lp, 'self_'), lp['sln_w'], lp['sln_b']))
        y = _bf16(_ref_ln(y + attn(y, enc, lp, 'cross_'), lp['cln_w'], lp['cln_b']))
        y = _bf16(_ref_ln(y + ffn(y, lp), lp['fln_w'], lp['fln_b']))
    y = _bf16(_ref_ln(y, params['dec_ln_w'], params['dec_ln_b']))

    logits = _ref_mm(y, params['proj_w'][:, :vocab_size])
    logp = jax.nn.log_softmax(logits, axis=-1)
    loss = -jnp.mean(jnp.take_along_axis(logp, labels[..., None], axis=-1))
    return logits, loss


if __name__ == "__main__":
    # Small shapes; T / vocab chosen non-multiples of the tiles so the padding
    # + in-kernel masking paths are exercised.
    B, input_dim, T_in = 2, 8, 20
    d_model, n_layers, d_ff, max_len, vocab = 32, 2, 64, 32, 50
    T_dec = 6

    key = jax.random.PRNGKey(0)
    pkey, xkey, lkey = jax.random.split(key, 3)
    params = init_params(pkey, input_dim=input_dim, d_model=d_model,
                         n_layers=n_layers, d_ff=d_ff, max_len=max_len,
                         vocab_size=vocab)
    feats = jax.random.normal(xkey, (B, input_dim, T_in), jnp.float32)  # NCW
    labels = jax.random.randint(lkey, (B, T_dec), 0, vocab, jnp.int32)

    fwd = jax.jit(functools.partial(whisper_forward, vocab_size=vocab))
    out = fwd(feats, labels, params)
    logits = jax.block_until_ready(out['logits'])
    loss = jax.block_until_ready(out['loss'])

    ref_logits, ref_loss = reference_forward(feats, labels, params,
                                             vocab_size=vocab)
    assert logits.shape == (B, T_dec, vocab), logits.shape
    err = float(jnp.max(jnp.abs(logits.astype(jnp.float32) - ref_logits)))
    lerr = abs(float(loss) - float(ref_loss))
    assert err < 5e-2, f"logits max abs error vs reference: {err}"
    assert lerr < 5e-2, f"loss error vs reference: {lerr}"
    print("KERNEL_OK")
</pallas_src>

<mosaic_0001>
module attributes {stable_mosaic.version = 11 : i64} {
  func.func @_qkv_kernel(%arg0: i32, %arg1: memref<8x32xbf16, #tpu.memory_space<vmem>>, %arg2: memref<32x32xbf16, #tpu.memory_space<vmem>>, %arg3: memref<1x32xf32, #tpu.memory_space<vmem>>, %arg4: memref<32x32xbf16, #tpu.memory_space<vmem>>, %arg5: memref<32x32xbf16, #tpu.memory_space<vmem>>, %arg6: memref<1x32xf32, #tpu.memory_space<vmem>>, %arg7: memref<8x32xbf16, #tpu.memory_space<vmem>>, %arg8: memref<8x32xbf16, #tpu.memory_space<vmem>>, %arg9: memref<8x32xbf16, #tpu.memory_space<vmem>>) attributes {dimension_semantics = [#tpu.dimension_semantics<parallel>], iteration_bounds = array<i64: 2>, scalar_prefetch = 0 : i64, scratch_operands = 0 : i64, tpu.core_type = #tpu.core_type<tc>, window_params = [{transform_indices = @transform_0, window_bounds = array<i64: 8, 32>}, {pipeline_mode = #tpu.pipeline_mode<synchronous>, transform_indices = @transform_1, window_bounds = array<i64: 32, 32>}, {pipeline_mode = #tpu.pipeline_mode<synchronous>, transform_indices = @transform_2, window_bounds = array<i64: 1, 32>}, {pipeline_mode = #tpu.pipeline_mode<synchronous>, transform_indices = @transform_3, window_bounds = array<i64: 32, 32>}, {pipeline_mode = #tpu.pipeline_mode<synchronous>, transform_indices = @transform_4, window_bounds = array<i64: 32, 32>}, {pipeline_mode = #tpu.pipeline_mode<synchronous>, transform_indices = @transform_5, window_bounds = array<i64: 1, 32>}, {transform_indices = @transform_6, window_bounds = array<i64: 8, 32>}, {transform_indices = @transform_7, window_bounds = array<i64: 8, 32>}, {transform_indices = @transform_8, window_bounds = array<i64: 8, 32>}]} {
    %c0 = arith.constant 0 : index
    %c0_0 = arith.constant 0 : index
    %0 = vector.load %arg1[%c0, %c0_0] : memref<8x32xbf16, #tpu.memory_space<vmem>>, vector<8x32xbf16>
    %c0_1 = arith.constant 0 : index
    %c0_2 = arith.constant 0 : index
    %1 = vector.load %arg2[%c0_1, %c0_2] : memref<32x32xbf16, #tpu.memory_space<vmem>>, vector<32x32xbf16>
    %cst = arith.constant dense<0.000000e+00> : vector<8x32xf32>
    %2 = tpu.matmul %0, %1, %cst {dimension_numbers = #tpu.dot_dimension_numbers<[1], [0], [0], [1], [0, 0, 1, 1], [], []>} : vector<8x32xbf16>, vector<32x32xbf16>, vector<8x32xf32> -> vector<8x32xf32>
    %c0_3 = arith.constant 0 : index
    %c0_4 = arith.constant 0 : index
    %3 = vector.load %arg3[%c0_3, %c0_4] : memref<1x32xf32, #tpu.memory_space<vmem>>, vector<1x32xf32>
    %4 = vector.broadcast %3 : vector<1x32xf32> to vector<8x32xf32>
    %5 = arith.addf %2, %4 : vector<8x32xf32>
    %cst_5 = arith.constant 0.176776692 : f32
    %6 = vector.broadcast %cst_5 : f32 to vector<8x32xf32>
    %7 = arith.mulf %5, %6 : vector<8x32xf32>
    %c0_6 = arith.constant 0 : index
    %c0_7 = arith.constant 0 : index
    %8 = vector.load %arg4[%c0_6, %c0_7] : memref<32x32xbf16, #tpu.memory_space<vmem>>, vector<32x32xbf16>
    %cst_8 = arith.constant dense<0.000000e+00> : vector<8x32xf32>
    %9 = tpu.matmul %0, %8, %cst_8 {dimension_numbers = #tpu.dot_dimension_numbers<[1], [0], [0], [1], [0, 0, 1, 1], [], []>} : vector<8x32xbf16>, vector<32x32xbf16>, vector<8x32xf32> -> vector<8x32xf32>
    %c0_9 = arith.constant 0 : index
    %c0_10 = arith.constant 0 : index
    %10 = vector.load %arg5[%c0_9, %c0_10] : memref<32x32xbf16, #tpu.memory_space<vmem>>, vector<32x32xbf16>
    %cst_11 = arith.constant dense<0.000000e+00> : vector<8x32xf32>
    %11 = tpu.matmul %0, %10, %cst_11 {dimension_numbers = #tpu.dot_dimension_numbers<[1], [0], [0], [1], [0, 0, 1, 1], [], []>} : vector<8x32xbf16>, vector<32x32xbf16>, vector<8x32xf32> -> vector<8x32xf32>
    %c0_12 = arith.constant 0 : index
    %c0_13 = arith.constant 0 : index
    %12 = vector.load %arg6[%c0_12, %c0_13] : memref<1x32xf32, #tpu.memory_space<vmem>>, vector<1x32xf32>
    %13 = vector.broadcast %12 : vector<1x32xf32> to vector<8x32xf32>
    %14 = arith.addf %11, %13 : vector<8x32xf32>
    %15 = arith.truncf %7 : vector<8x32xf32> to vector<8x32xbf16>
    %c0_14 = arith.constant 0 : index
    %c0_15 = arith.constant 0 : index
    %16 = vector.load %arg7[%c0_14, %c0_15] : memref<8x32xbf16, #tpu.memory_space<vmem>>, vector<8x32xbf16>
    tpu.vector_store %arg7[%c0_14, %c0_15], %15 {strides = array<i32>} : memref<8x32xbf16, #tpu.memory_space<vmem>>, vector<8x32xbf16>,
    %17 = arith.truncf %9 : vector<8x32xf32> to vector<8x32xbf16>
    %c0_16 = arith.constant 0 : index
    %c0_17 = arith.constant 0 : index
    %18 = vector.load %arg8[%c0_16, %c0_17] : memref<8x32xbf16, #tpu.memory_space<vmem>>, vector<8x32xbf16>
    tpu.vector_store %arg8[%c0_16, %c0_17], %17 {strides = array<i32>} : memref<8x32xbf16, #tpu.memory_space<vmem>>, vector<8x32xbf16>,
    %19 = arith.truncf %14 : vector<8x32xf32> to vector<8x32xbf16>
    %c0_18 = arith.constant 0 : index
    %c0_19 = arith.constant 0 : index
    %20 = vector.load %arg9[%c0_18, %c0_19] : memref<8x32xbf16, #tpu.memory_space<vmem>>, vector<8x32xbf16>
    tpu.vector_store %arg9[%c0_18, %c0_19], %19 {strides = array<i32>} : memref<8x32xbf16, #tpu.memory_space<vmem>>, vector<8x32xbf16>,
    return
  }
  func.func @transform_0(%arg0: i32) -> (i32, i32) {
    %c0_i32 = arith.constant 0 : i32
    %c0_i32_0 = arith.constant 0 : i32
    return %arg0, %c0_i32 : i32, i32
  }
  func.func @transform_1(%arg0: i32) -> (i32, i32) {
    %c0_i32 = arith.constant 0 : i32
    %c0_i32_0 = arith.constant 0 : i32
    %c0_i32_1 = arith.constant 0 : i32
    return %c0_i32, %c0_i32_0 : i32, i32
  }
  func.func @transform_2(%arg0: i32) -> (i32, i32) {
    %c0_i32 = arith.constant 0 : i32
    %c0_i32_0 = arith.constant 0 : i32
    %c0_i32_1 = arith.constant 0 : i32
    return %c0_i32, %c0_i32_0 : i32, i32
  }
  func.func @transform_3(%arg0: i32) -> (i32, i32) {
    %c0_i32 = arith.constant 0 : i32
    %c0_i32_0 = arith.constant 0 : i32
    %c0_i32_1 = arith.constant 0 : i32
    return %c0_i32, %c0_i32_0 : i32, i32
  }
  func.func @transform_4(%arg0: i32) -> (i32, i32) {
    %c0_i32 = arith.constant 0 : i32
    %c0_i32_0 = arith.constant 0 : i32
    %c0_i32_1 = arith.constant 0 : i32
    return %c0_i32, %c0_i32_0 : i32, i32
  }
  func.func @transform_5(%arg0: i32) -> (i32, i32) {
    %c0_i32 = arith.constant 0 : i32
    %c0_i32_0 = arith.constant 0 : i32
    %c0_i32_1 = arith.constant 0 : i32
    return %c0_i32, %c0_i32_0 : i32, i32
  }
  func.func @transform_6(%arg0: i32) -> (i32, i32) {
    %c0_i32 = arith.constant 0 : i32
    %c0_i32_0 = arith.constant 0 : i32
    return %arg0, %c0_i32 : i32, i32
  }
  func.func @transform_7(%arg0: i32) -> (i32, i32) {
    %c0_i32 = arith.constant 0 : i32
    %c0_i32_0 = arith.constant 0 : i32
    return %arg0, %c0_i32 : i32, i32
  }
  func.func @transform_8(%arg0: i32) -> (i32, i32) {
    %c0_i32 = arith.constant 0 : i32
    %c0_i32_0 = arith.constant 0 : i32
    return %arg0, %c0_i32 : i32, i32
  }
}

module attributes {stable_mosaic.version = 11 : i64} {
  func.func @_linear_rows_kernel(%arg0: i32, %arg1: memref<8x32xbf16, #tpu.memory_space<vmem>>, %arg2: memref<32x32xbf16, #tpu.memory_space<vmem>>, %arg3: memref<1x32xf32, #tpu.memory_space<vmem>>, %arg4: memref<8x32xbf16, #tpu.memory_space<vmem>>) attributes {dimension_semantics = [#tpu.dimension_semantics<parallel>], iteration_bounds = array<i64: 2>, scalar_prefetch = 0 : i64, scratch_operands = 0 : i64, tpu.core_type = #tpu.core_type<tc>, window_params = [{transform_indices = @transform_0, window_bounds = array<i64: 8, 32>}, {pipeline_mode = #tpu.pipeline_mode<synchronous>, transform_indices = @transform_1, window_bounds = array<i64: 32, 32>}, {pipeline_mode = #tpu.pipeline_mode<synchronous>, transform_indices = @transform_2, window_bounds = array<i64: 1, 32>}, {transform_indices = @transform_3, window_bounds = array<i64: 8, 32>}]} {
    %c0 = arith.constant 0 : index
    %c0_0 = arith.constant 0 : index
    %0 = vector.load %arg1[%c0, %c0_0] : memref<8x32xbf16, #tpu.memory_space<vmem>>, vector<8x32xbf16>
    %c0_1 = arith.constant 0 : index
    %c0_2 = arith.constant 0 : index
    %1 = vector.load %arg2[%c0_1, %c0_2] : memref<32x32xbf16, #tpu.memory_space<vmem>>, vector<32x32xbf16>
    %cst = arith.constant dense<0.000000e+00> : vector<8x32xf32>
    %2 = tpu.matmul %0, %1, %cst {dimension_numbers = #tpu.dot_dimension_numbers<[1], [0], [0], [1], [0, 0, 1, 1], [], []>} : vector<8x32xbf16>, vector<32x32xbf16>, vector<8x32xf32> -> vector<8x32xf32>
    %c0_3 = arith.constant 0 : index
    %c0_4 = arith.constant 0 : index
    %3 = vector.load %arg3[%c0_3, %c0_4] : memref<1x32xf32, #tpu.memory_space<vmem>>, vector<1x32xf32>
    %4 = vector.broadcast %3 : vector<1x32xf32> to vector<8x32xf32>
    %5 = arith.addf %2, %4 : vector<8x32xf32>
    %cst_5 = arith.constant 0.176776692 : f32
    %6 = vector.broadcast %cst_5 : f32 to vector<8x32xf32>
    %7 = arith.mulf %5, %6 : vector<8x32xf32>
    %8 = arith.truncf %7 : vector<8x32xf32> to vector<8x32xbf16>
    %c0_6 = arith.constant 0 : index
    %c0_7 = arith.constant 0 : index
    %9 = vector.load %arg4[%c0_6, %c0_7] : memref<8x32xbf16, #tpu.memory_space<vmem>>, vector<8x32xbf16>
    tpu.vector_store %arg4[%c0_6, %c0_7], %8 {strides = array<i32>} : memref<8x32xbf16, #tpu.memory_space<vmem>>, vector<8x32xbf16>,
    return
  }
  func.func @transform_0(%arg0: i32) -> (i32, i32) {
    %c0_i32 = arith.constant 0 : i32
    %c0_i32_0 = arith.constant 0 : i32
    return %arg0, %c0_i32 : i32, i32
  }
  func.func @transform_1(%arg0: i32) -> (i32, i32) {
    %c0_i32 = arith.constant 0 : i32
    %c0_i32_0 = arith.constant 0 : i32
    %c0_i32_1 = arith.constant 0 : i32
    return %c0_i32, %c0_i32_0 : i32, i32
  }
  func.func @transform_2(%arg0: i32) -> (i32, i32) {
    %c0_i32 = arith.constant 0 : i32
    %c0_i32_0 = arith.constant 0 : i32
    %c0_i32_1 = arith.constant 0 : i32
    return %c0_i32, %c0_i32_0 : i32, i32
  }
  func.func @transform_3(%arg0: i32) -> (i32, i32) {
    %c0_i32 = arith.constant 0 : i32
    %c0_i32_0 = arith.constant 0 : i32
    return %arg0, %c0_i32 : i32, i32
  }
}

module attributes {stable_mosaic.version = 11 : i64} {
  func.func @_attn_out_kernel(%arg0: i32, %arg1: memref<8x32xbf16, #tpu.memory_space<vmem>>, %arg2: memref<8x32xbf16, #tpu.memory_space<vmem>>, %arg3: memref<32x32xbf16, #tpu.memory_space<vmem>>, %arg4: memref<1x32xf32, #tpu.memory_space<vmem>>, %arg5: memref<1x32xf32, #tpu.memory_space<vmem>>, %arg6: memref<1x32xf32, #tpu.memory_space<vmem>>, %arg7: memref<8x32xbf16, #tpu.memory_space<vmem>>) attributes {dimension_semantics = [#tpu.dimension_semantics<parallel>], iteration_bounds = array<i64: 2>, scalar_prefetch = 0 : i64, scratch_operands = 0 : i64, tpu.core_type = #tpu.core_type<tc>, window_params = [{transform_indices = @transform_0, window_bounds = array<i64: 8, 32>}, {transform_indices = @transform_1, window_bounds = array<i64: 8, 32>}, {pipeline_mode = #tpu.pipeline_mode<synchronous>, transform_indices = @transform_2, window_bounds = array<i64: 32, 32>}, {pipeline_mode = #tpu.pipeline_mode<synchronous>, transform_indices = @transform_3, window_bounds = array<i64: 1, 32>}, {pipeline_mode = #tpu.pipeline_mode<synchronous>, transform_indices = @transform_4, window_bounds = array<i64: 1, 32>}, {pipeline_mode = #tpu.pipeline_mode<synchronous>, transform_indices = @transform_5, window_bounds = array<i64: 1, 32>}, {transform_indices = @transform_6, window_bounds = array<i64: 8, 32>}]} {
    %c0 = arith.constant 0 : index
    %c0_0 = arith.constant 0 : index
    %0 = vector.load %arg1[%c0, %c0_0] : memref<8x32xbf16, #tpu.memory_space<vmem>>, vector<8x32xbf16>
    %c0_1 = arith.constant 0 : index
    %c0_2 = arith.constant 0 : index
    %1 = vector.load %arg3[%c0_1, %c0_2] : memref<32x32xbf16, #tpu.memory_space<vmem>>, vector<32x32xbf16>
    %cst = arith.constant dense<0.000000e+00> : vector<8x32xf32>
    %2 = tpu.matmul %0, %1, %cst {dimension_numbers = #tpu.dot_dimension_numbers<[1], [0], [0], [1], [0, 0, 1, 1], [], []>} : vector<8x32xbf16>, vector<32x32xbf16>, vector<8x32xf32> -> vector<8x32xf32>
    %c0_3 = arith.constant 0 : index
    %c0_4 = arith.constant 0 : index
    %3 = vector.load %arg4[%c0_3, %c0_4] : memref<1x32xf32, #tpu.memory_space<vmem>>, vector<1x32xf32>
    %4 = vector.broadcast %3 : vector<1x32xf32> to vector<8x32xf32>
    %5 = arith.addf %2, %4 : vector<8x32xf32>
    %c0_5 = arith.constant 0 : index
    %c0_6 = arith.constant 0 : index
    %6 = vector.load %arg2[%c0_5, %c0_6] : memref<8x32xbf16, #tpu.memory_space<vmem>>, vector<8x32xbf16>
    %7 = arith.extf %6 : vector<8x32xbf16> to vector<8x32xf32>
    %8 = arith.addf %7, %5 : vector<8x32xf32>
    %c0_7 = arith.constant 0 : index
    %c0_8 = arith.constant 0 : index
    %9 = vector.load %arg5[%c0_7, %c0_8] : memref<1x32xf32, #tpu.memory_space<vmem>>, vector<1x32xf32>
    %c0_9 = arith.constant 0 : index
    %c0_10 = arith.constant 0 : index
    %10 = vector.load %arg6[%c0_9, %c0_10] : memref<1x32xf32, #tpu.memory_space<vmem>>, vector<1x32xf32>
    %cst_11 = arith.constant dense<0.000000e+00> : vector<8xf32>
    %11 = vector.multi_reduction <add>, %8, %cst_11 [1] : vector<8x32xf32> to vector<8xf32>
    %12 = vector.shape_cast %11 : vector<8xf32> to vector<8x1xf32>
    %cst_12 = arith.constant 3.200000e+01 : f32
    %13 = vector.broadcast %cst_12 : f32 to vector<8x1xf32>
    %14 = arith.divf %12, %13 : vector<8x1xf32>
    %15 = vector.broadcast %14 : vector<8x1xf32> to vector<8x32xf32>
    %16 = arith.subf %8, %15 : vector<8x32xf32>
    %17 = arith.mulf %16, %16 : vector<8x32xf32>
    %cst_13 = arith.constant dense<0.000000e+00> : vector<8xf32>
    %18 = vector.multi_reduction <add>, %17, %cst_13 [1] : vector<8x32xf32> to vector<8xf32>
    %19 = vector.shape_cast %18 : vector<8xf32> to vector<8x1xf32>
    %cst_14 = arith.constant 3.200000e+01 : f32
    %20 = vector.broadcast %cst_14 : f32 to vector<8x1xf32>
    %21 = arith.divf %19, %20 : vector<8x1xf32>
    %22 = vector.broadcast %14 : vector<8x1xf32> to vector<8x32xf32>
    %23 = arith.subf %8, %22 : vector<8x32xf32>
    %cst_15 = arith.constant 9.99999974E-6 : f32
    %24 = vector.broadcast %cst_15 : f32 to vector<8x1xf32>
    %25 = arith.addf %21, %24 : vector<8x1xf32>
    %26 = math.rsqrt %25 : vector<8x1xf32>
    %27 = vector.broadcast %26 : vector<8x1xf32> to vector<8x32xf32>
    %28 = arith.mulf %23, %27 : vector<8x32xf32>
    %29 = vector.broadcast %9 : vector<1x32xf32> to vector<8x32xf32>
    %30 = arith.mulf %28, %29 : vector<8x32xf32>
    %31 = vector.broadcast %10 : vector<1x32xf32> to vector<8x32xf32>
    %32 = arith.addf %30, %31 : vector<8x32xf32>
    %33 = arith.truncf %32 : vector<8x32xf32> to vector<8x32xbf16>
    %c0_16 = arith.constant 0 : index
    %c0_17 = arith.constant 0 : index
    %34 = vector.load %arg7[%c0_16, %c0_17] : memref<8x32xbf16, #tpu.memory_space<vmem>>, vector<8x32xbf16>
    tpu.vector_store %arg7[%c0_16, %c0_17], %33 {strides = array<i32>} : memref<8x32xbf16, #tpu.memory_space<vmem>>, vector<8x32xbf16>,
    return
  }
  func.func @transform_0(%arg0: i32) -> (i32, i32) {
    %c0_i32 = arith.constant 0 : i32
    %c0_i32_0 = arith.constant 0 : i32
    return %arg0, %c0_i32 : i32, i32
  }
  func.func @transform_1(%arg0: i32) -> (i32, i32) {
    %c0_i32 = arith.constant 0 : i32
    %c0_i32_0 = arith.constant 0 : i32
    return %arg0, %c0_i32 : i32, i32
  }
  func.func @transform_2(%arg0: i32) -> (i32, i32) {
    %c0_i32 = arith.constant 0 : i32
    %c0_i32_0 = arith.constant 0 : i32
    %c0_i32_1 = arith.constant 0 : i32
    return %c0_i32, %c0_i32_0 : i32, i32
  }
  func.func @transform_3(%arg0: i32) -> (i32, i32) {
    %c0_i32 = arith.constant 0 : i32
    %c0_i32_0 = arith.constant 0 : i32
    %c0_i32_1 = arith.constant 0 : i32
    return %c0_i32, %c0_i32_0 : i32, i32
  }
  func.func @transform_4(%arg0: i32) -> (i32, i32) {
    %c0_i32 = arith.constant 0 : i32
    %c0_i32_0 = arith.constant 0 : i32
    %c0_i32_1 = arith.constant 0 : i32
    return %c0_i32, %c0_i32_0 : i32, i32
  }
  func.func @transform_5(%arg0: i32) -> (i32, i32) {
    %c0_i32 = arith.constant 0 : i32
    %c0_i32_0 = arith.constant 0 : i32
    %c0_i32_1 = arith.constant 0 : i32
    return %c0_i32, %c0_i32_0 : i32, i32
  }
  func.func @transform_6(%arg0: i32) -> (i32, i32) {
    %c0_i32 = arith.constant 0 : i32
    %c0_i32_0 = arith.constant 0 : i32
    return %arg0, %c0_i32 : i32, i32
  }
}

module attributes {stable_mosaic.version = 11 : i64} {
  func.func @_attn_kernel(%arg0: i32, %arg1: i32, %arg2: memref<1x8x32xbf16, #tpu.memory_space<vmem>>, %arg3: memref<1x8x32xbf16, #tpu.memory_space<vmem>>, %arg4: memref<1x8x32xbf16, #tpu.memory_space<vmem>>, %arg5: memref<1x8x32xbf16, #tpu.memory_space<vmem>>) attributes {dimension_semantics = [#tpu.dimension_semantics<parallel>, #tpu.dimension_semantics<parallel>], iteration_bounds = array<i64: 2, 1>, scalar_prefetch = 0 : i64, scratch_operands = 0 : i64, tpu.core_type = #tpu.core_type<tc>, window_params = [{transform_indices = @transform_0, window_bounds = array<i64: 1, 8, 32>}, {transform_indices = @transform_1, window_bounds = array<i64: 1, 8, 32>}, {transform_indices = @transform_2, window_bounds = array<i64: 1, 8, 32>}, {transform_indices = @transform_3, window_bounds = array<i64: 1, 8, 32>}]} {
    %c0 = arith.constant 0 : index
    %c0_0 = arith.constant 0 : index
    %c0_1 = arith.constant 0 : index
    %0 = vector.load %arg2[%c0, %c0_0, %c0_1] : memref<1x8x32xbf16, #tpu.memory_space<vmem>>, vector<1x8x32xbf16>
    %1 = vector.shape_cast %0 : vector<1x8x32xbf16> to vector<8x32xbf16>
    %c0_2 = arith.constant 0 : index
    %c0_3 = arith.constant 0 : index
    %c0_4 = arith.constant 0 : index
    %2 = vector.load %arg3[%c0_2, %c0_3, %c0_4] : memref<1x8x32xbf16, #tpu.memory_space<vmem>>, vector<1x8x32xbf16>
    %3 = vector.shape_cast %2 : vector<1x8x32xbf16> to vector<8x32xbf16>
    %cst = arith.constant dense<0.000000e+00> : vector<8x8xf32>
    %4 = tpu.matmul %1, %3, %cst {dimension_numbers = #tpu.dot_dimension_numbers<[1], [1], [0], [0], [0, 0, 1, 0], [], []>} : vector<8x32xbf16>, vector<8x32xbf16>, vector<8x8xf32> -> vector<8x8xf32>
    %5 = tpu.iota {dimensions = array<i32: 1>} : vector<8x8xi32>
    %c6_i32 = arith.constant 6 : i32
    %6 = vector.broadcast %c6_i32 : i32 to vector<8x8xi32>
    %7 = arith.cmpi slt, %5, %6 : vector<8x8xi32>
    %cst_5 = arith.constant -1.000000e+30 : f32
    %8 = vector.broadcast %cst_5 : f32 to vector<8x8xf32>
    %9 = arith.select %7, %4, %8 : vector<8x8xi1>, vector<8x8xf32>
    %cst_6 = arith.constant dense<0xFF800000> : vector<8xf32>
    %10 = vector.multi_reduction <maximumf>, %9, %cst_6 [1] : vector<8x8xf32> to vector<8xf32>
    %11 = vector.shape_cast %10 : vector<8xf32> to vector<8x1xf32>
    %12 = vector.broadcast %11 : vector<8x1xf32> to vector<8x8xf32>
    %13 = arith.subf %9, %12 : vector<8x8xf32>
    %14 = math.exp %13 : vector<8x8xf32>
    %cst_7 = arith.constant dense<0.000000e+00> : vector<8xf32>
    %15 = vector.multi_reduction <add>, %14, %cst_7 [1] : vector<8x8xf32> to vector<8xf32>
    %16 = vector.shape_cast %15 : vector<8xf32> to vector<8x1xf32>
    %17 = arith.truncf %14 : vector<8x8xf32> to vector<8x8xbf16>
    %c0_8 = arith.constant 0 : index
    %c0_9 = arith.constant 0 : index
    %c0_10 = arith.constant 0 : index
    %18 = vector.load %arg4[%c0_8, %c0_9, %c0_10] : memref<1x8x32xbf16, #tpu.memory_space<vmem>>, vector<1x8x32xbf16>
    %19 = vector.shape_cast %18 : vector<1x8x32xbf16> to vector<8x32xbf16>
    %cst_11 = arith.constant dense<0.000000e+00> : vector<8x32xf32>
    %20 = tpu.matmul %17, %19, %cst_11 {dimension_numbers = #tpu.dot_dimension_numbers<[1], [0], [0], [1], [0, 0, 1, 1], [], []>} : vector<8x8xbf16>, vector<8x32xbf16>, vector<8x32xf32> -> vector<8x32xf32>
    %21 = tpu.reciprocal %16 {approx = true} : vector<8x1xf32> -> vector<8x1xf32>
    %22 = vector.broadcast %21 : vector<8x1xf32> to vector<8x32xf32>
    %23 = arith.mulf %20, %22 : vector<8x32xf32>
    %24 = arith.truncf %23 : vector<8x32xf32> to vector<8x32xbf16>
    %c0_12 = arith.constant 0 : index
    %c0_13 = arith.constant 0 : index
    %c0_14 = arith.constant 0 : index
    %25 = vector.load %arg5[%c0_12, %c0_13, %c0_14] : memref<1x8x32xbf16, #tpu.memory_space<vmem>>, vector<1x8x32xbf16>
    %26 = vector.shape_cast %25 : vector<1x8x32xbf16> to vector<8x32xbf16>
    %27 = vector.shape_cast %24 : vector<8x32xbf16> to vector<1x8x32xbf16>
    tpu.vector_store %arg5[%c0_12, %c0_13, %c0_14], %27 {strides = array<i32>} : memref<1x8x32xbf16, #tpu.memory_space<vmem>>, vector<1x8x32xbf16>,
    return
  }
  func.func @transform_0(%arg0: i32, %arg1: i32) -> (i32, i32, i32) {
    %c0_i32 = arith.constant 0 : i32
    %c0_i32_0 = arith.constant 0 : i32
    return %arg0, %arg1, %c0_i32 : i32, i32, i32
  }
  func.func @transform_1(%arg0: i32, %arg1: i32) -> (i32, i32, i32) {
    %c0_i32 = arith.constant 0 : i32
    %c0_i32_0 = arith.constant 0 : i32
    %c0_i32_1 = arith.constant 0 : i32
    return %arg0, %c0_i32, %c0_i32_0 : i32, i32, i32
  }
  func.func @transform_2(%arg0: i32, %arg1: i32) -> (i32, i32, i32) {
    %c0_i32 = arith.constant 0 : i32
    %c0_i32_0 = arith.constant 0 : i32
    %c0_i32_1 = arith.constant 0 : i32
    return %arg0, %c0_i32, %c0_i32_0 : i32, i32, i32
  }
  func.func @transform_3(%arg0: i32, %arg1: i32) -> (i32, i32, i32) {
    %c0_i32 = arith.constant 0 : i32
    %c0_i32_0 = arith.constant 0 : i32
    return %arg0, %arg1, %c0_i32 : i32, i32, i32
  }
}

module attributes {stable_mosaic.version = 11 : i64} {
  func.func @_conv_kernel(%arg0: i32, %arg1: i32, %arg2: memref<1x24x24xbf16, #tpu.memory_space<vmem>>, %arg3: memref<24x32xbf16, #tpu.memory_space<vmem>>, %arg4: memref<1x32xf32, #tpu.memory_space<vmem>>, %arg5: memref<1x24x32xbf16, #tpu.memory_space<vmem>>) attributes {dimension_semantics = [#tpu.dimension_semantics<parallel>, #tpu.dimension_semantics<parallel>], iteration_bounds = array<i64: 2, 1>, scalar_prefetch = 0 : i64, scratch_operands = 0 : i64, tpu.core_type = #tpu.core_type<tc>, window_params = [{transform_indices = @transform_0, window_bounds = array<i64: 1, 24, 24>}, {pipeline_mode = #tpu.pipeline_mode<synchronous>, transform_indices = @transform_1, window_bounds = array<i64: 24, 32>}, {pipeline_mode = #tpu.pipeline_mode<synchronous>, transform_indices = @transform_2, window_bounds = array<i64: 1, 32>}, {transform_indices = @transform_3, window_bounds = array<i64: 1, 24, 32>}]} {
    %c0 = arith.constant 0 : index
    %c0_0 = arith.constant 0 : index
    %c0_1 = arith.constant 0 : index
    %0 = vector.load %arg2[%c0, %c0_0, %c0_1] : memref<1x24x24xbf16, #tpu.memory_space<vmem>>, vector<1x24x24xbf16>
    %1 = vector.shape_cast %0 : vector<1x24x24xbf16> to vector<24x24xbf16>
    %c0_2 = arith.constant 0 : index
    %c0_3 = arith.constant 0 : index
    %2 = vector.load %arg3[%c0_2, %c0_3] : memref<24x32xbf16, #tpu.memory_space<vmem>>, vector<24x32xbf16>
    %cst = arith.constant dense<0.000000e+00> : vector<24x32xf32>
    %3 = tpu.matmul %1, %2, %cst {dimension_numbers = #tpu.dot_dimension_numbers<[1], [0], [0], [1], [0, 0, 1, 1], [], []>} : vector<24x24xbf16>, vector<24x32xbf16>, vector<24x32xf32> -> vector<24x32xf32>
    %c0_4 = arith.constant 0 : index
    %c0_5 = arith.constant 0 : index
    %4 = vector.load %arg4[%c0_4, %c0_5] : memref<1x32xf32, #tpu.memory_space<vmem>>, vector<1x32xf32>
    %5 = vector.broadcast %4 : vector<1x32xf32> to vector<24x32xf32>
    %6 = arith.addf %3, %5 : vector<24x32xf32>
    %7 = arith.truncf %6 : vector<24x32xf32> to vector<24x32xbf16>
    %c0_6 = arith.constant 0 : index
    %c0_7 = arith.constant 0 : index
    %c0_8 = arith.constant 0 : index
    %8 = vector.load %arg5[%c0_6, %c0_7, %c0_8] : memref<1x24x32xbf16, #tpu.memory_space<vmem>>, vector<1x24x32xbf16>
    %9 = vector.shape_cast %8 : vector<1x24x32xbf16> to vector<24x32xbf16>
    %10 = vector.shape_cast %7 : vector<24x32xbf16> to vector<1x24x32xbf16>
    tpu.vector_store %arg5[%c0_6, %c0_7, %c0_8], %10 {strides = array<i32>} : memref<1x24x32xbf16, #tpu.memory_space<vmem>>, vector<1x24x32xbf16>,
    return
  }
  func.func @transform_0(%arg0: i32, %arg1: i32) -> (i32, i32, i32) {
    %c0_i32 = arith.constant 0 : i32
    %c0_i32_0 = arith.constant 0 : i32
    return %arg0, %arg1, %c0_i32 : i32, i32, i32
  }
  func.func @transform_1(%arg0: i32, %arg1: i32) -> (i32, i32) {
    %c0_i32 = arith.constant 0 : i32
    %c0_i32_0 = arith.constant 0 : i32
    %c0_i32_1 = arith.constant 0 : i32
    return %c0_i32, %c0_i32_0 : i32, i32
  }
  func.func @transform_2(%arg0: i32, %arg1: i32) -> (i32, i32) {
    %c0_i32 = arith.constant 0 : i32
    %c0_i32_0 = arith.constant 0 : i32
    %c0_i32_1 = arith.constant 0 : i32
    return %c0_i32, %c0_i32_0 : i32, i32
  }
  func.func @transform_3(%arg0: i32, %arg1: i32) -> (i32, i32, i32) {
    %c0_i32 = arith.constant 0 : i32
    %c0_i32_0 = arith.constant 0 : i32
    return %arg0, %arg1, %c0_i32 : i32, i32, i32
  }
}

module attributes {stable_mosaic.version = 11 : i64} {
  func.func @_conv_pos_kernel(%arg0: i32, %arg1: i32, %arg2: memref<1x16x96xbf16, #tpu.memory_space<vmem>>, %arg3: memref<96x32xbf16, #tpu.memory_space<vmem>>, %arg4: memref<1x32xf32, #tpu.memory_space<vmem>>, %arg5: memref<16x32xf32, #tpu.memory_space<vmem>>, %arg6: memref<1x16x32xbf16, #tpu.memory_space<vmem>>) attributes {dimension_semantics = [#tpu.dimension_semantics<parallel>, #tpu.dimension_semantics<parallel>], iteration_bounds = array<i64: 2, 1>, scalar_prefetch = 0 : i64, scratch_operands = 0 : i64, tpu.core_type = #tpu.core_type<tc>, window_params = [{transform_indices = @transform_0, window_bounds = array<i64: 1, 16, 96>}, {pipeline_mode = #tpu.pipeline_mode<synchronous>, transform_indices = @transform_1, window_bounds = array<i64: 96, 32>}, {pipeline_mode = #tpu.pipeline_mode<synchronous>, transform_indices = @transform_2, window_bounds = array<i64: 1, 32>}, {transform_indices = @transform_3, window_bounds = array<i64: 16, 32>}, {transform_indices = @transform_4, window_bounds = array<i64: 1, 16, 32>}]} {
    %c0 = arith.constant 0 : index
    %c0_0 = arith.constant 0 : index
    %c0_1 = arith.constant 0 : index
    %0 = vector.load %arg2[%c0, %c0_0, %c0_1] : memref<1x16x96xbf16, #tpu.memory_space<vmem>>, vector<1x16x96xbf16>
    %1 = vector.shape_cast %0 : vector<1x16x96xbf16> to vector<16x96xbf16>
    %c0_2 = arith.constant 0 : index
    %c0_3 = arith.constant 0 : index
    %2 = vector.load %arg3[%c0_2, %c0_3] : memref<96x32xbf16, #tpu.memory_space<vmem>>, vector<96x32xbf16>
    %cst = arith.constant dense<0.000000e+00> : vector<16x32xf32>
    %3 = tpu.matmul %1, %2, %cst {dimension_numbers = #tpu.dot_dimension_numbers<[1], [0], [0], [1], [0, 0, 1, 1], [], []>} : vector<16x96xbf16>, vector<96x32xbf16>, vector<16x32xf32> -> vector<16x32xf32>
    %c0_4 = arith.constant 0 : index
    %c0_5 = arith.constant 0 : index
    %4 = vector.load %arg4[%c0_4, %c0_5] : memref<1x32xf32, #tpu.memory_space<vmem>>, vector<1x32xf32>
    %5 = vector.broadcast %4 : vector<1x32xf32> to vector<16x32xf32>
    %6 = arith.addf %3, %5 : vector<16x32xf32>
    %c0_6 = arith.constant 0 : index
    %c0_7 = arith.constant 0 : index
    %7 = vector.load %arg5[%c0_6, %c0_7] : memref<16x32xf32, #tpu.memory_space<vmem>>, vector<16x32xf32>
    %8 = arith.addf %6, %7 : vector<16x32xf32>
    %9 = arith.truncf %8 : vector<16x32xf32> to vector<16x32xbf16>
    %c0_8 = arith.constant 0 : index
    %c0_9 = arith.constant 0 : index
    %c0_10 = arith.constant 0 : index
    %10 = vector.load %arg6[%c0_8, %c0_9, %c0_10] : memref<1x16x32xbf16, #tpu.memory_space<vmem>>, vector<1x16x32xbf16>
    %11 = vector.shape_cast %10 : vector<1x16x32xbf16> to vector<16x32xbf16>
    %12 = vector.shape_cast %9 : vector<16x32xbf16> to vector<1x16x32xbf16>
    tpu.vector_store %arg6[%c0_8, %c0_9, %c0_10], %12 {strides = array<i32>} : memref<1x16x32xbf16, #tpu.memory_space<vmem>>, vector<1x16x32xbf16>,
    return
  }
  func.func @transform_0(%arg0: i32, %arg1: i32) -> (i32, i32, i32) {
    %c0_i32 = arith.constant 0 : i32
    %c0_i32_0 = arith.constant 0 : i32
    return %arg0, %arg1, %c0_i32 : i32, i32, i32
  }
  func.func @transform_1(%arg0: i32, %arg1: i32) -> (i32, i32) {
    %c0_i32 = arith.constant 0 : i32
    %c0_i32_0 = arith.constant 0 : i32
    %c0_i32_1 = arith.constant 0 : i32
    return %c0_i32, %c0_i32_0 : i32, i32
  }
  func.func @transform_2(%arg0: i32, %arg1: i32) -> (i32, i32) {
    %c0_i32 = arith.constant 0 : i32
    %c0_i32_0 = arith.constant 0 : i32
    %c0_i32_1 = arith.constant 0 : i32
    return %c0_i32, %c0_i32_0 : i32, i32
  }
  func.func @transform_3(%arg0: i32, %arg1: i32) -> (i32, i32) {
    %c0_i32 = arith.constant 0 : i32
    %c0_i32_0 = arith.constant 0 : i32
    return %arg1, %c0_i32 : i32, i32
  }
  func.func @transform_4(%arg0: i32, %arg1: i32) -> (i32, i32, i32) {
    %c0_i32 = arith.constant 0 : i32
    %c0_i32_0 = arith.constant 0 : i32
    return %arg0, %arg1, %c0_i32 : i32, i32, i32
  }
}

module attributes {stable_mosaic.version = 11 : i64} {
  func.func @_qkv_kernel(%arg0: i32, %arg1: memref<16x32xbf16, #tpu.memory_space<vmem>>, %arg2: memref<32x32xbf16, #tpu.memory_space<vmem>>, %arg3: memref<1x32xf32, #tpu.memory_space<vmem>>, %arg4: memref<32x32xbf16, #tpu.memory_space<vmem>>, %arg5: memref<32x32xbf16, #tpu.memory_space<vmem>>, %arg6: memref<1x32xf32, #tpu.memory_space<vmem>>, %arg7: memref<16x32xbf16, #tpu.memory_space<vmem>>, %arg8: memref<16x32xbf16, #tpu.memory_space<vmem>>, %arg9: memref<16x32xbf16, #tpu.memory_space<vmem>>) attributes {dimension_semantics = [#tpu.dimension_semantics<parallel>], iteration_bounds = array<i64: 2>, scalar_prefetch = 0 : i64, scratch_operands = 0 : i64, tpu.core_type = #tpu.core_type<tc>, window_params = [{transform_indices = @transform_0, window_bounds = array<i64: 16, 32>}, {pipeline_mode = #tpu.pipeline_mode<synchronous>, transform_indices = @transform_1, window_bounds = array<i64: 32, 32>}, {pipeline_mode = #tpu.pipeline_mode<synchronous>, transform_indices = @transform_2, window_bounds = array<i64: 1, 32>}, {pipeline_mode = #tpu.pipeline_mode<synchronous>, transform_indices = @transform_3, window_bounds = array<i64: 32, 32>}, {pipeline_mode = #tpu.pipeline_mode<synchronous>, transform_indices = @transform_4, window_bounds = array<i64: 32, 32>}, {pipeline_mode = #tpu.pipeline_mode<synchronous>, transform_indices = @transform_5, window_bounds = array<i64: 1, 32>}, {transform_indices = @transform_6, window_bounds = array<i64: 16, 32>}, {transform_indices = @transform_7, window_bounds = array<i64: 16, 32>}, {transform_indices = @transform_8, window_bounds = array<i64: 16, 32>}]} {
    %c0 = arith.constant 0 : index
    %c0_0 = arith.constant 0 : index
    %0 = vector.load %arg1[%c0, %c0_0] : memref<16x32xbf16, #tpu.memory_space<vmem>>, vector<16x32xbf16>
    %c0_1 = arith.constant 0 : index
    %c0_2 = arith.constant 0 : index
    %1 = vector.load %arg2[%c0_1, %c0_2] : memref<32x32xbf16, #tpu.memory_space<vmem>>, vector<32x32xbf16>
    %cst = arith.constant dense<0.000000e+00> : vector<16x32xf32>
    %2 = tpu.matmul %0, %1, %cst {dimension_numbers = #tpu.dot_dimension_numbers<[1], [0], [0], [1], [0, 0, 1, 1], [], []>} : vector<16x32xbf16>, vector<32x32xbf16>, vector<16x32xf32> -> vector<16x32xf32>
    %c0_3 = arith.constant 0 : index
    %c0_4 = arith.constant 0 : index
    %3 = vector.load %arg3[%c0_3, %c0_4] : memref<1x32xf32, #tpu.memory_space<vmem>>, vector<1x32xf32>
    %4 = vector.broadcast %3 : vector<1x32xf32> to vector<16x32xf32>
    %5 = arith.addf %2, %4 : vector<16x32xf32>
    %cst_5 = arith.constant 0.176776692 : f32
    %6 = vector.broadcast %cst_5 : f32 to vector<16x32xf32>
    %7 = arith.mulf %5, %6 : vector<16x32xf32>
    %c0_6 = arith.constant 0 : index
    %c0_7 = arith.constant 0 : index
    %8 = vector.load %arg4[%c0_6, %c0_7] : memref<32x32xbf16, #tpu.memory_space<vmem>>, vector<32x32xbf16>
    %cst_8 = arith.constant dense<0.000000e+00> : vector<16x32xf32>
    %9 = tpu.matmul %0, %8, %cst_8 {dimension_numbers = #tpu.dot_dimension_numbers<[1], [0], [0], [1], [0, 0, 1, 1], [], []>} : vector<16x32xbf16>, vector<32x32xbf16>, vector<16x32xf32> -> vector<16x32xf32>
    %c0_9 = arith.constant 0 : index
    %c0_10 = arith.constant 0 : index
    %10 = vector.load %arg5[%c0_9, %c0_10] : memref<32x32xbf16, #tpu.memory_space<vmem>>, vector<32x32xbf16>
    %cst_11 = arith.constant dense<0.000000e+00> : vector<16x32xf32>
    %11 = tpu.matmul %0, %10, %cst_11 {dimension_numbers = #tpu.dot_dimension_numbers<[1], [0], [0], [1], [0, 0, 1, 1], [], []>} : vector<16x32xbf16>, vector<32x32xbf16>, vector<16x32xf32> -> vector<16x32xf32>
    %c0_12 = arith.constant 0 : index
    %c0_13 = arith.constant 0 : index
    %12 = vector.load %arg6[%c0_12, %c0_13] : memref<1x32xf32, #tpu.memory_space<vmem>>, vector<1x32xf32>
    %13 = vector.broadcast %12 : vector<1x32xf32> to vector<16x32xf32>
    %14 = arith.addf %11, %13 : vector<16x32xf32>
    %15 = arith.truncf %7 : vector<16x32xf32> to vector<16x32xbf16>
    %c0_14 = arith.constant 0 : index
    %c0_15 = arith.constant 0 : index
    %16 = vector.load %arg7[%c0_14, %c0_15] : memref<16x32xbf16, #tpu.memory_space<vmem>>, vector<16x32xbf16>
    tpu.vector_store %arg7[%c0_14, %c0_15], %15 {strides = array<i32>} : memref<16x32xbf16, #tpu.memory_space<vmem>>, vector<16x32xbf16>,
    %17 = arith.truncf %9 : vector<16x32xf32> to vector<16x32xbf16>
    %c0_16 = arith.constant 0 : index
    %c0_17 = arith.constant 0 : index
    %18 = vector.load %arg8[%c0_16, %c0_17] : memref<16x32xbf16, #tpu.memory_space<vmem>>, vector<16x32xbf16>
    tpu.vector_store %arg8[%c0_16, %c0_17], %17 {strides = array<i32>} : memref<16x32xbf16, #tpu.memory_space<vmem>>, vector<16x32xbf16>,
    %19 = arith.truncf %14 : vector<16x32xf32> to vector<16x32xbf16>
    %c0_18 = arith.constant 0 : index
    %c0_19 = arith.constant 0 : index
    %20 = vector.load %arg9[%c0_18, %c0_19] : memref<16x32xbf16, #tpu.memory_space<vmem>>, vector<16x32xbf16>
    tpu.vector_store %arg9[%c0_18, %c0_19], %19 {strides = array<i32>} : memref<16x32xbf16, #tpu.memory_space<vmem>>, vector<16x32xbf16>,
    return
  }
  func.func @transform_0(%arg0: i32) -> (i32, i32) {
    %c0_i32 = arith.constant 0 : i32
    %c0_i32_0 = arith.constant 0 : i32
    return %arg0, %c0_i32 : i32, i32
  }
  func.func @transform_1(%arg0: i32) -> (i32, i32) {
    %c0_i32 = arith.constant 0 : i32
    %c0_i32_0 = arith.constant 0 : i32
    %c0_i32_1 = arith.constant 0 : i32
    return %c0_i32, %c0_i32_0 : i32, i32
  }
  func.func @transform_2(%arg0: i32) -> (i32, i32) {
    %c0_i32 = arith.constant 0 : i32
    %c0_i32_0 = arith.constant 0 : i32
    %c0_i32_1 = arith.constant 0 : i32
    return %c0_i32, %c0_i32_0 : i32, i32
  }
  func.func @transform_3(%arg0: i32) -> (i32, i32) {
    %c0_i32 = arith.constant 0 : i32
    %c0_i32_0 = arith.constant 0 : i32
    %c0_i32_1 = arith.constant 0 : i32
    return %c0_i32, %c0_i32_0 : i32, i32
  }
  func.func @transform_4(%arg0: i32) -> (i32, i32) {
    %c0_i32 = arith.constant 0 : i32
    %c0_i32_0 = arith.constant 0 : i32
    %c0_i32_1 = arith.constant 0 : i32
    return %c0_i32, %c0_i32_0 : i32, i32
  }
  func.func @transform_5(%arg0: i32) -> (i32, i32) {
    %c0_i32 = arith.constant 0 : i32
    %c0_i32_0 = arith.constant 0 : i32
    %c0_i32_1 = arith.constant 0 : i32
    return %c0_i32, %c0_i32_0 : i32, i32
  }
  func.func @transform_6(%arg0: i32) -> (i32, i32) {
    %c0_i32 = arith.constant 0 : i32
    %c0_i32_0 = arith.constant 0 : i32
    return %arg0, %c0_i32 : i32, i32
  }
  func.func @transform_7(%arg0: i32) -> (i32, i32) {
    %c0_i32 = arith.constant 0 : i32
    %c0_i32_0 = arith.constant 0 : i32
    return %arg0, %c0_i32 : i32, i32
  }
  func.func @transform_8(%arg0: i32) -> (i32, i32) {
    %c0_i32 = arith.constant 0 : i32
    %c0_i32_0 = arith.constant 0 : i32
    return %arg0, %c0_i32 : i32, i32
  }
}

module attributes {stable_mosaic.version = 11 : i64} {
  func.func @_attn_kernel(%arg0: i32, %arg1: i32, %arg2: memref<1x16x32xbf16, #tpu.memory_space<vmem>>, %arg3: memref<1x16x32xbf16, #tpu.memory_space<vmem>>, %arg4: memref<1x16x32xbf16, #tpu.memory_space<vmem>>, %arg5: memref<1x16x32xbf16, #tpu.memory_space<vmem>>) attributes {dimension_semantics = [#tpu.dimension_semantics<parallel>, #tpu.dimension_semantics<parallel>], iteration_bounds = array<i64: 2, 1>, scalar_prefetch = 0 : i64, scratch_operands = 0 : i64, tpu.core_type = #tpu.core_type<tc>, window_params = [{transform_indices = @transform_0, window_bounds = array<i64: 1, 16, 32>}, {transform_indices = @transform_1, window_bounds = array<i64: 1, 16, 32>}, {transform_indices = @transform_2, window_bounds = array<i64: 1, 16, 32>}, {transform_indices = @transform_3, window_bounds = array<i64: 1, 16, 32>}]} {
    %c0 = arith.constant 0 : index
    %c0_0 = arith.constant 0 : index
    %c0_1 = arith.constant 0 : index
    %0 = vector.load %arg2[%c0, %c0_0, %c0_1] : memref<1x16x32xbf16, #tpu.memory_space<vmem>>, vector<1x16x32xbf16>
    %1 = vector.shape_cast %0 : vector<1x16x32xbf16> to vector<16x32xbf16>
    %c0_2 = arith.constant 0 : index
    %c0_3 = arith.constant 0 : index
    %c0_4 = arith.constant 0 : index
    %2 = vector.load %arg3[%c0_2, %c0_3, %c0_4] : memref<1x16x32xbf16, #tpu.memory_space<vmem>>, vector<1x16x32xbf16>
    %3 = vector.shape_cast %2 : vector<1x16x32xbf16> to vector<16x32xbf16>
    %cst = arith.constant dense<0.000000e+00> : vector<16x16xf32>
    %4 = tpu.matmul %1, %3, %cst {dimension_numbers = #tpu.dot_dimension_numbers<[1], [1], [0], [0], [0, 0, 1, 0], [], []>} : vector<16x32xbf16>, vector<16x32xbf16>, vector<16x16xf32> -> vector<16x16xf32>
    %5 = tpu.iota {dimensions = array<i32: 1>} : vector<16x16xi32>
    %c10_i32 = arith.constant 10 : i32
    %6 = vector.broadcast %c10_i32 : i32 to vector<16x16xi32>
    %7 = arith.cmpi slt, %5, %6 : vector<16x16xi32>
    %cst_5 = arith.constant -1.000000e+30 : f32
    %8 = vector.broadcast %cst_5 : f32 to vector<16x16xf32>
    %9 = arith.select %7, %4, %8 : vector<16x16xi1>, vector<16x16xf32>
    %cst_6 = arith.constant dense<0xFF800000> : vector<16xf32>
    %10 = vector.multi_reduction <maximumf>, %9, %cst_6 [1] : vector<16x16xf32> to vector<16xf32>
    %11 = vector.shape_cast %10 : vector<16xf32> to vector<16x1xf32>
    %12 = vector.broadcast %11 : vector<16x1xf32> to vector<16x16xf32>
    %13 = arith.subf %9, %12 : vector<16x16xf32>
    %14 = math.exp %13 : vector<16x16xf32>
    %cst_7 = arith.constant dense<0.000000e+00> : vector<16xf32>
    %15 = vector.multi_reduction <add>, %14, %cst_7 [1] : vector<16x16xf32> to vector<16xf32>
    %16 = vector.shape_cast %15 : vector<16xf32> to vector<16x1xf32>
    %17 = arith.truncf %14 : vector<16x16xf32> to vector<16x16xbf16>
    %c0_8 = arith.constant 0 : index
    %c0_9 = arith.constant 0 : index
    %c0_10 = arith.constant 0 : index
    %18 = vector.load %arg4[%c0_8, %c0_9, %c0_10] : memref<1x16x32xbf16, #tpu.memory_space<vmem>>, vector<1x16x32xbf16>
    %19 = vector.shape_cast %18 : vector<1x16x32xbf16> to vector<16x32xbf16>
    %cst_11 = arith.constant dense<0.000000e+00> : vector<16x32xf32>
    %20 = tpu.matmul %17, %19, %cst_11 {dimension_numbers = #tpu.dot_dimension_numbers<[1], [0], [0], [1], [0, 0, 1, 1], [], []>} : vector<16x16xbf16>, vector<16x32xbf16>, vector<16x32xf32> -> vector<16x32xf32>
    %21 = tpu.reciprocal %16 {approx = true} : vector<16x1xf32> -> vector<16x1xf32>
    %22 = vector.broadcast %21 : vector<16x1xf32> to vector<16x32xf32>
    %23 = arith.mulf %20, %22 : vector<16x32xf32>
    %24 = arith.truncf %23 : vector<16x32xf32> to vector<16x32xbf16>
    %c0_12 = arith.constant 0 : index
    %c0_13 = arith.constant 0 : index
    %c0_14 = arith.constant 0 : index
    %25 = vector.load %arg5[%c0_12, %c0_13, %c0_14] : memref<1x16x32xbf16, #tpu.memory_space<vmem>>, vector<1x16x32xbf16>
    %26 = vector.shape_cast %25 : vector<1x16x32xbf16> to vector<16x32xbf16>
    %27 = vector.shape_cast %24 : vector<16x32xbf16> to vector<1x16x32xbf16>
    tpu.vector_store %arg5[%c0_12, %c0_13, %c0_14], %27 {strides = array<i32>} : memref<1x16x32xbf16, #tpu.memory_space<vmem>>, vector<1x16x32xbf16>,
    return
  }
  func.func @transform_0(%arg0: i32, %arg1: i32) -> (i32, i32, i32) {
    %c0_i32 = arith.constant 0 : i32
    %c0_i32_0 = arith.constant 0 : i32
    return %arg0, %arg1, %c0_i32 : i32, i32, i32
  }
  func.func @transform_1(%arg0: i32, %arg1: i32) -> (i32, i32, i32) {
    %c0_i32 = arith.constant 0 : i32
    %c0_i32_0 = arith.constant 0 : i32
    %c0_i32_1 = arith.constant 0 : i32
    return %arg0, %c0_i32, %c0_i32_0 : i32, i32, i32
  }
  func.func @transform_2(%arg0: i32, %arg1: i32) -> (i32, i32, i32) {
    %c0_i32 = arith.constant 0 : i32
    %c0_i32_0 = arith.constant 0 : i32
    %c0_i32_1 = arith.constant 0 : i32
    return %arg0, %c0_i32, %c0_i32_0 : i32, i32, i32
  }
  func.func @transform_3(%arg0: i32, %arg1: i32) -> (i32, i32, i32) {
    %c0_i32 = arith.constant 0 : i32
    %c0_i32_0 = arith.constant 0 : i32
    return %arg0, %arg1, %c0_i32 : i32, i32, i32
  }
}

module attributes {stable_mosaic.version = 11 : i64} {
  func.func @_attn_out_kernel(%arg0: i32, %arg1: memref<16x32xbf16, #tpu.memory_space<vmem>>, %arg2: memref<16x32xbf16, #tpu.memory_space<vmem>>, %arg3: memref<32x32xbf16, #tpu.memory_space<vmem>>, %arg4: memref<1x32xf32, #tpu.memory_space<vmem>>, %arg5: memref<1x32xf32, #tpu.memory_space<vmem>>, %arg6: memref<1x32xf32, #tpu.memory_space<vmem>>, %arg7: memref<16x32xbf16, #tpu.memory_space<vmem>>) attributes {dimension_semantics = [#tpu.dimension_semantics<parallel>], iteration_bounds = array<i64: 2>, scalar_prefetch = 0 : i64, scratch_operands = 0 : i64, tpu.core_type = #tpu.core_type<tc>, window_params = [{transform_indices = @transform_0, window_bounds = array<i64: 16, 32>}, {transform_indices = @transform_1, window_bounds = array<i64: 16, 32>}, {pipeline_mode = #tpu.pipeline_mode<synchronous>, transform_indices = @transform_2, window_bounds = array<i64: 32, 32>}, {pipeline_mode = #tpu.pipeline_mode<synchronous>, transform_indices = @transform_3, window_bounds = array<i64: 1, 32>}, {pipeline_mode = #tpu.pipeline_mode<synchronous>, transform_indices = @transform_4, window_bounds = array<i64: 1, 32>}, {pipeline_mode = #tpu.pipeline_mode<synchronous>, transform_indices = @transform_5, window_bounds = array<i64: 1, 32>}, {transform_indices = @transform_6, window_bounds = array<i64: 16, 32>}]} {
    %c0 = arith.constant 0 : index
    %c0_0 = arith.constant 0 : index
    %0 = vector.load %arg1[%c0, %c0_0] : memref<16x32xbf16, #tpu.memory_space<vmem>>, vector<16x32xbf16>
    %c0_1 = arith.constant 0 : index
    %c0_2 = arith.constant 0 : index
    %1 = vector.load %arg3[%c0_1, %c0_2] : memref<32x32xbf16, #tpu.memory_space<vmem>>, vector<32x32xbf16>
    %cst = arith.constant dense<0.000000e+00> : vector<16x32xf32>
    %2 = tpu.matmul %0, %1, %cst {dimension_numbers = #tpu.dot_dimension_numbers<[1], [0], [0], [1], [0, 0, 1, 1], [], []>} : vector<16x32xbf16>, vector<32x32xbf16>, vector<16x32xf32> -> vector<16x32xf32>
    %c0_3 = arith.constant 0 : index
    %c0_4 = arith.constant 0 : index
    %3 = vector.load %arg4[%c0_3, %c0_4] : memref<1x32xf32, #tpu.memory_space<vmem>>, vector<1x32xf32>
    %4 = vector.broadcast %3 : vector<1x32xf32> to vector<16x32xf32>
    %5 = arith.addf %2, %4 : vector<16x32xf32>
    %c0_5 = arith.constant 0 : index
    %c0_6 = arith.constant 0 : index
    %6 = vector.load %arg2[%c0_5, %c0_6] : memref<16x32xbf16, #tpu.memory_space<vmem>>, vector<16x32xbf16>
    %7 = arith.extf %6 : vector<16x32xbf16> to vector<16x32xf32>
    %8 = arith.addf %7, %5 : vector<16x32xf32>
    %c0_7 = arith.constant 0 : index
    %c0_8 = arith.constant 0 : index
    %9 = vector.load %arg5[%c0_7, %c0_8] : memref<1x32xf32, #tpu.memory_space<vmem>>, vector<1x32xf32>
    %c0_9 = arith.constant 0 : index
    %c0_10 = arith.constant 0 : index
    %10 = vector.load %arg6[%c0_9, %c0_10] : memref<1x32xf32, #tpu.memory_space<vmem>>, vector<1x32xf32>
    %cst_11 = arith.constant dense<0.000000e+00> : vector<16xf32>
    %11 = vector.multi_reduction <add>, %8, %cst_11 [1] : vector<16x32xf32> to vector<16xf32>
    %12 = vector.shape_cast %11 : vector<16xf32> to vector<16x1xf32>
    %cst_12 = arith.constant 3.200000e+01 : f32
    %13 = vector.broadcast %cst_12 : f32 to vector<16x1xf32>
    %14 = arith.divf %12, %13 : vector<16x1xf32>
    %15 = vector.broadcast %14 : vector<16x1xf32> to vector<16x32xf32>
    %16 = arith.subf %8, %15 : vector<16x32xf32>
    %17 = arith.mulf %16, %16 : vector<16x32xf32>
    %cst_13 = arith.constant dense<0.000000e+00> : vector<16xf32>
    %18 = vector.multi_reduction <add>, %17, %cst_13 [1] : vector<16x32xf32> to vector<16xf32>
    %19 = vector.shape_cast %18 : vector<16xf32> to vector<16x1xf32>
    %cst_14 = arith.constant 3.200000e+01 : f32
    %20 = vector.broadcast %cst_14 : f32 to vector<16x1xf32>
    %21 = arith.divf %19, %20 : vector<16x1xf32>
    %22 = vector.broadcast %14 : vector<16x1xf32> to vector<16x32xf32>
    %23 = arith.subf %8, %22 : vector<16x32xf32>
    %cst_15 = arith.constant 9.99999974E-6 : f32
    %24 = vector.broadcast %cst_15 : f32 to vector<16x1xf32>
    %25 = arith.addf %21, %24 : vector<16x1xf32>
    %26 = math.rsqrt %25 : vector<16x1xf32>
    %27 = vector.broadcast %26 : vector<16x1xf32> to vector<16x32xf32>
    %28 = arith.mulf %23, %27 : vector<16x32xf32>
    %29 = vector.broadcast %9 : vector<1x32xf32> to vector<16x32xf32>
    %30 = arith.mulf %28, %29 : vector<16x32xf32>
    %31 = vector.broadcast %10 : vector<1x32xf32> to vector<16x32xf32>
    %32 = arith.addf %30, %31 : vector<16x32xf32>
    %33 = arith.truncf %32 : vector<16x32xf32> to vector<16x32xbf16>
    %c0_16 = arith.constant 0 : index
    %c0_17 = arith.constant 0 : index
    %34 = vector.load %arg7[%c0_16, %c0_17] : memref<16x32xbf16, #tpu.memory_space<vmem>>, vector<16x32xbf16>
    tpu.vector_store %arg7[%c0_16, %c0_17], %33 {strides = array<i32>} : memref<16x32xbf16, #tpu.memory_space<vmem>>, vector<16x32xbf16>,
    return
  }
  func.func @transform_0(%arg0: i32) -> (i32, i32) {
    %c0_i32 = arith.constant 0 : i32
    %c0_i32_0 = arith.constant 0 : i32
    return %arg0, %c0_i32 : i32, i32
  }
  func.func @transform_1(%arg0: i32) -> (i32, i32) {
    %c0_i32 = arith.constant 0 : i32
    %c0_i32_0 = arith.constant 0 : i32
    return %arg0, %c0_i32 : i32, i32
  }
  func.func @transform_2(%arg0: i32) -> (i32, i32) {
    %c0_i32 = arith.constant 0 : i32
    %c0_i32_0 = arith.constant 0 : i32
    %c0_i32_1 = arith.constant 0 : i32
    return %c0_i32, %c0_i32_0 : i32, i32
  }
  func.func @transform_3(%arg0: i32) -> (i32, i32) {
    %c0_i32 = arith.constant 0 : i32
    %c0_i32_0 = arith.constant 0 : i32
    %c0_i32_1 = arith.constant 0 : i32
    return %c0_i32, %c0_i32_0 : i32, i32
  }
  func.func @transform_4(%arg0: i32) -> (i32, i32) {
    %c0_i32 = arith.constant 0 : i32
    %c0_i32_0 = arith.constant 0 : i32
    %c0_i32_1 = arith.constant 0 : i32
    return %c0_i32, %c0_i32_0 : i32, i32
  }
  func.func @transform_5(%arg0: i32) -> (i32, i32) {
    %c0_i32 = arith.constant 0 : i32
    %c0_i32_0 = arith.constant 0 : i32
    %c0_i32_1 = arith.constant 0 : i32
    return %c0_i32, %c0_i32_0 : i32, i32
  }
  func.func @transform_6(%arg0: i32) -> (i32, i32) {
    %c0_i32 = arith.constant 0 : i32
    %c0_i32_0 = arith.constant 0 : i32
    return %arg0, %c0_i32 : i32, i32
  }
}

module attributes {stable_mosaic.version = 11 : i64} {
  func.func @_ln_kernel(%arg0: i32, %arg1: memref<16x32xbf16, #tpu.memory_space<vmem>>, %arg2: memref<1x32xf32, #tpu.memory_space<vmem>>, %arg3: memref<1x32xf32, #tpu.memory_space<vmem>>, %arg4: memref<16x32xbf16, #tpu.memory_space<vmem>>) attributes {dimension_semantics = [#tpu.dimension_semantics<parallel>], iteration_bounds = array<i64: 2>, scalar_prefetch = 0 : i64, scratch_operands = 0 : i64, tpu.core_type = #tpu.core_type<tc>, window_params = [{transform_indices = @transform_0, window_bounds = array<i64: 16, 32>}, {pipeline_mode = #tpu.pipeline_mode<synchronous>, transform_indices = @transform_1, window_bounds = array<i64: 1, 32>}, {pipeline_mode = #tpu.pipeline_mode<synchronous>, transform_indices = @transform_2, window_bounds = array<i64: 1, 32>}, {transform_indices = @transform_3, window_bounds = array<i64: 16, 32>}]} {
    %c0 = arith.constant 0 : index
    %c0_0 = arith.constant 0 : index
    %0 = vector.load %arg1[%c0, %c0_0] : memref<16x32xbf16, #tpu.memory_space<vmem>>, vector<16x32xbf16>
    %1 = arith.extf %0 : vector<16x32xbf16> to vector<16x32xf32>
    %c0_1 = arith.constant 0 : index
    %c0_2 = arith.constant 0 : index
    %2 = vector.load %arg2[%c0_1, %c0_2] : memref<1x32xf32, #tpu.memory_space<vmem>>, vector<1x32xf32>
    %c0_3 = arith.constant 0 : index
    %c0_4 = arith.constant 0 : index
    %3 = vector.load %arg3[%c0_3, %c0_4] : memref<1x32xf32, #tpu.memory_space<vmem>>, vector<1x32xf32>
    %cst = arith.constant dense<0.000000e+00> : vector<16xf32>
    %4 = vector.multi_reduction <add>, %1, %cst [1] : vector<16x32xf32> to vector<16xf32>
    %5 = vector.shape_cast %4 : vector<16xf32> to vector<16x1xf32>
    %cst_5 = arith.constant 3.200000e+01 : f32
    %6 = vector.broadcast %cst_5 : f32 to vector<16x1xf32>
    %7 = arith.divf %5, %6 : vector<16x1xf32>
    %8 = vector.broadcast %7 : vector<16x1xf32> to vector<16x32xf32>
    %9 = arith.subf %1, %8 : vector<16x32xf32>
    %10 = arith.mulf %9, %9 : vector<16x32xf32>
    %cst_6 = arith.constant dense<0.000000e+00> : vector<16xf32>
    %11 = vector.multi_reduction <add>, %10, %cst_6 [1] : vector<16x32xf32> to vector<16xf32>
    %12 = vector.shape_cast %11 : vector<16xf32> to vector<16x1xf32>
    %cst_7 = arith.constant 3.200000e+01 : f32
    %13 = vector.broadcast %cst_7 : f32 to vector<16x1xf32>
    %14 = arith.divf %12, %13 : vector<16x1xf32>
    %15 = vector.broadcast %7 : vector<16x1xf32> to vector<16x32xf32>
    %16 = arith.subf %1, %15 : vector<16x32xf32>
    %cst_8 = arith.constant 9.99999974E-6 : f32
    %17 = vector.broadcast %cst_8 : f32 to vector<16x1xf32>
    %18 = arith.addf %14, %17 : vector<16x1xf32>
    %19 = math.rsqrt %18 : vector<16x1xf32>
    %20 = vector.broadcast %19 : vector<16x1xf32> to vector<16x32xf32>
    %21 = arith.mulf %16, %20 : vector<16x32xf32>
    %22 = vector.broadcast %2 : vector<1x32xf32> to vector<16x32xf32>
    %23 = arith.mulf %21, %22 : vector<16x32xf32>
    %24 = vector.broadcast %3 : vector<1x32xf32> to vector<16x32xf32>
    %25 = arith.addf %23, %24 : vector<16x32xf32>
    %26 = arith.truncf %25 : vector<16x32xf32> to vector<16x32xbf16>
    %c0_9 = arith.constant 0 : index
    %c0_10 = arith.constant 0 : index
    %27 = vector.load %arg4[%c0_9, %c0_10] : memref<16x32xbf16, #tpu.memory_space<vmem>>, vector<16x32xbf16>
    tpu.vector_store %arg4[%c0_9, %c0_10], %26 {strides = array<i32>} : memref<16x32xbf16, #tpu.memory_space<vmem>>, vector<16x32xbf16>,
    return
  }
  func.func @transform_0(%arg0: i32) -> (i32, i32) {
    %c0_i32 = arith.constant 0 : i32
    %c0_i32_0 = arith.constant 0 : i32
    return %arg0, %c0_i32 : i32, i32
  }
  func.func @transform_1(%arg0: i32) -> (i32, i32) {
    %c0_i32 = arith.constant 0 : i32
    %c0_i32_0 = arith.constant 0 : i32
    %c0_i32_1 = arith.constant 0 : i32
    return %c0_i32, %c0_i32_0 : i32, i32
  }
  func.func @transform_2(%arg0: i32) -> (i32, i32) {
    %c0_i32 = arith.constant 0 : i32
    %c0_i32_0 = arith.constant 0 : i32
    %c0_i32_1 = arith.constant 0 : i32
    return %c0_i32, %c0_i32_0 : i32, i32
  }
  func.func @transform_3(%arg0: i32) -> (i32, i32) {
    %c0_i32 = arith.constant 0 : i32
    %c0_i32_0 = arith.constant 0 : i32
    return %arg0, %c0_i32 : i32, i32
  }
}

module attributes {stable_mosaic.version = 11 : i64} {
  func.func @_ffn_kernel(%arg0: i32, %arg1: i32, %arg2: memref<16x32xbf16, #tpu.memory_space<vmem>>, %arg3: memref<32x64xbf16, #tpu.memory_space<vmem>>, %arg4: memref<1x64xf32, #tpu.memory_space<vmem>>, %arg5: memref<64x32xbf16, #tpu.memory_space<vmem>>, %arg6: memref<1x32xf32, #tpu.memory_space<vmem>>, %arg7: memref<1x32xf32, #tpu.memory_space<vmem>>, %arg8: memref<1x32xf32, #tpu.memory_space<vmem>>, %arg9: memref<16x32xbf16, #tpu.memory_space<vmem>>, %arg10: memref<16x32xf32, #tpu.memory_space<vmem>>) attributes {dimension_semantics = [#tpu.dimension_semantics<parallel>, #tpu.dimension_semantics<arbitrary>], iteration_bounds = array<i64: 2, 1>, scalar_prefetch = 0 : i64, scratch_operands = 1 : i64, tpu.core_type = #tpu.core_type<tc>, window_params = [{transform_indices = @transform_0, window_bounds = array<i64: 16, 32>}, {transform_indices = @transform_1, window_bounds = array<i64: 32, 64>}, {transform_indices = @transform_2, window_bounds = array<i64: 1, 64>}, {transform_indices = @transform_3, window_bounds = array<i64: 64, 32>}, {pipeline_mode = #tpu.pipeline_mode<synchronous>, transform_indices = @transform_4, window_bounds = array<i64: 1, 32>}, {pipeline_mode = #tpu.pipeline_mode<synchronous>, transform_indices = @transform_5, window_bounds = array<i64: 1, 32>}, {pipeline_mode = #tpu.pipeline_mode<synchronous>, transform_indices = @transform_6, window_bounds = array<i64: 1, 32>}, {transform_indices = @transform_7, window_bounds = array<i64: 16, 32>}]} {
    %c0_i32 = arith.constant 0 : i32
    %0 = arith.cmpi eq, %arg1, %c0_i32 : i32
    %1 = arith.extui %0 : i1 to i32
    %c0_i32_0 = arith.constant 0 : i32
    %2 = arith.cmpi ne, %1, %c0_i32_0 : i32
    scf.if %2 {
      %cst_19 = arith.constant 0.000000e+00 : f32
      %31 = vector.broadcast %cst_19 : f32 to vector<16x32xf32>
      %c0_20 = arith.constant 0 : index
      %c0_21 = arith.constant 0 : index
      %32 = vector.load %arg10[%c0_20, %c0_21] : memref<16x32xf32, #tpu.memory_space<vmem>>, vector<16x32xf32>
      tpu.vector_store %arg10[%c0_20, %c0_21], %31 {strides = array<i32>} : memref<16x32xf32, #tpu.memory_space<vmem>>, vector<16x32xf32>,
    } else {
    }
    %c0 = arith.constant 0 : index
    %c0_1 = arith.constant 0 : index
    %3 = vector.load %arg2[%c0, %c0_1] : memref<16x32xbf16, #tpu.memory_space<vmem>>, vector<16x32xbf16>
    %c0_2 = arith.constant 0 : index
    %c0_3 = arith.constant 0 : index
    %4 = vector.load %arg3[%c0_2, %c0_3] : memref<32x64xbf16, #tpu.memory_space<vmem>>, vector<32x64xbf16>
    %cst = arith.constant dense<0.000000e+00> : vector<16x64xf32>
    %5 = tpu.matmul %3, %4, %cst {dimension_numbers = #tpu.dot_dimension_numbers<[1], [0], [0], [1], [0, 0, 1, 1], [], []>} : vector<16x32xbf16>, vector<32x64xbf16>, vector<16x64xf32> -> vector<16x64xf32>
    %c0_4 = arith.constant 0 : index
    %c0_5 = arith.constant 0 : index
    %6 = vector.load %arg4[%c0_4, %c0_5] : memref<1x64xf32, #tpu.memory_space<vmem>>, vector<1x64xf32>
    %7 = vector.broadcast %6 : vector<1x64xf32> to vector<16x64xf32>
    %8 = arith.addf %5, %7 : vector<16x64xf32>
    %cst_6 = arith.constant 5.000000e-01 : f32
    %9 = vector.broadcast %cst_6 : f32 to vector<16x64xf32>
    %10 = arith.mulf %9, %8 : vector<16x64xf32>
    %cst_7 = arith.constant 4.471500e-02 : f32
    %11 = vector.broadcast %cst_7 : f32 to vector<16x64xf32>
    %12 = arith.mulf %11, %8 : vector<16x64xf32>
    %13 = arith.mulf %12, %8 : vector<16x64xf32>
    %14 = arith.mulf %13, %8 : vector<16x64xf32>
    %15 = arith.addf %8, %14 : vector<16x64xf32>
    %cst_8 = arith.constant 0.797884583 : f32
    %16 = vector.broadcast %cst_8 : f32 to vector<16x64xf32>
    %17 = arith.mulf %16, %15 : vector<16x64xf32>
    %18 = math.tanh %17 : vector<16x64xf32>
    %cst_9 = arith.constant 1.000000e+00 : f32
    %19 = vector.broadcast %cst_9 : f32 to vector<16x64xf32>
    %20 = arith.addf %19, %18 : vector<16x64xf32>
    %21 = arith.mulf %10, %20 : vector<16x64xf32>
    %c0_10 = arith.constant 0 : index
    %c0_11 = arith.constant 0 : index
    %22 = vector.load %arg10[%c0_10, %c0_11] : memref<16x32xf32, #tpu.memory_space<vmem>>, vector<16x32xf32>
    %23 = arith.truncf %21 : vector<16x64xf32> to vector<16x64xbf16>
    %c0_12 = arith.constant 0 : index
    %c0_13 = arith.constant 0 : index
    %24 = vector.load %arg5[%c0_12, %c0_13] : memref<64x32xbf16, #tpu.memory_space<vmem>>, vector<64x32xbf16>
    %cst_14 = arith.constant dense<0.000000e+00> : vector<16x32xf32>
    %25 = tpu.matmul %23, %24, %cst_14 {dimension_numbers = #tpu.dot_dimension_numbers<[1], [0], [0], [1], [0, 0, 1, 1], [], []>} : vector<16x64xbf16>, vector<64x32xbf16>, vector<16x32xf32> -> vector<16x32xf32>
    %26 = arith.addf %22, %25 : vector<16x32xf32>
    %c0_15 = arith.constant 0 : index
    %c0_16 = arith.constant 0 : index
    %27 = vector.load %arg10[%c0_15, %c0_16] : memref<16x32xf32, #tpu.memory_space<vmem>>, vector<16x32xf32>
    tpu.vector_store %arg10[%c0_15, %c0_16], %26 {strides = array<i32>} : memref<16x32xf32, #tpu.memory_space<vmem>>, vector<16x32xf32>,
    %c0_i32_17 = arith.constant 0 : i32
    %28 = arith.cmpi eq, %arg1, %c0_i32_17 : i32
    %29 = arith.extui %28 : i1 to i32
    %c0_i32_18 = arith.constant 0 : i32
    %30 = arith.cmpi ne, %29, %c0_i32_18 : i32
    scf.if %30 {
      %c0_19 = arith.constant 0 : index
      %c0_20 = arith.constant 0 : index
      %31 = vector.load %arg10[%c0_19, %c0_20] : memref<16x32xf32, #tpu.memory_space<vmem>>, vector<16x32xf32>
      %c0_21 = arith.constant 0 : index
      %c0_22 = arith.constant 0 : index
      %32 = vector.load %arg6[%c0_21, %c0_22] : memref<1x32xf32, #tpu.memory_space<vmem>>, vector<1x32xf32>
      %33 = vector.broadcast %32 : vector<1x32xf32> to vector<16x32xf32>
      %34 = arith.addf %31, %33 : vector<16x32xf32>
      %c0_23 = arith.constant 0 : index
      %c0_24 = arith.constant 0 : index
      %35 = vector.load %arg2[%c0_23, %c0_24] : memref<16x32xbf16, #tpu.memory_space<vmem>>, vector<16x32xbf16>
      %36 = arith.extf %35 : vector<16x32xbf16> to vector<16x32xf32>
      %37 = arith.addf %36, %34 : vector<16x32xf32>
      %c0_25 = arith.constant 0 : index
      %c0_26 = arith.constant 0 : index
      %38 = vector.load %arg7[%c0_25, %c0_26] : memref<1x32xf32, #tpu.memory_space<vmem>>, vector<1x32xf32>
      %c0_27 = arith.constant 0 : index
      %c0_28 = arith.constant 0 : index
      %39 = vector.load %arg8[%c0_27, %c0_28] : memref<1x32xf32, #tpu.memory_space<vmem>>, vector<1x32xf32>
      %cst_29 = arith.constant dense<0.000000e+00> : vector<16xf32>
      %40 = vector.multi_reduction <add>, %37, %cst_29 [1] : vector<16x32xf32> to vector<16xf32>
      %41 = vector.shape_cast %40 : vector<16xf32> to vector<16x1xf32>
      %cst_30 = arith.constant 3.200000e+01 : f32
      %42 = vector.broadcast %cst_30 : f32 to vector<16x1xf32>
      %43 = arith.divf %41, %42 : vector<16x1xf32>
      %44 = vector.broadcast %43 : vector<16x1xf32> to vector<16x32xf32>
      %45 = arith.subf %37, %44 : vector<16x32xf32>
      %46 = arith.mulf %45, %45 : vector<16x32xf32>
      %cst_31 = arith.constant dense<0.000000e+00> : vector<16xf32>
      %47 = vector.multi_reduction <add>, %46, %cst_31 [1] : vector<16x32xf32> to vector<16xf32>
      %48 = vector.shape_cast %47 : vector<16xf32> to vector<16x1xf32>
      %cst_32 = arith.constant 3.200000e+01 : f32
      %49 = vector.broadcast %cst_32 : f32 to vector<16x1xf32>
      %50 = arith.divf %48, %49 : vector<16x1xf32>
      %51 = vector.broadcast %43 : vector<16x1xf32> to vector<16x32xf32>
      %52 = arith.subf %37, %51 : vector<16x32xf32>
      %cst_33 = arith.constant 9.99999974E-6 : f32
      %53 = vector.broadcast %cst_33 : f32 to vector<16x1xf32>
      %54 = arith.addf %50, %53 : vector<16x1xf32>
      %55 = math.rsqrt %54 : vector<16x1xf32>
      %56 = vector.broadcast %55 : vector<16x1xf32> to vector<16x32xf32>
      %57 = arith.mulf %52, %56 : vector<16x32xf32>
      %58 = vector.broadcast %38 : vector<1x32xf32> to vector<16x32xf32>
      %59 = arith.mulf %57, %58 : vector<16x32xf32>
      %60 = vector.broadcast %39 : vector<1x32xf32> to vector<16x32xf32>
      %61 = arith.addf %59, %60 : vector<16x32xf32>
      %62 = arith.truncf %61 : vector<16x32xf32> to vector<16x32xbf16>
      %c0_34 = arith.constant 0 : index
      %c0_35 = arith.constant 0 : index
      %63 = vector.load %arg9[%c0_34, %c0_35] : memref<16x32xbf16, #tpu.memory_space<vmem>>, vector<16x32xbf16>
      tpu.vector_store %arg9[%c0_34, %c0_35], %62 {strides = array<i32>} : memref<16x32xbf16, #tpu.memory_space<vmem>>, vector<16x32xbf16>,
    } else {
    }
    return
  }
  func.func @transform_0(%arg0: i32, %arg1: i32) -> (i32, i32) {
    %c0_i32 = arith.constant 0 : i32
    %c0_i32_0 = arith.constant 0 : i32
    return %arg0, %c0_i32 : i32, i32
  }
  func.func @transform_1(%arg0: i32, %arg1: i32) -> (i32, i32) {
    %c0_i32 = arith.constant 0 : i32
    %c0_i32_0 = arith.constant 0 : i32
    return %c0_i32, %arg1 : i32, i32
  }
  func.func @transform_2(%arg0: i32, %arg1: i32) -> (i32, i32) {
    %c0_i32 = arith.constant 0 : i32
    %c0_i32_0 = arith.constant 0 : i32
    return %c0_i32, %arg1 : i32, i32
  }
  func.func @transform_3(%arg0: i32, %arg1: i32) -> (i32, i32) {
    %c0_i32 = arith.constant 0 : i32
    %c0_i32_0 = arith.constant 0 : i32
    return %arg1, %c0_i32 : i32, i32
  }
  func.func @transform_4(%arg0: i32, %arg1: i32) -> (i32, i32) {
    %c0_i32 = arith.constant 0 : i32
    %c0_i32_0 = arith.constant 0 : i32
    %c0_i32_1 = arith.constant 0 : i32
    return %c0_i32, %c0_i32_0 : i32, i32
  }
  func.func @transform_5(%arg0: i32, %arg1: i32) -> (i32, i32) {
    %c0_i32 = arith.constant 0 : i32
    %c0_i32_0 = arith.constant 0 : i32
    %c0_i32_1 = arith.constant 0 : i32
    return %c0_i32, %c0_i32_0 : i32, i32
  }
  func.func @transform_6(%arg0: i32, %arg1: i32) -> (i32, i32) {
    %c0_i32 = arith.constant 0 : i32
    %c0_i32_0 = arith.constant 0 : i32
    %c0_i32_1 = arith.constant 0 : i32
    return %c0_i32, %c0_i32_0 : i32, i32
  }
  func.func @transform_7(%arg0: i32, %arg1: i32) -> (i32, i32) {
    %c0_i32 = arith.constant 0 : i32
    %c0_i32_0 = arith.constant 0 : i32
    return %arg0, %c0_i32 : i32, i32
  }
}

module attributes {stable_mosaic.version = 11 : i64} {
  func.func @_kv_kernel(%arg0: i32, %arg1: memref<16x32xbf16, #tpu.memory_space<vmem>>, %arg2: memref<32x32xbf16, #tpu.memory_space<vmem>>, %arg3: memref<32x32xbf16, #tpu.memory_space<vmem>>, %arg4: memref<1x32xf32, #tpu.memory_space<vmem>>, %arg5: memref<16x32xbf16, #tpu.memory_space<vmem>>, %arg6: memref<16x32xbf16, #tpu.memory_space<vmem>>) attributes {dimension_semantics = [#tpu.dimension_semantics<parallel>], iteration_bounds = array<i64: 2>, scalar_prefetch = 0 : i64, scratch_operands = 0 : i64, tpu.core_type = #tpu.core_type<tc>, window_params = [{transform_indices = @transform_0, window_bounds = array<i64: 16, 32>}, {pipeline_mode = #tpu.pipeline_mode<synchronous>, transform_indices = @transform_1, window_bounds = array<i64: 32, 32>}, {pipeline_mode = #tpu.pipeline_mode<synchronous>, transform_indices = @transform_2, window_bounds = array<i64: 32, 32>}, {pipeline_mode = #tpu.pipeline_mode<synchronous>, transform_indices = @transform_3, window_bounds = array<i64: 1, 32>}, {transform_indices = @transform_4, window_bounds = array<i64: 16, 32>}, {transform_indices = @transform_5, window_bounds = array<i64: 16, 32>}]} {
    %c0 = arith.constant 0 : index
    %c0_0 = arith.constant 0 : index
    %0 = vector.load %arg1[%c0, %c0_0] : memref<16x32xbf16, #tpu.memory_space<vmem>>, vector<16x32xbf16>
    %c0_1 = arith.constant 0 : index
    %c0_2 = arith.constant 0 : index
    %1 = vector.load %arg2[%c0_1, %c0_2] : memref<32x32xbf16, #tpu.memory_space<vmem>>, vector<32x32xbf16>
    %cst = arith.constant dense<0.000000e+00> : vector<16x32xf32>
    %2 = tpu.matmul %0, %1, %cst {dimension_numbers = #tpu.dot_dimension_numbers<[1], [0], [0], [1], [0, 0, 1, 1], [], []>} : vector<16x32xbf16>, vector<32x32xbf16>, vector<16x32xf32> -> vector<16x32xf32>
    %3 = arith.truncf %2 : vector<16x32xf32> to vector<16x32xbf16>
    %c0_3 = arith.constant 0 : index
    %c0_4 = arith.constant 0 : index
    %4 = vector.load %arg5[%c0_3, %c0_4] : memref<16x32xbf16, #tpu.memory_space<vmem>>, vector<16x32xbf16>
    tpu.vector_store %arg5[%c0_3, %c0_4], %3 {strides = array<i32>} : memref<16x32xbf16, #tpu.memory_space<vmem>>, vector<16x32xbf16>,
    %c0_5 = arith.constant 0 : index
    %c0_6 = arith.constant 0 : index
    %5 = vector.load %arg3[%c0_5, %c0_6] : memref<32x32xbf16, #tpu.memory_space<vmem>>, vector<32x32xbf16>
    %cst_7 = arith.constant dense<0.000000e+00> : vector<16x32xf32>
    %6 = tpu.matmul %0, %5, %cst_7 {dimension_numbers = #tpu.dot_dimension_numbers<[1], [0], [0], [1], [0, 0, 1, 1], [], []>} : vector<16x32xbf16>, vector<32x32xbf16>, vector<16x32xf32> -> vector<16x32xf32>
    %c0_8 = arith.constant 0 : index
    %c0_9 = arith.constant 0 : index
    %7 = vector.load %arg4[%c0_8, %c0_9] : memref<1x32xf32, #tpu.memory_space<vmem>>, vector<1x32xf32>
    %8 = vector.broadcast %7 : vector<1x32xf32> to vector<16x32xf32>
    %9 = arith.addf %6, %8 : vector<16x32xf32>
    %10 = arith.truncf %9 : vector<16x32xf32> to vector<16x32xbf16>
    %c0_10 = arith.constant 0 : index
    %c0_11 = arith.constant 0 : index
    %11 = vector.load %arg6[%c0_10, %c0_11] : memref<16x32xbf16, #tpu.memory_space<vmem>>, vector<16x32xbf16>
    tpu.vector_store %arg6[%c0_10, %c0_11], %10 {strides = array<i32>} : memref<16x32xbf16, #tpu.memory_space<vmem>>, vector<16x32xbf16>,
    return
  }
  func.func @transform_0(%arg0: i32) -> (i32, i32) {
    %c0_i32 = arith.constant 0 : i32
    %c0_i32_0 = arith.constant 0 : i32
    return %arg0, %c0_i32 : i32, i32
  }
  func.func @transform_1(%arg0: i32) -> (i32, i32) {
    %c0_i32 = arith.constant 0 : i32
    %c0_i32_0 = arith.constant 0 : i32
    %c0_i32_1 = arith.constant 0 : i32
    return %c0_i32, %c0_i32_0 : i32, i32
  }
  func.func @transform_2(%arg0: i32) -> (i32, i32) {
    %c0_i32 = arith.constant 0 : i32
    %c0_i32_0 = arith.constant 0 : i32
    %c0_i32_1 = arith.constant 0 : i32
    return %c0_i32, %c0_i32_0 : i32, i32
  }
  func.func @transform_3(%arg0: i32) -> (i32, i32) {
    %c0_i32 = arith.constant 0 : i32
    %c0_i32_0 = arith.constant 0 : i32
    %c0_i32_1 = arith.constant 0 : i32
    return %c0_i32, %c0_i32_0 : i32, i32
  }
  func.func @transform_4(%arg0: i32) -> (i32, i32) {
    %c0_i32 = arith.constant 0 : i32
    %c0_i32_0 = arith.constant 0 : i32
    return %arg0, %c0_i32 : i32, i32
  }
  func.func @transform_5(%arg0: i32) -> (i32, i32) {
    %c0_i32 = arith.constant 0 : i32
    %c0_i32_0 = arith.constant 0 : i32
    return %arg0, %c0_i32 : i32, i32
  }
}

module attributes {stable_mosaic.version = 11 : i64} {
  func.func @_attn_kernel(%arg0: i32, %arg1: i32, %arg2: memref<1x8x32xbf16, #tpu.memory_space<vmem>>, %arg3: memref<1x16x32xbf16, #tpu.memory_space<vmem>>, %arg4: memref<1x16x32xbf16, #tpu.memory_space<vmem>>, %arg5: memref<1x8x32xbf16, #tpu.memory_space<vmem>>) attributes {dimension_semantics = [#tpu.dimension_semantics<parallel>, #tpu.dimension_semantics<parallel>], iteration_bounds = array<i64: 2, 1>, scalar_prefetch = 0 : i64, scratch_operands = 0 : i64, tpu.core_type = #tpu.core_type<tc>, window_params = [{transform_indices = @transform_0, window_bounds = array<i64: 1, 8, 32>}, {transform_indices = @transform_1, window_bounds = array<i64: 1, 16, 32>}, {transform_indices = @transform_2, window_bounds = array<i64: 1, 16, 32>}, {transform_indices = @transform_3, window_bounds = array<i64: 1, 8, 32>}]} {
    %c0 = arith.constant 0 : index
    %c0_0 = arith.constant 0 : index
    %c0_1 = arith.constant 0 : index
    %0 = vector.load %arg2[%c0, %c0_0, %c0_1] : memref<1x8x32xbf16, #tpu.memory_space<vmem>>, vector<1x8x32xbf16>
    %1 = vector.shape_cast %0 : vector<1x8x32xbf16> to vector<8x32xbf16>
    %c0_2 = arith.constant 0 : index
    %c0_3 = arith.constant 0 : index
    %c0_4 = arith.constant 0 : index
    %2 = vector.load %arg3[%c0_2, %c0_3, %c0_4] : memref<1x16x32xbf16, #tpu.memory_space<vmem>>, vector<1x16x32xbf16>
    %3 = vector.shape_cast %2 : vector<1x16x32xbf16> to vector<16x32xbf16>
    %cst = arith.constant dense<0.000000e+00> : vector<8x16xf32>
    %4 = tpu.matmul %1, %3, %cst {dimension_numbers = #tpu.dot_dimension_numbers<[1], [1], [0], [0], [0, 0, 1, 0], [], []>} : vector<8x32xbf16>, vector<16x32xbf16>, vector<8x16xf32> -> vector<8x16xf32>
    %5 = tpu.iota {dimensions = array<i32: 1>} : vector<8x16xi32>
    %c10_i32 = arith.constant 10 : i32
    %6 = vector.broadcast %c10_i32 : i32 to vector<8x16xi32>
    %7 = arith.cmpi slt, %5, %6 : vector<8x16xi32>
    %cst_5 = arith.constant -1.000000e+30 : f32
    %8 = vector.broadcast %cst_5 : f32 to vector<8x16xf32>
    %9 = arith.select %7, %4, %8 : vector<8x16xi1>, vector<8x16xf32>
    %cst_6 = arith.constant dense<0xFF800000> : vector<8xf32>
    %10 = vector.multi_reduction <maximumf>, %9, %cst_6 [1] : vector<8x16xf32> to vector<8xf32>
    %11 = vector.shape_cast %10 : vector<8xf32> to vector<8x1xf32>
    %12 = vector.broadcast %11 : vector<8x1xf32> to vector<8x16xf32>
    %13 = arith.subf %9, %12 : vector<8x16xf32>
    %14 = math.exp %13 : vector<8x16xf32>
    %cst_7 = arith.constant dense<0.000000e+00> : vector<8xf32>
    %15 = vector.multi_reduction <add>, %14, %cst_7 [1] : vector<8x16xf32> to vector<8xf32>
    %16 = vector.shape_cast %15 : vector<8xf32> to vector<8x1xf32>
    %17 = arith.truncf %14 : vector<8x16xf32> to vector<8x16xbf16>
    %c0_8 = arith.constant 0 : index
    %c0_9 = arith.constant 0 : index
    %c0_10 = arith.constant 0 : index
    %18 = vector.load %arg4[%c0_8, %c0_9, %c0_10] : memref<1x16x32xbf16, #tpu.memory_space<vmem>>, vector<1x16x32xbf16>
    %19 = vector.shape_cast %18 : vector<1x16x32xbf16> to vector<16x32xbf16>
    %cst_11 = arith.constant dense<0.000000e+00> : vector<8x32xf32>
    %20 = tpu.matmul %17, %19, %cst_11 {dimension_numbers = #tpu.dot_dimension_numbers<[1], [0], [0], [1], [0, 0, 1, 1], [], []>} : vector<8x16xbf16>, vector<16x32xbf16>, vector<8x32xf32> -> vector<8x32xf32>
    %21 = tpu.reciprocal %16 {approx = true} : vector<8x1xf32> -> vector<8x1xf32>
    %22 = vector.broadcast %21 : vector<8x1xf32> to vector<8x32xf32>
    %23 = arith.mulf %20, %22 : vector<8x32xf32>
    %24 = arith.truncf %23 : vector<8x32xf32> to vector<8x32xbf16>
    %c0_12 = arith.constant 0 : index
    %c0_13 = arith.constant 0 : index
    %c0_14 = arith.constant 0 : index
    %25 = vector.load %arg5[%c0_12, %c0_13, %c0_14] : memref<1x8x32xbf16, #tpu.memory_space<vmem>>, vector<1x8x32xbf16>
    %26 = vector.shape_cast %25 : vector<1x8x32xbf16> to vector<8x32xbf16>
    %27 = vector.shape_cast %24 : vector<8x32xbf16> to vector<1x8x32xbf16>
    tpu.vector_store %arg5[%c0_12, %c0_13, %c0_14], %27 {strides = array<i32>} : memref<1x8x32xbf16, #tpu.memory_space<vmem>>, vector<1x8x32xbf16>,
    return
  }
  func.func @transform_0(%arg0: i32, %arg1: i32) -> (i32, i32, i32) {
    %c0_i32 = arith.constant 0 : i32
    %c0_i32_0 = arith.constant 0 : i32
    return %arg0, %arg1, %c0_i32 : i32, i32, i32
  }
  func.func @transform_1(%arg0: i32, %arg1: i32) -> (i32, i32, i32) {
    %c0_i32 = arith.constant 0 : i32
    %c0_i32_0 = arith.constant 0 : i32
    %c0_i32_1 = arith.constant 0 : i32
    return %arg0, %c0_i32, %c0_i32_0 : i32, i32, i32
  }
  func.func @transform_2(%arg0: i32, %arg1: i32) -> (i32, i32, i32) {
    %c0_i32 = arith.constant 0 : i32
    %c0_i32_0 = arith.constant 0 : i32
    %c0_i32_1 = arith.constant 0 : i32
    return %arg0, %c0_i32, %c0_i32_0 : i32, i32, i32
  }
  func.func @transform_3(%arg0: i32, %arg1: i32) -> (i32, i32, i32) {
    %c0_i32 = arith.constant 0 : i32
    %c0_i32_0 = arith.constant 0 : i32
    return %arg0, %arg1, %c0_i32 : i32, i32, i32
  }
}

module attributes {stable_mosaic.version = 11 : i64} {
  func.func @_ffn_kernel(%arg0: i32, %arg1: i32, %arg2: memref<8x32xbf16, #tpu.memory_space<vmem>>, %arg3: memref<32x64xbf16, #tpu.memory_space<vmem>>, %arg4: memref<1x64xf32, #tpu.memory_space<vmem>>, %arg5: memref<64x32xbf16, #tpu.memory_space<vmem>>, %arg6: memref<1x32xf32, #tpu.memory_space<vmem>>, %arg7: memref<1x32xf32, #tpu.memory_space<vmem>>, %arg8: memref<1x32xf32, #tpu.memory_space<vmem>>, %arg9: memref<8x32xbf16, #tpu.memory_space<vmem>>, %arg10: memref<8x32xf32, #tpu.memory_space<vmem>>) attributes {dimension_semantics = [#tpu.dimension_semantics<parallel>, #tpu.dimension_semantics<arbitrary>], iteration_bounds = array<i64: 2, 1>, scalar_prefetch = 0 : i64, scratch_operands = 1 : i64, tpu.core_type = #tpu.core_type<tc>, window_params = [{transform_indices = @transform_0, window_bounds = array<i64: 8, 32>}, {transform_indices = @transform_1, window_bounds = array<i64: 32, 64>}, {transform_indices = @transform_2, window_bounds = array<i64: 1, 64>}, {transform_indices = @transform_3, window_bounds = array<i64: 64, 32>}, {pipeline_mode = #tpu.pipeline_mode<synchronous>, transform_indices = @transform_4, window_bounds = array<i64: 1, 32>}, {pipeline_mode = #tpu.pipeline_mode<synchronous>, transform_indices = @transform_5, window_bounds = array<i64: 1, 32>}, {pipeline_mode = #tpu.pipeline_mode<synchronous>, transform_indices = @transform_6, window_bounds = array<i64: 1, 32>}, {transform_indices = @transform_7, window_bounds = array<i64: 8, 32>}]} {
    %c0_i32 = arith.constant 0 : i32
    %0 = arith.cmpi eq, %arg1, %c0_i32 : i32
    %1 = arith.extui %0 : i1 to i32
    %c0_i32_0 = arith.constant 0 : i32
    %2 = arith.cmpi ne, %1, %c0_i32_0 : i32
    scf.if %2 {
      %cst_19 = arith.constant 0.000000e+00 : f32
      %31 = vector.broadcast %cst_19 : f32 to vector<8x32xf32>
      %c0_20 = arith.constant 0 : index
      %c0_21 = arith.constant 0 : index
      %32 = vector.load %arg10[%c0_20, %c0_21] : memref<8x32xf32, #tpu.memory_space<vmem>>, vector<8x32xf32>
      tpu.vector_store %arg10[%c0_20, %c0_21], %31 {strides = array<i32>} : memref<8x32xf32, #tpu.memory_space<vmem>>, vector<8x32xf32>,
    } else {
    }
    %c0 = arith.constant 0 : index
    %c0_1 = arith.constant 0 : index
    %3 = vector.load %arg2[%c0, %c0_1] : memref<8x32xbf16, #tpu.memory_space<vmem>>, vector<8x32xbf16>
    %c0_2 = arith.constant 0 : index
    %c0_3 = arith.constant 0 : index
    %4 = vector.load %arg3[%c0_2, %c0_3] : memref<32x64xbf16, #tpu.memory_space<vmem>>, vector<32x64xbf16>
    %cst = arith.constant dense<0.000000e+00> : vector<8x64xf32>
    %5 = tpu.matmul %3, %4, %cst {dimension_numbers = #tpu.dot_dimension_numbers<[1], [0], [0], [1], [0, 0, 1, 1], [], []>} : vector<8x32xbf16>, vector<32x64xbf16>, vector<8x64xf32> -> vector<8x64xf32>
    %c0_4 = arith.constant 0 : index
    %c0_5 = arith.constant 0 : index
    %6 = vector.load %arg4[%c0_4, %c0_5] : memref<1x64xf32, #tpu.memory_space<vmem>>, vector<1x64xf32>
    %7 = vector.broadcast %6 : vector<1x64xf32> to vector<8x64xf32>
    %8 = arith.addf %5, %7 : vector<8x64xf32>
    %cst_6 = arith.constant 5.000000e-01 : f32
    %9 = vector.broadcast %cst_6 : f32 to vector<8x64xf32>
    %10 = arith.mulf %9, %8 : vector<8x64xf32>
    %cst_7 = arith.constant 4.471500e-02 : f32
    %11 = vector.broadcast %cst_7 : f32 to vector<8x64xf32>
    %12 = arith.mulf %11, %8 : vector<8x64xf32>
    %13 = arith.mulf %12, %8 : vector<8x64xf32>
    %14 = arith.mulf %13, %8 : vector<8x64xf32>
    %15 = arith.addf %8, %14 : vector<8x64xf32>
    %cst_8 = arith.constant 0.797884583 : f32
    %16 = vector.broadcast %cst_8 : f32 to vector<8x64xf32>
    %17 = arith.mulf %16, %15 : vector<8x64xf32>
    %18 = math.tanh %17 : vector<8x64xf32>
    %cst_9 = arith.constant 1.000000e+00 : f32
    %19 = vector.broadcast %cst_9 : f32 to vector<8x64xf32>
    %20 = arith.addf %19, %18 : vector<8x64xf32>
    %21 = arith.mulf %10, %20 : vector<8x64xf32>
    %c0_10 = arith.constant 0 : index
    %c0_11 = arith.constant 0 : index
    %22 = vector.load %arg10[%c0_10, %c0_11] : memref<8x32xf32, #tpu.memory_space<vmem>>, vector<8x32xf32>
    %23 = arith.truncf %21 : vector<8x64xf32> to vector<8x64xbf16>
    %c0_12 = arith.constant 0 : index
    %c0_13 = arith.constant 0 : index
    %24 = vector.load %arg5[%c0_12, %c0_13] : memref<64x32xbf16, #tpu.memory_space<vmem>>, vector<64x32xbf16>
    %cst_14 = arith.constant dense<0.000000e+00> : vector<8x32xf32>
    %25 = tpu.matmul %23, %24, %cst_14 {dimension_numbers = #tpu.dot_dimension_numbers<[1], [0], [0], [1], [0, 0, 1, 1], [], []>} : vector<8x64xbf16>, vector<64x32xbf16>, vector<8x32xf32> -> vector<8x32xf32>
    %26 = arith.addf %22, %25 : vector<8x32xf32>
    %c0_15 = arith.constant 0 : index
    %c0_16 = arith.constant 0 : index
    %27 = vector.load %arg10[%c0_15, %c0_16] : memref<8x32xf32, #tpu.memory_space<vmem>>, vector<8x32xf32>
    tpu.vector_store %arg10[%c0_15, %c0_16], %26 {strides = array<i32>} : memref<8x32xf32, #tpu.memory_space<vmem>>, vector<8x32xf32>,
    %c0_i32_17 = arith.constant 0 : i32
    %28 = arith.cmpi eq, %arg1, %c0_i32_17 : i32
    %29 = arith.extui %28 : i1 to i32
    %c0_i32_18 = arith.constant 0 : i32
    %30 = arith.cmpi ne, %29, %c0_i32_18 : i32
    scf.if %30 {
      %c0_19 = arith.constant 0 : index
      %c0_20 = arith.constant 0 : index
      %31 = vector.load %arg10[%c0_19, %c0_20] : memref<8x32xf32, #tpu.memory_space<vmem>>, vector<8x32xf32>
      %c0_21 = arith.constant 0 : index
      %c0_22 = arith.constant 0 : index
      %32 = vector.load %arg6[%c0_21, %c0_22] : memref<1x32xf32, #tpu.memory_space<vmem>>, vector<1x32xf32>
      %33 = vector.broadcast %32 : vector<1x32xf32> to vector<8x32xf32>
      %34 = arith.addf %31, %33 : vector<8x32xf32>
      %c0_23 = arith.constant 0 : index
      %c0_24 = arith.constant 0 : index
      %35 = vector.load %arg2[%c0_23, %c0_24] : memref<8x32xbf16, #tpu.memory_space<vmem>>, vector<8x32xbf16>
      %36 = arith.extf %35 : vector<8x32xbf16> to vector<8x32xf32>
      %37 = arith.addf %36, %34 : vector<8x32xf32>
      %c0_25 = arith.constant 0 : index
      %c0_26 = arith.constant 0 : index
      %38 = vector.load %arg7[%c0_25, %c0_26] : memref<1x32xf32, #tpu.memory_space<vmem>>, vector<1x32xf32>
      %c0_27 = arith.constant 0 : index
      %c0_28 = arith.constant 0 : index
      %39 = vector.load %arg8[%c0_27, %c0_28] : memref<1x32xf32, #tpu.memory_space<vmem>>, vector<1x32xf32>
      %cst_29 = arith.constant dense<0.000000e+00> : vector<8xf32>
      %40 = vector.multi_reduction <add>, %37, %cst_29 [1] : vector<8x32xf32> to vector<8xf32>
      %41 = vector.shape_cast %40 : vector<8xf32> to vector<8x1xf32>
      %cst_30 = arith.constant 3.200000e+01 : f32
      %42 = vector.broadcast %cst_30 : f32 to vector<8x1xf32>
      %43 = arith.divf %41, %42 : vector<8x1xf32>
      %44 = vector.broadcast %43 : vector<8x1xf32> to vector<8x32xf32>
      %45 = arith.subf %37, %44 : vector<8x32xf32>
      %46 = arith.mulf %45, %45 : vector<8x32xf32>
      %cst_31 = arith.constant dense<0.000000e+00> : vector<8xf32>
      %47 = vector.multi_reduction <add>, %46, %cst_31 [1] : vector<8x32xf32> to vector<8xf32>
      %48 = vector.shape_cast %47 : vector<8xf32> to vector<8x1xf32>
      %cst_32 = arith.constant 3.200000e+01 : f32
      %49 = vector.broadcast %cst_32 : f32 to vector<8x1xf32>
      %50 = arith.divf %48, %49 : vector<8x1xf32>
      %51 = vector.broadcast %43 : vector<8x1xf32> to vector<8x32xf32>
      %52 = arith.subf %37, %51 : vector<8x32xf32>
      %cst_33 = arith.constant 9.99999974E-6 : f32
      %53 = vector.broadcast %cst_33 : f32 to vector<8x1xf32>
      %54 = arith.addf %50, %53 : vector<8x1xf32>
      %55 = math.rsqrt %54 : vector<8x1xf32>
      %56 = vector.broadcast %55 : vector<8x1xf32> to vector<8x32xf32>
      %57 = arith.mulf %52, %56 : vector<8x32xf32>
      %58 = vector.broadcast %38 : vector<1x32xf32> to vector<8x32xf32>
      %59 = arith.mulf %57, %58 : vector<8x32xf32>
      %60 = vector.broadcast %39 : vector<1x32xf32> to vector<8x32xf32>
      %61 = arith.addf %59, %60 : vector<8x32xf32>
      %62 = arith.truncf %61 : vector<8x32xf32> to vector<8x32xbf16>
      %c0_34 = arith.constant 0 : index
      %c0_35 = arith.constant 0 : index
      %63 = vector.load %arg9[%c0_34, %c0_35] : memref<8x32xbf16, #tpu.memory_space<vmem>>, vector<8x32xbf16>
      tpu.vector_store %arg9[%c0_34, %c0_35], %62 {strides = array<i32>} : memref<8x32xbf16, #tpu.memory_space<vmem>>, vector<8x32xbf16>,
    } else {
    }
    return
  }
  func.func @transform_0(%arg0: i32, %arg1: i32) -> (i32, i32) {
    %c0_i32 = arith.constant 0 : i32
    %c0_i32_0 = arith.constant 0 : i32
    return %arg0, %c0_i32 : i32, i32
  }
  func.func @transform_1(%arg0: i32, %arg1: i32) -> (i32, i32) {
    %c0_i32 = arith.constant 0 : i32
    %c0_i32_0 = arith.constant 0 : i32
    return %c0_i32, %arg1 : i32, i32
  }
  func.func @transform_2(%arg0: i32, %arg1: i32) -> (i32, i32) {
    %c0_i32 = arith.constant 0 : i32
    %c0_i32_0 = arith.constant 0 : i32
    return %c0_i32, %arg1 : i32, i32
  }
  func.func @transform_3(%arg0: i32, %arg1: i32) -> (i32, i32) {
    %c0_i32 = arith.constant 0 : i32
    %c0_i32_0 = arith.constant 0 : i32
    return %arg1, %c0_i32 : i32, i32
  }
  func.func @transform_4(%arg0: i32, %arg1: i32) -> (i32, i32) {
    %c0_i32 = arith.constant 0 : i32
    %c0_i32_0 = arith.constant 0 : i32
    %c0_i32_1 = arith.constant 0 : i32
    return %c0_i32, %c0_i32_0 : i32, i32
  }
  func.func @transform_5(%arg0: i32, %arg1: i32) -> (i32, i32) {
    %c0_i32 = arith.constant 0 : i32
    %c0_i32_0 = arith.constant 0 : i32
    %c0_i32_1 = arith.constant 0 : i32
    return %c0_i32, %c0_i32_0 : i32, i32
  }
  func.func @transform_6(%arg0: i32, %arg1: i32) -> (i32, i32) {
    %c0_i32 = arith.constant 0 : i32
    %c0_i32_0 = arith.constant 0 : i32
    %c0_i32_1 = arith.constant 0 : i32
    return %c0_i32, %c0_i32_0 : i32, i32
  }
  func.func @transform_7(%arg0: i32, %arg1: i32) -> (i32, i32) {
    %c0_i32 = arith.constant 0 : i32
    %c0_i32_0 = arith.constant 0 : i32
    return %arg0, %c0_i32 : i32, i32
  }
}

module attributes {stable_mosaic.version = 11 : i64} {
  func.func @_ln_kernel(%arg0: i32, %arg1: memref<8x32xbf16, #tpu.memory_space<vmem>>, %arg2: memref<1x32xf32, #tpu.memory_space<vmem>>, %arg3: memref<1x32xf32, #tpu.memory_space<vmem>>, %arg4: memref<8x32xbf16, #tpu.memory_space<vmem>>) attributes {dimension_semantics = [#tpu.dimension_semantics<parallel>], iteration_bounds = array<i64: 2>, scalar_prefetch = 0 : i64, scratch_operands = 0 : i64, tpu.core_type = #tpu.core_type<tc>, window_params = [{transform_indices = @transform_0, window_bounds = array<i64: 8, 32>}, {pipeline_mode = #tpu.pipeline_mode<synchronous>, transform_indices = @transform_1, window_bounds = array<i64: 1, 32>}, {pipeline_mode = #tpu.pipeline_mode<synchronous>, transform_indices = @transform_2, window_bounds = array<i64: 1, 32>}, {transform_indices = @transform_3, window_bounds = array<i64: 8, 32>}]} {
    %c0 = arith.constant 0 : index
    %c0_0 = arith.constant 0 : index
    %0 = vector.load %arg1[%c0, %c0_0] : memref<8x32xbf16, #tpu.memory_space<vmem>>, vector<8x32xbf16>
    %1 = arith.extf %0 : vector<8x32xbf16> to vector<8x32xf32>
    %c0_1 = arith.constant 0 : index
    %c0_2 = arith.constant 0 : index
    %2 = vector.load %arg2[%c0_1, %c0_2] : memref<1x32xf32, #tpu.memory_space<vmem>>, vector<1x32xf32>
    %c0_3 = arith.constant 0 : index
    %c0_4 = arith.constant 0 : index
    %3 = vector.load %arg3[%c0_3, %c0_4] : memref<1x32xf32, #tpu.memory_space<vmem>>, vector<1x32xf32>
    %cst = arith.constant dense<0.000000e+00> : vector<8xf32>
    %4 = vector.multi_reduction <add>, %1, %cst [1] : vector<8x32xf32> to vector<8xf32>
    %5 = vector.shape_cast %4 : vector<8xf32> to vector<8x1xf32>
    %cst_5 = arith.constant 3.200000e+01 : f32
    %6 = vector.broadcast %cst_5 : f32 to vector<8x1xf32>
    %7 = arith.divf %5, %6 : vector<8x1xf32>
    %8 = vector.broadcast %7 : vector<8x1xf32> to vector<8x32xf32>
    %9 = arith.subf %1, %8 : vector<8x32xf32>
    %10 = arith.mulf %9, %9 : vector<8x32xf32>
    %cst_6 = arith.constant dense<0.000000e+00> : vector<8xf32>
    %11 = vector.multi_reduction <add>, %10, %cst_6 [1] : vector<8x32xf32> to vector<8xf32>
    %12 = vector.shape_cast %11 : vector<8xf32> to vector<8x1xf32>
    %cst_7 = arith.constant 3.200000e+01 : f32
    %13 = vector.broadcast %cst_7 : f32 to vector<8x1xf32>
    %14 = arith.divf %12, %13 : vector<8x1xf32>
    %15 = vector.broadcast %7 : vector<8x1xf32> to vector<8x32xf32>
    %16 = arith.subf %1, %15 : vector<8x32xf32>
    %cst_8 = arith.constant 9.99999974E-6 : f32
    %17 = vector.broadcast %cst_8 : f32 to vector<8x1xf32>
    %18 = arith.addf %14, %17 : vector<8x1xf32>
    %19 = math.rsqrt %18 : vector<8x1xf32>
    %20 = vector.broadcast %19 : vector<8x1xf32> to vector<8x32xf32>
    %21 = arith.mulf %16, %20 : vector<8x32xf32>
    %22 = vector.broadcast %2 : vector<1x32xf32> to vector<8x32xf32>
    %23 = arith.mulf %21, %22 : vector<8x32xf32>
    %24 = vector.broadcast %3 : vector<1x32xf32> to vector<8x32xf32>
    %25 = arith.addf %23, %24 : vector<8x32xf32>
    %26 = arith.truncf %25 : vector<8x32xf32> to vector<8x32xbf16>
    %c0_9 = arith.constant 0 : index
    %c0_10 = arith.constant 0 : index
    %27 = vector.load %arg4[%c0_9, %c0_10] : memref<8x32xbf16, #tpu.memory_space<vmem>>, vector<8x32xbf16>
    tpu.vector_store %arg4[%c0_9, %c0_10], %26 {strides = array<i32>} : memref<8x32xbf16, #tpu.memory_space<vmem>>, vector<8x32xbf16>,
    return
  }
  func.func @transform_0(%arg0: i32) -> (i32, i32) {
    %c0_i32 = arith.constant 0 : i32
    %c0_i32_0 = arith.constant 0 : i32
    return %arg0, %c0_i32 : i32, i32
  }
  func.func @transform_1(%arg0: i32) -> (i32, i32) {
    %c0_i32 = arith.constant 0 : i32
    %c0_i32_0 = arith.constant 0 : i32
    %c0_i32_1 = arith.constant 0 : i32
    return %c0_i32, %c0_i32_0 : i32, i32
  }
  func.func @transform_2(%arg0: i32) -> (i32, i32) {
    %c0_i32 = arith.constant 0 : i32
    %c0_i32_0 = arith.constant 0 : i32
    %c0_i32_1 = arith.constant 0 : i32
    return %c0_i32, %c0_i32_0 : i32, i32
  }
  func.func @transform_3(%arg0: i32) -> (i32, i32) {
    %c0_i32 = arith.constant 0 : i32
    %c0_i32_0 = arith.constant 0 : i32
    return %arg0, %c0_i32 : i32, i32
  }
}

module attributes {stable_mosaic.version = 11 : i64} {
  func.func @_proj_ce_kernel(%arg0: i32, %arg1: i32, %arg2: memref<8x32xbf16, #tpu.memory_space<vmem>>, %arg3: memref<32x128xbf16, #tpu.memory_space<vmem>>, %arg4: memref<8x1xi32, #tpu.memory_space<vmem>>, %arg5: memref<8x128xbf16, #tpu.memory_space<vmem>>, %arg6: memref<8x1xf32, #tpu.memory_space<vmem>>, %arg7: memref<8x1xf32, #tpu.memory_space<vmem>>, %arg8: memref<8x1xf32, #tpu.memory_space<vmem>>, %arg9: memref<8x1xf32, #tpu.memory_space<vmem>>) attributes {dimension_semantics = [#tpu.dimension_semantics<parallel>, #tpu.dimension_semantics<arbitrary>], iteration_bounds = array<i64: 2, 1>, scalar_prefetch = 0 : i64, scratch_operands = 3 : i64, tpu.core_type = #tpu.core_type<tc>, window_params = [{transform_indices = @transform_0, window_bounds = array<i64: 8, 32>}, {transform_indices = @transform_1, window_bounds = array<i64: 32, 128>}, {transform_indices = @transform_2, window_bounds = array<i64: 8, 1>}, {transform_indices = @transform_3, window_bounds = array<i64: 8, 128>}, {transform_indices = @transform_4, window_bounds = array<i64: 8, 1>}]} {
    %c0_i32 = arith.constant 0 : i32
    %0 = arith.cmpi eq, %arg1, %c0_i32 : i32
    %1 = arith.extui %0 : i1 to i32
    %c0_i32_0 = arith.constant 0 : i32
    %2 = arith.cmpi ne, %1, %c0_i32_0 : i32
    scf.if %2 {
      %cst_27 = arith.constant 0xFF800000 : f32
      %45 = vector.broadcast %cst_27 : f32 to vector<8x1xf32>
      %c0_28 = arith.constant 0 : index
      %c0_29 = arith.constant 0 : index
      %46 = vector.load %arg7[%c0_28, %c0_29] : memref<8x1xf32, #tpu.memory_space<vmem>>, vector<8x1xf32>
      tpu.vector_store %arg7[%c0_28, %c0_29], %45 {strides = array<i32>} : memref<8x1xf32, #tpu.memory_space<vmem>>, vector<8x1xf32>,
      %cst_30 = arith.constant 0.000000e+00 : f32
      %47 = vector.broadcast %cst_30 : f32 to vector<8x1xf32>
      %c0_31 = arith.constant 0 : index
      %c0_32 = arith.constant 0 : index
      %48 = vector.load %arg8[%c0_31, %c0_32] : memref<8x1xf32, #tpu.memory_space<vmem>>, vector<8x1xf32>
      tpu.vector_store %arg8[%c0_31, %c0_32], %47 {strides = array<i32>} : memref<8x1xf32, #tpu.memory_space<vmem>>, vector<8x1xf32>,
      %cst_33 = arith.constant 0.000000e+00 : f32
      %49 = vector.broadcast %cst_33 : f32 to vector<8x1xf32>
      %c0_34 = arith.constant 0 : index
      %c0_35 = arith.constant 0 : index
      %50 = vector.load %arg9[%c0_34, %c0_35] : memref<8x1xf32, #tpu.memory_space<vmem>>, vector<8x1xf32>
      tpu.vector_store %arg9[%c0_34, %c0_35], %49 {strides = array<i32>} : memref<8x1xf32, #tpu.memory_space<vmem>>, vector<8x1xf32>,
    } else {
    }
    %c0 = arith.constant 0 : index
    %c0_1 = arith.constant 0 : index
    %3 = vector.load %arg2[%c0, %c0_1] : memref<8x32xbf16, #tpu.memory_space<vmem>>, vector<8x32xbf16>
    %c0_2 = arith.constant 0 : index
    %c0_3 = arith.constant 0 : index
    %4 = vector.load %arg3[%c0_2, %c0_3] : memref<32x128xbf16, #tpu.memory_space<vmem>>, vector<32x128xbf16>
    %cst = arith.constant dense<0.000000e+00> : vector<8x128xf32>
    %5 = tpu.matmul %3, %4, %cst {dimension_numbers = #tpu.dot_dimension_numbers<[1], [0], [0], [1], [0, 0, 1, 1], [], []>} : vector<8x32xbf16>, vector<32x128xbf16>, vector<8x128xf32> -> vector<8x128xf32>
    %6 = arith.truncf %5 : vector<8x128xf32> to vector<8x128xbf16>
    %c0_4 = arith.constant 0 : index
    %c0_5 = arith.constant 0 : index
    %7 = vector.load %arg5[%c0_4, %c0_5] : memref<8x128xbf16, #tpu.memory_space<vmem>>, vector<8x128xbf16>
    tpu.vector_store %arg5[%c0_4, %c0_5], %6 {strides = array<i32>} : memref<8x128xbf16, #tpu.memory_space<vmem>>, vector<8x128xbf16>,
    %8 = tpu.iota {dimensions = array<i32: 1>} : vector<8x128xi32>
    %c128_i32 = arith.constant 128 : i32
    %9 = arith.muli %arg1, %c128_i32 : i32
    %10 = vector.broadcast %9 : i32 to vector<8x128xi32>
    %11 = arith.addi %8, %10 : vector<8x128xi32>
    %c50_i32 = arith.constant 50 : i32
    %12 = vector.broadcast %c50_i32 : i32 to vector<8x128xi32>
    %13 = arith.cmpi slt, %11, %12 : vector<8x128xi32>
    %cst_6 = arith.constant -1.000000e+30 : f32
    %14 = vector.broadcast %cst_6 : f32 to vector<8x128xf32>
    %15 = arith.select %13, %5, %14 : vector<8x128xi1>, vector<8x128xf32>
    %c0_7 = arith.constant 0 : index
    %c0_8 = arith.constant 0 : index
    %16 = vector.load %arg7[%c0_7, %c0_8] : memref<8x1xf32, #tpu.memory_space<vmem>>, vector<8x1xf32>
    %cst_9 = arith.constant dense<0xFF800000> : vector<8xf32>
    %17 = vector.multi_reduction <maximumf>, %15, %cst_9 [1] : vector<8x128xf32> to vector<8xf32>
    %18 = vector.shape_cast %17 : vector<8xf32> to vector<8x1xf32>
    %19 = arith.maximumf %16, %18 : vector<8x1xf32>
    %c0_10 = arith.constant 0 : index
    %c0_11 = arith.constant 0 : index
    %20 = vector.load %arg8[%c0_10, %c0_11] : memref<8x1xf32, #tpu.memory_space<vmem>>, vector<8x1xf32>
    %21 = arith.subf %16, %19 : vector<8x1xf32>
    %22 = math.exp %21 : vector<8x1xf32>
    %23 = arith.mulf %20, %22 : vector<8x1xf32>
    %24 = vector.broadcast %19 : vector<8x1xf32> to vector<8x128xf32>
    %25 = arith.subf %15, %24 : vector<8x128xf32>
    %26 = math.exp %25 : vector<8x128xf32>
    %cst_12 = arith.constant dense<0.000000e+00> : vector<8xf32>
    %27 = vector.multi_reduction <add>, %26, %cst_12 [1] : vector<8x128xf32> to vector<8xf32>
    %28 = vector.shape_cast %27 : vector<8xf32> to vector<8x1xf32>
    %29 = arith.addf %23, %28 : vector<8x1xf32>
    %c0_13 = arith.constant 0 : index
    %c0_14 = arith.constant 0 : index
    %30 = vector.load %arg8[%c0_13, %c0_14] : memref<8x1xf32, #tpu.memory_space<vmem>>, vector<8x1xf32>
    tpu.vector_store %arg8[%c0_13, %c0_14], %29 {strides = array<i32>} : memref<8x1xf32, #tpu.memory_space<vmem>>, vector<8x1xf32>,
    %c0_15 = arith.constant 0 : index
    %c0_16 = arith.constant 0 : index
    %31 = vector.load %arg7[%c0_15, %c0_16] : memref<8x1xf32, #tpu.memory_space<vmem>>, vector<8x1xf32>
    tpu.vector_store %arg7[%c0_15, %c0_16], %19 {strides = array<i32>} : memref<8x1xf32, #tpu.memory_space<vmem>>, vector<8x1xf32>,
    %c0_17 = arith.constant 0 : index
    %c0_18 = arith.constant 0 : index
    %32 = vector.load %arg9[%c0_17, %c0_18] : memref<8x1xf32, #tpu.memory_space<vmem>>, vector<8x1xf32>
    %c0_19 = arith.constant 0 : index
    %c0_20 = arith.constant 0 : index
    %33 = vector.load %arg4[%c0_19, %c0_20] : memref<8x1xi32, #tpu.memory_space<vmem>>, vector<8x1xi32>
    %34 = vector.broadcast %33 : vector<8x1xi32> to vector<8x128xi32>
    %35 = arith.cmpi eq, %11, %34 : vector<8x128xi32>
    %cst_21 = arith.constant 0.000000e+00 : f32
    %36 = vector.broadcast %cst_21 : f32 to vector<8x128xf32>
    %37 = arith.select %35, %5, %36 : vector<8x128xi1>, vector<8x128xf32>
    %cst_22 = arith.constant dense<0.000000e+00> : vector<8xf32>
    %38 = vector.multi_reduction <add>, %37, %cst_22 [1] : vector<8x128xf32> to vector<8xf32>
    %39 = vector.shape_cast %38 : vector<8xf32> to vector<8x1xf32>
    %40 = arith.addf %32, %39 : vector<8x1xf32>
    %c0_23 = arith.constant 0 : index
    %c0_24 = arith.constant 0 : index
    %41 = vector.load %arg9[%c0_23, %c0_24] : memref<8x1xf32, #tpu.memory_space<vmem>>, vector<8x1xf32>
    tpu.vector_store %arg9[%c0_23, %c0_24], %40 {strides = array<i32>} : memref<8x1xf32, #tpu.memory_space<vmem>>, vector<8x1xf32>,
    %c0_i32_25 = arith.constant 0 : i32
    %42 = arith.cmpi eq, %arg1, %c0_i32_25 : i32
    %43 = arith.extui %42 : i1 to i32
    %c0_i32_26 = arith.constant 0 : i32
    %44 = arith.cmpi ne, %43, %c0_i32_26 : i32
    scf.if %44 {
      %c0_27 = arith.constant 0 : index
      %c0_28 = arith.constant 0 : index
      %45 = vector.load %arg7[%c0_27, %c0_28] : memref<8x1xf32, #tpu.memory_space<vmem>>, vector<8x1xf32>
      %c0_29 = arith.constant 0 : index
      %c0_30 = arith.constant 0 : index
      %46 = vector.load %arg8[%c0_29, %c0_30] : memref<8x1xf32, #tpu.memory_space<vmem>>, vector<8x1xf32>
      %47 = math.log %46 : vector<8x1xf32>
      %48 = arith.addf %45, %47 : vector<8x1xf32>
      %c0_31 = arith.constant 0 : index
      %c0_32 = arith.constant 0 : index
      %49 = vector.load %arg9[%c0_31, %c0_32] : memref<8x1xf32, #tpu.memory_space<vmem>>, vector<8x1xf32>
      %50 = arith.subf %48, %49 : vector<8x1xf32>
      %c0_33 = arith.constant 0 : index
      %c0_34 = arith.constant 0 : index
      %51 = vector.load %arg6[%c0_33, %c0_34] : memref<8x1xf32, #tpu.memory_space<vmem>>, vector<8x1xf32>
      tpu.vector_store %arg6[%c0_33, %c0_34], %50 {strides = array<i32>} : memref<8x1xf32, #tpu.memory_space<vmem>>, vector<8x1xf32>,
    } else {
    }
    return
  }
  func.func @transform_0(%arg0: i32, %arg1: i32) -> (i32, i32) {
    %c0_i32 = arith.constant 0 : i32
    %c0_i32_0 = arith.constant 0 : i32
    return %arg0, %c0_i32 : i32, i32
  }
  func.func @transform_1(%arg0: i32, %arg1: i32) -> (i32, i32) {
    %c0_i32 = arith.constant 0 : i32
    %c0_i32_0 = arith.constant 0 : i32
    return %c0_i32, %arg1 : i32, i32
  }
  func.func @transform_2(%arg0: i32, %arg1: i32) -> (i32, i32) {
    %c0_i32 = arith.constant 0 : i32
    %c0_i32_0 = arith.constant 0 : i32
    return %arg0, %c0_i32 : i32, i32
  }
  func.func @transform_3(%arg0: i32, %arg1: i32) -> (i32, i32) {
    %c0_i32 = arith.constant 0 : i32
    return %arg0, %arg1 : i32, i32
  }
  func.func @transform_4(%arg0: i32, %arg1: i32) -> (i32, i32) {
    %c0_i32 = arith.constant 0 : i32
    %c0_i32_0 = arith.constant 0 : i32
    return %arg0, %c0_i32 : i32, i32
  }
}

</mosaic_0001>

<bundles_post_ra>
// kernel: whisper_forward.41
= control target key start
LH: loop header
LB: loop body
LE: loop exit
PB: predicated region body
PF: predicated region fallthrough
CT: control target
= control target key end

     0   :  { %s1116_s0 = inlined_call_operand.hbm [shape: bf16[2,8,32], index: 0, kind: input, shape index: {}]   ;;  %s1117_s1 = inlined_call_operand.hbm [shape: bf16[2,8,32], index: 1, kind: input, shape index: {}]   ;;  %s1118_s2 = inlined_call_operand.hbm [shape: bf16[2,8,32], index: 2, kind: input, shape index: {}]   ;;  %s1119_s3 = inlined_call_operand.hbm [shape: bf16[2,8,32], index: 3, kind: output, shape index: {}]  }
   0x1   :  { %1125 = sst [smem:[#allocation15_spill]] %s1117_s1 }
   0x2   :  { %8 = vsyncpa [#allocation3], 0 }
   0x3   :  { %10 = vsyncpa [#allocation3 + $0x1], 0 }
   0x4   :  { %11 = vsyncpa [#allocation6], 0 }
   0x5   :  { %13 = vsyncpa [#allocation6 + $0x1], 0 }
   0x6   :  { %14 = vsyncpa [#allocation4], 0 }
   0x7   :  { %16 = vsyncpa [#allocation4 + $0x1], 0  ;;  %s849_s12 = smov 0   ;;  %s851_s13 = smov 0  }
   0x8   :  { %s853_s14 = smov 0   ;;  %s855_s15 = smov 0  }
   0x9   :  { %s857_s16 = smov 0   ;;  %s859_s17 = smov 0  }
   0xa LB: > { %1126 = sst [smem:[#allocation12_spill]] %s817_s16  ;;  %s880_s18 = sadd.s32 4294967295, %s821_s17   ;;  %s821_s17 = sphi %s859_s17, %s22_s17   ;;  %s817_s16 = sphi %s857_s16, %s1147_s16   ;;  %s813_s15 = sphi %s855_s15, %s1146_s15   ;;  %s809_s14 = sphi %s853_s14, %s1150_s14   ;;  %s805_s13 = sphi %s851_s13, %s1149_s13   ;;  %s801_s12 = sphi %s849_s12, %s1148_s12  }
   0xb   : > { %s531_s19 = sadd.s32 4294967294, %s821_s17   ;;  %s34_s20 = sadd.s32 1, %s817_s16 }
   0xc   : > { %s43_s21 = sadd.s32 1, %s809_s14  ;;  %p36_p0 = scmp.ge.s32.totalorder %s34_s20, 2 }
   0xd   : > { %p50_p1 = scmp.ne.s32.totalorder %s809_s14, %s805_s13  ;;  %p51_p2 = scmp.eq.s32.totalorder %s821_s17, 0 }
   0xe   : > { %p56_p3 = scmp.ne.s32.totalorder %s805_s13, %s801_s12  ;;  %s1152_s20 = smov (%p36_p0, %s34_s20), 0 }
   0xf   : > { %1127 = sst [smem:[#allocation13_spill]] %s1152_s20  ;;  %p892_p4 = por %p51_p2, %p50_p1 }
  0x10   : > { %p57_p5 = scmp.eq.s32.totalorder %s880_s18, 0  ;;  %s38_s23 = ssub.s32 %s817_s16, %s1152_s20 }
  0x11   : > { %p134_p6 = scmp.eq.s32.totalorder %s880_s18, 1  ;;  %p41_p7 = scmp.eq.s32.totalorder %s38_s23, 0 }
  0x12   : > { %p900_p8 = por %p57_p5, %p56_p3  ;;  %p140_p10 = scmp.eq.s32.totalorder %s531_s19, 1 }
  0x13   : > { %p904_p9 = por %p134_p6, %p50_p1  ;;  %p589_p13 = scmp.lt.s32.totalorder %s821_s17, 2 }
  0x14   : > { %s1129_s24 = scalar_select %p900_p8, 1, 0 }
  0x15   : > { %s1130_s25 = scalar_select %p904_p9, 1, 0 }
  0x16   : > { %s909_s26 = scalar_select %p41_p7, %s809_s14, %s43_s21  }
  0x17   : > { %p911_p11 = por %p140_p10, %p56_p3  ;;  %s160_s28 = sand.u32 1, %s809_s14  }
  0x18   : > { %1131 = sst [smem:[#allocation14_spill]] %s909_s26  ;;  %s920_s29 = sshll.u32 %s160_s28, 2 }
  0x19   : > { %s1132_s27 = scalar_select %p911_p11, 1, 0 }
  0x1a   : > { %s923_s30 = sshll.u32 %s817_s16, 6  ;;  %p927_p0 = pnand %p589_p13, %p892_p4 }
  0x1b   : > { %s179_s5 = sand.u32 1, %s821_s17   ;;  %s1134_s1 = sld [smem:[#allocation15_spill]] }
  0x1c   : > { %s1133_s4 = scalar_select %p927_p0, 1, 0 }
  0x1d   : > { %s183_s9 = scalar_lea.vmem [#allocation5], %s920_s29  ;;  %s943_s11 = scalar_lea.sflag [#allocation6], %s179_s5 }
  0x1e   : > { %s190_s10 = sshll.u32 %s183_s9, 4  ;;  %p949_p4 = pneg %p927_p0  ;;  %s940_s10 = int_to_ptr.vmem [resolvable:$true] %s190_s10 }
  0x21   : > { %s936_s8 = scalar_lea.hbm %s1134_s1, %s923_s30  ;;  %s650_s6 = scalar_lea.hbm %s1134_s1, 128 }
  0x22   : > { %s645_s19 = scalar_lea.hbm %s936_s8, 64  ;;  %p651_p7 = scmp.lt.u32.totalorder %s936_s8, %s1134_s1 }
  0x23   : > { %p646_p3 = scmp.ne.s32.totalorder %s936_s8, %s645_s19  ;;  %p652_p10 = scmp.lt.u32.totalorder %s650_s6, %s645_s19 }
  0x24   : > { %p654_p12 = scmp.lt.u32.totalorder %s645_s19, %s936_s8 }
  0x25   : > { %p648_p5 = pnand %p949_p4, %p646_p3  ;;  %p653_p13 = por %p652_p10, %p651_p7 }
  0x27   : > { %p649_p6 = pneg %p648_p5  ;;  %p655_p1 = por %p654_p12, %p653_p13 }
  0x29   : > { %p656_p2 = pnand %p655_p1, %p649_p6 }
  0x2b   : > { %659 = shalt.err (!%p656_p2)
}
  0x2c   : > { %s660_s5 = scalar_lea.vmem %s940_s10, 64  ;;  %s823_s22 = smov [#allocation5]  }
  0x2d   : > { %p661_p3 = scmp.ne.s32.totalorder %s940_s10, %s660_s5  ;;  %s665_s23 = sshll.u32 %s823_s22, 4  ;;  %s666_s23 = int_to_ptr.vmem [resolvable:$false] %s665_s23 }
  0x2e   : > { %s667_s7 = scalar_lea.vmem %s666_s23, 128  ;;  %p668_p9 = scmp.lt.s32.totalorder %s940_s10, %s666_s23 }
  0x2f   : > { %p663_p5 = pnand %p661_p3, %p949_p4  ;;  %p669_p8 = scmp.lt.s32.totalorder %s667_s7, %s660_s5 }
  0x31   : > { %p664_p11 = pneg %p663_p5  ;;  %p670_p7 = por %p669_p8, %p668_p9 }
  0x33   : > { %p671_p10 = pnand %p670_p7, %p664_p11 }
  0x35   : > { %674 = shalt.err (!%p671_p10)
}
  0x36   : > { %581 = dma.hbm_to_vmem [thread:$0]  (!%p927_p0), %s936_s8, 64, %s940_s10, %s943_s11  }
  0x37   : > { %p1136_p12 = scmp.lt.s32.totalorder %s821_s17, 3  ;;  %p1137_p1 = scmp.ge.s32.totalorder %s821_s17, 1 }
  0x38   : > { %s985_s5 = scalar_lea.hbm %s1116_s0, %s923_s30  ;;  %s164_s22 = scalar_lea.vmem [#allocation2], %s920_s29 }
  0x39   : > { %p977_p2 = pnand %p1137_p1, %p1136_p12  ;;  %s172_s23 = sshll.u32 %s164_s22, 4  ;;  %s988_s23 = int_to_ptr.vmem [resolvable:$true] %s172_s23 }
  0x3a   : > { %s994_s7 = scalar_lea.hbm %s1118_s2, %s923_s30  ;;  %s161_s1 = scalar_lea.sflag [#allocation3], %s160_s28 }
  0x3b   : > { %s1138_s19 = scalar_select %p977_p2, 1, 0 }
  0x3c   : > { %s675_s20 = scalar_lea.hbm %s985_s5, 64  ;;  %s680_s16 = scalar_lea.hbm %s1116_s0, 128 }
  0x3d   : > { %p676_p8 = scmp.ne.s32.totalorder %s985_s5, %s675_s20  ;;  %p681_p6 = scmp.lt.u32.totalorder %s985_s5, %s1116_s0 }
  0x3e   : > { %p682_p13 = scmp.lt.u32.totalorder %s680_s16, %s675_s20  ;;  %p684_p5 = scmp.lt.u32.totalorder %s675_s20, %s985_s5 }
  0x3f   : > { %p678_p9 = pnand %p676_p8, %p949_p4 }
  0x40   : > { %p683_p3 = por %p682_p13, %p681_p6 }
  0x41   : > { %p679_p11 = pneg %p678_p9 }
  0x42   : > { %p685_p7 = por %p684_p5, %p683_p3 }
  0x44   : > { %p686_p10 = pnand %p685_p7, %p679_p11 }
  0x46   : > { %689 = shalt.err (!%p686_p10)
}
  0x47   : > { %s690_s28 = scalar_lea.vmem %s988_s23, 64  ;;  %s824_s30 = smov [#allocation2]  }
  0x48   : > { %p691_p12 = scmp.ne.s32.totalorder %s988_s23, %s690_s28  ;;  %s695_s8 = sshll.u32 %s824_s30, 4  ;;  %s696_s8 = int_to_ptr.vmem [resolvable:$false] %s695_s8 }
  0x49   : > { %s697_s26 = scalar_lea.vmem %s696_s8, 128  ;;  %p698_p9 = scmp.lt.s32.totalorder %s988_s23, %s696_s8 }
  0x4a   : > { %p693_p1 = pnand %p691_p12, %p949_p4  ;;  %p699_p2 = scmp.lt.s32.totalorder %s697_s26, %s690_s28 }
  0x4c   : > { %p694_p8 = pneg %p693_p1  ;;  %p700_p6 = por %p699_p2, %p698_p9 }
  0x4e   : > { %p701_p13 = pnand %p700_p6, %p694_p8 }
  0x50   : > { %704 = shalt.err (!%p701_p13)
}
  0x51   : > { %578 = dma.hbm_to_vmem [thread:$0]  (!%p927_p0), %s985_s5, 64, %s988_s23, %s161_s1  }
  0x52   : > { %s201_s16 = scalar_lea.vmem [#allocation7], %s920_s29  ;;  %s705_s10 = scalar_lea.hbm %s994_s7, 64 }
  0x53   : > { %s208_s20 = sshll.u32 %s201_s16, 4  ;;  %p706_p11 = scmp.ne.s32.totalorder %s994_s7, %s705_s10  ;;  %s209_s20 = int_to_ptr.vmem [resolvable:$true] %s208_s20 }
  0x54   : > { %s710_s22 = scalar_lea.hbm %s1118_s2, 128  ;;  %p711_p5 = scmp.lt.u32.totalorder %s994_s7, %s1118_s2 }
  0x55   : > { %p708_p2 = pnand %p706_p11, %p949_p4  ;;  %p712_p7 = scmp.lt.u32.totalorder %s710_s22, %s705_s10 }
  0x56   : > { %p714_p12 = scmp.lt.u32.totalorder %s705_s10, %s994_s7 }
  0x57   : > { %p709_p3 = pneg %p708_p2  ;;  %p713_p10 = por %p712_p7, %p711_p5 }
  0x59   : > { %p715_p1 = por %p714_p12, %p713_p10 }
  0x5b   : > { %p716_p8 = pnand %p715_p1, %p709_p3 }
  0x5d   : > { %719 = shalt.err (!%p716_p8)
}
  0x5e   : > { %s720_s1 = scalar_lea.vmem %s209_s20, 64  ;;  %s825_s29 = smov [#allocation7]  }
  0x5f   : > { %p721_p9 = scmp.ne.s32.totalorder %s209_s20, %s720_s1  ;;  %s725_s5 = sshll.u32 %s825_s29, 4  ;;  %s726_s5 = int_to_ptr.vmem [resolvable:$false] %s725_s5 }
  0x60   : > { %s727_s23 = scalar_lea.vmem %s726_s5, 128  ;;  %p728_p11 = scmp.lt.s32.totalorder %s209_s20, %s726_s5 }
  0x61   : > { %p723_p6 = pnand %p721_p9, %p949_p4  ;;  %p729_p2 = scmp.lt.s32.totalorder %s727_s23, %s720_s1 }
  0x63   : > { %p724_p13 = pneg %p723_p6  ;;  %p730_p0 = por %p729_p2, %p728_p11 }
  0x65   : > { %p731_p5 = pnand %p730_p0, %p724_p13 }
  0x67   : > { %734 = shalt.err (!%p731_p5)
}
  0x68   : > { %p1139_p7 = scmp.ne.s32.totalorder %s1133_s4, 0  ;;  %p1140_p3 = scmp.ne.s32.totalorder %s1138_s19, 0 }
  0x69   : > { %s1041_s21 = sand.u32 (!%p1140_p3), 1, %s805_s13   ;;  %p1141_p0 = scmp.ne.s32.totalorder (!%p1140_p3), %s1129_s24, 0 }
  0x6a   : > { %584 = dma.hbm_to_vmem [thread:$0]  (!%p1139_p7), %s994_s7, 64, %s209_s20, %s943_s11  }
  0x6b   : > { %217 = sbr.rel (%p1140_p3) target bundleno = 731 (0x2db), region = 32  ;;  %s1044_s8 = sshll.u32 (!%p1140_p3), %s1041_s21, 2 }
  0x6c   : > { %s220_s26 = scalar_lea.sflag (!%p1140_p3), [#allocation3], %s1041_s21  ;;  %s223_s16 = scalar_lea.vmem (!%p1140_p3), [#allocation2], %s1044_s8 }
  0x72   : > { %788 = dma.done.wait (%p1141_p0), %s220_s26, 64  }
  0x73   : > { %790 = vsyncadd (%p1141_p0), %s220_s26, 4294967232  ;;  %s228_s4 = sand.u32 1, %s880_s18   ;;  %s232_s19 = scalar_lea.vmem [#allocation5], %s1044_s8 }
  0x74   : > { %s229_s11 = scalar_lea.sflag [#allocation6], %s228_s4 }
  0x75   : > { %792 = dma.done.wait (%p1141_p0), %s229_s11, 128  }
  0x76   : > { %794 = vsyncadd (%p1141_p0), %s229_s11, 4294967168  ;;  %v826_v0 = vmov 0.0   ;;  %vm827_vm0 = vmmov 0   ;;  %vm277_vm1 = vcmask 261120   ;;  %v276_v1 = vld [vmem:[%s232_s19] sm:$0xf]  ;;  %v324_v4 = vlaneseq }
  0x77   : > { %555 = vmatprep.subr.bf16.mxu0 %v826_v0  ;;  %557 = vmatprep.mubr.msk.bf16.mxu0 %vm827_vm0, %v826_v0  ;;  %v282_v2 = vsel %vm277_vm1, %v276_v1, 0  ;;  %v275_v3 = vld [vmem:[%s223_s16] sm:$0xf]  ;;  %vm328_vm3 = vcmask 64512   ;;  %vm343_vm4 = vcmask 1043456   ;;  %s241_s18 = scalar_lea.vmem [#allocation7], %s1044_s8 }
  0x78   : > { %561 = vmatprep.subr.bf16.mxu1 %v826_v0  ;;  %563 = vmatprep.mubr.msk.bf16.mxu1 %vm827_vm0, %v826_v0  ;;  %v325_v5 = vand.u32 127, %v324_v4  ;;  %v339_v12 = vld [vmem:[%s241_s18] sm:$0xf]  ;;  %s548_s24 = sshll.u32 %s813_s15, 6  ;;  %s273_s7 = scalar_lea.vmem [#allocation8], %s1044_s8  ;;  %vm390_vm5 = vcmask 257024  }
  0x79   : > { %556 = vmatpush3.bf16.xpose.msra.mxu0 %v282_v2  ;;  %v345_v13 = vsel %vm343_vm4, %v339_v12, 0  ;;  %s407_s20 = sshll.u32 %s273_s7, 4  ;;  %s1067_s9 = scalar_lea.hbm %s1119_s3, %s548_s24  ;;  %s1069_s20 = int_to_ptr.vmem [resolvable:$true] %s407_s20 }
  0x7a   : > { %vm326_vm2 = vcmp.lt.s32.totalorder %v325_v5, 6  ;;  %562 = vmatpush3.bf16.msra.mxu1 %v345_v13  ;;  %s393_s15 = scalar_lea.sflag [#allocation4], %s1041_s21  ;;  %s735_s22 = scalar_lea.vmem %s1069_s20, 64 }
  0x7b   : > { %p736_p4 = scmp.ne.s32.totalorder %s1069_s20, %s735_s22  ;;  %p1142_p10 = scmp.ne.s32.totalorder %s1130_s25, 0 }
  0x7c   : > { %s828_s28 = smov [#allocation8]  }
  0x7d   : > { %p737_p12 = pnand %p736_p4, %p1142_p10  ;;  %s739_s30 = sshll.u32 %s828_s28, 4  ;;  %s740_s30 = int_to_ptr.vmem [resolvable:$false] %s739_s30 }
  0x7e   : > { %s741_s1 = scalar_lea.vmem %s740_s30, 128  ;;  %p742_p8 = scmp.lt.s32.totalorder %s1069_s20, %s740_s30 }
  0x7f   : > { %p738_p1 = pneg %p737_p12  ;;  %p743_p9 = scmp.lt.s32.totalorder %s741_s1, %s735_s22 }
  0x80   : > { %558 = vmatmul.mubr.msk.bf16.vlgmr.msra.gmra.mrb[0].mxu0 %vm277_vm1, %v275_v3 }
  0x81   : > { %p744_p6 = por %p743_p9, %p742_p8 }
  0x83   : > { %p745_p13 = pnand %p744_p6, %p738_p1 }
 0x153   : > { %v318_v6 = vpop.f32.mrb[0].mxu0 }
 0x154   : > { %v327_v7 = vsel %vm326_vm2, %v318_v6, -1e+30  ;;  %v559_v8 = vpop.f32.mrb[1].mxu0 }
 0x155   : > { %v321_v9 = vpop.f32.mrb[2].mxu0  ;;  %v329_v10 = vsel %vm328_vm3, %v327_v7, -inf }
 0x156   : > { %330 = vmax.xlane.f32.xlu0 %v329_v10  ;;  %v560_v11 = vpop.f32.mrb[3].mxu0 }
 0x1e3   : > { %v331_v14 = vpop.xlane.xlu0 %330 }
 0x1e4   : > { %v332_v15 = vsub.f32 %v327_v7, %v331_v14 }
 0x1e6   : > { %v333_v16 = vmul.f32 1.442695, %v332_v15 }
 0x1e8   : > { %641 = vpow2.f32 %v333_v16 }
 0x1f2   : > { %v642_v17 = vpop.eup %641 }
 0x1f3   : > { %v335_v18 = vsel %vm328_vm3, %v642_v17, 0.0  ;;  %v338_v19 = vpack.c.bf16 %v642_v17, %v642_v17 }
 0x1f4   : > { %336 = vadd.xlane.f32.xlu0 %v335_v18 }
 0x1f5   : > { %564 = vmatmul.mubr.msk.bf16.vlgmr.msra.gmra.mrb[0].mxu1 %vm328_vm3, %v338_v19 }
 0x281   : > { %v337_v20 = vpop.xlane.xlu0 %336 }
 0x282   : > { %643 = vrcp.f32 %v337_v20 }
 0x28c   : > { %v644_v21 = vpop.eup %643 }
 0x2c8   : > { %v381_v22 = vpop.f32.mrb[0].mxu1 }
 0x2c9   : > { %v388_v23 = vmul.f32 %v644_v21, %v381_v22  ;;  %v565_v24 = vpop.f32.mrb[1].mxu1 }
 0x2ca   : > { %v384_v25 = vpop.f32.mrb[2].mxu1 }
 0x2cb   : > { %v389_v26 = vpack.c.bf16 %v388_v23, %v388_v23  ;;  %v566_v27 = vpop.f32.mrb[3].mxu1 }
 0x2cd   : > { %391 = vst.msk [vmem:[%s273_s7] sm:$0xf] %vm390_vm5, %v389_v26 }
 0x2ce   : > { %748 = shalt.err (!%p745_p13)
}
 0x2cf   : > { %s749_s29 = scalar_lea.hbm %s1067_s9, 64  ;;  %s753_s21 = scalar_lea.hbm %s1119_s3, 128 }
 0x2d0   : > { %p750_p11 = scmp.ne.s32.totalorder %s1067_s9, %s749_s29  ;;  %p754_p7 = scmp.lt.u32.totalorder %s1067_s9, %s1119_s3 }
 0x2d1   : > { %p755_p3 = scmp.lt.u32.totalorder %s753_s21, %s749_s29  ;;  %p757_p4 = scmp.lt.u32.totalorder %s749_s29, %s1067_s9 }
 0x2d2   : > { %p751_p2 = pnand %p750_p11, %p1142_p10 }
 0x2d3   : > { %p756_p0 = por %p755_p3, %p754_p7 }
 0x2d4   : > { %p752_p5 = pneg %p751_p2 }
 0x2d5   : > { %p758_p12 = por %p757_p4, %p756_p0 }
 0x2d7   : > { %p759_p1 = pnand %p758_p12, %p752_p5 }
 0x2d9   : > { %762 = shalt.err (!%p759_p1)
}
 0x2da   : > { %573 = dma.vmem_to_hbm [thread:$0]  (%p1142_p10), %s1069_s20, 64, %s1067_s9, %s393_s15  }
 0x2db PF: > { %s419_s16 = sand.u32 1, %s801_s12   ;;  %p1143_p8 = scmp.ne.s32.totalorder %s1132_s27, 0 }
 0x2dc   : > { %p1144_p9 = scmp.ge.s32.totalorder %s821_s17, 2  ;;  %s420_s4 = scalar_lea.sflag [#allocation4], %s419_s16 }
 0x2de   : > { %p586_p6 = pnand %p1144_p9, %p1143_p8 }
 0x2e0   : > { %796 = dma.done.wait (!%p586_p6), %s420_s4, 64  }
 0x2e1   : > { %798 = vsyncadd (!%p586_p6), %s420_s4, 4294967232  ;;  %s22_s17 = sadd.s32 1, %s821_s17   ;;  %s1145_s25 = sld [smem:[#allocation14_spill]] }
 0x2e2   : > { %p19_p13 = scmp.ge.s32.totalorder %s22_s17, 4   ;;  %s1146_s15 = sld [smem:[#allocation12_spill]] }
 0x2e3   : > { %s1147_s16 = sld [smem:[#allocation13_spill]]  ;;  %s1148_s12 = smov %s805_s13 }
 0x2e4   : > { %s1149_s13 = smov %s809_s14  ;;  %21 = sbr.rel (!%p19_p13) target bundleno = 10 (0xa), region = 101 }
 0x2e7   : > { %s1150_s14 = smov %s1145_s25 }
 0x2eb   :  { %425 = vsyncpa [#allocation3], 1 }
 0x2ec   :  { %427 = vsyncpa [#allocation3 + $0x1], 1 }
 0x2ed   :  { %428 = vsyncpa [#allocation6], 1 }
 0x2ee   :  { %430 = vsyncpa [#allocation6 + $0x1], 1 }
 0x2ef   :  { %431 = vsyncpa [#allocation4], 1 }
 0x2f0   :  { %433 = vsyncpa [#allocation4 + $0x1], 1 }

// kernel: whisper_forward.42
= control target key start
LH: loop header
LB: loop body
LE: loop exit
PB: predicated region body
PF: predicated region fallthrough
CT: control target
= control target key end

     0   :  { %s1378_s0 = inlined_call_operand.hbm [shape: bf16[16,32], index: 0, kind: input, shape index: {}]   ;;  %s1379_s1 = inlined_call_operand.hbm [shape: bf16[16,32], index: 1, kind: input, shape index: {}]   ;;  %s1380_s2 = inlined_call_operand.hbm [shape: bf16[32,32], index: 2, kind: input, shape index: {}]   ;;  %s1381_s3 = inlined_call_operand.hbm [shape: f32[1,32], index: 3, kind: input, shape index: {}]   ;;  %s1382_s4 = inlined_call_operand.hbm [shape: f32[1,32], index: 4, kind: input, shape index: {}]   ;;  %s1383_s5 = inlined_call_operand.hbm [shape: f32[1,32], index: 5, kind: input, shape index: {}]   ;;  %s1384_s6 = inlined_call_operand.hbm [shape: bf16[16,32], index: 6, kind: output, shape index: {}]  }
   0x1   :  { %1389 = sst [smem:[#allocation20_spill]] %s1380_s2 }
   0x2   :  { %1390 = sst [smem:[#allocation21_spill]] %s1381_s3 }
   0x3   :  { %1391 = sst [smem:[#allocation22_spill]] %s1382_s4 }
   0x4   :  { %11 = vsyncpa [#allocation3], 0 }
   0x5   :  { %13 = vsyncpa [#allocation3 + $0x1], 0 }
   0x6   :  { %14 = vsyncpa [#allocation6], 0 }
   0x7   :  { %16 = vsyncpa [#allocation6 + $0x1], 0 }
   0x8   :  { %17 = vsyncpa [#allocation9], 0 }
   0x9   :  { %18 = vsyncpa [#allocation12], 0 }
   0xa   :  { %19 = vsyncpa [#allocation4], 0 }
   0xb   :  { %21 = vsyncpa [#allocation4 + $0x1], 0  ;;  %s1048_s21 = smov 0   ;;  %s1050_s22 = smov 0  }
   0xc   :  { %s1052_s23 = smov 0   ;;  %s1054_s24 = smov 0  }
   0xd LB: > { %s1002_s25 = smov [#allocation7]   ;;  %s1069_s27 = sadd.s32 4294967295, %s1000_s24   ;;  %s1000_s24 = sphi %s1054_s24, %s1418_s24   ;;  %s996_s23 = sphi %s1052_s23, %s1417_s23   ;;  %s992_s22 = sphi %s1050_s22, %s1416_s22   ;;  %s988_s21 = sphi %s1048_s21, %s1415_s21  }
   0xe   : > { %s206_s26 = sshll.u32 %s1002_s25, 4  ;;  %p607_p0 = scmp.ge.s32.totalorder %s1000_s24, 1  ;;  %s1074_s26 = int_to_ptr.vmem [resolvable:$true] %s206_s26 }
   0xf   : > { %p1385_p1 = scmp.eq.s32.totalorder %s1069_s27, 0  ;;  %p194_p2 = scmp.lt.s32.totalorder %s1000_s24, 3 }
  0x10   : > { %s1003_s29 = smov [#allocation8]   ;;  %s1004_s8 = smov [#allocation10]  }
  0x11   : > { %p1076_p3 = pnand %p607_p0, %p194_p2  ;;  %s220_s30 = sshll.u32 %s1003_s29, 4  ;;  %s1089_s30 = int_to_ptr.vmem [resolvable:$true] %s220_s30 }
  0x12   : > { %s231_s9 = sshll.u32 %s1004_s8, 4  ;;  %s1394_s2 = sld [smem:[#allocation20_spill]]  ;;  %s1091_s9 = int_to_ptr.vmem [resolvable:$true] %s231_s9 }
  0x13   : > { %s1392_s28 = scalar_select %p1076_p3, 1, 0 }
  0x14   : > { %p668_p5 = pneg %p1076_p3 }
  0x16   : > { %p1085_p6 = pnand %p668_p5, %p1385_p1 }
  0x18   : > { %s746_s12 = scalar_lea.hbm %s1394_s2, 256  ;;  %p1101_p8 = pneg %p1085_p6 }
  0x19   : > { %p747_p7 = scmp.ne.s32.totalorder %s1394_s2, %s746_s12  ;;  %p753_p11 = scmp.lt.u32.totalorder %s746_s12, %s1394_s2 }
  0x1b   : > { %p749_p9 = pnand %p1101_p8, %p747_p7 }
  0x1d   : > { %p750_p10 = pneg %p749_p9 }
  0x1f   : > { %p755_p12 = pnand %p753_p11, %p750_p10 }
  0x21   : > { %758 = shalt.err (!%p755_p12)
}
  0x22   : > { %s759_s18 = scalar_lea.vmem %s1074_s26, 256  ;;  %p767_p5 = scmp.lt.s32.totalorder %s1074_s26, %s1074_s26 }
  0x23   : > { %p760_p13 = scmp.ne.s32.totalorder %s1074_s26, %s759_s18  ;;  %p768_p4 = scmp.lt.s32.totalorder %s759_s18, %s759_s18 }
  0x25   : > { %p762_p0 = pnand %p760_p13, %p1101_p8  ;;  %p769_p7 = por %p768_p4, %p767_p5 }
  0x27   : > { %p763_p2 = pneg %p762_p0 }
  0x29   : > { %p770_p9 = pnand %p769_p7, %p763_p2 }
  0x2b   : > { %773 = shalt.err (!%p770_p9)
}
  0x2c   : > { %s1005_s19 = smov 64   ;;  %s1006_s20 = smov 4  }
  0x2d   : > { %671 = dma.hbm_to_vmem [thread:$0]  (!%p1085_p6), %s1394_s2, 256, %s1074_s26, [#allocation6], %s1005_s19, %s1005_s19, %s1006_s20  }
  0x2e   : > { %s1396_s3 = sld [smem:[#allocation21_spill]] }
  0x34   : > { %s774_s11 = scalar_lea.hbm %s1396_s3, 16 }
  0x35   : > { %p775_p4 = scmp.ne.s32.totalorder %s1396_s3, %s774_s11  ;;  %p781_p12 = scmp.lt.u32.totalorder %s774_s11, %s1396_s3 }
  0x37   : > { %p777_p10 = pnand %p775_p4, %p1101_p8 }
  0x39   : > { %p778_p11 = pneg %p777_p10 }
  0x3b   : > { %p783_p13 = pnand %p781_p12, %p778_p11 }
  0x3d   : > { %786 = shalt.err (!%p783_p13)
}
  0x3e   : > { %s787_s26 = scalar_lea.vmem %s1089_s30, 16  ;;  %s794_s17 = scalar_lea.vmem %s1089_s30, 32 }
  0x3f   : > { %p788_p0 = scmp.ne.s32.totalorder %s1089_s30, %s787_s26  ;;  %p795_p7 = scmp.lt.s32.totalorder %s1089_s30, %s1089_s30 }
  0x40   : > { %p796_p9 = scmp.lt.s32.totalorder %s794_s17, %s787_s26 }
  0x41   : > { %p790_p2 = pnand %p788_p0, %p1101_p8 }
  0x42   : > { %p797_p4 = por %p796_p9, %p795_p7 }
  0x43   : > { %p791_p5 = pneg %p790_p2 }
  0x45   : > { %p798_p10 = pnand %p797_p4, %p791_p5 }
  0x47   : > { %801 = shalt.err (!%p798_p10)
}
  0x48   : > { %674 = dma.hbm_to_vmem [thread:$0]  (!%p1085_p6), %s1396_s3, 16, %s1089_s30, [#allocation9]  }
  0x49   : > { %s1397_s4 = sld [smem:[#allocation22_spill]] }
  0x4f   : > { %s802_s29 = scalar_lea.hbm %s1397_s4, 16 }
  0x50   : > { %p803_p11 = scmp.ne.s32.totalorder %s1397_s4, %s802_s29  ;;  %p809_p0 = scmp.lt.u32.totalorder %s802_s29, %s1397_s4 }
  0x52   : > { %p805_p12 = pnand %p803_p11, %p1101_p8 }
  0x54   : > { %p806_p13 = pneg %p805_p12 }
  0x56   : > { %p811_p2 = pnand %p809_p0, %p806_p13 }
  0x58   : > { %814 = shalt.err (!%p811_p2)
}
  0x59   : > { %s815_s30 = scalar_lea.vmem %s1091_s9, 16  ;;  %s822_s13 = scalar_lea.vmem %s1091_s9, 32 }
  0x5a   : > { %p816_p5 = scmp.ne.s32.totalorder %s1091_s9, %s815_s30  ;;  %p823_p4 = scmp.lt.s32.totalorder %s1091_s9, %s1091_s9 }
  0x5b   : > { %p824_p10 = scmp.lt.s32.totalorder %s822_s13, %s815_s30 }
  0x5c   : > { %p818_p7 = pnand %p816_p5, %p1101_p8 }
  0x5d   : > { %p825_p11 = por %p824_p10, %p823_p4 }
  0x5e   : > { %p819_p9 = pneg %p818_p7 }
  0x60   : > { %p826_p12 = pnand %p825_p11, %p819_p9 }
  0x62   : > { %829 = shalt.err (!%p826_p12)
}
  0x63   : > { %677 = dma.hbm_to_vmem [thread:$0]  (!%p1085_p6), %s1397_s4, 16, %s1091_s9, [#allocation9]  }
  0x64   : > { %s1007_s26 = smov [#allocation11]   ;;  %s830_s20 = scalar_lea.hbm %s1383_s5, 16 }
  0x65   : > { %s242_s17 = sshll.u32 %s1007_s26, 4  ;;  %p831_p13 = scmp.ne.s32.totalorder %s1383_s5, %s830_s20  ;;  %s243_s17 = int_to_ptr.vmem [resolvable:$true] %s242_s17 }
  0x66   : > { %p837_p5 = scmp.lt.u32.totalorder %s830_s20, %s1383_s5 }
  0x67   : > { %p833_p0 = pnand %p831_p13, %p1101_p8 }
  0x69   : > { %p834_p2 = pneg %p833_p0 }
  0x6b   : > { %p839_p7 = pnand %p837_p5, %p834_p2 }
  0x6d   : > { %842 = shalt.err (!%p839_p7)
}
  0x6e   : > { %s843_s9 = scalar_lea.vmem %s243_s17, 16  ;;  %s850_s11 = scalar_lea.vmem %s243_s17, 32 }
  0x6f   : > { %p844_p9 = scmp.ne.s32.totalorder %s243_s17, %s843_s9  ;;  %p851_p11 = scmp.lt.s32.totalorder %s243_s17, %s243_s17 }
  0x70   : > { %p852_p12 = scmp.lt.s32.totalorder %s850_s11, %s843_s9 }
  0x71   : > { %p846_p4 = pnand %p844_p9, %p1101_p8 }
  0x72   : > { %p853_p1 = por %p852_p12, %p851_p11 }
  0x73   : > { %p847_p10 = pneg %p846_p4 }
  0x75   : > { %p854_p3 = pnand %p853_p1, %p847_p10 }
  0x77   : > { %857 = shalt.err (!%p854_p3)
}
  0x78   : > { %680 = dma.hbm_to_vmem [thread:$0]  (!%p1085_p6), %s1383_s5, 16, %s243_s17, [#allocation12]  }
  0x79   : > { %s606_s15 = sadd.s32 4294967294, %s1000_s24   ;;  %s1190_s7 = sadd.s32 1, %s1000_s24  }
  0x7a   : > { %s31_s13 = ssub.s32 %s1000_s24, %s1190_s7  ;;  %s34_s14 = sadd.s32 1, %s996_s23 }
  0x7b   : > { %p32_p1 = scmp.eq.s32.totalorder %s31_s13, 0  ;;  %p41_p3 = scmp.ne.s32.totalorder %s996_s23, %s992_s22 }
  0x7c   : > { %p42_p8 = scmp.eq.s32.totalorder %s1000_s24, 0  ;;  %p47_p13 = scmp.ne.s32.totalorder %s992_s22, %s988_s21 }
  0x7d   : > { %s1201_s16 = scalar_select %p32_p1, %s996_s23, %s34_s14  }
  0x7e   : > { %p1203_p0 = por %p42_p8, %p41_p3  ;;  %p1399_p2 = scmp.eq.s32.totalorder %s1069_s27, 0 }
  0x7f   : > { %p181_p5 = scmp.eq.s32.totalorder %s1069_s27, 1  ;;  %p187_p7 = scmp.eq.s32.totalorder %s606_s15, 1 }
  0x80   : > { %p1209_p6 = por %p1399_p2, %p47_p13  ;;  %p696_p9 = scmp.lt.s32.totalorder %s1000_s24, 2 }
  0x81   : > { %s253_s18 = sand.u32 1, %s996_s23   ;;  %p1216_p4 = por %p181_p5, %p41_p3 }
  0x82   : > { %s1400_s17 = scalar_select %p1209_p6, 1, 0 }
  0x83   : > { %s1401_s19 = scalar_select %p1216_p4, 1, 0 }
  0x84   : > { %p1220_p10 = por %p187_p7, %p47_p13  ;;  %s1224_s25 = sshll.u32 %s253_s18, 2 }
  0x85   : > { %s614_s29 = sshll.u32 %s1000_s24, 6  ;;  %s257_s11 = scalar_lea.vmem [#allocation2], %s1224_s25 }
  0x86   : > { %s1402_s20 = scalar_select %p1220_p10, 1, 0 }
  0x87   : > { %s1230_s9 = scalar_lea.hbm %s1378_s0, %s614_s29  ;;  %s264_s12 = sshll.u32 %s257_s11, 4  ;;  %s1233_s12 = int_to_ptr.vmem [resolvable:$true] %s264_s12 }
  0x88   : > { %p1237_p11 = pnand %p696_p9, %p1203_p0  ;;  %s1244_s14 = scalar_lea.hbm %s1379_s1, %s614_s29 }
  0x89   : > { %s271_s8 = sand.u32 1, %s1000_s24   ;;  %s254_s10 = scalar_lea.sflag [#allocation3], %s253_s18 }
  0x8a   : > { %s858_s2 = scalar_lea.hbm %s1230_s9, 64  ;;  %p860_p1 = pneg %p1237_p11 }
  0x8b   : > { %p859_p12 = scmp.ne.s32.totalorder %s1230_s9, %s858_s2  ;;  %s863_s3 = scalar_lea.hbm %s1378_s0, 128 }
  0x8c   : > { %p864_p13 = scmp.lt.u32.totalorder %s1230_s9, %s1378_s0  ;;  %p865_p0 = scmp.lt.u32.totalorder %s863_s3, %s858_s2 }
  0x8d   : > { %p861_p3 = pnand %p860_p1, %p859_p12  ;;  %p867_p5 = scmp.lt.u32.totalorder %s858_s2, %s1230_s9 }
  0x8e   : > { %p866_p2 = por %p865_p0, %p864_p13 }
  0x8f   : > { %p862_p8 = pneg %p861_p3 }
  0x90   : > { %p868_p7 = por %p867_p5, %p866_p2 }
  0x92   : > { %p869_p9 = pnand %p868_p7, %p862_p8 }
  0x94   : > { %872 = shalt.err (!%p869_p9)
}
  0x95   : > { %s873_s18 = scalar_lea.vmem %s1233_s12, 64  ;;  %s1008_s29 = smov [#allocation2]  }
  0x96   : > { %p874_p12 = scmp.ne.s32.totalorder %s1233_s12, %s873_s18  ;;  %s878_s13 = sshll.u32 %s1008_s29, 4  ;;  %s879_s13 = int_to_ptr.vmem [resolvable:$false] %s878_s13 }
  0x97   : > { %s880_s4 = scalar_lea.vmem %s879_s13, 128  ;;  %p881_p4 = scmp.lt.s32.totalorder %s1233_s12, %s879_s13 }
  0x98   : > { %p876_p3 = pnand %p874_p12, %p860_p1  ;;  %p882_p13 = scmp.lt.s32.totalorder %s880_s4, %s873_s18 }
  0x9a   : > { %p877_p10 = pneg %p876_p3  ;;  %p883_p0 = por %p882_p13, %p881_p4 }
  0x9c   : > { %p884_p2 = pnand %p883_p0, %p877_p10 }
  0x9e   : > { %887 = shalt.err (!%p884_p2)
}
  0x9f   : > { %684 = dma.hbm_to_vmem [thread:$0]  (!%p1237_p11), %s1230_s9, 64, %s1233_s12, %s254_s10  }
  0xa0   : > { %s275_s2 = scalar_lea.vmem [#allocation5], %s1224_s25  ;;  %s272_s26 = scalar_lea.sflag [#allocation6], %s271_s8 }
  0xa1   : > { %s282_s3 = sshll.u32 %s275_s2, 4  ;;  %s888_s11 = scalar_lea.hbm %s1244_s14, 64  ;;  %s283_s3 = int_to_ptr.vmem [resolvable:$true] %s282_s3 }
  0xa2   : > { %p889_p4 = scmp.ne.s32.totalorder %s1244_s14, %s888_s11  ;;  %s893_s29 = scalar_lea.hbm %s1379_s1, 128 }
  0xa3   : > { %p894_p5 = scmp.lt.u32.totalorder %s1244_s14, %s1379_s1  ;;  %p895_p7 = scmp.lt.u32.totalorder %s893_s29, %s888_s11 }
  0xa4   : > { %p891_p10 = pnand %p889_p4, %p860_p1  ;;  %p897_p12 = scmp.lt.u32.totalorder %s888_s11, %s1244_s14 }
  0xa5   : > { %p896_p9 = por %p895_p7, %p894_p5 }
  0xa6   : > { %p892_p8 = pneg %p891_p10 }
  0xa7   : > { %p898_p3 = por %p897_p12, %p896_p9 }
  0xa9   : > { %p899_p13 = pnand %p898_p3, %p892_p8 }
  0xab   : > { %902 = shalt.err (!%p899_p13)
}
  0xac   : > { %s903_s25 = scalar_lea.vmem %s283_s3, 64  ;;  %s1009_s9 = smov [#allocation5]  }
  0xad   : > { %p904_p0 = scmp.ne.s32.totalorder %s283_s3, %s903_s25  ;;  %s908_s12 = sshll.u32 %s1009_s9, 4  ;;  %s909_s12 = int_to_ptr.vmem [resolvable:$false] %s908_s12 }
  0xae   : > { %s910_s8 = scalar_lea.vmem %s909_s12, 128  ;;  %p911_p10 = scmp.lt.s32.totalorder %s283_s3, %s909_s12 }
  0xaf   : > { %p906_p2 = pnand %p904_p0, %p860_p1  ;;  %p912_p6 = scmp.lt.s32.totalorder %s910_s8, %s903_s25 }
  0xb1   : > { %p907_p4 = pneg %p906_p2  ;;  %p913_p5 = por %p912_p6, %p911_p10 }
  0xb3   : > { %p914_p7 = pnand %p913_p5, %p907_p4 }
  0xb5   : > { %917 = shalt.err (!%p914_p7)
}
  0xb6   : > { %687 = dma.hbm_to_vmem [thread:$0]  (!%p1237_p11), %s1244_s14, 64, %s283_s3, %s272_s26  }
  0xb7   : > { %p1404_p8 = scmp.ne.s32.totalorder %s1392_s28, 0 }
  0xb8   : > { %s1297_s10 = sand.u32 (!%p1404_p8), 1, %s992_s22   ;;  %p1405_p6 = scmp.ne.s32.totalorder (!%p1404_p8), %s1400_s17, 0 }
  0xb9   : > { %291 = sbr.rel (%p1404_p8) target bundleno = 760 (0x2f8), region = 44  ;;  %s1300_s2 = sshll.u32 (!%p1404_p8), %s1297_s10, 2 }
  0xba   : > { %s294_s11 = scalar_lea.sflag (!%p1404_p8), [#allocation3], %s1297_s10  ;;  %s297_s15 = scalar_lea.vmem (!%p1404_p8), [#allocation2], %s1300_s2 }
  0xc0   : > { %963 = dma.done.wait (%p1405_p6), %s294_s11, 64  }
  0xc1   : > { %965 = vsyncadd (%p1405_p6), %s294_s11, 4294967232  ;;  %s302_s28 = sand.u32 1, %s1069_s27   ;;  %s306_s14 = scalar_lea.vmem [#allocation5], %s1300_s2 }
  0xc2   : > { %s303_s30 = scalar_lea.sflag [#allocation6], %s302_s28 }
  0xc3   : > { %967 = dma.done.wait (%p1405_p6), %s303_s30, 64  }
  0xc4   : > { %969 = vsyncadd (%p1405_p6), %s303_s30, 4294967232  ;;  %p1406_p11 = scmp.eq.s32.totalorder %s1069_s27, 0 }
  0xc6   : > { %971 = dma.done.wait (%p1406_p11), [#allocation6], 256   ;;  %p1407_p1 = pmov %p1406_p11 }
  0xc8   : > { %973 = vsyncadd (%p1407_p1), [#allocation6], 4294967040  ;;  %p1408_p9 = pmov %p1407_p1 }
  0xc9   : > { %p1409_p12 = pmov %p1407_p1 }
  0xca   : > { %975 = dma.done.wait (%p1408_p9), [#allocation9], 32  }
  0xcb   : > { %977 = vsyncadd (%p1409_p12), [#allocation9], 4294967264  ;;  %p1410_p3 = pmov %p1407_p1 }
  0xcc   : > { %p1411_p13 = pmov %p1407_p1 }
  0xcd   : > { %979 = dma.done.wait (%p1410_p3), [#allocation12], 16  }
  0xce   : > { %981 = vsyncadd (%p1411_p13), [#allocation12], 4294967280  ;;  %v1010_v0 = vmov 0.0   ;;  %vm1011_vm0 = vmmov 0   ;;  %v742_v1 = vld [vmem:[#allocation7] sm:$0xff]   ;;  %v743_v2 = vld [vmem:[#allocation7 + $0x8] sm:$0xff]  }
  0xcf   : > { %638 = vmatprep.subr.bf16.mxu0 %v1010_v0  ;;  %642 = vmatprep.mubr.msk.bf16.mxu0 %vm1011_vm0, %v1010_v0  ;;  %v357_v3 = vld [vmem:[%s297_s15] sm:$0xf]  ;;  %vm381_vm1 = vcmask 261120   ;;  %v425_v4 = vld [vmem:[%s306_s14] sm:$0xf]  ;;  %s632_s17 = sshll.u32 %s1069_s27, 6 }
  0xd0   : > { %639 = vmatpush3.bf16.msra.mxu0 %v742_v1  ;;  %v625_v5 = vld [vmem:[#allocation8] ss:$0 sm:$0xff]  ;;  %v426_v6 = vunpack.c.l.bf16 %v425_v4  ;;  %v629_v23 = vld [vmem:[#allocation10] ss:$0 sm:$0xff]  ;;  %v630_v25 = vld [vmem:[#allocation11] ss:$0 sm:$0xff]  ;;  %s1334_s13 = scalar_lea.hbm %s1384_s6, %s632_s17 }
  0xd1   : > { %640 = vmatprep.subr.bf16.mxu0 %v1010_v0  ;;  %s355_s3 = scalar_lea.vmem [#allocation13], %s1300_s2  ;;  %vm459_vm2 = vcmask 257024   ;;  %s462_s4 = scalar_lea.sflag [#allocation4], %s1297_s10 }
  0xd2   : > { %s475_s26 = sshll.u32 %s355_s3, 4  ;;  %p1412_p2 = scmp.ne.s32.totalorder %s1401_s19, 0  ;;  %s1336_s26 = int_to_ptr.vmem [resolvable:$true] %s475_s26 }
  0xd3   : > { %s918_s25 = scalar_lea.vmem %s1336_s26, 64  ;;  %s1012_s27 = smov [#allocation13]  }
  0xd4   : > { %641 = vmatpush3.bf16.msra.mxu0 %v743_v2  ;;  %p919_p0 = scmp.ne.s32.totalorder %s1336_s26, %s918_s25  ;;  %s922_s9 = sshll.u32 %s1012_s27, 4  ;;  %s923_s9 = int_to_ptr.vmem [resolvable:$false] %s922_s9 }
  0xd5   : > { %s924_s12 = scalar_lea.vmem %s923_s9, 128  ;;  %p925_p5 = scmp.lt.s32.totalorder %s1336_s26, %s923_s9 }
  0xd6   : > { %p920_p4 = pnand %p919_p0, %p1412_p2  ;;  %p926_p7 = scmp.lt.s32.totalorder %s924_s12, %s918_s25 }
  0xd7   : > { %643 = vmatmul.mubr.msk.bf16.vlgmr.msra.gmra.mrb[0].mxu0 %vm381_vm1, %v357_v3 }
  0xd8   : > { %p921_p10 = pneg %p920_p4  ;;  %p927_p8 = por %p926_p7, %p925_p5 }
  0xda   : > { %p928_p6 = pnand %p927_p8, %p921_p10 }
 0x1aa   : > { %v419_v7 = vpop.f32.mrb[0].mxu0 }
 0x1ab   : > { %v420_v8 = vadd.f32 %v625_v5, %v419_v7  ;;  %v644_v9 = vpop.f32.mrb[1].mxu0 }
 0x1ac   : > { %v422_v10 = vpop.f32.mrb[2].mxu0 }
 0x1ad   : > { %v645_v11 = vpop.f32.mrb[3].mxu0  ;;  %v427_v12 = vadd.f32 %v426_v6, %v420_v8 }
 0x1af   : > { %v430_v13 = vsel %vm381_vm1, %v427_v12, 0.0 }
 0x1b0   : > { %431 = vadd.xlane.f32.xlu0 %v430_v13 }
 0x23d   : > { %v432_v14 = vpop.xlane.xlu0 %431 }
 0x23e   : > { %v434_v15 = vmul.f32 0.03125, %v432_v14 }
 0x240   : > { %v435_v16 = vsub.f32 %v427_v12, %v434_v15 }
 0x242   : > { %v436_v17 = vmul.f32 %v435_v16, %v435_v16 }
 0x244   : > { %v437_v18 = vsel %vm381_vm1, %v436_v17, 0.0 }
 0x245   : > { %438 = vadd.xlane.f32.xlu0 %v437_v18 }
 0x2d2   : > { %v439_v19 = vpop.xlane.xlu0 %438 }
 0x2d3   : > { %v440_v20 = vmul.f32 0.03125, %v439_v19 }
 0x2d5   : > { %v441_v21 = vadd.f32 1e-05, %v440_v20 }
 0x2d7   : > { %744 = vrsqrt.f32 %v441_v21 }
 0x2e1   : > { %v745_v22 = vpop.eup %744 }
 0x2e2   : > { %v443_v24 = vmul.f32 %v745_v22, %v435_v16 }
 0x2e4   : > { %v450_v26 = vmul.f32 %v629_v23, %v443_v24 }
 0x2e6   : > { %v457_v27 = vadd.f32 %v630_v25, %v450_v26 }
 0x2e8   : > { %v458_v28 = vpack.c.bf16 %v457_v27, %v457_v27 }
 0x2ea   : > { %460 = vst.msk [vmem:[%s355_s3] sm:$0xf] %vm459_vm2, %v458_v28 }
 0x2eb   : > { %931 = shalt.err (!%p928_p6)
}
 0x2ec   : > { %s932_s8 = scalar_lea.hbm %s1334_s13, 64  ;;  %s936_s11 = scalar_lea.hbm %s1384_s6, 128 }
 0x2ed   : > { %p933_p11 = scmp.ne.s32.totalorder %s1334_s13, %s932_s8  ;;  %p937_p12 = scmp.lt.u32.totalorder %s1334_s13, %s1384_s6 }
 0x2ee   : > { %p938_p3 = scmp.lt.u32.totalorder %s936_s11, %s932_s8  ;;  %p940_p0 = scmp.lt.u32.totalorder %s932_s8, %s1334_s13 }
 0x2ef   : > { %p934_p1 = pnand %p933_p11, %p1412_p2 }
 0x2f0   : > { %p939_p13 = por %p938_p3, %p937_p12 }
 0x2f1   : > { %p935_p9 = pneg %p934_p1 }
 0x2f2   : > { %p941_p4 = por %p940_p0, %p939_p13 }
 0x2f4   : > { %p942_p10 = pnand %p941_p4, %p935_p9 }
 0x2f6   : > { %945 = shalt.err (!%p942_p10)
}
 0x2f7   : > { %666 = dma.vmem_to_hbm [thread:$0]  (%p1412_p2), %s1336_s26, 64, %s1334_s13, %s462_s4  }
 0x2f8 PF: > { %s487_s30 = sand.u32 1, %s988_s21   ;;  %p1413_p5 = scmp.ne.s32.totalorder %s1402_s20, 0 }
 0x2f9   : > { %p1414_p7 = scmp.ge.s32.totalorder %s1000_s24, 2  ;;  %s488_s14 = scalar_lea.sflag [#allocation4], %s487_s30 }
 0x2fb   : > { %p689_p8 = pnand %p1414_p7, %p1413_p5 }
 0x2fd   : > { %983 = dma.done.wait (!%p689_p8), %s488_s14, 64  }
 0x2fe   : > { %985 = vsyncadd (!%p689_p8), %s488_s14, 4294967232  ;;  %p24_p6 = scmp.ge.s32.totalorder %s1190_s7, 4   ;;  %s1415_s21 = smov %s992_s22 }
 0x2ff   : > { %s1416_s22 = smov %s996_s23  ;;  %s1417_s23 = smov %s1201_s16 }
 0x300   : > { %s1418_s24 = smov %s1190_s7  ;;  %26 = sbr.rel (!%p24_p6) target bundleno = 13 (0xd), region = 118 }
 0x307   :  { %493 = vsyncpa [#allocation3], 1 }
 0x308   :  { %495 = vsyncpa [#allocation3 + $0x1], 1 }
 0x309   :  { %496 = vsyncpa [#allocation6], 1 }
 0x30a   :  { %498 = vsyncpa [#allocation6 + $0x1], 1 }
 0x30b   :  { %499 = vsyncpa [#allocation9], 1 }
 0x30c   :  { %500 = vsyncpa [#allocation12], 1 }
 0x30d   :  { %501 = vsyncpa [#allocation4], 1 }
 0x30e   :  { %503 = vsyncpa [#allocation4 + $0x1], 1 }

// kernel: whisper_forward.43
= control target key start
LH: loop header
LB: loop body
LE: loop exit
PB: predicated region body
PF: predicated region fallthrough
CT: control target
= control target key end

     0   :  { %8 = vsyncpa [#allocation3], 0  ;;  %s909_s0 = inlined_call_operand.hbm [shape: bf16[16,32], index: 0, kind: input, shape index: {}]   ;;  %s910_s1 = inlined_call_operand.hbm [shape: bf16[32,32], index: 1, kind: input, shape index: {}]   ;;  %s911_s2 = inlined_call_operand.hbm [shape: f32[1,32], index: 2, kind: input, shape index: {}]   ;;  %s912_s3 = inlined_call_operand.hbm [shape: bf16[16,32], index: 3, kind: output, shape index: {}]  }
   0x1   :  { %10 = vsyncpa [#allocation3 + $0x1], 0 }
   0x2   :  { %11 = vsyncpa [#allocation6], 0 }
   0x3   :  { %12 = vsyncpa [#allocation4], 0 }
   0x4   :  { %14 = vsyncpa [#allocation4 + $0x1], 0  ;;  %s679_s12 = smov 0   ;;  %s681_s13 = smov 0  }
   0x5   :  { %s683_s14 = smov 0   ;;  %s685_s15 = smov 0  }
   0x6 LB: > { %s700_s16 = sadd.s32 4294967295, %s649_s15   ;;  %s389_s17 = sadd.s32 4294967294, %s649_s15   ;;  %s649_s15 = sphi %s685_s15, %s932_s15   ;;  %s645_s14 = sphi %s683_s14, %s931_s14   ;;  %s641_s13 = sphi %s681_s13, %s930_s13   ;;  %s637_s12 = sphi %s679_s12, %s929_s12  }
   0x7   : > { %p40_p0 = scmp.ne.s32.totalorder %s641_s13, %s637_s12  ;;  %p913_p1 = scmp.eq.s32.totalorder %s700_s16, 0 }
   0x8   : > { %p112_p3 = scmp.eq.s32.totalorder %s389_s17, 1  ;;  %p390_p5 = scmp.ge.s32.totalorder %s649_s15, 1 }
   0x9   : > { %p709_p4 = por %p913_p1, %p40_p0  ;;  %p119_p7 = scmp.lt.s32.totalorder %s649_s15, 3 }
   0xa   : > { %p714_p6 = por %p112_p3, %p40_p0  ;;  %s651_s21 = smov [#allocation5]  }
   0xb   : > { %s916_s18 = scalar_select %p709_p4, 1, 0 }
   0xc   : > { %s917_s19 = scalar_select %p714_p6, 1, 0 }
   0xd   : > { %p719_p8 = pnand %p390_p5, %p119_p7  ;;  %s131_s22 = sshll.u32 %s651_s21, 4  ;;  %s723_s22 = int_to_ptr.vmem [resolvable:$true] %s131_s22 }
   0xe   : > { %s652_s24 = smov [#allocation7]   ;;  %s493_s28 = scalar_lea.hbm %s910_s1, 256 }
   0xf   : > { %p432_p9 = pneg %p719_p8  ;;  %s145_s25 = sshll.u32 %s652_s24, 4  ;;  %s734_s25 = int_to_ptr.vmem [resolvable:$true] %s145_s25 }
  0x10   : > { %p494_p12 = scmp.ne.s32.totalorder %s910_s1, %s493_s28  ;;  %p500_p5 = scmp.lt.u32.totalorder %s493_s28, %s910_s1 }
  0x11   : > { %p730_p11 = pnand %p432_p9, %p913_p1 }
  0x13   : > { %p495_p13 = pneg %p730_p11 }
  0x15   : > { %p496_p0 = pnand %p495_p13, %p494_p12 }
  0x17   : > { %p497_p3 = pneg %p496_p0 }
  0x19   : > { %p502_p7 = pnand %p500_p5, %p497_p3 }
  0x1b   : > { %505 = shalt.err (!%p502_p7)
}
  0x1c   : > { %s506_s6 = scalar_lea.vmem %s723_s22, 256  ;;  %p514_p2 = scmp.lt.s32.totalorder %s723_s22, %s723_s22 }
  0x1d   : > { %p507_p9 = scmp.ne.s32.totalorder %s723_s22, %s506_s6  ;;  %p515_p12 = scmp.lt.s32.totalorder %s506_s6, %s506_s6 }
  0x1f   : > { %p509_p10 = pnand %p507_p9, %p495_p13  ;;  %p516_p0 = por %p515_p12, %p514_p2 }
  0x21   : > { %p510_p1 = pneg %p509_p10 }
  0x23   : > { %p517_p6 = pnand %p516_p0, %p510_p1 }
  0x25   : > { %520 = shalt.err (!%p517_p6)
}
  0x26   : > { %s653_s7 = smov 64   ;;  %s654_s8 = smov 4  }
  0x27   : > { %435 = dma.hbm_to_vmem [thread:$0]  (!%p730_p11), %s910_s1, 256, %s723_s22, [#allocation6], %s653_s7, %s653_s7, %s654_s8  }
  0x28   : > { %s521_s21 = scalar_lea.hbm %s911_s2, 16 }
  0x29   : > { %p522_p2 = scmp.ne.s32.totalorder %s911_s2, %s521_s21  ;;  %p528_p10 = scmp.lt.u32.totalorder %s521_s21, %s911_s2 }
  0x2b   : > { %p524_p1 = pnand %p522_p2, %p495_p13 }
  0x2d   : > { %p525_p6 = pneg %p524_p1 }
  0x2f   : > { %p530_p3 = pnand %p528_p10, %p525_p6 }
  0x31   : > { %533 = shalt.err (!%p530_p3)
}
  0x32   : > { %s534_s22 = scalar_lea.vmem %s734_s25, 16  ;;  %s541_s29 = scalar_lea.vmem %s734_s25, 32 }
  0x33   : > { %p535_p5 = scmp.ne.s32.totalorder %s734_s25, %s534_s22  ;;  %p542_p12 = scmp.lt.s32.totalorder %s734_s25, %s734_s25 }
  0x34   : > { %p543_p0 = scmp.lt.s32.totalorder %s541_s29, %s534_s22 }
  0x35   : > { %p537_p7 = pnand %p535_p5, %p495_p13 }
  0x36   : > { %p544_p2 = por %p543_p0, %p542_p12 }
  0x37   : > { %p538_p9 = pneg %p537_p7 }
  0x39   : > { %p545_p1 = pnand %p544_p2, %p538_p9 }
  0x3b   : > { %548 = shalt.err (!%p545_p1)
}
  0x3c   : > { %438 = dma.hbm_to_vmem [thread:$0]  (!%p730_p11), %s911_s2, 16, %s734_s25, [#allocation6]  }
  0x3d   : > { %s790_s5 = sadd.s32 1, %s649_s15   ;;  %s27_s23 = sadd.s32 1, %s645_s14 }
  0x3e   : > { %s24_s6 = ssub.s32 %s649_s15, %s790_s5  ;;  %p34_p13 = scmp.ne.s32.totalorder %s645_s14, %s641_s13 }
  0x3f   : > { %p25_p6 = scmp.eq.s32.totalorder %s24_s6, 0  ;;  %p35_p10 = scmp.eq.s32.totalorder %s649_s15, 0 }
  0x40   : > { %p920_p3 = scmp.eq.s32.totalorder %s700_s16, 1  ;;  %p449_p7 = scmp.lt.s32.totalorder %s649_s15, 2 }
  0x41   : > { %s806_s8 = scalar_select %p25_p6, %s645_s14, %s27_s23  }
  0x42   : > { %p800_p5 = por %p920_p3, %p34_p13  ;;  %p36_p9 = por %p35_p10, %p34_p13 }
  0x43   : > { %s156_s9 = sand.u32 1, %s645_s14   ;;  %s395_s25 = sshll.u32 %s649_s15, 6 }
  0x44   : > { %s921_s7 = scalar_select %p800_p5, 1, 0 }
  0x45   : > { %s394_s10 = sshll.u32 %s156_s9, 2  ;;  %s813_s21 = scalar_lea.hbm %s909_s0, %s395_s25 }
  0x46   : > { %s160_s24 = scalar_lea.vmem [#allocation2], %s394_s10  ;;  %p817_p11 = pnand %p449_p7, %p36_p9 }
  0x47   : > { %s167_s26 = sshll.u32 %s160_s24, 4  ;;  %s157_s28 = scalar_lea.sflag [#allocation3], %s156_s9  ;;  %s815_s26 = int_to_ptr.vmem [resolvable:$true] %s167_s26 }
  0x48   : > { %s549_s22 = scalar_lea.hbm %s813_s21, 64  ;;  %p551_p0 = pneg %p817_p11 }
  0x49   : > { %p550_p12 = scmp.ne.s32.totalorder %s813_s21, %s549_s22  ;;  %s554_s4 = scalar_lea.hbm %s909_s0, 128 }
  0x4a   : > { %p555_p13 = scmp.lt.u32.totalorder %s813_s21, %s909_s0  ;;  %p556_p6 = scmp.lt.u32.totalorder %s554_s4, %s549_s22 }
  0x4b   : > { %p552_p2 = pnand %p551_p0, %p550_p12  ;;  %p558_p3 = scmp.lt.u32.totalorder %s549_s22, %s813_s21 }
  0x4c   : > { %p557_p10 = por %p556_p6, %p555_p13 }
  0x4d   : > { %p553_p1 = pneg %p552_p2 }
  0x4e   : > { %p559_p7 = por %p558_p3, %p557_p10 }
  0x50   : > { %p560_p9 = pnand %p559_p7, %p553_p1 }
  0x52   : > { %563 = shalt.err (!%p560_p9)
}
  0x53   : > { %s564_s9 = scalar_lea.vmem %s815_s26, 64  ;;  %s655_s10 = smov [#allocation2]  }
  0x54   : > { %p565_p12 = scmp.ne.s32.totalorder %s815_s26, %s564_s9  ;;  %s569_s25 = sshll.u32 %s655_s10, 4  ;;  %s570_s25 = int_to_ptr.vmem [resolvable:$false] %s569_s25 }
  0x55   : > { %s571_s11 = scalar_lea.vmem %s570_s25, 128  ;;  %p572_p4 = scmp.lt.s32.totalorder %s815_s26, %s570_s25 }
  0x56   : > { %p567_p2 = pnand %p565_p12, %p551_p0  ;;  %p573_p13 = scmp.lt.s32.totalorder %s571_s11, %s564_s9 }
  0x58   : > { %p568_p5 = pneg %p567_p2  ;;  %p574_p6 = por %p573_p13, %p572_p4 }
  0x5a   : > { %p575_p10 = pnand %p574_p6, %p568_p5 }
  0x5c   : > { %578 = shalt.err (!%p575_p10)
}
  0x5d   : > { %442 = dma.hbm_to_vmem [thread:$0]  (!%p817_p11), %s813_s21, 64, %s815_s26, %s157_s28  }
  0x5e   : > { %176 = sbr.rel (%p719_p8) target bundleno = 346 (0x15a), region = 32  ;;  %s849_s17 = sand.u32 (!%p719_p8), 1, %s641_s13  }
  0x5f   : > { %s397_s24 = sshll.u32 (!%p719_p8), %s849_s17, 2  ;;  %s179_s22 = scalar_lea.sflag (!%p719_p8), [#allocation3], %s849_s17 }
  0x60   : > { %s182_s29 = scalar_lea.vmem (!%p719_p8), [#allocation2], %s397_s24  ;;  %p923_p4 = scmp.ne.s32.totalorder (!%p719_p8), %s916_s18, 0 }
  0x65   : > { %624 = dma.done.wait (%p923_p4), %s179_s22, 64  }
  0x66   : > { %626 = vsyncadd (%p923_p4), %s179_s22, 4294967232  ;;  %p924_p5 = scmp.eq.s32.totalorder %s700_s16, 0 }
  0x68   : > { %628 = dma.done.wait (%p924_p5), [#allocation6], 272   ;;  %p925_p11 = pmov %p924_p5 }
  0x69   : > { %v656_v0 = vmov 0.0   ;;  %vm657_vm0 = vmmov 0   ;;  %v491_v1 = vld [vmem:[#allocation5] sm:$0xff]   ;;  %v492_v2 = vld [vmem:[#allocation5 + $0x8] sm:$0xff]   ;;  %v214_v3 = vld [vmem:[%s182_s29] sm:$0xf] }
  0x6a   : > { %630 = vsyncadd (%p925_p11), [#allocation6], 4294967024  ;;  %412 = vmatprep.subr.bf16.mxu0 %v656_v0  ;;  %416 = vmatprep.mubr.msk.bf16.mxu0 %vm657_vm0, %v656_v0  ;;  %vm238_vm1 = vcmask 261120   ;;  %v401_v4 = vld [vmem:[#allocation7] ss:$0 sm:$0xff]  ;;  %s406_s18 = sshll.u32 %s700_s16, 6 }
  0x6b   : > { %413 = vmatpush3.bf16.msra.mxu0 %v491_v1  ;;  %s212_s20 = scalar_lea.vmem [#allocation8], %s397_s24  ;;  %vm284_vm2 = vcmask 257024   ;;  %s865_s28 = scalar_lea.hbm %s912_s3, %s406_s18 }
  0x6c   : > { %414 = vmatprep.subr.bf16.mxu0 %v656_v0  ;;  %s300_s21 = sshll.u32 %s212_s20, 4  ;;  %s287_s30 = scalar_lea.sflag [#allocation4], %s849_s17  ;;  %s867_s21 = int_to_ptr.vmem [resolvable:$true] %s300_s21 }
  0x6d   : > { %s579_s4 = scalar_lea.vmem %s867_s21, 64  ;;  %p926_p0 = scmp.ne.s32.totalorder %s921_s7, 0 }
  0x6e   : > { %p580_p8 = scmp.ne.s32.totalorder %s867_s21, %s579_s4  ;;  %s658_s16 = smov [#allocation8]  }
  0x6f   : > { %415 = vmatpush3.bf16.msra.mxu0 %v492_v2  ;;  %s583_s23 = sshll.u32 %s658_s16, 4  ;;  %s584_s23 = int_to_ptr.vmem [resolvable:$false] %s583_s23 }
  0x70   : > { %p581_p1 = pnand %p580_p8, %p926_p0  ;;  %s585_s6 = scalar_lea.vmem %s584_s23, 128 }
  0x71   : > { %p586_p7 = scmp.lt.s32.totalorder %s867_s21, %s584_s23  ;;  %p587_p9 = scmp.lt.s32.totalorder %s585_s6, %s579_s4 }
  0x72   : > { %417 = vmatmul.mubr.msk.bf16.vlgmr.msra.gmra.mrb[0].mxu0 %vm238_vm1, %v214_v3  ;;  %p582_p3 = pneg %p581_p1 }
  0x73   : > { %p588_p12 = por %p587_p9, %p586_p7 }
  0x75   : > { %p589_p2 = pnand %p588_p12, %p582_p3 }
 0x145   : > { %v276_v5 = vpop.f32.mrb[0].mxu0 }
 0x146   : > { %v277_v6 = vadd.f32 %v401_v4, %v276_v5  ;;  %v418_v7 = vpop.f32.mrb[1].mxu0 }
 0x147   : > { %v279_v8 = vpop.f32.mrb[2].mxu0 }
 0x148   : > { %v282_v9 = vmul.f32 0.17677669, %v277_v6  ;;  %v419_v10 = vpop.f32.mrb[3].mxu0 }
 0x14a   : > { %v283_v11 = vpack.c.bf16 %v282_v9, %v282_v9 }
 0x14c   : > { %285 = vst.msk [vmem:[%s212_s20] sm:$0xf] %vm284_vm2, %v283_v11 }
 0x14d   : > { %592 = shalt.err (!%p589_p2)
}
 0x14e   : > { %s593_s9 = scalar_lea.hbm %s865_s28, 64  ;;  %s597_s11 = scalar_lea.hbm %s912_s3, 128 }
 0x14f   : > { %p594_p13 = scmp.ne.s32.totalorder %s865_s28, %s593_s9  ;;  %p598_p4 = scmp.lt.u32.totalorder %s865_s28, %s912_s3 }
 0x150   : > { %p599_p5 = scmp.lt.u32.totalorder %s597_s11, %s593_s9  ;;  %p601_p8 = scmp.lt.u32.totalorder %s593_s9, %s865_s28 }
 0x151   : > { %p595_p6 = pnand %p594_p13, %p926_p0 }
 0x152   : > { %p600_p11 = por %p599_p5, %p598_p4 }
 0x153   : > { %p596_p10 = pneg %p595_p6 }
 0x154   : > { %p602_p1 = por %p601_p8, %p600_p11 }
 0x156   : > { %p603_p3 = pnand %p602_p1, %p596_p10 }
 0x158   : > { %606 = shalt.err (!%p603_p3)
}
 0x159   : > { %430 = dma.vmem_to_hbm [thread:$0]  (%p926_p0), %s867_s21, 64, %s865_s28, %s287_s30  }
 0x15a PF: > { %s312_s22 = sand.u32 1, %s637_s12   ;;  %p927_p7 = scmp.ne.s32.totalorder %s917_s19, 0 }
 0x15b   : > { %p928_p9 = scmp.ge.s32.totalorder %s649_s15, 2  ;;  %s313_s29 = scalar_lea.sflag [#allocation4], %s312_s22 }
 0x15d   : > { %p444_p12 = pnand %p928_p9, %p927_p7 }
 0x15f   : > { %632 = dma.done.wait (!%p444_p12), %s313_s29, 64  }
 0x160   : > { %634 = vsyncadd (!%p444_p12), %s313_s29, 4294967232  ;;  %p17_p2 = scmp.ge.s32.totalorder %s790_s5, 4   ;;  %s929_s12 = smov %s641_s13 }
 0x161   : > { %s930_s13 = smov %s645_s14  ;;  %s931_s14 = smov %s806_s8 }
 0x162   : > { %s932_s15 = smov %s790_s5  ;;  %19 = sbr.rel (!%p17_p2) target bundleno = 6 (0x6), region = 85 }
 0x169   :  { %318 = vsyncpa [#allocation3], 1 }
 0x16a   :  { %320 = vsyncpa [#allocation3 + $0x1], 1 }
 0x16b   :  { %321 = vsyncpa [#allocation6], 1 }
 0x16c   :  { %322 = vsyncpa [#allocation4], 1 }
 0x16d   :  { %324 = vsyncpa [#allocation4 + $0x1], 1 }

// kernel: whisper_forward.40
= control target key start
LH: loop header
LB: loop body
LE: loop exit
PB: predicated region body
PF: predicated region fallthrough
CT: control target
= control target key end

     0   :  { %s1783_s0 = inlined_call_operand.hbm [shape: bf16[16,32], index: 0, kind: input, shape index: {}]   ;;  %s1784_s1 = inlined_call_operand.hbm [shape: bf16[32,32], index: 1, kind: input, shape index: {}]   ;;  %s1785_s2 = inlined_call_operand.hbm [shape: f32[1,32], index: 2, kind: input, shape index: {}]   ;;  %s1786_s3 = inlined_call_operand.hbm [shape: bf16[32,32], index: 3, kind: input, shape index: {}]   ;;  %s1787_s4 = inlined_call_operand.hbm [shape: bf16[32,32], index: 4, kind: input, shape index: {}]   ;;  %s1788_s5 = inlined_call_operand.hbm [shape: f32[1,32], index: 5, kind: input, shape index: {}]   ;;  %s1789_s6 = inlined_call_operand.hbm [shape: bf16[16,32], index: 6, kind: output, shape index: {0}]   ;;  %s1790_s7 = inlined_call_operand.hbm [shape: bf16[16,32], index: 7, kind: output, shape index: {1}]   ;;  %s1791_s8 = inlined_call_operand.hbm [shape: bf16[16,32], index: 8, kind: output, shape index: {2}]  }
   0x1   :  { %1799 = sst [smem:[#allocation23_spill]] %s1783_s0 }
   0x2   :  { %1800 = sst [smem:[#allocation24_spill]] %s1784_s1 }
   0x3   :  { %1801 = sst [smem:[#allocation25_spill]] %s1785_s2 }
   0x4   :  { %14 = vsyncpa [#allocation3], 0 }
   0x5   :  { %16 = vsyncpa [#allocation3 + $0x1], 0 }
   0x6   :  { %17 = vsyncpa [#allocation6], 0 }
   0x7   :  { %18 = vsyncpa [#allocation9], 0 }
   0x8   :  { %19 = vsyncpa [#allocation12], 0 }
   0x9   :  { %20 = vsyncpa [#allocation4], 0 }
   0xa   :  { %22 = vsyncpa [#allocation4 + $0x1], 0 }
   0xb   :  { %23 = vsyncpa [#allocation15], 0 }
   0xc   :  { %25 = vsyncpa [#allocation15 + $0x1], 0  ;;  %s1390_s27 = smov 0   ;;  %s1392_s28 = smov 0  }
   0xd   :  { %s1394_s29 = smov 0   ;;  %s1396_s30 = smov 0  }
   0xe LB: > { %s1332_s9 = smov [#allocation5]   ;;  %s1411_s11 = sadd.s32 4294967295, %s1330_s30   ;;  %s1330_s30 = sphi %s1396_s30, %s1830_s30   ;;  %s1326_s29 = sphi %s1394_s29, %s1829_s29   ;;  %s1322_s28 = sphi %s1392_s28, %s1828_s28   ;;  %s1318_s27 = sphi %s1390_s27, %s1827_s27  }
   0xf   : > { %s257_s10 = sshll.u32 %s1332_s9, 4  ;;  %p834_p0 = scmp.ge.s32.totalorder %s1330_s30, 1  ;;  %s1416_s10 = int_to_ptr.vmem [resolvable:$true] %s257_s10 }
  0x10   : > { %p1793_p1 = scmp.eq.s32.totalorder %s1411_s11, 0  ;;  %p245_p2 = scmp.lt.s32.totalorder %s1330_s30, 3 }
  0x11   : > { %s1333_s13 = smov [#allocation8]   ;;  %s1334_s16 = smov [#allocation7]  }
  0x12   : > { %p1418_p3 = pnand %p834_p0, %p245_p2  ;;  %s281_s14 = sshll.u32 %s1333_s13, 4  ;;  %s1431_s14 = int_to_ptr.vmem [resolvable:$true] %s281_s14 }
  0x13   : > { %s271_s17 = sshll.u32 %s1334_s16, 4  ;;  %s1804_s1 = sld [smem:[#allocation24_spill]]  ;;  %s1433_s17 = int_to_ptr.vmem [resolvable:$true] %s271_s17 }
  0x14   : > { %s1802_s12 = scalar_select %p1418_p3, 1, 0 }
  0x15   : > { %p933_p5 = pneg %p1418_p3 }
  0x17   : > { %p1427_p6 = pnand %p933_p5, %p1793_p1 }
  0x19   : > { %s1022_s20 = scalar_lea.hbm %s1804_s1, 256  ;;  %p1443_p8 = pneg %p1427_p6 }
  0x1a   : > { %p1023_p7 = scmp.ne.s32.totalorder %s1804_s1, %s1022_s20  ;;  %p1029_p11 = scmp.lt.u32.totalorder %s1022_s20, %s1804_s1 }
  0x1c   : > { %p1025_p9 = pnand %p1443_p8, %p1023_p7 }
  0x1e   : > { %p1026_p10 = pneg %p1025_p9 }
  0x20   : > { %p1031_p12 = pnand %p1029_p11, %p1026_p10 }
  0x22   : > { %1034 = shalt.err (!%p1031_p12)
}
  0x23   : > { %s1035_s26 = scalar_lea.vmem %s1416_s10, 256  ;;  %p1043_p5 = scmp.lt.s32.totalorder %s1416_s10, %s1416_s10 }
  0x24   : > { %p1036_p13 = scmp.ne.s32.totalorder %s1416_s10, %s1035_s26  ;;  %p1044_p4 = scmp.lt.s32.totalorder %s1035_s26, %s1035_s26 }
  0x26   : > { %p1038_p0 = pnand %p1036_p13, %p1443_p8  ;;  %p1045_p7 = por %p1044_p4, %p1043_p5 }
  0x28   : > { %p1039_p2 = pneg %p1038_p0 }
  0x2a   : > { %p1046_p9 = pnand %p1045_p7, %p1039_p2 }
  0x2c   : > { %1049 = shalt.err (!%p1046_p9)
}
  0x2d   : > { %s1792_s9 = smov 64   ;;  %s1336_s13 = smov 4  }
  0x2e   : > { %936 = dma.hbm_to_vmem [thread:$0]  (!%p1427_p6), %s1804_s1, 256, %s1416_s10, [#allocation6], %s1792_s9, %s1792_s9, %s1336_s13  }
  0x2f   : > { %s1050_s21 = scalar_lea.hbm %s1786_s3, 256 }
  0x30   : > { %p1051_p4 = scmp.ne.s32.totalorder %s1786_s3, %s1050_s21  ;;  %p1057_p12 = scmp.lt.u32.totalorder %s1050_s21, %s1786_s3 }
  0x32   : > { %p1053_p10 = pnand %p1051_p4, %p1443_p8 }
  0x34   : > { %p1054_p11 = pneg %p1053_p10 }
  0x36   : > { %p1059_p13 = pnand %p1057_p12, %p1054_p11 }
  0x38   : > { %1062 = shalt.err (!%p1059_p13)
}
  0x39   : > { %s1063_s10 = scalar_lea.vmem %s1431_s14, 256  ;;  %p1071_p7 = scmp.lt.s32.totalorder %s1431_s14, %s1431_s14 }
  0x3a   : > { %p1064_p0 = scmp.ne.s32.totalorder %s1431_s14, %s1063_s10  ;;  %p1072_p9 = scmp.lt.s32.totalorder %s1063_s10, %s1063_s10 }
  0x3c   : > { %p1066_p2 = pnand %p1064_p0, %p1443_p8  ;;  %p1073_p4 = por %p1072_p9, %p1071_p7 }
  0x3e   : > { %p1067_p5 = pneg %p1066_p2 }
  0x40   : > { %p1074_p10 = pnand %p1073_p4, %p1067_p5 }
  0x42   : > { %1077 = shalt.err (!%p1074_p10)
}
  0x43   : > { %942 = dma.hbm_to_vmem [thread:$0]  (!%p1427_p6), %s1786_s3, 256, %s1431_s14, [#allocation9], %s1792_s9, %s1792_s9, %s1336_s13  }
  0x44   : > { %s1806_s2 = sld [smem:[#allocation25_spill]] }
  0x4a   : > { %s1078_s21 = scalar_lea.hbm %s1806_s2, 16 }
  0x4b   : > { %p1079_p11 = scmp.ne.s32.totalorder %s1806_s2, %s1078_s21  ;;  %p1085_p0 = scmp.lt.u32.totalorder %s1078_s21, %s1806_s2 }
  0x4d   : > { %p1081_p12 = pnand %p1079_p11, %p1443_p8 }
  0x4f   : > { %p1082_p13 = pneg %p1081_p12 }
  0x51   : > { %p1087_p2 = pnand %p1085_p0, %p1082_p13 }
  0x53   : > { %1090 = shalt.err (!%p1087_p2)
}
  0x54   : > { %s1091_s14 = scalar_lea.vmem %s1433_s17, 16  ;;  %s1098_s10 = scalar_lea.vmem %s1433_s17, 32 }
  0x55   : > { %p1092_p5 = scmp.ne.s32.totalorder %s1433_s17, %s1091_s14  ;;  %p1099_p4 = scmp.lt.s32.totalorder %s1433_s17, %s1433_s17 }
  0x56   : > { %p1100_p10 = scmp.lt.s32.totalorder %s1098_s10, %s1091_s14 }
  0x57   : > { %p1094_p7 = pnand %p1092_p5, %p1443_p8 }
  0x58   : > { %p1101_p11 = por %p1100_p10, %p1099_p4 }
  0x59   : > { %p1095_p9 = pneg %p1094_p7 }
  0x5b   : > { %p1102_p12 = pnand %p1101_p11, %p1095_p9 }
  0x5d   : > { %1105 = shalt.err (!%p1102_p12)
}
  0x5e   : > { %939 = dma.hbm_to_vmem [thread:$0]  (!%p1427_p6), %s1806_s2, 16, %s1433_s17, [#allocation6]  }
  0x5f   : > { %s1337_s19 = smov [#allocation10]   ;;  %s1338_s21 = smov [#allocation11]  }
  0x60   : > { %s294_s20 = sshll.u32 %s1337_s19, 4  ;;  %s308_s22 = sshll.u32 %s1338_s21, 4  ;;  %s295_s20 = int_to_ptr.vmem [resolvable:$true] %s294_s20  ;;  %s309_s22 = int_to_ptr.vmem [resolvable:$true] %s308_s22 }
  0x61   : > { %s1106_s26 = scalar_lea.hbm %s1787_s4, 256 }
  0x62   : > { %p1107_p13 = scmp.ne.s32.totalorder %s1787_s4, %s1106_s26  ;;  %p1113_p5 = scmp.lt.u32.totalorder %s1106_s26, %s1787_s4 }
  0x64   : > { %p1109_p0 = pnand %p1107_p13, %p1443_p8 }
  0x66   : > { %p1110_p2 = pneg %p1109_p0 }
  0x68   : > { %p1115_p7 = pnand %p1113_p5, %p1110_p2 }
  0x6a   : > { %1118 = shalt.err (!%p1115_p7)
}
  0x6b   : > { %s1119_s17 = scalar_lea.vmem %s295_s20, 256  ;;  %p1127_p11 = scmp.lt.s32.totalorder %s295_s20, %s295_s20 }
  0x6c   : > { %p1120_p9 = scmp.ne.s32.totalorder %s295_s20, %s1119_s17  ;;  %p1128_p12 = scmp.lt.s32.totalorder %s1119_s17, %s1119_s17 }
  0x6e   : > { %p1122_p4 = pnand %p1120_p9, %p1443_p8  ;;  %p1129_p1 = por %p1128_p12, %p1127_p11 }
  0x70   : > { %p1123_p10 = pneg %p1122_p4 }
  0x72   : > { %p1130_p3 = pnand %p1129_p1, %p1123_p10 }
  0x74   : > { %1133 = shalt.err (!%p1130_p3)
}
  0x75   : > { %s1807_s18 = smov 64   ;;  %s1134_s25 = scalar_lea.hbm %s1788_s5, 16 }
  0x76   : > { %945 = dma.hbm_to_vmem [thread:$0]  (!%p1427_p6), %s1787_s4, 256, %s295_s20, [#allocation9], %s1807_s18, %s1807_s18, %s1336_s13  }
  0x77   : > { %p1135_p1 = scmp.ne.s32.totalorder %s1788_s5, %s1134_s25  ;;  %p1141_p0 = scmp.lt.u32.totalorder %s1134_s25, %s1788_s5 }
  0x79   : > { %p1137_p3 = pnand %p1135_p1, %p1443_p8 }
  0x7b   : > { %p1138_p13 = pneg %p1137_p3 }
  0x7d   : > { %p1143_p2 = pnand %p1141_p0, %p1138_p13 }
  0x7f   : > { %1146 = shalt.err (!%p1143_p2)
}
  0x80   : > { %s1147_s17 = scalar_lea.vmem %s309_s22, 16  ;;  %s1154_s13 = scalar_lea.vmem %s309_s22, 32 }
  0x81   : > { %p1148_p5 = scmp.ne.s32.totalorder %s309_s22, %s1147_s17  ;;  %p1155_p4 = scmp.lt.s32.totalorder %s309_s22, %s309_s22 }
  0x82   : > { %p1156_p10 = scmp.lt.s32.totalorder %s1154_s13, %s1147_s17 }
  0x83   : > { %p1150_p7 = pnand %p1148_p5, %p1443_p8 }
  0x84   : > { %p1157_p11 = por %p1156_p10, %p1155_p4 }
  0x85   : > { %p1151_p9 = pneg %p1150_p7 }
  0x87   : > { %p1158_p12 = pnand %p1157_p11, %p1151_p9 }
  0x89   : > { %1161 = shalt.err (!%p1158_p12)
}
  0x8a   : > { %948 = dma.hbm_to_vmem [thread:$0]  (!%p1427_p6), %s1788_s5, 16, %s309_s22, [#allocation12]  }
  0x8b   : > { %s1795_s15 = sadd.s32 4294967294, %s1330_s30   ;;  %s1558_s23 = sadd.s32 1, %s1330_s30  }
  0x8c   : > { %s38_s9 = sadd.s32 1, %s1326_s29  ;;  %s35_s19 = ssub.s32 %s1330_s30, %s1558_s23 }
  0x8d   : > { %p45_p8 = scmp.ne.s32.totalorder %s1326_s29, %s1322_s28  ;;  %p36_p1 = scmp.eq.s32.totalorder %s35_s19, 0 }
  0x8e   : > { %p46_p3 = scmp.eq.s32.totalorder %s1330_s30, 0  ;;  %p51_p13 = scmp.ne.s32.totalorder %s1322_s28, %s1318_s27 }
  0x8f   : > { %p180_p0 = scmp.eq.s32.totalorder %s1411_s11, 1  ;;  %p1808_p5 = scmp.eq.s32.totalorder %s1411_s11, 0 }
  0x90   : > { %s1570_s21 = scalar_select %p36_p1, %s1326_s29, %s38_s9  }
  0x91   : > { %p47_p2 = por %p46_p3, %p45_p8  ;;  %p1574_p7 = por %p1808_p5, %p51_p13 }
  0x92   : > { %p1578_p6 = por %p180_p0, %p45_p8  ;;  %p186_p9 = scmp.eq.s32.totalorder %s1795_s15, 1 }
  0x93   : > { %p968_p4 = scmp.lt.s32.totalorder %s1330_s30, 2  ;;  %s319_s25 = sand.u32 1, %s1326_s29  }
  0x94   : > { %s1810_s22 = scalar_select %p1578_p6, 1, 0 }
  0x95   : > { %p1586_p10 = por %p186_p9, %p51_p13  ;;  %s841_s14 = sshll.u32 %s319_s25, 2 }
  0x96   : > { %s842_s10 = sshll.u32 %s1330_s30, 6  ;;  %s1812_s0 = sld [smem:[#allocation23_spill]] }
  0x97   : > { %s1811_s26 = scalar_select %p1586_p10, 1, 0 }
  0x98   : > { %s323_s20 = scalar_lea.vmem [#allocation2], %s841_s14  ;;  %p1596_p11 = pnand %p968_p4, %p47_p2 }
  0x99   : > { %s330_s18 = sshll.u32 %s323_s20, 4  ;;  %s320_s19 = scalar_lea.sflag [#allocation3], %s319_s25  ;;  %s1600_s18 = int_to_ptr.vmem [resolvable:$true] %s330_s18 }
  0x9a   : > { %p1164_p8 = pneg %p1596_p11 }
  0x9c   : > { %s1594_s13 = scalar_lea.hbm %s1812_s0, %s842_s10  ;;  %s1167_s16 = scalar_lea.hbm %s1812_s0, 128 }
  0x9d   : > { %s1162_s15 = scalar_lea.hbm %s1594_s13, 64  ;;  %p1168_p13 = scmp.lt.u32.totalorder %s1594_s13, %s1812_s0 }
  0x9e   : > { %p1163_p12 = scmp.ne.s32.totalorder %s1594_s13, %s1162_s15  ;;  %p1169_p0 = scmp.lt.u32.totalorder %s1167_s16, %s1162_s15 }
  0x9f   : > { %p1171_p5 = scmp.lt.u32.totalorder %s1162_s15, %s1594_s13 }
  0xa0   : > { %p1165_p1 = pnand %p1164_p8, %p1163_p12  ;;  %p1170_p2 = por %p1169_p0, %p1168_p13 }
  0xa2   : > { %p1166_p3 = pneg %p1165_p1  ;;  %p1172_p9 = por %p1171_p5, %p1170_p2 }
  0xa4   : > { %p1173_p4 = pnand %p1172_p9, %p1166_p3 }
  0xa6   : > { %1176 = shalt.err (!%p1173_p4)
}
  0xa7   : > { %s1177_s25 = scalar_lea.vmem %s1600_s18, 64  ;;  %s1339_s10 = smov [#allocation2]  }
  0xa8   : > { %p1178_p12 = scmp.ne.s32.totalorder %s1600_s18, %s1177_s25  ;;  %s1182_s14 = sshll.u32 %s1339_s10, 4  ;;  %s1183_s14 = int_to_ptr.vmem [resolvable:$false] %s1182_s14 }
  0xa9   : > { %s1184_s17 = scalar_lea.vmem %s1183_s14, 128  ;;  %p1185_p6 = scmp.lt.s32.totalorder %s1600_s18, %s1183_s14 }
  0xaa   : > { %p1180_p1 = pnand %p1178_p12, %p1164_p8  ;;  %p1186_p13 = scmp.lt.s32.totalorder %s1184_s17, %s1177_s25 }
  0xac   : > { %p1181_p10 = pneg %p1180_p1  ;;  %p1187_p0 = por %p1186_p13, %p1185_p6 }
  0xae   : > { %p1188_p2 = pnand %p1187_p0, %p1181_p10 }
  0xb0   : > { %1191 = shalt.err (!%p1188_p2)
}
  0xb1   : > { %952 = dma.hbm_to_vmem [thread:$0]  (!%p1596_p11), %s1594_s13, 64, %s1600_s18, %s320_s19  }
  0xb2   : > { %p1814_p3 = scmp.ne.s32.totalorder %s1802_s12, 0 }
  0xb3   : > { %s1630_s15 = sand.u32 (!%p1814_p3), 1, %s1322_s28  }
  0xb4   : > { %339 = sbr.rel (%p1814_p3) target bundleno = 483 (0x1e3), region = 44  ;;  %s1633_s16 = sshll.u32 (!%p1814_p3), %s1630_s15, 2 }
  0xb5   : > { %s342_s20 = scalar_lea.sflag (!%p1814_p3), [#allocation3], %s1630_s15  ;;  %s345_s25 = scalar_lea.vmem (!%p1814_p3), [#allocation2], %s1633_s16 }
  0xbb   : > { %1293 = dma.done.wait (%p1574_p7), %s342_s20, 64  }
  0xbc   : > { %1295 = vsyncadd (%p1574_p7), %s342_s20, 4294967232  ;;  %p1815_p6 = scmp.eq.s32.totalorder %s1411_s11, 0 }
  0xbe   : > { %1297 = dma.done.wait (%p1815_p6), [#allocation6], 272   ;;  %p1816_p10 = pmov %p1815_p6 }
  0xbf   : > { %p1817_p11 = pmov %p1815_p6 }
  0xc0   : > { %1299 = vsyncadd (%p1816_p10), [#allocation6], 4294967024 }
  0xc1   : > { %1301 = dma.done.wait (%p1817_p11), [#allocation9], 512   ;;  %p1818_p8 = pmov %p1815_p6 }
  0xc2   : > { %p1819_p5 = pmov %p1815_p6 }
  0xc3   : > { %1303 = vsyncadd (%p1818_p8), [#allocation9], 4294966784 }
  0xc4   : > { %1305 = dma.done.wait (%p1819_p5), [#allocation12], 16   ;;  %p1820_p9 = pmov %p1819_p5 }
  0xc5   : > { %v1340_v0 = vmov 0.0   ;;  %vm1341_vm0 = vmmov 0   ;;  %v1016_v1 = vld [vmem:[#allocation5] sm:$0xff]   ;;  %v1017_v2 = vld [vmem:[#allocation5 + $0x8] sm:$0xff]   ;;  %v1018_v3 = vld [vmem:[#allocation8] sm:$0xff]   ;;  %vm433_vm1 = vcmask 261120  }
  0xc6   : > { %1307 = vsyncadd (%p1820_p9), [#allocation12], 4294967280  ;;  %881 = vmatprep.subr.bf16.mxu0 %v1340_v0  ;;  %885 = vmatprep.mubr.msk.bf16.mxu0 %vm1341_vm0, %v1340_v0  ;;  %v1020_v4 = vld [vmem:[#allocation8 + $0x8] sm:$0xff]   ;;  %v1019_v6 = vld [vmem:[#allocation10] sm:$0xff]   ;;  %s609_s12 = sand.u32 1, %s1411_s11   ;;  %s1658_s24 = sshll.u32 %s1411_s11, 6 }
  0xc7   : > { %889 = vmatprep.subr.bf16.mxu1 %v1340_v0  ;;  %893 = vmatprep.mubr.msk.bf16.mxu1 %vm1341_vm0, %v1340_v0  ;;  %v409_v5 = vld [vmem:[%s345_s25] sm:$0xf]  ;;  %v1021_v7 = vld [vmem:[#allocation10 + $0x8] sm:$0xff]   ;;  %s400_s13 = scalar_lea.vmem [#allocation14], %s1633_s16  ;;  %s1797_s9 = scalar_lea.vmem [#allocation13], %s1633_s16  ;;  %vm598_vm2 = vcmask 257024  }
  0xc8   : > { %882 = vmatpush3.bf16.msra.mxu0 %v1016_v1  ;;  %890 = vmatpush3.bf16.msra.mxu1 %v1018_v3  ;;  %v853_v8 = vld [vmem:[#allocation7] ss:$0 sm:$0xff]  ;;  %s641_s18 = sshll.u32 %s400_s13, 4  ;;  %s628_s19 = sshll.u32 %s1797_s9, 4  ;;  %v860_v20 = vld [vmem:[#allocation11] ss:$0 sm:$0xff]  ;;  %s1670_s18 = int_to_ptr.vmem [resolvable:$true] %s641_s18  ;;  %s1678_s19 = int_to_ptr.vmem [resolvable:$true] %s628_s19 }
  0xc9   : > { %883 = vmatprep.subr.bf16.mxu0 %v1340_v0  ;;  %891 = vmatprep.subr.bf16.mxu1 %v1340_v0  ;;  %s1668_s11 = scalar_lea.hbm %s1790_s7, %s1658_s24  ;;  %s1676_s25 = scalar_lea.hbm %s1789_s6, %s1658_s24 }
  0xca   : > { %s1798_s10 = scalar_lea.vmem [#allocation16], %s1633_s16  ;;  %s1686_s9 = scalar_lea.sflag [#allocation15], %s609_s12 }
  0xcb   : > { %s1684_s14 = sshll.u32 %s1798_s10, 4  ;;  %s1192_s0 = scalar_lea.vmem %s1670_s18, 64  ;;  %s655_s14 = int_to_ptr.vmem [resolvable:$true] %s1684_s14 }
  0xcc   : > { %884 = vmatpush3.bf16.msra.mxu0 %v1017_v2  ;;  %892 = vmatpush3.bf16.msra.mxu1 %v1020_v4  ;;  %p1193_p7 = scmp.ne.s32.totalorder %s1670_s18, %s1192_s0  ;;  %p1821_p4 = scmp.ne.s32.totalorder %s1810_s22, 0 }
  0xcd   : > { %897 = vmatprep.subr.bf16.mxu0 %v1340_v0  ;;  %s1342_s17 = smov [#allocation14]  }
  0xce   : > { %p1194_p12 = pnand %p1193_p7, %p1821_p4  ;;  %s1196_s20 = sshll.u32 %s1342_s17, 4  ;;  %s1197_s20 = int_to_ptr.vmem [resolvable:$false] %s1196_s20 }
  0xcf   : > { %886 = vmatmul.mubr.msk.bf16.vlgmr.msra.gmra.mrb[0].mxu0 %vm433_vm1, %v409_v5  ;;  %894 = vmatmul.mubr.msk.bf16.vlgmr.msra.gmra.mrb[0].mxu1 %vm433_vm1, %v409_v5  ;;  %s1198_s1 = scalar_lea.vmem %s1197_s20, 128  ;;  %p1199_p13 = scmp.lt.s32.totalorder %s1670_s18, %s1197_s20 }
  0xd0   : > { %898 = vmatpush3.bf16.msra.mxu0 %v1019_v6  ;;  %901 = vmatprep.mubr.msk.bf16.mxu0 %vm1341_vm0, %v1340_v0  ;;  %p1195_p1 = pneg %p1194_p12  ;;  %p1200_p0 = scmp.lt.s32.totalorder %s1198_s1, %s1192_s0 }
  0xd1   : > { %899 = vmatprep.subr.bf16.mxu0 %v1340_v0 }
  0xd2   : > { %p1201_p2 = por %p1200_p0, %p1199_p13 }
  0xd4   : > { %900 = vmatpush3.bf16.msra.mxu0 %v1021_v7  ;;  %p1202_p3 = pnand %p1201_p2, %p1195_p1 }
  0xd7   : > { %902 = vmatmul.mubr.msk.bf16.vlgmr.msra.gmra.mrb[4].mxu0 %vm433_vm1, %v409_v5 }
 0x1a2   : > { %v471_v9 = vpop.f32.mrb[0].mxu0  ;;  %v528_v15 = vpop.f32.mrb[0].mxu1 }
 0x1a3   : > { %v472_v10 = vadd.f32 %v853_v8, %v471_v9  ;;  %v887_v11 = vpop.f32.mrb[1].mxu0  ;;  %v600_v16 = vpack.c.bf16 %v528_v15, %v528_v15  ;;  %v895_v17 = vpop.f32.mrb[1].mxu1 }
 0x1a4   : > { %v474_v12 = vpop.f32.mrb[2].mxu0  ;;  %v531_v19 = vpop.f32.mrb[2].mxu1 }
 0x1a5   : > { %v477_v13 = vmul.f32 0.17677669, %v472_v10  ;;  %v888_v14 = vpop.f32.mrb[3].mxu0  ;;  %v896_v21 = vpop.f32.mrb[3].mxu1  ;;  %601 = vst.msk [vmem:[%s400_s13] sm:$0xf] %vm598_vm2, %v600_v16 }
 0x1a7   : > { %v597_v18 = vpack.c.bf16 %v477_v13, %v477_v13 }
 0x1a8   : > { %1205 = shalt.err (!%p1202_p3)
}
 0x1a9   : > { %s1206_s12 = scalar_lea.hbm %s1668_s11, 64  ;;  %s1210_s17 = scalar_lea.hbm %s1790_s7, 128 }
 0x1aa   : > { %p1207_p6 = scmp.ne.s32.totalorder %s1668_s11, %s1206_s12  ;;  %p1211_p8 = scmp.lt.u32.totalorder %s1668_s11, %s1790_s7 }
 0x1ab   : > { %p1212_p5 = scmp.lt.u32.totalorder %s1210_s17, %s1206_s12  ;;  %p1214_p7 = scmp.lt.u32.totalorder %s1206_s12, %s1668_s11 }
 0x1ac   : > { %p1208_p10 = pnand %p1207_p6, %p1821_p4 }
 0x1ad   : > { %p1213_p9 = por %p1212_p5, %p1211_p8 }
 0x1ae   : > { %p1209_p11 = pneg %p1208_p10 }
 0x1af   : > { %p1215_p12 = por %p1214_p7, %p1213_p9 }
 0x1b1   : > { %p1216_p1 = pnand %p1215_p12, %p1209_p11 }
 0x1b3   : > { %1219 = shalt.err (!%p1216_p1)
}
 0x1b4   : > { %928 = dma.vmem_to_hbm [thread:$0]  (%p1821_p4), %s1670_s18, 64, %s1668_s11, %s1686_s9   ;;  %v591_v22 = vpop.f32.mrb[4].mxu0 }
 0x1b5   : > { %s1822_s0 = scalar_lea.vmem [#allocation13], %s1633_s16  ;;  %s605_s1 = scalar_lea.sflag [#allocation4], %s1630_s15 }
 0x1b6   : > { %599 = vst.msk [vmem:[%s1822_s0] sm:$0xf] %vm598_vm2, %v597_v18  ;;  %s1220_s2 = scalar_lea.vmem %s1678_s19, 64  ;;  %s1343_s10 = smov [#allocation13]  }
 0x1b7   : > { %p1221_p13 = scmp.ne.s32.totalorder %s1678_s19, %s1220_s2  ;;  %s1224_s12 = sshll.u32 %s1343_s10, 4  ;;  %s1225_s12 = int_to_ptr.vmem [resolvable:$false] %s1224_s12 }
 0x1b8   : > { %s1226_s13 = scalar_lea.vmem %s1225_s12, 128  ;;  %p1227_p3 = scmp.lt.s32.totalorder %s1678_s19, %s1225_s12 }
 0x1b9   : > { %p1222_p0 = pnand %p1221_p13, %p1821_p4  ;;  %p1228_p6 = scmp.lt.s32.totalorder %s1226_s13, %s1220_s2 }
 0x1bb   : > { %p1223_p2 = pneg %p1222_p0  ;;  %p1229_p10 = por %p1228_p6, %p1227_p3 }
 0x1bd   : > { %p1230_p11 = pnand %p1229_p10, %p1223_p2 }
 0x1bf   : > { %1233 = shalt.err (!%p1230_p11)
}
 0x1c0   : > { %s1234_s15 = scalar_lea.hbm %s1676_s25, 64  ;;  %s1238_s17 = scalar_lea.hbm %s1789_s6, 128 }
 0x1c1   : > { %p1235_p8 = scmp.ne.s32.totalorder %s1676_s25, %s1234_s15  ;;  %p1239_p7 = scmp.lt.u32.totalorder %s1676_s25, %s1789_s6 }
 0x1c2   : > { %p1240_p12 = scmp.lt.u32.totalorder %s1238_s17, %s1234_s15  ;;  %p1242_p13 = scmp.lt.u32.totalorder %s1234_s15, %s1676_s25 }
 0x1c3   : > { %p1236_p5 = pnand %p1235_p8, %p1821_p4 }
 0x1c4   : > { %p1241_p1 = por %p1240_p12, %p1239_p7 }
 0x1c5   : > { %p1237_p9 = pneg %p1236_p5 }
 0x1c6   : > { %p1243_p0 = por %p1242_p13, %p1241_p1 }
 0x1c8   : > { %p1244_p2 = pnand %p1243_p0, %p1237_p9 }
 0x1ca   : > { %1247 = shalt.err (!%p1244_p2)
}
 0x1cb   : > { %927 = dma.vmem_to_hbm [thread:$0]  (%p1821_p4), %s1678_s19, 64, %s1676_s25, %s605_s1   ;;  %v592_v23 = vadd.f32 %v860_v20, %v591_v22  ;;  %v903_v24 = vpop.f32.mrb[5].mxu0 }
 0x1cc   : > { %v594_v25 = vpop.f32.mrb[6].mxu0  ;;  %s1739_s12 = scalar_lea.hbm %s1791_s8, %s1658_s24  ;;  %s1823_s13 = scalar_lea.vmem [#allocation16], %s1633_s16 }
 0x1cd   : > { %v602_v26 = vpack.c.bf16 %v592_v23, %v592_v23  ;;  %v904_v27 = vpop.f32.mrb[7].mxu0  ;;  %s1248_s15 = scalar_lea.vmem %s655_s14, 64  ;;  %s1344_s19 = smov [#allocation16]  }
 0x1ce   : > { %p1249_p3 = scmp.ne.s32.totalorder %s655_s14, %s1248_s15  ;;  %s1252_s25 = sshll.u32 %s1344_s19, 4  ;;  %s1253_s25 = int_to_ptr.vmem [resolvable:$false] %s1252_s25 }
 0x1cf   : > { %603 = vst.msk [vmem:[%s1823_s13] sm:$0xf] %vm598_vm2, %v602_v26  ;;  %s1254_s1 = scalar_lea.vmem %s1253_s25, 128  ;;  %p1255_p11 = scmp.lt.s32.totalorder %s655_s14, %s1253_s25 }
 0x1d0   : > { %p1250_p6 = pnand %p1249_p3, %p1821_p4  ;;  %p1256_p8 = scmp.lt.s32.totalorder %s1254_s1, %s1248_s15 }
 0x1d2   : > { %p1251_p10 = pneg %p1250_p6  ;;  %p1257_p5 = por %p1256_p8, %p1255_p11 }
 0x1d4   : > { %p1258_p9 = pnand %p1257_p5, %p1251_p10 }
 0x1d6   : > { %1261 = shalt.err (!%p1258_p9)
}
 0x1d7   : > { %s1262_s16 = scalar_lea.hbm %s1739_s12, 64  ;;  %s1266_s11 = scalar_lea.hbm %s1791_s8, 128 }
 0x1d8   : > { %p1263_p7 = scmp.ne.s32.totalorder %s1739_s12, %s1262_s16  ;;  %p1267_p13 = scmp.lt.u32.totalorder %s1739_s12, %s1791_s8 }
 0x1d9   : > { %p1268_p0 = scmp.lt.u32.totalorder %s1266_s11, %s1262_s16  ;;  %p1270_p3 = scmp.lt.u32.totalorder %s1262_s16, %s1739_s12 }
 0x1da   : > { %p1264_p12 = pnand %p1263_p7, %p1821_p4 }
 0x1db   : > { %p1269_p2 = por %p1268_p0, %p1267_p13 }
 0x1dc   : > { %p1265_p1 = pneg %p1264_p12 }
 0x1dd   : > { %p1271_p6 = por %p1270_p3, %p1269_p2 }
 0x1df   : > { %p1272_p10 = pnand %p1271_p6, %p1265_p1 }
 0x1e1   : > { %1275 = shalt.err (!%p1272_p10)
}
 0x1e2   : > { %929 = dma.vmem_to_hbm [thread:$0]  (%p1821_p4), %s655_s14, 64, %s1739_s12, %s1686_s9  }
 0x1e3 PF: > { %s666_s0 = sand.u32 1, %s1318_s27   ;;  %p1824_p11 = scmp.ne.s32.totalorder %s1811_s26, 0 }
 0x1e4   : > { %p1825_p8 = scmp.ge.s32.totalorder %s1330_s30, 2  ;;  %s667_s2 = scalar_lea.sflag [#allocation4], %s666_s0 }
 0x1e6   : > { %p954_p5 = pnand %p1825_p8, %p1824_p11 }
 0x1e8   : > { %1309 = dma.done.wait (!%p954_p5), %s667_s2, 64  }
 0x1e9   : > { %1311 = vsyncadd (!%p954_p5), %s667_s2, 4294967232  ;;  %s1826_s10 = sadd.s32 4294967294, %s1330_s30  }
 0x1ea   : > { %s675_s13 = sand.u32 1, %s1826_s10  }
 0x1eb   : > { %s676_s15 = scalar_lea.sflag [#allocation15], %s675_s13 }
 0x1ec   : > { %1313 = dma.done.wait (!%p954_p5), %s676_s15, 128  }
 0x1ed   : > { %1315 = vsyncadd (!%p954_p5), %s676_s15, 4294967168  ;;  %p28_p4 = scmp.ge.s32.totalorder %s1558_s23, 4   ;;  %s1827_s27 = smov %s1322_s28 }
 0x1ee   : > { %s1828_s28 = smov %s1326_s29  ;;  %s1829_s29 = smov %s1570_s21 }
 0x1ef   : > { %s1830_s30 = smov %s1558_s23  ;;  %30 = sbr.rel (!%p28_p4) target bundleno = 14 (0xe), region = 141 }
 0x1f6   :  { %690 = vsyncpa [#allocation3], 1 }
 0x1f7   :  { %692 = vsyncpa [#allocation3 + $0x1], 1 }
 0x1f8   :  { %693 = vsyncpa [#allocation6], 1 }
 0x1f9   :  { %694 = vsyncpa [#allocation9], 1 }
 0x1fa   :  { %695 = vsyncpa [#allocation12], 1 }
 0x1fb   :  { %696 = vsyncpa [#allocation4], 1 }
 0x1fc   :  { %698 = vsyncpa [#allocation4 + $0x1], 1 }
 0x1fd   :  { %699 = vsyncpa [#allocation15], 1 }
 0x1fe   :  { %701 = vsyncpa [#allocation15 + $0x1], 1 }

// kernel: whisper_forward.29
= control target key start
LH: loop header
LB: loop body
LE: loop exit
PB: predicated region body
PF: predicated region fallthrough
CT: control target
= control target key end

     0   :  { %8 = vsyncpa [#allocation3], 0  ;;  %s1061_s0 = inlined_call_operand.hbm [shape: bf16[2,24,24], index: 0, kind: input, shape index: {}]   ;;  %s1062_s1 = inlined_call_operand.hbm [shape: bf16[24,32], index: 1, kind: input, shape index: {}]   ;;  %s1063_s2 = inlined_call_operand.hbm [shape: f32[1,32], index: 2, kind: input, shape index: {}]   ;;  %s1064_s3 = inlined_call_operand.hbm [shape: bf16[2,24,32], index: 3, kind: output, shape index: {}]  }
   0x1   :  { %10 = vsyncpa [#allocation3 + $0x1], 0 }
   0x2   :  { %11 = vsyncpa [#allocation6], 0 }
   0x3   :  { %12 = vsyncpa [#allocation4], 0 }
   0x4   :  { %14 = vsyncpa [#allocation4 + $0x1], 0  ;;  %s801_s12 = smov 0   ;;  %s803_s13 = smov 0  }
   0x5   :  { %s805_s14 = smov 0   ;;  %s807_s15 = smov 0  }
   0x6   :  { %s809_s16 = smov 0   ;;  %s811_s17 = smov 0  }
   0x7 LB: > { %s465_s18 = sadd.s32 4294967295, %s771_s17   ;;  %s466_s19 = sadd.s32 4294967294, %s771_s17   ;;  %s771_s17 = sphi %s811_s17, %s20_s17   ;;  %s767_s16 = sphi %s809_s16, %s1086_s16   ;;  %s763_s15 = sphi %s807_s15, %s1085_s15   ;;  %s759_s14 = sphi %s805_s14, %s1084_s14   ;;  %s755_s13 = sphi %s803_s13, %s1083_s13   ;;  %s751_s12 = sphi %s801_s12, %s1082_s12  }
   0x8   : > { %p54_p0 = scmp.ne.s32.totalorder %s755_s13, %s751_s12  ;;  %p835_p1 = scmp.eq.s32.totalorder %s465_s18, 0 }
   0x9   : > { %p839_p2 = scmp.eq.s32.totalorder %s465_s18, 1  ;;  %p128_p3 = scmp.eq.s32.totalorder %s466_s19, 1 }
   0xa   : > { %s1069_s20 = scalar_select %p835_p1, 1, 0 }
   0xb   : > { %p845_p4 = por %p835_p1, %p54_p0  ;;  %p467_p5 = scmp.ge.s32.totalorder %s771_s17, 1 }
   0xc   : > { %p850_p6 = por %p128_p3, %p54_p0  ;;  %p135_p7 = scmp.lt.s32.totalorder %s771_s17, 3 }
   0xd   : > { %s1071_s22 = scalar_select %p845_p4, 1, 0 }
   0xe   : > { %s1072_s23 = scalar_select %p850_p6, 1, 0 }
   0xf   : > { %p855_p8 = pnand %p467_p5, %p135_p7  ;;  %s773_s25 = smov [#allocation5]  }
  0x10   : > { %s147_s26 = sshll.u32 %s773_s25, 4  ;;  %s774_s28 = smov [#allocation7]   ;;  %s859_s26 = int_to_ptr.vmem [resolvable:$true] %s147_s26 }
  0x11   : > { %p520_p9 = pneg %p855_p8  ;;  %s161_s29 = sshll.u32 %s774_s28, 4  ;;  %s870_s29 = int_to_ptr.vmem [resolvable:$true] %s161_s29 }
  0x12   : > { %s599_s5 = scalar_lea.hbm %s1062_s1, 192 }
  0x13   : > { %p866_p11 = pnand %p520_p9, %p835_p1  ;;  %p600_p12 = scmp.ne.s32.totalorder %s1062_s1, %s599_s5 }
  0x14   : > { %p606_p5 = scmp.lt.u32.totalorder %s599_s5, %s1062_s1 }
  0x15   : > { %p601_p13 = pneg %p866_p11 }
  0x17   : > { %p602_p0 = pnand %p601_p13, %p600_p12 }
  0x19   : > { %p603_p3 = pneg %p602_p0 }
  0x1b   : > { %p608_p7 = pnand %p606_p5, %p603_p3 }
  0x1d   : > { %611 = shalt.err (!%p608_p7)
}
  0x1e   : > { %s612_s10 = scalar_lea.vmem %s859_s26, 192  ;;  %p620_p1 = scmp.lt.s32.totalorder %s859_s26, %s859_s26 }
  0x1f   : > { %p613_p9 = scmp.ne.s32.totalorder %s859_s26, %s612_s10  ;;  %p621_p12 = scmp.lt.s32.totalorder %s612_s10, %s612_s10 }
  0x21   : > { %p615_p10 = pnand %p613_p9, %p601_p13  ;;  %p622_p0 = por %p621_p12, %p620_p1 }
  0x23   : > { %p616_p6 = pneg %p615_p10 }
  0x25   : > { %p623_p4 = pnand %p622_p0, %p616_p6 }
  0x27   : > { %626 = shalt.err (!%p623_p4)
}
  0x28   : > { %s775_s11 = smov 64   ;;  %s776_s18 = smov 4  }
  0x29   : > { %523 = dma.hbm_to_vmem [thread:$0]  (!%p866_p11), %s1062_s1, 192, %s859_s26, [#allocation6], %s775_s11, %s775_s11, %s776_s18  }
  0x2a   : > { %s627_s4 = scalar_lea.hbm %s1063_s2, 16 }
  0x2b   : > { %p628_p1 = scmp.ne.s32.totalorder %s1063_s2, %s627_s4  ;;  %p634_p10 = scmp.lt.u32.totalorder %s627_s4, %s1063_s2 }
  0x2d   : > { %p630_p4 = pnand %p628_p1, %p601_p13 }
  0x2f   : > { %p631_p6 = pneg %p630_p4 }
  0x31   : > { %p636_p3 = pnand %p634_p10, %p631_p6 }
  0x33   : > { %639 = shalt.err (!%p636_p3)
}
  0x34   : > { %s640_s26 = scalar_lea.vmem %s870_s29, 16  ;;  %s647_s9 = scalar_lea.vmem %s870_s29, 32 }
  0x35   : > { %p641_p5 = scmp.ne.s32.totalorder %s870_s29, %s640_s26  ;;  %p648_p12 = scmp.lt.s32.totalorder %s870_s29, %s870_s29 }
  0x36   : > { %p649_p0 = scmp.lt.s32.totalorder %s647_s9, %s640_s26 }
  0x37   : > { %p643_p7 = pnand %p641_p5, %p601_p13 }
  0x38   : > { %p650_p1 = por %p649_p0, %p648_p12 }
  0x39   : > { %p644_p9 = pneg %p643_p7 }
  0x3b   : > { %p651_p4 = pnand %p650_p1, %p644_p9 }
  0x3d   : > { %654 = shalt.err (!%p651_p4)
}
  0x3e   : > { %526 = dma.hbm_to_vmem [thread:$0]  (!%p866_p11), %s1063_s2, 16, %s870_s29, [#allocation6]  }
  0x3f   : > { %s32_s25 = sadd.s32 1, %s767_s16  ;;  %s41_s28 = sadd.s32 1, %s759_s14 }
  0x40   : > { %p34_p13 = scmp.ge.s32.totalorder %s32_s25, 2  ;;  %p48_p6 = scmp.ne.s32.totalorder %s759_s14, %s755_s13 }
  0x41   : > { %p49_p10 = scmp.eq.s32.totalorder %s771_s17, 0  ;;  %p537_p3 = scmp.lt.s32.totalorder %s771_s17, 2 }
  0x42   : > { %s1088_s25 = smov (%p34_p13, %s32_s25), 0  ;;  %p938_p7 = por %p839_p2, %p48_p6 }
  0x43   : > { %p50_p5 = por %p49_p10, %p48_p6  ;;  %s36_s30 = ssub.s32 %s767_s16, %s1088_s25 }
  0x44   : > { %s1075_s27 = scalar_select %p938_p7, 1, 0 }
  0x45   : > { %s172_s4 = sand.u32 1, %s759_s14   ;;  %p39_p9 = scmp.eq.s32.totalorder %s36_s30, 0 }
  0x46   : > { %s504_s29 = smul.u32 12, %s172_s4  ;;  %p945_p11 = pnand %p537_p3, %p50_p5 }
  0x47   : > { %s950_s6 = scalar_select %p39_p9, %s759_s14, %s41_s28  }
  0x48   : > { %s505_s7 = smul.u32 192, %s767_s16  ;;  %s176_s8 = scalar_lea.vmem [#allocation2], %s504_s29 }
  0x49   : > { %s185_s26 = sshll.u32 %s176_s8, 4  ;;  %s960_s19 = scalar_lea.sflag [#allocation3], %s172_s4  ;;  %s958_s26 = int_to_ptr.vmem [resolvable:$true] %s185_s26 }
  0x4a   : > { %s956_s10 = scalar_lea.hbm %s1061_s0, %s505_s7  ;;  %p657_p12 = pneg %p945_p11 }
  0x4b   : > { %s655_s30 = scalar_lea.hbm %s956_s10, 192  ;;  %s660_s7 = scalar_lea.hbm %s1061_s0, 384 }
  0x4c   : > { %p656_p2 = scmp.ne.s32.totalorder %s956_s10, %s655_s30  ;;  %p661_p4 = scmp.lt.u32.totalorder %s956_s10, %s1061_s0 }
  0x4d   : > { %p662_p13 = scmp.lt.u32.totalorder %s660_s7, %s655_s30  ;;  %p664_p10 = scmp.lt.u32.totalorder %s655_s30, %s956_s10 }
  0x4e   : > { %p658_p0 = pnand %p657_p12, %p656_p2 }
  0x4f   : > { %p663_p6 = por %p662_p13, %p661_p4 }
  0x50   : > { %p659_p1 = pneg %p658_p0 }
  0x51   : > { %p665_p3 = por %p664_p10, %p663_p6 }
  0x53   : > { %p666_p5 = pnand %p665_p3, %p659_p1 }
  0x55   : > { %669 = shalt.err (!%p666_p5)
}
  0x56   : > { %s670_s4 = scalar_lea.vmem %s958_s26, 192  ;;  %s777_s9 = smov [#allocation2]  }
  0x57   : > { %p671_p9 = scmp.ne.s32.totalorder %s958_s26, %s670_s4  ;;  %s675_s28 = sshll.u32 %s777_s9, 4  ;;  %s676_s28 = int_to_ptr.vmem [resolvable:$false] %s675_s28 }
  0x58   : > { %s677_s29 = scalar_lea.vmem %s676_s28, 384  ;;  %p678_p7 = scmp.lt.s32.totalorder %s958_s26, %s676_s28 }
  0x59   : > { %p673_p2 = pnand %p671_p9, %p657_p12  ;;  %p679_p4 = scmp.lt.s32.totalorder %s677_s29, %s670_s4 }
  0x5b   : > { %p674_p0 = pneg %p673_p2  ;;  %p680_p13 = por %p679_p4, %p678_p7 }
  0x5d   : > { %p681_p6 = pnand %p680_p13, %p674_p0 }
  0x5f   : > { %684 = shalt.err (!%p681_p6)
}
  0x60   : > { %530 = dma.hbm_to_vmem [thread:$0]  (!%p945_p11), %s956_s10, 192, %s958_s26, %s960_s19, %s775_s11, %s775_s11, %s776_s18  }
  0x61   : > { %197 = sbr.rel (%p855_p8) target bundleno = 351 (0x15f), region = 32  ;;  %s994_s30 = sand.u32 (!%p855_p8), 1, %s755_s13  }
  0x62   : > { %s506_s7 = smul.u32 (!%p855_p8), 12, %s994_s30  ;;  %s200_s8 = scalar_lea.sflag (!%p855_p8), [#allocation3], %s994_s30 }
  0x63   : > { %p1077_p7 = scmp.ne.s32.totalorder (!%p855_p8), %s1071_s22, 0 }
  0x64   : > { %s203_s21 = scalar_lea.vmem (!%p855_p8), [#allocation2], %s506_s7 }
  0x68   : > { %738 = dma.done.wait (%p1077_p7), %s200_s8, 192  }
  0x69   : > { %740 = vsyncadd (%p1077_p7), %s200_s8, 4294967104  ;;  %p1078_p12 = scmp.ne.s32.totalorder %s1069_s20, 0 }
  0x6b   : > { %742 = dma.done.wait (%p1078_p12), [#allocation6], 208  }
  0x6c   : > { %744 = vsyncadd (%p1078_p12), [#allocation6], 4294967088  ;;  %vm274_vm0 = vcmask 1043456   ;;  %v595_v0 = vld [vmem:[#allocation5] sm:$0xff]   ;;  %vm267_vm1 = vcmask 195584   ;;  %v597_v2 = vld [vmem:[%s203_s21] sm:$0xff]  }
  0x6d   : > { %v596_v1 = vld [vmem:[#allocation5 + $0x8] ss:$0 sps:$4 sm:$0xff]   ;;  %495 = vmatprep.subr.bf16.mxu0 %v595_v0  ;;  %499 = vmatprep.mubr.msk.bf16.mxu0 %vm267_vm1, %v597_v2  ;;  %v598_v4 = vld [vmem:[%s203_s21 + $0x8] ss:$0 sps:$4 sm:$0xff]   ;;  %v475_v5 = vld [vmem:[#allocation7] ss:$0 sm:$0xff] }
  0x6e   : > { %496 = vmatpush3.bf16.msra.mxu0 %v595_v0  ;;  %v276_v3 = vsel %vm274_vm0, %v596_v1, 0  ;;  %s233_s22 = scalar_lea.vmem [#allocation8], %s506_s7  ;;  %s507_s24 = smul.u32 192, %s763_s15  ;;  %vm339_vm2 = vcmask 257024  }
  0x6f   : > { %503 = vmatprep.subr.msk.bf16.mxu0 %vm274_vm0, %v596_v1  ;;  %s359_s20 = sshll.u32 %s233_s22, 4  ;;  %s344_s15 = scalar_lea.sflag [#allocation4], %s994_s30  ;;  %s1007_s20 = int_to_ptr.vmem [resolvable:$true] %s359_s20 }
  0x70   : > { %s1012_s5 = scalar_lea.hbm %s1064_s3, %s507_s24  ;;  %s685_s26 = scalar_lea.vmem %s1007_s20, 192 }
  0x71   : > { %p686_p8 = scmp.ne.s32.totalorder %s1007_s20, %s685_s26  ;;  %p1079_p11 = scmp.ne.s32.totalorder %s1075_s27, 0 }
  0x72   : > { %498 = vmatpush3.bf16.msra.mxu0 %v276_v3  ;;  %s778_s10 = smov [#allocation8]  }
  0x73   : > { %p687_p1 = pnand %p686_p8, %p1079_p11  ;;  %s689_s19 = sshll.u32 %s778_s10, 4  ;;  %s690_s19 = int_to_ptr.vmem [resolvable:$false] %s689_s19 }
  0x74   : > { %s691_s4 = scalar_lea.vmem %s690_s19, 384  ;;  %p692_p3 = scmp.lt.s32.totalorder %s1007_s20, %s690_s19 }
  0x75   : > { %500 = vmatmul.mubr.msk.bf16.vlgmr.msra.gmra.mrb[0].mxu0 %vm267_vm1, %v598_v4  ;;  %p688_p10 = pneg %p687_p1  ;;  %p693_p5 = scmp.lt.s32.totalorder %s691_s4, %s685_s26 }
  0x77   : > { %p694_p9 = por %p693_p5, %p692_p3 }
  0x79   : > { %p695_p2 = pnand %p694_p9, %p688_p10 }
 0x148   : > { %v501_v6 = vpop.f32.mrb[0].mxu0 }
 0x149   : > { %v321_v7 = vadd.f32 %v501_v6, %v475_v5  ;;  %v312_v8 = vpop.f32.mrb[1].mxu0 }
 0x14a   : > { %v313_v9 = vadd.f32 %v475_v5, %v312_v8  ;;  %v502_v10 = vpop.f32.mrb[2].mxu0 }
 0x14b   : > { %v490_v11 = vpack.c.bf16 %v321_v7, %v321_v7  ;;  %v315_v12 = vpop.f32.mrb[3].mxu0 }
 0x14c   : > { %v488_v13 = vpack.c.bf16 %v313_v9, %v313_v9  ;;  %v316_v14 = vadd.f32 %v475_v5, %v315_v12 }
 0x14d   : > { %342 = vst.msk [vmem:[%s233_s22 + $0x8] sm:$0xf] %vm339_vm2, %v490_v11 }
 0x14e   : > { %340 = vst.msk [vmem:[%s233_s22] sm:$0xf] %vm339_vm2, %v488_v13  ;;  %v489_v15 = vpack.c.bf16 %v316_v14, %v316_v14 }
 0x150   : > { %341 = vst.msk [vmem:[%s233_s22 + $0x4] sm:$0xf] %vm339_vm2, %v489_v15 }
 0x151   : > { %698 = shalt.err (!%p695_p2)
}
 0x152   : > { %s699_s9 = scalar_lea.hbm %s1012_s5, 192  ;;  %s703_s7 = scalar_lea.hbm %s1064_s3, 384 }
 0x153   : > { %p700_p0 = scmp.ne.s32.totalorder %s1012_s5, %s699_s9  ;;  %p704_p6 = scmp.lt.u32.totalorder %s1012_s5, %s1064_s3 }
 0x154   : > { %p705_p7 = scmp.lt.u32.totalorder %s703_s7, %s699_s9  ;;  %p707_p8 = scmp.lt.u32.totalorder %s699_s9, %s1012_s5 }
 0x155   : > { %p701_p4 = pnand %p700_p0, %p1079_p11 }
 0x156   : > { %p706_p12 = por %p705_p7, %p704_p6 }
 0x157   : > { %p702_p13 = pneg %p701_p4 }
 0x158   : > { %p708_p1 = por %p707_p8, %p706_p12 }
 0x15a   : > { %p709_p10 = pnand %p708_p1, %p702_p13 }
 0x15c   : > { %712 = shalt.err (!%p709_p10)
}
 0x15d   : > { %s779_s22 = smov 64   ;;  %s780_s24 = smov 4  }
 0x15e   : > { %518 = dma.vmem_to_hbm [thread:$0]  (%p1079_p11), %s1007_s20, 192, %s1012_s5, %s344_s15, %s779_s22, %s779_s22, %s780_s24  }
 0x15f PF: > { %s374_s11 = sand.u32 1, %s751_s12   ;;  %p1080_p3 = scmp.ne.s32.totalorder %s1072_s23, 0 }
 0x160   : > { %p1081_p5 = scmp.ge.s32.totalorder %s771_s17, 2  ;;  %s375_s18 = scalar_lea.sflag [#allocation4], %s374_s11 }
 0x162   : > { %p532_p9 = pnand %p1081_p5, %p1080_p3 }
 0x164   : > { %746 = dma.done.wait (!%p532_p9), %s375_s18, 192  }
 0x165   : > { %748 = vsyncadd (!%p532_p9), %s375_s18, 4294967104  ;;  %s20_s17 = sadd.s32 1, %s771_s17   ;;  %s1082_s12 = smov %s755_s13 }
 0x166   : > { %p17_p2 = scmp.ge.s32.totalorder %s20_s17, 4   ;;  %s1083_s13 = smov %s759_s14 }
 0x167   : > { %s1084_s14 = smov %s950_s6  ;;  %s1085_s15 = smov %s767_s16 }
 0x168   : > { %s1086_s16 = smov %s1088_s25  ;;  %19 = sbr.rel (!%p17_p2) target bundleno = 7 (0x7), region = 85 }
 0x16f   :  { %380 = vsyncpa [#allocation3], 1 }
 0x170   :  { %382 = vsyncpa [#allocation3 + $0x1], 1 }
 0x171   :  { %383 = vsyncpa [#allocation6], 1 }
 0x172   :  { %384 = vsyncpa [#allocation4], 1 }
 0x173   :  { %386 = vsyncpa [#allocation4 + $0x1], 1 }

// kernel: whisper_forward.30
= control target key start
LH: loop header
LB: loop body
LE: loop exit
PB: predicated region body
PF: predicated region fallthrough
CT: control target
= control target key end

     0   :  { %9 = vsyncpa [#allocation3], 0  ;;  %s1246_s0 = inlined_call_operand.hbm [shape: bf16[2,16,96], index: 0, kind: input, shape index: {}]   ;;  %s1247_s1 = inlined_call_operand.hbm [shape: bf16[96,32], index: 1, kind: input, shape index: {}]   ;;  %s1248_s2 = inlined_call_operand.hbm [shape: f32[1,32], index: 2, kind: input, shape index: {}]   ;;  %s1249_s3 = inlined_call_operand.hbm [shape: f32[16,32], index: 3, kind: input, shape index: {}]   ;;  %s1250_s4 = inlined_call_operand.hbm [shape: bf16[2,16,32], index: 4, kind: output, shape index: {}]  }
   0x1   :  { %11 = vsyncpa [#allocation3 + $0x1], 0 }
   0x2   :  { %12 = vsyncpa [#allocation6], 0 }
   0x3   :  { %13 = vsyncpa [#allocation9], 0 }
   0x4   :  { %14 = vsyncpa [#allocation4], 0 }
   0x5   :  { %16 = vsyncpa [#allocation4 + $0x1], 0  ;;  %s955_s15 = smov 0   ;;  %s957_s16 = smov 0  }
   0x6   :  { %s959_s17 = smov 0   ;;  %s961_s18 = smov 0  }
   0x7   :  { %s963_s19 = smov 0   ;;  %s965_s20 = smov 0  }
   0x8 LB: > { %s544_s21 = sadd.s32 4294967295, %s915_s20   ;;  %s545_s22 = sadd.s32 4294967294, %s915_s20   ;;  %s915_s20 = sphi %s965_s20, %s22_s20   ;;  %s911_s19 = sphi %s963_s19, %s1277_s19   ;;  %s907_s18 = sphi %s961_s18, %s1276_s18   ;;  %s903_s17 = sphi %s959_s17, %s1275_s17   ;;  %s899_s16 = sphi %s957_s16, %s1274_s16   ;;  %s895_s15 = sphi %s955_s15, %s1273_s15  }
   0x9   : > { %p56_p0 = scmp.ne.s32.totalorder %s899_s16, %s895_s15  ;;  %p989_p1 = scmp.eq.s32.totalorder %s544_s21, 0 }
   0xa   : > { %p993_p2 = scmp.eq.s32.totalorder %s544_s21, 1  ;;  %p156_p3 = scmp.eq.s32.totalorder %s545_s22, 1 }
   0xb   : > { %s1256_s23 = scalar_select %p989_p1, 1, 0 }
   0xc   : > { %s1257_s24 = scalar_select %p993_p2, 1, 0 }
   0xd   : > { %p999_p4 = por %p989_p1, %p56_p0  ;;  %p546_p5 = scmp.ge.s32.totalorder %s915_s20, 1 }
   0xe   : > { %p1004_p6 = por %p156_p3, %p56_p0  ;;  %p163_p7 = scmp.lt.s32.totalorder %s915_s20, 3 }
   0xf   : > { %s1258_s25 = scalar_select %p999_p4, 1, 0 }
  0x10   : > { %s1259_s26 = scalar_select %p1004_p6, 1, 0 }
  0x11   : > { %p1009_p8 = pnand %p546_p5, %p163_p7  ;;  %s917_s28 = smov [#allocation5]  }
  0x12   : > { %1260 = sst [smem:[#allocation15_spill]] %s1259_s26  ;;  %s175_s29 = sshll.u32 %s917_s28, 4  ;;  %s1013_s29 = int_to_ptr.vmem [resolvable:$true] %s175_s29 }
  0x13   : > { %s1261_s27 = scalar_select %p1009_p8, 1, 0 }
  0x14   : > { %p619_p9 = pneg %p1009_p8  ;;  %s918_s5 = smov [#allocation7]  }
  0x15   : > { %s189_s6 = sshll.u32 %s918_s5, 4  ;;  %s919_s7 = smov [#allocation8]   ;;  %s1024_s6 = int_to_ptr.vmem [resolvable:$true] %s189_s6 }
  0x16   : > { %p1020_p11 = pnand %p619_p9, %p989_p1  ;;  %s1026_s8 = sshll.u32 %s919_s7, 4  ;;  %s203_s8 = int_to_ptr.vmem [resolvable:$true] %s1026_s8 }
  0x17   : > { %s711_s11 = scalar_lea.hbm %s1247_s1, 768 }
  0x18   : > { %p712_p12 = scmp.ne.s32.totalorder %s1247_s1, %s711_s11  ;;  %p1036_p13 = pneg %p1020_p11 }
  0x19   : > { %p718_p5 = scmp.lt.u32.totalorder %s711_s11, %s1247_s1 }
  0x1a   : > { %p714_p0 = pnand %p1036_p13, %p712_p12 }
  0x1c   : > { %p715_p3 = pneg %p714_p0 }
  0x1e   : > { %p720_p7 = pnand %p718_p5, %p715_p3 }
  0x20   : > { %723 = shalt.err (!%p720_p7)
}
  0x21   : > { %s724_s28 = scalar_lea.vmem %s1013_s29, 768  ;;  %p732_p1 = scmp.lt.s32.totalorder %s1013_s29, %s1013_s29 }
  0x22   : > { %p725_p9 = scmp.ne.s32.totalorder %s1013_s29, %s724_s28  ;;  %p733_p4 = scmp.lt.s32.totalorder %s724_s28, %s724_s28 }
  0x24   : > { %p727_p10 = pnand %p725_p9, %p1036_p13  ;;  %p734_p12 = por %p733_p4, %p732_p1 }
  0x26   : > { %p728_p6 = pneg %p727_p10 }
  0x28   : > { %p735_p0 = pnand %p734_p12, %p728_p6 }
  0x2a   : > { %738 = shalt.err (!%p735_p0)
}
  0x2b   : > { %s920_s5 = smov 64   ;;  %s921_s7 = smov 4  }
  0x2c   : > { %622 = dma.hbm_to_vmem [thread:$0]  (!%p1020_p11), %s1247_s1, 768, %s1013_s29, [#allocation6], %s920_s5, %s920_s5, %s921_s7  }
  0x2d   : > { %s739_s13 = scalar_lea.hbm %s1248_s2, 16 }
  0x2e   : > { %p740_p1 = scmp.ne.s32.totalorder %s1248_s2, %s739_s13  ;;  %p746_p10 = scmp.lt.u32.totalorder %s739_s13, %s1248_s2 }
  0x30   : > { %p742_p4 = pnand %p740_p1, %p1036_p13 }
  0x32   : > { %p743_p6 = pneg %p742_p4 }
  0x34   : > { %p748_p3 = pnand %p746_p10, %p743_p6 }
  0x36   : > { %751 = shalt.err (!%p748_p3)
}
  0x37   : > { %s752_s29 = scalar_lea.vmem %s1024_s6, 16  ;;  %s759_s9 = scalar_lea.vmem %s1024_s6, 32 }
  0x38   : > { %p753_p5 = scmp.ne.s32.totalorder %s1024_s6, %s752_s29  ;;  %p760_p12 = scmp.lt.s32.totalorder %s1024_s6, %s1024_s6 }
  0x39   : > { %p761_p0 = scmp.lt.s32.totalorder %s759_s9, %s752_s29 }
  0x3a   : > { %p755_p7 = pnand %p753_p5, %p1036_p13 }
  0x3b   : > { %p762_p1 = por %p761_p0, %p760_p12 }
  0x3c   : > { %p756_p9 = pneg %p755_p7 }
  0x3e   : > { %p763_p4 = pnand %p762_p1, %p756_p9 }
  0x40   : > { %766 = shalt.err (!%p763_p4)
}
  0x41   : > { %625 = dma.hbm_to_vmem [thread:$0]  (!%p1020_p11), %s1248_s2, 16, %s1024_s6, [#allocation6]  }
  0x42   : > { %s767_s13 = scalar_lea.hbm %s1249_s3, 256 }
  0x43   : > { %p768_p6 = scmp.ne.s32.totalorder %s1249_s3, %s767_s13  ;;  %p774_p5 = scmp.lt.u32.totalorder %s767_s13, %s1249_s3 }
  0x45   : > { %p770_p10 = pnand %p768_p6, %p1036_p13 }
  0x47   : > { %p771_p3 = pneg %p770_p10 }
  0x49   : > { %p776_p7 = pnand %p774_p5, %p771_p3 }
  0x4b   : > { %779 = shalt.err (!%p776_p7)
}
  0x4c   : > { %s780_s9 = scalar_lea.vmem %s203_s8, 256  ;;  %p788_p1 = scmp.lt.s32.totalorder %s203_s8, %s203_s8 }
  0x4d   : > { %p781_p9 = scmp.ne.s32.totalorder %s203_s8, %s780_s9  ;;  %p789_p4 = scmp.lt.s32.totalorder %s780_s9, %s780_s9 }
  0x4f   : > { %p783_p12 = pnand %p781_p9, %p1036_p13  ;;  %p790_p8 = por %p789_p4, %p788_p1 }
  0x51   : > { %p784_p0 = pneg %p783_p12 }
  0x53   : > { %p791_p2 = pnand %p790_p8, %p784_p0 }
  0x55   : > { %794 = shalt.err (!%p791_p2)
}
  0x56   : > { %s922_s6 = smov 128   ;;  %s923_s14 = smov 8  }
  0x57   : > { %628 = dma.hbm_to_vmem [thread:$0]  (!%p1020_p11), %s1249_s3, 256, %s203_s8, [#allocation9], %s922_s6, %s922_s6, %s923_s14  }
  0x58   : > { %s43_s11 = sadd.s32 1, %s903_s17  ;;  %s34_s12 = sadd.s32 1, %s911_s19 }
  0x59   : > { %p50_p2 = scmp.ne.s32.totalorder %s903_s17, %s899_s16  ;;  %p36_p8 = scmp.ge.s32.totalorder %s34_s12, 2 }
  0x5a   : > { %p51_p13 = scmp.eq.s32.totalorder %s915_s20, 0  ;;  %p1264_p6 = scmp.ne.s32.totalorder %s1257_s24, 0 }
  0x5b   : > { %p640_p3 = scmp.lt.s32.totalorder %s915_s20, 2  ;;  %s1279_s12 = smov (%p36_p8, %s34_s12), 0 }
  0x5c   : > { %p1110_p10 = por %p1264_p6, %p50_p2  ;;  %p52_p5 = por %p51_p13, %p50_p2 }
  0x5d   : > { %s216_s30 = sand.u32 1, %s903_s17   ;;  %s38_s21 = ssub.s32 %s911_s19, %s1279_s12 }
  0x5e   : > { %p41_p7 = scmp.eq.s32.totalorder %s38_s21, 0  ;;  %s551_s8 = sshll.u32 %s216_s30, 3 }
  0x5f   : > { %s576_s22 = sshll.u32 %s911_s19, 7  ;;  %s220_s6 = scalar_lea.vmem [#allocation2], %s551_s8 }
  0x60   : > { %s1122_s28 = scalar_select %p41_p7, %s903_s17, %s43_s11  }
  0x61   : > { %s1127_s24 = scalar_lea.hbm %s1246_s0, %s576_s22  ;;  %s229_s14 = sshll.u32 %s220_s6, 4  ;;  %s1129_s14 = int_to_ptr.vmem [resolvable:$true] %s229_s14 }
  0x62   : > { %p1133_p11 = pnand %p640_p3, %p52_p5  ;;  %s1137_s10 = scalar_lea.sflag [#allocation3], %s216_s30 }
  0x63   : > { %s795_s11 = scalar_lea.hbm %s1127_s24, 128  ;;  %s800_s22 = scalar_lea.hbm %s1246_s0, 256 }
  0x64   : > { %p796_p9 = scmp.ne.s32.totalorder %s1127_s24, %s795_s11  ;;  %p797_p12 = pneg %p1133_p11 }
  0x65   : > { %p801_p4 = scmp.lt.u32.totalorder %s1127_s24, %s1246_s0  ;;  %p802_p2 = scmp.lt.u32.totalorder %s800_s22, %s795_s11 }
  0x66   : > { %p798_p0 = pnand %p797_p12, %p796_p9  ;;  %p804_p13 = scmp.lt.u32.totalorder %s795_s11, %s1127_s24 }
  0x67   : > { %p803_p8 = por %p802_p2, %p801_p4 }
  0x68   : > { %p799_p1 = pneg %p798_p0 }
  0x69   : > { %p805_p6 = por %p804_p13, %p803_p8 }
  0x6b   : > { %p806_p3 = pnand %p805_p6, %p799_p1 }
  0x6d   : > { %809 = shalt.err (!%p806_p3)
}
  0x6e   : > { %s810_s30 = scalar_lea.vmem %s1129_s14, 128  ;;  %s924_s6 = smov [#allocation2]  }
  0x6f   : > { %p811_p5 = scmp.ne.s32.totalorder %s1129_s14, %s810_s30  ;;  %s815_s21 = sshll.u32 %s924_s6, 4  ;;  %s816_s21 = int_to_ptr.vmem [resolvable:$false] %s815_s21 }
  0x70   : > { %s817_s8 = scalar_lea.vmem %s816_s21, 256  ;;  %p818_p0 = scmp.lt.s32.totalorder %s1129_s14, %s816_s21 }
  0x71   : > { %p813_p7 = pnand %p811_p5, %p797_p12  ;;  %p819_p4 = scmp.lt.s32.totalorder %s817_s8, %s810_s30 }
  0x73   : > { %p814_p9 = pneg %p813_p7  ;;  %p820_p2 = por %p819_p4, %p818_p0 }
  0x75   : > { %p821_p8 = pnand %p820_p2, %p814_p9 }
  0x77   : > { %824 = shalt.err (!%p821_p8)
}
  0x78   : > { %632 = dma.hbm_to_vmem [thread:$0]  (!%p1133_p11), %s1127_s24, 128, %s1129_s14, %s1137_s10, %s920_s5, %s920_s5, %s921_s7  }
  0x79   : > { %p1267_p12 = scmp.ne.s32.totalorder %s1261_s27, 0 }
  0x7a   : > { %s1171_s11 = sand.u32 (!%p1267_p12), 1, %s899_s16   ;;  %p1268_p1 = scmp.ne.s32.totalorder (!%p1267_p12), %s1258_s25, 0 }
  0x7b   : > { %241 = sbr.rel (%p1267_p12) target bundleno = 396 (0x18c), region = 36  ;;  %s555_s22 = sshll.u32 (!%p1267_p12), %s1171_s11, 3 }
  0x7c   : > { %s244_s29 = scalar_lea.sflag (!%p1267_p12), [#allocation3], %s1171_s11  ;;  %s247_s26 = scalar_lea.vmem (!%p1267_p12), [#allocation2], %s555_s22 }
  0x82   : > { %878 = dma.done.wait (%p1268_p1), %s244_s29, 128  }
  0x83   : > { %880 = vsyncadd (%p1268_p1), %s244_s29, 4294967168  ;;  %p1269_p11 = scmp.ne.s32.totalorder %s1256_s23, 0 }
  0x85   : > { %882 = dma.done.wait (%p1269_p11), [#allocation6], 784  }
  0x86   : > { %884 = vsyncadd (%p1269_p11), [#allocation6], 4294966512 }
  0x87   : > { %886 = dma.done.wait (%p1269_p11), [#allocation9], 256  }
  0x88   : > { %888 = vsyncadd (%p1269_p11), [#allocation9], 4294967040  ;;  %v925_v0 = vmov 0.0   ;;  %vm926_vm0 = vmmov 0   ;;  %v704_v1 = vld [vmem:[#allocation5] sm:$0xff]   ;;  %v705_v2 = vld [vmem:[#allocation5 + $0x8] sm:$0xff]  }
  0x89   : > { %587 = vmatprep.subr.bf16.mxu0 %v925_v0  ;;  %599 = vmatprep.mubr.msk.bf16.mxu0 %vm926_vm0, %v925_v0  ;;  %v706_v3 = vld [vmem:[#allocation5 + $0x10] sm:$0xff]   ;;  %v707_v4 = vld [vmem:[#allocation5 + $0x18] sm:$0xff]   ;;  %v708_v5 = vld [vmem:[#allocation5 + $0x20] sm:$0xff]   ;;  %vm350_vm1 = vcmask 785408   ;;  %s579_s23 = sshll.u32 %s907_s18, 7  ;;  %s283_s25 = scalar_lea.vmem [#allocation10], %s555_s22 }
  0x8a   : > { %588 = vmatpush3.bf16.msra.mxu0 %v704_v1  ;;  %v709_v6 = vld [vmem:[#allocation5 + $0x28] sm:$0xff]   ;;  %v710_v7 = vld [vmem:[%s247_s26] sm:$0xff]   ;;  %s426_s27 = sshll.u32 %s283_s25, 4  ;;  %vm407_vm2 = vcmask 257024   ;;  %s1195_s24 = scalar_lea.hbm %s1250_s4, %s579_s23  ;;  %s1197_s27 = int_to_ptr.vmem [resolvable:$true] %s426_s27 }
  0x8b   : > { %589 = vmatprep.subr.bf16.mxu0 %v925_v0  ;;  %v560_v8 = vld [vmem:[#allocation7] ss:$0 sm:$0xff]  ;;  %v395_v10 = vld [vmem:[#allocation8] sm:$0xff]  ;;  %v396_v14 = vld [vmem:[#allocation8 + $0x8] sm:$0xff]  ;;  %s411_s18 = scalar_lea.sflag [#allocation4], %s1171_s11  ;;  %s825_s14 = scalar_lea.vmem %s1197_s27, 128 }
  0x8c   : > { %p826_p13 = scmp.ne.s32.totalorder %s1197_s27, %s825_s14  ;;  %s927_s10 = smov [#allocation10]  }
  0x8d   : > { %s829_s9 = sshll.u32 %s927_s10, 4  ;;  %s830_s9 = int_to_ptr.vmem [resolvable:$false] %s829_s9 }
  0x8e   : > { %590 = vmatpush3.bf16.msra.mxu0 %v705_v2  ;;  %p827_p6 = pnand %p826_p13, %p1110_p10  ;;  %s831_s30 = scalar_lea.vmem %s830_s9, 256 }
  0x8f   : > { %591 = vmatprep.subr.bf16.mxu0 %v925_v0  ;;  %p832_p5 = scmp.lt.s32.totalorder %s1197_s27, %s830_s9  ;;  %p833_p7 = scmp.lt.s32.totalorder %s831_s30, %s825_s14 }
  0x90   : > { %p828_p3 = pneg %p827_p6 }
  0x91   : > { %p834_p9 = por %p833_p7, %p832_p5 }
  0x92   : > { %592 = vmatpush3.bf16.msra.mxu0 %v706_v3 }
  0x93   : > { %593 = vmatprep.subr.bf16.mxu0 %v925_v0  ;;  %p835_p0 = pnand %p834_p9, %p828_p3 }
  0x96   : > { %594 = vmatpush3.bf16.msra.mxu0 %v707_v4 }
  0x97   : > { %595 = vmatprep.subr.bf16.mxu0 %v925_v0 }
  0x9a   : > { %596 = vmatpush3.bf16.msra.mxu0 %v708_v5 }
  0x9b   : > { %597 = vmatprep.subr.bf16.mxu0 %v925_v0 }
  0x9e   : > { %598 = vmatpush3.bf16.msra.mxu0 %v709_v6 }
  0xa1   : > { %600 = vmatmul.mubr.msk.bf16.vlgmr.msra.gmra.mrb[0].mxu0 %vm350_vm1, %v710_v7 }
 0x174   : > { %v388_v9 = vpop.f32.mrb[0].mxu0 }
 0x175   : > { %v389_v11 = vadd.f32 %v560_v8, %v388_v9  ;;  %v601_v12 = vpop.f32.mrb[1].mxu0 }
 0x176   : > { %v391_v13 = vpop.f32.mrb[2].mxu0 }
 0x177   : > { %v397_v15 = vadd.f32 %v395_v10, %v389_v11  ;;  %v392_v16 = vadd.f32 %v560_v8, %v391_v13  ;;  %v602_v17 = vpop.f32.mrb[3].mxu0 }
 0x179   : > { %v577_v18 = vpack.c.bf16 %v397_v15, %v397_v15  ;;  %v398_v19 = vadd.f32 %v396_v14, %v392_v16 }
 0x17b   : > { %408 = vst.msk [vmem:[%s283_s25] sm:$0xf] %vm407_vm2, %v577_v18  ;;  %v578_v20 = vpack.c.bf16 %v398_v19, %v398_v19 }
 0x17d   : > { %409 = vst.msk [vmem:[%s283_s25 + $0x4] sm:$0xf] %vm407_vm2, %v578_v20 }
 0x17e   : > { %838 = shalt.err (!%p835_p0)
}
 0x17f   : > { %s839_s6 = scalar_lea.hbm %s1195_s24, 128  ;;  %s843_s22 = scalar_lea.hbm %s1250_s4, 256 }
 0x180   : > { %p840_p4 = scmp.ne.s32.totalorder %s1195_s24, %s839_s6  ;;  %p844_p12 = scmp.lt.u32.totalorder %s1195_s24, %s1250_s4 }
 0x181   : > { %p845_p1 = scmp.lt.u32.totalorder %s843_s22, %s839_s6  ;;  %p847_p13 = scmp.lt.u32.totalorder %s839_s6, %s1195_s24 }
 0x182   : > { %p841_p2 = pnand %p840_p4, %p1110_p10 }
 0x183   : > { %p846_p11 = por %p845_p1, %p844_p12 }
 0x184   : > { %p842_p8 = pneg %p841_p2 }
 0x185   : > { %p848_p6 = por %p847_p13, %p846_p11 }
 0x187   : > { %p849_p3 = pnand %p848_p6, %p842_p8 }
 0x189   : > { %852 = shalt.err (!%p849_p3)
}
 0x18a   : > { %s928_s23 = smov 64   ;;  %s929_s25 = smov 4  }
 0x18b   : > { %617 = dma.vmem_to_hbm [thread:$0]  (%p1110_p10), %s1197_s27, 128, %s1195_s24, %s411_s18, %s928_s23, %s928_s23, %s929_s25  }
 0x18c PF: > { %s1270_s5 = sld [smem:[#allocation15_spill]]  ;;  %s441_s7 = sand.u32 1, %s895_s15  }
 0x18d   : > { %p1272_p7 = scmp.ge.s32.totalorder %s915_s20, 2  ;;  %s442_s14 = scalar_lea.sflag [#allocation4], %s441_s7 }
 0x192   : > { %p1271_p5 = scmp.ne.s32.totalorder %s1270_s5, 0 }
 0x194   : > { %p634_p9 = pnand %p1272_p7, %p1271_p5 }
 0x196   : > { %890 = dma.done.wait (!%p634_p9), %s442_s14, 128  }
 0x197   : > { %892 = vsyncadd (!%p634_p9), %s442_s14, 4294967168  ;;  %s22_s20 = sadd.s32 1, %s915_s20   ;;  %s1273_s15 = smov %s899_s16 }
 0x198   : > { %p19_p0 = scmp.ge.s32.totalorder %s22_s20, 4   ;;  %s1274_s16 = smov %s903_s17 }
 0x199   : > { %s1275_s17 = smov %s1122_s28  ;;  %s1276_s18 = smov %s911_s19 }
 0x19a   : > { %s1277_s19 = smov %s1279_s12  ;;  %21 = sbr.rel (!%p19_p0) target bundleno = 8 (0x8), region = 94 }
 0x1a1   :  { %447 = vsyncpa [#allocation3], 1 }
 0x1a2   :  { %449 = vsyncpa [#allocation3 + $0x1], 1 }
 0x1a3   :  { %450 = vsyncpa [#allocation6], 1 }
 0x1a4   :  { %451 = vsyncpa [#allocation9], 1 }
 0x1a5   :  { %452 = vsyncpa [#allocation4], 1 }
 0x1a6   :  { %454 = vsyncpa [#allocation4 + $0x1], 1 }

// kernel: whisper_forward.31
= control target key start
LH: loop header
LB: loop body
LE: loop exit
PB: predicated region body
PF: predicated region fallthrough
CT: control target
= control target key end

     0   :  { %s1896_s0 = inlined_call_operand.hbm [shape: bf16[32,32], index: 0, kind: input, shape index: {}]   ;;  %s1897_s1 = inlined_call_operand.hbm [shape: bf16[32,32], index: 1, kind: input, shape index: {}]   ;;  %s1898_s2 = inlined_call_operand.hbm [shape: f32[1,32], index: 2, kind: input, shape index: {}]   ;;  %s1899_s3 = inlined_call_operand.hbm [shape: bf16[32,32], index: 3, kind: input, shape index: {}]   ;;  %s1900_s4 = inlined_call_operand.hbm [shape: bf16[32,32], index: 4, kind: input, shape index: {}]   ;;  %s1901_s5 = inlined_call_operand.hbm [shape: f32[1,32], index: 5, kind: input, shape index: {}]   ;;  %s1902_s6 = inlined_call_operand.hbm [shape: bf16[32,32], index: 6, kind: output, shape index: {0}]   ;;  %s1903_s7 = inlined_call_operand.hbm [shape: bf16[32,32], index: 7, kind: output, shape index: {1}]   ;;  %s1904_s8 = inlined_call_operand.hbm [shape: bf16[32,32], index: 8, kind: output, shape index: {2}]  }
   0x1   :  { %1912 = sst [smem:[#allocation23_spill]] %s1896_s0 }
   0x2   :  { %1913 = sst [smem:[#allocation24_spill]] %s1897_s1 }
   0x3   :  { %14 = vsyncpa [#allocation3], 0 }
   0x4   :  { %16 = vsyncpa [#allocation3 + $0x1], 0 }
   0x5   :  { %17 = vsyncpa [#allocation6], 0 }
   0x6   :  { %18 = vsyncpa [#allocation9], 0 }
   0x7   :  { %19 = vsyncpa [#allocation12], 0 }
   0x8   :  { %20 = vsyncpa [#allocation4], 0 }
   0x9   :  { %22 = vsyncpa [#allocation4 + $0x1], 0 }
   0xa   :  { %23 = vsyncpa [#allocation15], 0 }
   0xb   :  { %25 = vsyncpa [#allocation15 + $0x1], 0  ;;  %s1466_s27 = smov 0   ;;  %s1468_s28 = smov 0  }
   0xc   :  { %s1470_s29 = smov 0   ;;  %s1472_s30 = smov 0  }
   0xd LB: > { %s1406_s9 = smov [#allocation5]   ;;  %s1487_s11 = sadd.s32 4294967295, %s1404_s30   ;;  %s1404_s30 = sphi %s1472_s30, %s1943_s30   ;;  %s1400_s29 = sphi %s1470_s29, %s1942_s29   ;;  %s1396_s28 = sphi %s1468_s28, %s1941_s28   ;;  %s1392_s27 = sphi %s1466_s27, %s1940_s27  }
   0xe   : > { %s257_s10 = sshll.u32 %s1406_s9, 4  ;;  %p884_p0 = scmp.ge.s32.totalorder %s1404_s30, 1  ;;  %s1492_s10 = int_to_ptr.vmem [resolvable:$true] %s257_s10 }
   0xf   : > { %p1907_p1 = scmp.eq.s32.totalorder %s1487_s11, 0  ;;  %p245_p2 = scmp.lt.s32.totalorder %s1404_s30, 3 }
  0x10   : > { %s1407_s13 = smov [#allocation8]   ;;  %s1408_s16 = smov [#allocation7]  }
  0x11   : > { %p1494_p3 = pnand %p884_p0, %p245_p2  ;;  %s281_s14 = sshll.u32 %s1407_s13, 4  ;;  %s1507_s14 = int_to_ptr.vmem [resolvable:$true] %s281_s14 }
  0x12   : > { %s271_s17 = sshll.u32 %s1408_s16, 4  ;;  %s1916_s1 = sld [smem:[#allocation24_spill]]  ;;  %s1509_s17 = int_to_ptr.vmem [resolvable:$true] %s271_s17 }
  0x13   : > { %s1914_s12 = scalar_select %p1494_p3, 1, 0 }
  0x14   : > { %p1004_p5 = pneg %p1494_p3 }
  0x16   : > { %p1503_p6 = pnand %p1004_p5, %p1907_p1 }
  0x18   : > { %s1096_s20 = scalar_lea.hbm %s1916_s1, 256  ;;  %p1519_p8 = pneg %p1503_p6 }
  0x19   : > { %p1097_p7 = scmp.ne.s32.totalorder %s1916_s1, %s1096_s20  ;;  %p1103_p11 = scmp.lt.u32.totalorder %s1096_s20, %s1916_s1 }
  0x1b   : > { %p1099_p9 = pnand %p1519_p8, %p1097_p7 }
  0x1d   : > { %p1100_p10 = pneg %p1099_p9 }
  0x1f   : > { %p1105_p12 = pnand %p1103_p11, %p1100_p10 }
  0x21   : > { %1108 = shalt.err (!%p1105_p12)
}
  0x22   : > { %s1109_s26 = scalar_lea.vmem %s1492_s10, 256  ;;  %p1117_p5 = scmp.lt.s32.totalorder %s1492_s10, %s1492_s10 }
  0x23   : > { %p1110_p13 = scmp.ne.s32.totalorder %s1492_s10, %s1109_s26  ;;  %p1118_p4 = scmp.lt.s32.totalorder %s1109_s26, %s1109_s26 }
  0x25   : > { %p1112_p0 = pnand %p1110_p13, %p1519_p8  ;;  %p1119_p7 = por %p1118_p4, %p1117_p5 }
  0x27   : > { %p1113_p2 = pneg %p1112_p0 }
  0x29   : > { %p1120_p9 = pnand %p1119_p7, %p1113_p2 }
  0x2b   : > { %1123 = shalt.err (!%p1120_p9)
}
  0x2c   : > { %s1905_s9 = smov 64   ;;  %s1910_s13 = smov 4  }
  0x2d   : > { %1007 = dma.hbm_to_vmem [thread:$0]  (!%p1503_p6), %s1916_s1, 256, %s1492_s10, [#allocation6], %s1905_s9, %s1905_s9, %s1910_s13  }
  0x2e   : > { %s1124_s21 = scalar_lea.hbm %s1899_s3, 256 }
  0x2f   : > { %p1125_p4 = scmp.ne.s32.totalorder %s1899_s3, %s1124_s21  ;;  %p1131_p12 = scmp.lt.u32.totalorder %s1124_s21, %s1899_s3 }
  0x31   : > { %p1127_p10 = pnand %p1125_p4, %p1519_p8 }
  0x33   : > { %p1128_p11 = pneg %p1127_p10 }
  0x35   : > { %p1133_p13 = pnand %p1131_p12, %p1128_p11 }
  0x37   : > { %1136 = shalt.err (!%p1133_p13)
}
  0x38   : > { %s1137_s10 = scalar_lea.vmem %s1507_s14, 256  ;;  %p1145_p7 = scmp.lt.s32.totalorder %s1507_s14, %s1507_s14 }
  0x39   : > { %p1138_p0 = scmp.ne.s32.totalorder %s1507_s14, %s1137_s10  ;;  %p1146_p9 = scmp.lt.s32.totalorder %s1137_s10, %s1137_s10 }
  0x3b   : > { %p1140_p2 = pnand %p1138_p0, %p1519_p8  ;;  %p1147_p4 = por %p1146_p9, %p1145_p7 }
  0x3d   : > { %p1141_p5 = pneg %p1140_p2 }
  0x3f   : > { %p1148_p10 = pnand %p1147_p4, %p1141_p5 }
  0x41   : > { %1151 = shalt.err (!%p1148_p10)
}
  0x42   : > { %1013 = dma.hbm_to_vmem [thread:$0]  (!%p1503_p6), %s1899_s3, 256, %s1507_s14, [#allocation9], %s1905_s9, %s1905_s9, %s1910_s13  }
  0x43   : > { %s1152_s21 = scalar_lea.hbm %s1898_s2, 16 }
  0x44   : > { %p1153_p11 = scmp.ne.s32.totalorder %s1898_s2, %s1152_s21  ;;  %p1159_p0 = scmp.lt.u32.totalorder %s1152_s21, %s1898_s2 }
  0x46   : > { %p1155_p12 = pnand %p1153_p11, %p1519_p8 }
  0x48   : > { %p1156_p13 = pneg %p1155_p12 }
  0x4a   : > { %p1161_p2 = pnand %p1159_p0, %p1156_p13 }
  0x4c   : > { %1164 = shalt.err (!%p1161_p2)
}
  0x4d   : > { %s1165_s14 = scalar_lea.vmem %s1509_s17, 16  ;;  %s1172_s10 = scalar_lea.vmem %s1509_s17, 32 }
  0x4e   : > { %p1166_p5 = scmp.ne.s32.totalorder %s1509_s17, %s1165_s14  ;;  %p1173_p4 = scmp.lt.s32.totalorder %s1509_s17, %s1509_s17 }
  0x4f   : > { %p1174_p10 = scmp.lt.s32.totalorder %s1172_s10, %s1165_s14 }
  0x50   : > { %p1168_p7 = pnand %p1166_p5, %p1519_p8 }
  0x51   : > { %p1175_p11 = por %p1174_p10, %p1173_p4 }
  0x52   : > { %p1169_p9 = pneg %p1168_p7 }
  0x54   : > { %p1176_p12 = pnand %p1175_p11, %p1169_p9 }
  0x56   : > { %1179 = shalt.err (!%p1176_p12)
}
  0x57   : > { %1010 = dma.hbm_to_vmem [thread:$0]  (!%p1503_p6), %s1898_s2, 16, %s1509_s17, [#allocation6]  }
  0x58   : > { %s1411_s19 = smov [#allocation10]   ;;  %s1412_s21 = smov [#allocation11]  }
  0x59   : > { %s294_s20 = sshll.u32 %s1411_s19, 4  ;;  %s308_s22 = sshll.u32 %s1412_s21, 4  ;;  %s295_s20 = int_to_ptr.vmem [resolvable:$true] %s294_s20  ;;  %s309_s22 = int_to_ptr.vmem [resolvable:$true] %s308_s22 }
  0x5a   : > { %s1180_s26 = scalar_lea.hbm %s1900_s4, 256 }
  0x5b   : > { %p1181_p13 = scmp.ne.s32.totalorder %s1900_s4, %s1180_s26  ;;  %p1187_p5 = scmp.lt.u32.totalorder %s1180_s26, %s1900_s4 }
  0x5d   : > { %p1183_p0 = pnand %p1181_p13, %p1519_p8 }
  0x5f   : > { %p1184_p2 = pneg %p1183_p0 }
  0x61   : > { %p1189_p7 = pnand %p1187_p5, %p1184_p2 }
  0x63   : > { %1192 = shalt.err (!%p1189_p7)
}
  0x64   : > { %s1193_s17 = scalar_lea.vmem %s295_s20, 256  ;;  %p1201_p11 = scmp.lt.s32.totalorder %s295_s20, %s295_s20 }
  0x65   : > { %p1194_p9 = scmp.ne.s32.totalorder %s295_s20, %s1193_s17  ;;  %p1202_p12 = scmp.lt.s32.totalorder %s1193_s17, %s1193_s17 }
  0x67   : > { %p1196_p4 = pnand %p1194_p9, %p1519_p8  ;;  %p1203_p1 = por %p1202_p12, %p1201_p11 }
  0x69   : > { %p1197_p10 = pneg %p1196_p4 }
  0x6b   : > { %p1204_p3 = pnand %p1203_p1, %p1197_p10 }
  0x6d   : > { %1207 = shalt.err (!%p1204_p3)
}
  0x6e   : > { %s1918_s18 = smov 64   ;;  %s1208_s25 = scalar_lea.hbm %s1901_s5, 16 }
  0x6f   : > { %1016 = dma.hbm_to_vmem [thread:$0]  (!%p1503_p6), %s1900_s4, 256, %s295_s20, [#allocation9], %s1918_s18, %s1918_s18, %s1910_s13  }
  0x70   : > { %p1209_p1 = scmp.ne.s32.totalorder %s1901_s5, %s1208_s25  ;;  %p1215_p0 = scmp.lt.u32.totalorder %s1208_s25, %s1901_s5 }
  0x72   : > { %p1211_p3 = pnand %p1209_p1, %p1519_p8 }
  0x74   : > { %p1212_p13 = pneg %p1211_p3 }
  0x76   : > { %p1217_p2 = pnand %p1215_p0, %p1212_p13 }
  0x78   : > { %1220 = shalt.err (!%p1217_p2)
}
  0x79   : > { %s1221_s17 = scalar_lea.vmem %s309_s22, 16  ;;  %s1228_s20 = scalar_lea.vmem %s309_s22, 32 }
  0x7a   : > { %p1222_p5 = scmp.ne.s32.totalorder %s309_s22, %s1221_s17  ;;  %p1229_p4 = scmp.lt.s32.totalorder %s309_s22, %s309_s22 }
  0x7b   : > { %p1230_p10 = scmp.lt.s32.totalorder %s1228_s20, %s1221_s17 }
  0x7c   : > { %p1224_p7 = pnand %p1222_p5, %p1519_p8 }
  0x7d   : > { %p1231_p11 = por %p1230_p10, %p1229_p4 }
  0x7e   : > { %p1225_p9 = pneg %p1224_p7 }
  0x80   : > { %p1232_p12 = pnand %p1231_p11, %p1225_p9 }
  0x82   : > { %1235 = shalt.err (!%p1232_p12)
}
  0x83   : > { %1019 = dma.hbm_to_vmem [thread:$0]  (!%p1503_p6), %s1901_s5, 16, %s309_s22, [#allocation12]  }
  0x84   : > { %s1909_s15 = sadd.s32 4294967294, %s1404_s30   ;;  %s1634_s23 = sadd.s32 1, %s1404_s30  }
  0x85   : > { %s38_s21 = sadd.s32 1, %s1400_s29  ;;  %s35_s24 = ssub.s32 %s1404_s30, %s1634_s23 }
  0x86   : > { %p45_p8 = scmp.ne.s32.totalorder %s1400_s29, %s1396_s28  ;;  %p36_p1 = scmp.eq.s32.totalorder %s35_s24, 0 }
  0x87   : > { %p46_p3 = scmp.eq.s32.totalorder %s1404_s30, 0  ;;  %p51_p13 = scmp.ne.s32.totalorder %s1396_s28, %s1392_s27 }
  0x88   : > { %p180_p0 = scmp.eq.s32.totalorder %s1487_s11, 1  ;;  %p1919_p5 = scmp.eq.s32.totalorder %s1487_s11, 0 }
  0x89   : > { %s1646_s25 = scalar_select %p36_p1, %s1400_s29, %s38_s21  }
  0x8a   : > { %p47_p2 = por %p46_p3, %p45_p8  ;;  %p1650_p7 = por %p1919_p5, %p51_p13 }
  0x8b   : > { %p1654_p6 = por %p180_p0, %p45_p8  ;;  %p186_p9 = scmp.eq.s32.totalorder %s1909_s15, 1 }
  0x8c   : > { %p1039_p4 = scmp.lt.s32.totalorder %s1404_s30, 2  ;;  %s319_s14 = sand.u32 1, %s1400_s29  }
  0x8d   : > { %s1921_s22 = scalar_select %p1654_p6, 1, 0 }
  0x8e   : > { %p1662_p10 = por %p186_p9, %p51_p13  ;;  %s891_s16 = sshll.u32 %s319_s14, 3 }
  0x8f   : > { %s933_s17 = sshll.u32 %s1404_s30, 7  ;;  %s1923_s0 = sld [smem:[#allocation23_spill]] }
  0x90   : > { %s1922_s10 = scalar_select %p1662_p10, 1, 0 }
  0x91   : > { %s323_s21 = scalar_lea.vmem [#allocation2], %s891_s16  ;;  %p1672_p11 = pnand %p1039_p4, %p47_p2 }
  0x92   : > { %s330_s24 = sshll.u32 %s323_s21, 4  ;;  %s1678_s13 = scalar_lea.sflag [#allocation3], %s319_s14  ;;  %s1676_s24 = int_to_ptr.vmem [resolvable:$true] %s330_s24 }
  0x93   : > { %p1238_p8 = pneg %p1672_p11 }
  0x95   : > { %s1670_s19 = scalar_lea.hbm %s1923_s0, %s933_s17  ;;  %s1241_s20 = scalar_lea.hbm %s1923_s0, 256 }
  0x96   : > { %s1236_s1 = scalar_lea.hbm %s1670_s19, 128  ;;  %p1242_p13 = scmp.lt.u32.totalorder %s1670_s19, %s1923_s0 }
  0x97   : > { %p1237_p12 = scmp.ne.s32.totalorder %s1670_s19, %s1236_s1  ;;  %p1243_p0 = scmp.lt.u32.totalorder %s1241_s20, %s1236_s1 }
  0x98   : > { %p1245_p5 = scmp.lt.u32.totalorder %s1236_s1, %s1670_s19 }
  0x99   : > { %p1239_p1 = pnand %p1238_p8, %p1237_p12  ;;  %p1244_p2 = por %p1243_p0, %p1242_p13 }
  0x9b   : > { %p1240_p3 = pneg %p1239_p1  ;;  %p1246_p9 = por %p1245_p5, %p1244_p2 }
  0x9d   : > { %p1247_p4 = pnand %p1246_p9, %p1240_p3 }
  0x9f   : > { %1250 = shalt.err (!%p1247_p4)
}
  0xa0   : > { %s1251_s14 = scalar_lea.vmem %s1676_s24, 128  ;;  %s1413_s16 = smov [#allocation2]  }
  0xa1   : > { %p1252_p12 = scmp.ne.s32.totalorder %s1676_s24, %s1251_s14  ;;  %s1256_s17 = sshll.u32 %s1413_s16, 4  ;;  %s1257_s17 = int_to_ptr.vmem [resolvable:$false] %s1256_s17 }
  0xa2   : > { %s1258_s9 = scalar_lea.vmem %s1257_s17, 256  ;;  %p1259_p6 = scmp.lt.s32.totalorder %s1676_s24, %s1257_s17 }
  0xa3   : > { %p1254_p1 = pnand %p1252_p12, %p1238_p8  ;;  %p1260_p13 = scmp.lt.s32.totalorder %s1258_s9, %s1251_s14 }
  0xa5   : > { %p1255_p10 = pneg %p1254_p1  ;;  %p1261_p0 = por %p1260_p13, %p1259_p6 }
  0xa7   : > { %p1262_p2 = pnand %p1261_p0, %p1255_p10 }
  0xa9   : > { %1265 = shalt.err (!%p1262_p2)
}
  0xaa   : > { %s1925_s1 = smov 4   ;;  %p1926_p8 = scmp.ne.s32.totalorder %s1914_s12, 0 }
  0xab   : > { %1023 = dma.hbm_to_vmem [thread:$0]  (!%p1672_p11), %s1670_s19, 128, %s1676_s24, %s1678_s13, %s1918_s18, %s1918_s18, %s1925_s1  }
  0xac   : > { %342 = sbr.rel (%p1926_p8) target bundleno = 481 (0x1e1), region = 44  ;;  %s1712_s20 = sand.u32 (!%p1926_p8), 1, %s1396_s28  }
  0xad   : > { %s1715_s21 = sshll.u32 (!%p1926_p8), %s1712_s20, 3  ;;  %s345_s15 = scalar_lea.sflag (!%p1926_p8), [#allocation3], %s1712_s20 }
  0xae   : > { %s348_s14 = scalar_lea.vmem (!%p1926_p8), [#allocation2], %s1715_s21 }
  0xb3   : > { %1367 = dma.done.wait (%p1650_p7), %s345_s15, 128  }
  0xb4   : > { %1369 = vsyncadd (%p1650_p7), %s345_s15, 4294967168  ;;  %p1927_p6 = scmp.eq.s32.totalorder %s1487_s11, 0 }
  0xb6   : > { %1371 = dma.done.wait (%p1927_p6), [#allocation6], 272   ;;  %p1928_p10 = pmov %p1927_p6 }
  0xb7   : > { %p1929_p11 = pmov %p1927_p6 }
  0xb8   : > { %1373 = vsyncadd (%p1928_p10), [#allocation6], 4294967024 }
  0xb9   : > { %1375 = dma.done.wait (%p1929_p11), [#allocation9], 512   ;;  %p1930_p3 = pmov %p1927_p6 }
  0xbb   : > { %1377 = vsyncadd (%p1930_p3), [#allocation9], 4294966784  ;;  %p1931_p5 = pmov %p1930_p3 }
  0xbc   : > { %p1932_p9 = pmov %p1930_p3 }
  0xbd   : > { %1379 = dma.done.wait (%p1931_p5), [#allocation12], 16  }
  0xbe   : > { %1381 = vsyncadd (%p1932_p9), [#allocation12], 4294967280  ;;  %v1414_v0 = vmov 0.0   ;;  %vm1415_vm0 = vmmov 0   ;;  %v1089_v1 = vld [vmem:[#allocation5] sm:$0xff]   ;;  %v1090_v2 = vld [vmem:[#allocation5 + $0x8] sm:$0xff]  }
  0xbf   : > { %952 = vmatprep.subr.bf16.mxu0 %v1414_v0  ;;  %956 = vmatprep.mubr.msk.bf16.mxu0 %vm1415_vm0, %v1414_v0  ;;  %v1092_v3 = vld [vmem:[#allocation8] sm:$0xff]   ;;  %v1094_v5 = vld [vmem:[#allocation8 + $0x8] sm:$0xff]   ;;  %vm446_vm1 = vcmask 261120   ;;  %v1093_v6 = vld [vmem:[#allocation10] sm:$0xff]   ;;  %s1739_s12 = scalar_lea.vmem [#allocation14], %s1715_s21  ;;  %s1746_s26 = sshll.u32 %s1487_s11, 7 }
  0xc0   : > { %960 = vmatprep.subr.bf16.mxu1 %v1414_v0  ;;  %964 = vmatprep.mubr.msk.bf16.mxu1 %vm1415_vm0, %v1414_v0  ;;  %v1091_v4 = vld [vmem:[%s348_s14] sm:$0xff]   ;;  %s685_s13 = sshll.u32 %s1739_s12, 4  ;;  %vm622_vm2 = vcmask 257024   ;;  %s396_s19 = scalar_lea.vmem [#allocation13], %s1715_s21  ;;  %s1743_s13 = int_to_ptr.vmem [resolvable:$true] %s685_s13 }
  0xc1   : > { %953 = vmatpush3.bf16.msra.mxu0 %v1089_v1  ;;  %961 = vmatpush3.bf16.msra.mxu1 %v1092_v3  ;;  %v1095_v7 = vld [vmem:[#allocation10 + $0x8] sm:$0xff]   ;;  %s669_s24 = sshll.u32 %s396_s19, 4  ;;  %v1751_v22 = vld [vmem:[#allocation11] ss:$0 sm:$0xff]  ;;  %s1757_s9 = scalar_lea.hbm %s1903_s7, %s1746_s26  ;;  %s1766_s24 = int_to_ptr.vmem [resolvable:$true] %s669_s24 }
  0xc2   : > { %954 = vmatprep.subr.bf16.mxu0 %v1414_v0  ;;  %962 = vmatprep.subr.bf16.mxu1 %v1414_v0  ;;  %v904_v8 = vld [vmem:[#allocation7] ss:$0 sm:$0xff]  ;;  %s1764_s14 = scalar_lea.hbm %s1902_s6, %s1746_s26  ;;  %s1769_s18 = scalar_lea.vmem [#allocation16], %s1715_s21 }
  0xc3   : > { %s1933_s16 = sand.u32 1, %s1487_s11   ;;  %s1266_s1 = scalar_lea.vmem %s1743_s13, 128 }
  0xc4   : > { %s1780_s17 = scalar_lea.sflag [#allocation15], %s1933_s16  ;;  %p1267_p7 = scmp.ne.s32.totalorder %s1743_s13, %s1266_s1 }
  0xc5   : > { %955 = vmatpush3.bf16.msra.mxu0 %v1090_v2  ;;  %963 = vmatpush3.bf16.msra.mxu1 %v1094_v5  ;;  %p1934_p4 = scmp.ne.s32.totalorder %s1921_s22, 0  ;;  %s1416_s21 = smov [#allocation14]  }
  0xc6   : > { %968 = vmatprep.subr.bf16.mxu0 %v1414_v0  ;;  %s1270_s15 = sshll.u32 %s1416_s21, 4  ;;  %s1271_s15 = int_to_ptr.vmem [resolvable:$false] %s1270_s15 }
  0xc7   : > { %p1268_p12 = pnand %p1267_p7, %p1934_p4  ;;  %s1272_s0 = scalar_lea.vmem %s1271_s15, 256 }
  0xc8   : > { %957 = vmatmul.mubr.msk.bf16.vlgmr.msra.gmra.mrb[0].mxu0 %vm446_vm1, %v1091_v4  ;;  %965 = vmatmul.mubr.msk.bf16.vlgmr.msra.gmra.mrb[0].mxu1 %vm446_vm1, %v1091_v4  ;;  %p1273_p13 = scmp.lt.s32.totalorder %s1743_s13, %s1271_s15  ;;  %p1274_p0 = scmp.lt.s32.totalorder %s1272_s0, %s1266_s1 }
  0xc9   : > { %969 = vmatpush3.bf16.msra.mxu0 %v1093_v6  ;;  %972 = vmatprep.mubr.msk.bf16.mxu0 %vm1415_vm0, %v1414_v0  ;;  %p1269_p1 = pneg %p1268_p12 }
  0xca   : > { %970 = vmatprep.subr.bf16.mxu0 %v1414_v0  ;;  %p1275_p2 = por %p1274_p0, %p1273_p13 }
  0xcc   : > { %p1276_p8 = pnand %p1275_p2, %p1269_p1 }
  0xcd   : > { %971 = vmatpush3.bf16.msra.mxu0 %v1095_v7 }
  0xd0   : > { %973 = vmatmul.mubr.msk.bf16.vlgmr.msra.gmra.mrb[4].mxu0 %vm446_vm1, %v1091_v4 }
 0x19b   : > { %v484_v9 = vpop.f32.mrb[0].mxu0  ;;  %v543_v16 = vpop.f32.mrb[0].mxu1 }
 0x19c   : > { %v485_v10 = vadd.f32 %v904_v8, %v484_v9  ;;  %v958_v11 = vpop.f32.mrb[1].mxu0  ;;  %v936_v17 = vpack.c.bf16 %v543_v16, %v543_v16  ;;  %v966_v18 = vpop.f32.mrb[1].mxu1 }
 0x19d   : > { %v487_v12 = vpop.f32.mrb[2].mxu0  ;;  %v546_v21 = vpop.f32.mrb[2].mxu1 }
 0x19e   : > { %v491_v13 = vmul.f32 0.17677669, %v485_v10  ;;  %v488_v14 = vadd.f32 %v904_v8, %v487_v12  ;;  %v959_v15 = vpop.f32.mrb[3].mxu0  ;;  %633 = vst.msk [vmem:[%s1739_s12] sm:$0xf] %vm622_vm2, %v936_v17  ;;  %v937_v23 = vpack.c.bf16 %v546_v21, %v546_v21  ;;  %v967_v24 = vpop.f32.mrb[3].mxu1 }
 0x1a0   : > { %v934_v19 = vpack.c.bf16 %v491_v13, %v491_v13  ;;  %v492_v20 = vmul.f32 0.17677669, %v488_v14  ;;  %634 = vst.msk [vmem:[%s1739_s12 + $0x4] sm:$0xf] %vm622_vm2, %v937_v23 }
 0x1a2   : > { %623 = vst.msk [vmem:[%s396_s19] sm:$0xf] %vm622_vm2, %v934_v19  ;;  %v935_v25 = vpack.c.bf16 %v492_v20, %v492_v20 }
 0x1a3   : > { %v607_v26 = vpop.f32.mrb[4].mxu0 }
 0x1a4   : > { %624 = vst.msk [vmem:[%s396_s19 + $0x4] sm:$0xf] %vm622_vm2, %v935_v25  ;;  %v1776_v27 = vadd.f32 %v1751_v22, %v607_v26  ;;  %v974_v28 = vpop.f32.mrb[5].mxu0 }
 0x1a5   : > { %1279 = shalt.err (!%p1276_p8)
}
 0x1a6   : > { %s1280_s11 = scalar_lea.hbm %s1757_s9, 128  ;;  %s1284_s16 = scalar_lea.hbm %s1903_s7, 256 }
 0x1a7   : > { %p1281_p6 = scmp.ne.s32.totalorder %s1757_s9, %s1280_s11  ;;  %p1285_p3 = scmp.lt.u32.totalorder %s1757_s9, %s1903_s7 }
 0x1a8   : > { %p1286_p5 = scmp.lt.u32.totalorder %s1284_s16, %s1280_s11  ;;  %p1288_p7 = scmp.lt.u32.totalorder %s1280_s11, %s1757_s9 }
 0x1a9   : > { %p1282_p10 = pnand %p1281_p6, %p1934_p4 }
 0x1aa   : > { %p1287_p9 = por %p1286_p5, %p1285_p3 }
 0x1ab   : > { %p1283_p11 = pneg %p1282_p10 }
 0x1ac   : > { %p1289_p12 = por %p1288_p7, %p1287_p9 }
 0x1ae   : > { %p1290_p1 = pnand %p1289_p12, %p1283_p11 }
 0x1b0   : > { %1293 = shalt.err (!%p1290_p1)
}
 0x1b1   : > { %s1417_s0 = smov 64   ;;  %s1418_s1 = smov 4   ;;  %v610_v29 = vpop.f32.mrb[6].mxu0 }
 0x1b2   : > { %999 = dma.vmem_to_hbm [thread:$0]  (%p1934_p4), %s1743_s13, 128, %s1757_s9, %s1780_s17, %s1417_s0, %s1417_s0, %s1418_s1  }
 0x1b3   : > { %s1294_s12 = scalar_lea.vmem %s1766_s24, 128  ;;  %s1419_s19 = smov [#allocation13]  }
 0x1b4   : > { %p1295_p13 = scmp.ne.s32.totalorder %s1766_s24, %s1294_s12  ;;  %s1298_s16 = sshll.u32 %s1419_s19, 4  ;;  %s1299_s16 = int_to_ptr.vmem [resolvable:$false] %s1298_s16 }
 0x1b5   : > { %s1300_s21 = scalar_lea.vmem %s1299_s16, 256  ;;  %p1301_p8 = scmp.lt.s32.totalorder %s1766_s24, %s1299_s16 }
 0x1b6   : > { %p1296_p0 = pnand %p1295_p13, %p1934_p4  ;;  %p1302_p6 = scmp.lt.s32.totalorder %s1300_s21, %s1294_s12 }
 0x1b8   : > { %p1297_p2 = pneg %p1296_p0  ;;  %p1303_p10 = por %p1302_p6, %p1301_p8 }
 0x1ba   : > { %p1304_p11 = pnand %p1303_p10, %p1297_p2 }
 0x1bc   : > { %1307 = shalt.err (!%p1304_p11)
}
 0x1bd   : > { %s1308_s13 = scalar_lea.hbm %s1764_s14, 128  ;;  %s1312_s19 = scalar_lea.hbm %s1902_s6, 256 }
 0x1be   : > { %p1309_p3 = scmp.ne.s32.totalorder %s1764_s14, %s1308_s13  ;;  %p1313_p7 = scmp.lt.u32.totalorder %s1764_s14, %s1902_s6 }
 0x1bf   : > { %p1314_p12 = scmp.lt.u32.totalorder %s1312_s19, %s1308_s13  ;;  %p1316_p13 = scmp.lt.u32.totalorder %s1308_s13, %s1764_s14 }
 0x1c0   : > { %p1310_p5 = pnand %p1309_p3, %p1934_p4 }
 0x1c1   : > { %p1315_p1 = por %p1314_p12, %p1313_p7 }
 0x1c2   : > { %p1311_p9 = pneg %p1310_p5 }
 0x1c3   : > { %p1317_p0 = por %p1316_p13, %p1315_p1 }
 0x1c5   : > { %p1318_p2 = pnand %p1317_p0, %p1311_p9 }
 0x1c7   : > { %1321 = shalt.err (!%p1318_p2)
}
 0x1c8   : > { %s1935_s12 = scalar_lea.sflag [#allocation4], %s1712_s20  ;;  %v938_v30 = vpack.c.bf16 %v1776_v27, %v1776_v27  ;;  %v611_v31 = vadd.f32 %v1751_v22, %v610_v29  ;;  %v975_v32 = vpop.f32.mrb[7].mxu0  ;;  %s1936_s11 = sshll.u32 %s1769_s18, 4  ;;  %s1841_s11 = int_to_ptr.vmem [resolvable:$true] %s1936_s11 }
 0x1c9   : > { %998 = dma.vmem_to_hbm [thread:$0]  (%p1934_p4), %s1766_s24, 128, %s1764_s14, %s1935_s12, %s1417_s0, %s1417_s0, %s1418_s1  }
 0x1ca   : > { %643 = vst.msk [vmem:[%s1769_s18] sm:$0xf] %vm622_vm2, %v938_v30  ;;  %v939_v33 = vpack.c.bf16 %v611_v31, %v611_v31  ;;  %s1847_s13 = scalar_lea.hbm %s1904_s8, %s1746_s26  ;;  %s1322_s24 = scalar_lea.vmem %s1841_s11, 128 }
 0x1cb   : > { %p1323_p8 = scmp.ne.s32.totalorder %s1841_s11, %s1322_s24  ;;  %s1420_s14 = smov [#allocation16]  }
 0x1cc   : > { %644 = vst.msk [vmem:[%s1769_s18 + $0x4] sm:$0xf] %vm622_vm2, %v939_v33  ;;  %s1326_s9 = sshll.u32 %s1420_s14, 4  ;;  %s1327_s9 = int_to_ptr.vmem [resolvable:$false] %s1326_s9 }
 0x1cd   : > { %p1324_p6 = pnand %p1323_p8, %p1934_p4  ;;  %s1328_s15 = scalar_lea.vmem %s1327_s9, 256 }
 0x1ce   : > { %p1329_p11 = scmp.lt.s32.totalorder %s1841_s11, %s1327_s9  ;;  %p1330_p3 = scmp.lt.s32.totalorder %s1328_s15, %s1322_s24 }
 0x1cf   : > { %p1325_p10 = pneg %p1324_p6 }
 0x1d0   : > { %p1331_p5 = por %p1330_p3, %p1329_p11 }
 0x1d2   : > { %p1332_p9 = pnand %p1331_p5, %p1325_p10 }
 0x1d4   : > { %1335 = shalt.err (!%p1332_p9)
}
 0x1d5   : > { %s1336_s18 = scalar_lea.hbm %s1847_s13, 128  ;;  %s1340_s16 = scalar_lea.hbm %s1904_s8, 256 }
 0x1d6   : > { %p1337_p7 = scmp.ne.s32.totalorder %s1847_s13, %s1336_s18  ;;  %p1341_p13 = scmp.lt.u32.totalorder %s1847_s13, %s1904_s8 }
 0x1d7   : > { %p1342_p0 = scmp.lt.u32.totalorder %s1340_s16, %s1336_s18  ;;  %p1344_p8 = scmp.lt.u32.totalorder %s1336_s18, %s1847_s13 }
 0x1d8   : > { %p1338_p12 = pnand %p1337_p7, %p1934_p4 }
 0x1d9   : > { %p1343_p2 = por %p1342_p0, %p1341_p13 }
 0x1da   : > { %p1339_p1 = pneg %p1338_p12 }
 0x1db   : > { %p1345_p6 = por %p1344_p8, %p1343_p2 }
 0x1dd   : > { %p1346_p10 = pnand %p1345_p6, %p1339_p1 }
 0x1df   : > { %1349 = shalt.err (!%p1346_p10)
}
 0x1e0   : > { %1000 = dma.vmem_to_hbm [thread:$0]  (%p1934_p4), %s1841_s11, 128, %s1847_s13, %s1780_s17, %s1417_s0, %s1417_s0, %s1418_s1  }
 0x1e1 PF: > { %s716_s21 = sand.u32 1, %s1392_s27   ;;  %p1937_p11 = scmp.ne.s32.totalorder %s1922_s10, 0 }
 0x1e2   : > { %p1938_p3 = scmp.ge.s32.totalorder %s1404_s30, 2  ;;  %s717_s24 = scalar_lea.sflag [#allocation4], %s716_s21 }
 0x1e4   : > { %p1025_p5 = pnand %p1938_p3, %p1937_p11 }
 0x1e6   : > { %1383 = dma.done.wait (!%p1025_p5), %s717_s24, 128  }
 0x1e7   : > { %1385 = vsyncadd (!%p1025_p5), %s717_s24, 4294967168  ;;  %s1939_s22 = sadd.s32 4294967294, %s1404_s30  }
 0x1e8   : > { %s725_s14 = sand.u32 1, %s1939_s22  }
 0x1e9   : > { %s726_s9 = scalar_lea.sflag [#allocation15], %s725_s14 }
 0x1ea   : > { %1387 = dma.done.wait (!%p1025_p5), %s726_s9, 256  }
 0x1eb   : > { %1389 = vsyncadd (!%p1025_p5), %s726_s9, 4294967040  ;;  %p28_p4 = scmp.ge.s32.totalorder %s1634_s23, 4   ;;  %s1940_s27 = smov %s1396_s28 }
 0x1ec   : > { %s1941_s28 = smov %s1400_s29  ;;  %s1942_s29 = smov %s1646_s25 }
 0x1ed   : > { %s1943_s30 = smov %s1634_s23  ;;  %30 = sbr.rel (!%p28_p4) target bundleno = 13 (0xd), region = 141 }
 0x1f4   :  { %740 = vsyncpa [#allocation3], 1 }
 0x1f5   :  { %742 = vsyncpa [#allocation3 + $0x1], 1 }
 0x1f6   :  { %743 = vsyncpa [#allocation6], 1 }
 0x1f7   :  { %744 = vsyncpa [#allocation9], 1 }
 0x1f8   :  { %745 = vsyncpa [#allocation12], 1 }
 0x1f9   :  { %746 = vsyncpa [#allocation4], 1 }
 0x1fa   :  { %748 = vsyncpa [#allocation4 + $0x1], 1 }
 0x1fb   :  { %749 = vsyncpa [#allocation15], 1 }
 0x1fc   :  { %751 = vsyncpa [#allocation15 + $0x1], 1 }

// kernel: whisper_forward.32
= control target key start
LH: loop header
LB: loop body
LE: loop exit
PB: predicated region body
PF: predicated region fallthrough
CT: control target
= control target key end

     0   :  { %s1225_s0 = inlined_call_operand.hbm [shape: bf16[2,16,32], index: 0, kind: input, shape index: {}]   ;;  %s1226_s1 = inlined_call_operand.hbm [shape: bf16[2,16,32], index: 1, kind: input, shape index: {}]   ;;  %s1227_s2 = inlined_call_operand.hbm [shape: bf16[2,16,32], index: 2, kind: input, shape index: {}]   ;;  %s1228_s3 = inlined_call_operand.hbm [shape: bf16[2,16,32], index: 3, kind: output, shape index: {}]  }
   0x1   :  { %1238 = sst [smem:[#allocation15_spill]] %s1226_s1 }
   0x2   :  { %8 = vsyncpa [#allocation3], 0 }
   0x3   :  { %10 = vsyncpa [#allocation3 + $0x1], 0 }
   0x4   :  { %11 = vsyncpa [#allocation6], 0 }
   0x5   :  { %13 = vsyncpa [#allocation6 + $0x1], 0 }
   0x6   :  { %14 = vsyncpa [#allocation4], 0 }
   0x7   :  { %16 = vsyncpa [#allocation4 + $0x1], 0  ;;  %s936_s12 = smov 0   ;;  %s938_s13 = smov 0  }
   0x8   :  { %s940_s14 = smov 0   ;;  %s942_s15 = smov 0  }
   0x9   :  { %s944_s16 = smov 0   ;;  %s946_s17 = smov 0  }
   0xa LB: > { %1239 = sst [smem:[#allocation12_spill]] %s900_s16  ;;  %s967_s18 = sadd.s32 4294967295, %s904_s17   ;;  %s904_s17 = sphi %s946_s17, %s22_s17   ;;  %s900_s16 = sphi %s944_s16, %s1262_s16   ;;  %s896_s15 = sphi %s942_s15, %s1261_s15   ;;  %s892_s14 = sphi %s940_s14, %s1265_s14   ;;  %s888_s13 = sphi %s938_s13, %s1264_s13   ;;  %s884_s12 = sphi %s936_s12, %s1263_s12  }
   0xb   : > { %s588_s19 = sadd.s32 4294967294, %s904_s17   ;;  %s34_s20 = sadd.s32 1, %s900_s16 }
   0xc   : > { %s43_s21 = sadd.s32 1, %s892_s14  ;;  %p36_p0 = scmp.ge.s32.totalorder %s34_s20, 2 }
   0xd   : > { %p50_p1 = scmp.ne.s32.totalorder %s892_s14, %s888_s13  ;;  %p51_p2 = scmp.eq.s32.totalorder %s904_s17, 0 }
   0xe   : > { %p56_p3 = scmp.ne.s32.totalorder %s888_s13, %s884_s12  ;;  %s1267_s20 = smov (%p36_p0, %s34_s20), 0 }
   0xf   : > { %1240 = sst [smem:[#allocation13_spill]] %s1267_s20  ;;  %p979_p4 = por %p51_p2, %p50_p1 }
  0x10   : > { %p57_p5 = scmp.eq.s32.totalorder %s967_s18, 0  ;;  %s38_s23 = ssub.s32 %s900_s16, %s1267_s20 }
  0x11   : > { %p134_p6 = scmp.eq.s32.totalorder %s967_s18, 1  ;;  %p41_p7 = scmp.eq.s32.totalorder %s38_s23, 0 }
  0x12   : > { %p987_p8 = por %p57_p5, %p56_p3  ;;  %p140_p10 = scmp.eq.s32.totalorder %s588_s19, 1 }
  0x13   : > { %p991_p9 = por %p134_p6, %p50_p1  ;;  %p661_p13 = scmp.lt.s32.totalorder %s904_s17, 2 }
  0x14   : > { %s1242_s24 = scalar_select %p987_p8, 1, 0 }
  0x15   : > { %s1243_s25 = scalar_select %p991_p9, 1, 0 }
  0x16   : > { %s996_s26 = scalar_select %p41_p7, %s892_s14, %s43_s21  }
  0x17   : > { %p998_p11 = por %p140_p10, %p56_p3  ;;  %s1231_s28 = sand.u32 1, %s892_s14  }
  0x18   : > { %1244 = sst [smem:[#allocation14_spill]] %s996_s26  ;;  %s1007_s29 = sshll.u32 %s1231_s28, 3 }
  0x19   : > { %s1245_s27 = scalar_select %p998_p11, 1, 0 }
  0x1a   : > { %s1010_s30 = sshll.u32 %s900_s16, 7  ;;  %p1014_p0 = pnand %p661_p13, %p979_p4 }
  0x1b   : > { %s183_s5 = sand.u32 1, %s904_s17   ;;  %s1247_s1 = sld [smem:[#allocation15_spill]] }
  0x1c   : > { %s187_s9 = scalar_lea.vmem [#allocation5], %s1007_s29  ;;  %s1030_s11 = scalar_lea.sflag [#allocation6], %s183_s5 }
  0x1d   : > { %s194_s10 = sshll.u32 %s187_s9, 4  ;;  %p1036_p4 = pneg %p1014_p0  ;;  %s1027_s10 = int_to_ptr.vmem [resolvable:$true] %s194_s10 }
  0x21   : > { %s1023_s8 = scalar_lea.hbm %s1247_s1, %s1010_s30  ;;  %s733_s6 = scalar_lea.hbm %s1247_s1, 256 }
  0x22   : > { %s728_s19 = scalar_lea.hbm %s1023_s8, 128  ;;  %p734_p7 = scmp.lt.u32.totalorder %s1023_s8, %s1247_s1 }
  0x23   : > { %p729_p3 = scmp.ne.s32.totalorder %s1023_s8, %s728_s19  ;;  %p735_p10 = scmp.lt.u32.totalorder %s733_s6, %s728_s19 }
  0x24   : > { %p737_p12 = scmp.lt.u32.totalorder %s728_s19, %s1023_s8 }
  0x25   : > { %p731_p5 = pnand %p1036_p4, %p729_p3  ;;  %p736_p13 = por %p735_p10, %p734_p7 }
  0x27   : > { %p732_p6 = pneg %p731_p5  ;;  %p738_p1 = por %p737_p12, %p736_p13 }
  0x29   : > { %p739_p2 = pnand %p738_p1, %p732_p6 }
  0x2b   : > { %742 = shalt.err (!%p739_p2)
}
  0x2c   : > { %s743_s5 = scalar_lea.vmem %s1027_s10, 128  ;;  %s906_s22 = smov [#allocation5]  }
  0x2d   : > { %p744_p3 = scmp.ne.s32.totalorder %s1027_s10, %s743_s5  ;;  %s748_s23 = sshll.u32 %s906_s22, 4  ;;  %s749_s23 = int_to_ptr.vmem [resolvable:$false] %s748_s23 }
  0x2e   : > { %s750_s7 = scalar_lea.vmem %s749_s23, 256  ;;  %p751_p9 = scmp.lt.s32.totalorder %s1027_s10, %s749_s23 }
  0x2f   : > { %p746_p5 = pnand %p744_p3, %p1036_p4  ;;  %p752_p8 = scmp.lt.s32.totalorder %s750_s7, %s743_s5 }
  0x31   : > { %p747_p11 = pneg %p746_p5  ;;  %p753_p7 = por %p752_p8, %p751_p9 }
  0x33   : > { %p754_p10 = pnand %p753_p7, %p747_p11 }
  0x35   : > { %757 = shalt.err (!%p754_p10)
}
  0x36   : > { %s1232_s19 = smov 64   ;;  %s1234_s6 = smov 4  }
  0x37   : > { %653 = dma.hbm_to_vmem [thread:$0]  (!%p1014_p0), %s1023_s8, 128, %s1027_s10, %s1030_s11, %s1232_s19, %s1232_s19, %s1234_s6  }
  0x38   : > { %p1249_p8 = scmp.lt.s32.totalorder %s904_s17, 3  ;;  %p1250_p9 = scmp.ge.s32.totalorder %s904_s17, 1 }
  0x39   : > { %s1075_s23 = scalar_lea.hbm %s1225_s0, %s1010_s30  ;;  %s164_s7 = scalar_lea.vmem [#allocation2], %s1007_s29 }
  0x3a   : > { %p1067_p11 = pnand %p1250_p9, %p1249_p8  ;;  %s173_s28 = sshll.u32 %s164_s7, 4  ;;  %s1078_s28 = int_to_ptr.vmem [resolvable:$true] %s173_s28 }
  0x3b   : > { %s1084_s19 = scalar_lea.hbm %s1227_s2, %s1010_s30  ;;  %s1252_s6 = sand.u32 1, %s892_s14  }
  0x3c   : > { %s1251_s9 = scalar_select %p1067_p11, 1, 0 }
  0x3d   : > { %s1088_s1 = scalar_lea.sflag [#allocation3], %s1252_s6  ;;  %s758_s20 = scalar_lea.hbm %s1075_s23, 128 }
  0x3e   : > { %p759_p12 = scmp.ne.s32.totalorder %s1075_s23, %s758_s20  ;;  %s763_s16 = scalar_lea.hbm %s1225_s0, 256 }
  0x3f   : > { %p764_p6 = scmp.lt.u32.totalorder %s1075_s23, %s1225_s0  ;;  %p765_p13 = scmp.lt.u32.totalorder %s763_s16, %s758_s20 }
  0x40   : > { %p761_p1 = pnand %p759_p12, %p1036_p4  ;;  %p767_p5 = scmp.lt.u32.totalorder %s758_s20, %s1075_s23 }
  0x41   : > { %p766_p3 = por %p765_p13, %p764_p6 }
  0x42   : > { %p762_p2 = pneg %p761_p1 }
  0x43   : > { %p768_p7 = por %p767_p5, %p766_p3 }
  0x45   : > { %p769_p10 = pnand %p768_p7, %p762_p2 }
  0x47   : > { %772 = shalt.err (!%p769_p10)
}
  0x48   : > { %s773_s30 = scalar_lea.vmem %s1078_s28, 128  ;;  %s909_s6 = smov [#allocation2]  }
  0x49   : > { %p774_p8 = scmp.ne.s32.totalorder %s1078_s28, %s773_s30  ;;  %s778_s8 = sshll.u32 %s909_s6, 4  ;;  %s779_s8 = int_to_ptr.vmem [resolvable:$false] %s778_s8 }
  0x4a   : > { %s780_s26 = scalar_lea.vmem %s779_s8, 256  ;;  %p781_p1 = scmp.lt.s32.totalorder %s1078_s28, %s779_s8 }
  0x4b   : > { %p776_p9 = pnand %p774_p8, %p1036_p4  ;;  %p782_p11 = scmp.lt.s32.totalorder %s780_s26, %s773_s30 }
  0x4d   : > { %p777_p12 = pneg %p776_p9  ;;  %p783_p6 = por %p782_p11, %p781_p1 }
  0x4f   : > { %p784_p13 = pnand %p783_p6, %p777_p12 }
  0x51   : > { %787 = shalt.err (!%p784_p13)
}
  0x52   : > { %s1253_s16 = smov 4   ;;  %s1254_s20 = smov 64  }
  0x53   : > { %650 = dma.hbm_to_vmem [thread:$0]  (!%p1014_p0), %s1075_s23, 128, %s1078_s28, %s1088_s1, %s1254_s20, %s1254_s20, %s1253_s16  }
  0x54   : > { %s208_s10 = scalar_lea.vmem [#allocation7], %s1007_s29  ;;  %s788_s22 = scalar_lea.hbm %s1084_s19, 128 }
  0x55   : > { %s215_s5 = sshll.u32 %s208_s10, 4  ;;  %p789_p11 = scmp.ne.s32.totalorder %s1084_s19, %s788_s22  ;;  %s1116_s5 = int_to_ptr.vmem [resolvable:$true] %s215_s5 }
  0x56   : > { %s793_s6 = scalar_lea.hbm %s1227_s2, 256  ;;  %p794_p5 = scmp.lt.u32.totalorder %s1084_s19, %s1227_s2 }
  0x57   : > { %p791_p2 = pnand %p789_p11, %p1036_p4  ;;  %p795_p7 = scmp.lt.u32.totalorder %s793_s6, %s788_s22 }
  0x58   : > { %p797_p8 = scmp.lt.u32.totalorder %s788_s22, %s1084_s19 }
  0x59   : > { %p792_p3 = pneg %p791_p2  ;;  %p796_p10 = por %p795_p7, %p794_p5 }
  0x5b   : > { %p798_p9 = por %p797_p8, %p796_p10 }
  0x5d   : > { %p799_p12 = pnand %p798_p9, %p792_p3 }
  0x5f   : > { %802 = shalt.err (!%p799_p12)
}
  0x60   : > { %s803_s1 = scalar_lea.vmem %s1116_s5, 128  ;;  %s910_s28 = smov [#allocation7]  }
  0x61   : > { %p804_p1 = scmp.ne.s32.totalorder %s1116_s5, %s803_s1  ;;  %s808_s29 = sshll.u32 %s910_s28, 4  ;;  %s809_s29 = int_to_ptr.vmem [resolvable:$false] %s808_s29 }
  0x62   : > { %s810_s23 = scalar_lea.vmem %s809_s29, 256  ;;  %p811_p11 = scmp.lt.s32.totalorder %s1116_s5, %s809_s29 }
  0x63   : > { %p806_p6 = pnand %p804_p1, %p1036_p4  ;;  %p812_p2 = scmp.lt.s32.totalorder %s810_s23, %s803_s1 }
  0x65   : > { %p807_p13 = pneg %p806_p6  ;;  %p813_p5 = por %p812_p2, %p811_p11 }
  0x67   : > { %p814_p7 = pnand %p813_p5, %p807_p13 }
  0x69   : > { %817 = shalt.err (!%p814_p7)
}
  0x6a   : > { %656 = dma.hbm_to_vmem [thread:$0]  (!%p1014_p0), %s1084_s19, 128, %s1116_s5, %s1030_s11, %s1254_s20, %s1254_s20, %s1253_s16  }
  0x6b   : > { %p1255_p4 = scmp.ne.s32.totalorder %s1251_s9, 0 }
  0x6c   : > { %s1146_s21 = sand.u32 (!%p1255_p4), 1, %s888_s13   ;;  %p1256_p3 = scmp.ne.s32.totalorder (!%p1255_p4), %s1242_s24, 0 }
  0x6d   : > { %227 = sbr.rel (%p1255_p4) target bundleno = 740 (0x2e4), region = 32  ;;  %s1149_s10 = sshll.u32 (!%p1255_p4), %s1146_s21, 3 }
  0x6e   : > { %s230_s4 = scalar_lea.sflag (!%p1255_p4), [#allocation3], %s1146_s21  ;;  %s233_s22 = scalar_lea.vmem (!%p1255_p4), [#allocation2], %s1149_s10 }
  0x74   : > { %871 = dma.done.wait (%p1256_p3), %s230_s4, 128  }
  0x75   : > { %873 = vsyncadd (%p1256_p3), %s230_s4, 4294967168  ;;  %s238_s11 = sand.u32 1, %s967_s18   ;;  %s242_s9 = scalar_lea.vmem [#allocation5], %s1149_s10 }
  0x76   : > { %s239_s19 = scalar_lea.sflag [#allocation6], %s238_s11 }
  0x77   : > { %875 = dma.done.wait (%p1256_p3), %s239_s19, 256  }
  0x78   : > { %877 = vsyncadd (%p1256_p3), %s239_s19, 4294967040  ;;  %v911_v0 = vmov 0.0   ;;  %vm912_vm0 = vmmov 0   ;;  %vm301_vm1 = vcmask 261120   ;;  %v717_v1 = vld [vmem:[%s242_s9] sm:$0xff]   ;;  %v718_v3 = vld [vmem:[%s233_s22] sm:$0xff]   ;;  %v349_v4 = vlaneseq }
  0x79   : > { %627 = vmatprep.subr.bf16.mxu0 %v911_v0  ;;  %629 = vmatprep.mubr.msk.bf16.mxu0 %vm912_vm0, %v911_v0  ;;  %v306_v2 = vsel %vm301_vm1, %v717_v1, 0  ;;  %vm354_vm3 = vcmask 130048   ;;  %s251_s18 = scalar_lea.vmem [#allocation7], %s1149_s10  ;;  %s283_s24 = scalar_lea.vmem [#allocation8], %s1149_s10  ;;  %vm438_vm4 = vcmask 257024  }
  0x7a   : > { %633 = vmatprep.subr.bf16.mxu1 %v911_v0  ;;  %635 = vmatprep.mubr.msk.bf16.mxu1 %vm912_vm0, %v911_v0  ;;  %v350_v5 = vand.u32 127, %v349_v4  ;;  %v719_v14 = vld [vmem:[%s251_s18] sm:$0xff]   ;;  %s457_s16 = sshll.u32 %s283_s24, 4  ;;  %s622_s20 = sshll.u32 %s896_s15, 7  ;;  %s1176_s16 = int_to_ptr.vmem [resolvable:$true] %s457_s16 }
  0x7b   : > { %628 = vmatpush3.bf16.xpose.msra.mxu0 %v306_v2  ;;  %634 = vmatpush3.bf16.msra.mxu1 %v719_v14  ;;  %s1174_s30 = scalar_lea.hbm %s1228_s3, %s622_s20  ;;  %s442_s15 = scalar_lea.sflag [#allocation4], %s1146_s21 }
  0x7c   : > { %vm351_vm2 = vcmp.lt.s32.totalorder %v350_v5, 10  ;;  %s818_s6 = scalar_lea.vmem %s1176_s16, 128  ;;  %p1257_p10 = scmp.ne.s32.totalorder %s1243_s25, 0 }
  0x7d   : > { %p819_p0 = scmp.ne.s32.totalorder %s1176_s16, %s818_s6  ;;  %s913_s8 = smov [#allocation8]  }
  0x7e   : > { %s822_s26 = sshll.u32 %s913_s8, 4  ;;  %s823_s26 = int_to_ptr.vmem [resolvable:$false] %s822_s26 }
  0x7f   : > { %p820_p8 = pnand %p819_p0, %p1257_p10  ;;  %s824_s1 = scalar_lea.vmem %s823_s26, 256 }
  0x80   : > { %p825_p12 = scmp.lt.s32.totalorder %s1176_s16, %s823_s26  ;;  %p826_p1 = scmp.lt.s32.totalorder %s824_s1, %s818_s6 }
  0x81   : > { %p821_p9 = pneg %p820_p8 }
  0x82   : > { %630 = vmatmul.mubr.msk.bf16.vlgmr.msra.gmra.mrb[0].mxu0 %vm301_vm1, %v718_v3  ;;  %p827_p6 = por %p826_p1, %p825_p12 }
  0x84   : > { %p828_p13 = pnand %p827_p6, %p821_p9 }
 0x155   : > { %v342_v6 = vpop.f32.mrb[0].mxu0 }
 0x156   : > { %v352_v7 = vsel %vm351_vm2, %v342_v6, -1e+30  ;;  %v631_v8 = vpop.f32.mrb[1].mxu0 }
 0x157   : > { %v345_v9 = vpop.f32.mrb[2].mxu0  ;;  %v355_v10 = vsel %vm354_vm3, %v352_v7, -inf }
 0x158   : > { %v353_v11 = vsel %vm351_vm2, %v345_v9, -1e+30  ;;  %356 = vmax.xlane.f32.xlu0 %v355_v10  ;;  %v632_v12 = vpop.f32.mrb[3].mxu0 }
 0x159   : > { %v358_v13 = vsel %vm354_vm3, %v353_v11, -inf }
 0x15c   : > { %359 = vmax.xlane.f32.xlu0 %v358_v13 }
 0x1e5   : > { %v357_v15 = vpop.xlane.xlu0 %356 }
 0x1e6   : > { %v361_v16 = vsub.f32 %v352_v7, %v357_v15 }
 0x1e8   : > { %v363_v17 = vmul.f32 1.442695, %v361_v16 }
 0x1e9   : > { %v360_v18 = vpop.xlane.xlu0 %359 }
 0x1ea   : > { %720 = vpow2.f32 %v363_v17  ;;  %v362_v19 = vsub.f32 %v353_v11, %v360_v18 }
 0x1ec   : > { %v365_v20 = vmul.f32 1.442695, %v362_v19 }
 0x1ee   : > { %722 = vpow2.f32 %v365_v20 }
 0x1f4   : > { %v721_v21 = vpop.eup %720 }
 0x1f5   : > { %v367_v22 = vsel %vm354_vm3, %v721_v21, 0.0 }
 0x1f6   : > { %368 = vadd.xlane.f32.xlu1 %v367_v22 }
 0x1f8   : > { %v723_v23 = vpop.eup %722 }
 0x1f9   : > { %v370_v24 = vsel %vm354_vm3, %v723_v23, 0.0  ;;  %v373_v25 = vpack.c.bf16 %v723_v23, %v721_v21 }
 0x1fa   : > { %371 = vadd.xlane.f32.xlu1 %v370_v24 }
 0x1fb   : > { %636 = vmatmul.mubr.msk.bf16.vlgmr.msra.gmra.mrb[0].mxu1 %vm354_vm3, %v373_v25 }
 0x283   : > { %v369_v26 = vpop.xlane.xlu1 %368 }
 0x284   : > { %724 = vrcp.f32 %v369_v26 }
 0x287   : > { %v372_v27 = vpop.xlane.xlu1 %371 }
 0x288   : > { %726 = vrcp.f32 %v372_v27 }
 0x28e   : > { %v725_v28 = vpop.eup %724 }
 0x292   : > { %v727_v32 = vpop.eup %726 }
 0x2ce   : > { %v419_v29 = vpop.f32.mrb[0].mxu1 }
 0x2cf   : > { %v428_v30 = vmul.f32 %v725_v28, %v419_v29  ;;  %v637_v31 = vpop.f32.mrb[1].mxu1 }
 0x2d0   : > { %v422_v33 = vpop.f32.mrb[2].mxu1 }
 0x2d1   : > { %v620_v34 = vpack.c.bf16 %v428_v30, %v428_v30  ;;  %v429_v35 = vmul.f32 %v727_v32, %v422_v33  ;;  %v638_v36 = vpop.f32.mrb[3].mxu1 }
 0x2d3   : > { %439 = vst.msk [vmem:[%s283_s24] sm:$0xf] %vm438_vm4, %v620_v34  ;;  %v621_v37 = vpack.c.bf16 %v429_v35, %v429_v35 }
 0x2d5   : > { %440 = vst.msk [vmem:[%s283_s24 + $0x4] sm:$0xf] %vm438_vm4, %v621_v37 }
 0x2d6   : > { %831 = shalt.err (!%p828_p13)
}
 0x2d7   : > { %s832_s28 = scalar_lea.hbm %s1174_s30, 128  ;;  %s836_s10 = scalar_lea.hbm %s1228_s3, 256 }
 0x2d8   : > { %p833_p11 = scmp.ne.s32.totalorder %s1174_s30, %s832_s28  ;;  %p837_p7 = scmp.lt.u32.totalorder %s1174_s30, %s1228_s3 }
 0x2d9   : > { %p838_p4 = scmp.lt.u32.totalorder %s836_s10, %s832_s28  ;;  %p840_p0 = scmp.lt.u32.totalorder %s832_s28, %s1174_s30 }
 0x2da   : > { %p834_p2 = pnand %p833_p11, %p1257_p10 }
 0x2db   : > { %p839_p3 = por %p838_p4, %p837_p7 }
 0x2dc   : > { %p835_p5 = pneg %p834_p2 }
 0x2dd   : > { %p841_p8 = por %p840_p0, %p839_p3 }
 0x2df   : > { %p842_p9 = pnand %p841_p8, %p835_p5 }
 0x2e1   : > { %845 = shalt.err (!%p842_p9)
}
 0x2e2   : > { %s914_s11 = smov 64   ;;  %s915_s19 = smov 4  }
 0x2e3   : > { %645 = dma.vmem_to_hbm [thread:$0]  (%p1257_p10), %s1176_s16, 128, %s1174_s30, %s442_s15, %s914_s11, %s914_s11, %s915_s19  }
 0x2e4 PF: > { %s472_s9 = sand.u32 1, %s884_s12   ;;  %p1258_p12 = scmp.ne.s32.totalorder %s1245_s27, 0 }
 0x2e5   : > { %p1259_p1 = scmp.ge.s32.totalorder %s904_s17, 2  ;;  %s473_s18 = scalar_lea.sflag [#allocation4], %s472_s9 }
 0x2e7   : > { %p658_p6 = pnand %p1259_p1, %p1258_p12 }
 0x2e9   : > { %879 = dma.done.wait (!%p658_p6), %s473_s18, 128  }
 0x2ea   : > { %881 = vsyncadd (!%p658_p6), %s473_s18, 4294967168  ;;  %s22_s17 = sadd.s32 1, %s904_s17   ;;  %s1260_s24 = sld [smem:[#allocation14_spill]] }
 0x2eb   : > { %p19_p13 = scmp.ge.s32.totalorder %s22_s17, 4   ;;  %s1261_s15 = sld [smem:[#allocation12_spill]] }
 0x2ec   : > { %s1262_s16 = sld [smem:[#allocation13_spill]]  ;;  %s1263_s12 = smov %s888_s13 }
 0x2ed   : > { %s1264_s13 = smov %s892_s14  ;;  %21 = sbr.rel (!%p19_p13) target bundleno = 10 (0xa), region = 101 }
 0x2f0   : > { %s1265_s14 = smov %s1260_s24 }
 0x2f4   :  { %478 = vsyncpa [#allocation3], 1 }
 0x2f5   :  { %480 = vsyncpa [#allocation3 + $0x1], 1 }
 0x2f6   :  { %481 = vsyncpa [#allocation6], 1 }
 0x2f7   :  { %483 = vsyncpa [#allocation6 + $0x1], 1 }
 0x2f8   :  { %484 = vsyncpa [#allocation4], 1 }
 0x2f9   :  { %486 = vsyncpa [#allocation4 + $0x1], 1 }

// kernel: whisper_forward.33
= control target key start
LH: loop header
LB: loop body
LE: loop exit
PB: predicated region body
PF: predicated region fallthrough
CT: control target
= control target key end

     0   :  { %s1458_s0 = inlined_call_operand.hbm [shape: bf16[32,32], index: 0, kind: input, shape index: {}]   ;;  %s1459_s1 = inlined_call_operand.hbm [shape: bf16[32,32], index: 1, kind: input, shape index: {}]   ;;  %s1460_s2 = inlined_call_operand.hbm [shape: bf16[32,32], index: 2, kind: input, shape index: {}]   ;;  %s1461_s3 = inlined_call_operand.hbm [shape: f32[1,32], index: 3, kind: input, shape index: {}]   ;;  %s1462_s4 = inlined_call_operand.hbm [shape: f32[1,32], index: 4, kind: input, shape index: {}]   ;;  %s1463_s5 = inlined_call_operand.hbm [shape: f32[1,32], index: 5, kind: input, shape index: {}]   ;;  %s1464_s6 = inlined_call_operand.hbm [shape: bf16[32,32], index: 6, kind: output, shape index: {}]  }
   0x1   :  { %1472 = sst [smem:[#allocation20_spill]] %s1458_s0 }
   0x2   :  { %1473 = sst [smem:[#allocation21_spill]] %s1460_s2 }
   0x3   :  { %1474 = sst [smem:[#allocation22_spill]] %s1461_s3 }
   0x4   :  { %11 = vsyncpa [#allocation3], 0 }
   0x5   :  { %13 = vsyncpa [#allocation3 + $0x1], 0 }
   0x6   :  { %14 = vsyncpa [#allocation6], 0 }
   0x7   :  { %16 = vsyncpa [#allocation6 + $0x1], 0 }
   0x8   :  { %17 = vsyncpa [#allocation9], 0 }
   0x9   :  { %18 = vsyncpa [#allocation12], 0 }
   0xa   :  { %19 = vsyncpa [#allocation4], 0 }
   0xb   :  { %21 = vsyncpa [#allocation4 + $0x1], 0  ;;  %s1115_s21 = smov 0   ;;  %s1117_s22 = smov 0  }
   0xc   :  { %s1119_s23 = smov 0   ;;  %s1121_s24 = smov 0  }
   0xd LB: > { %s1136_s25 = sadd.s32 4294967295, %s1065_s24   ;;  %s651_s26 = sadd.s32 4294967294, %s1065_s24   ;;  %s1065_s24 = sphi %s1121_s24, %s1501_s24   ;;  %s1061_s23 = sphi %s1119_s23, %s1500_s23   ;;  %s1057_s22 = sphi %s1117_s22, %s1499_s22   ;;  %s1053_s21 = sphi %s1115_s21, %s1498_s21  }
   0xe   : > { %p47_p0 = scmp.ne.s32.totalorder %s1057_s22, %s1053_s21  ;;  %p1465_p1 = scmp.eq.s32.totalorder %s1136_s25, 0 }
   0xf   : > { %p187_p3 = scmp.eq.s32.totalorder %s651_s26, 1  ;;  %p652_p5 = scmp.ge.s32.totalorder %s1065_s24, 1 }
  0x10   : > { %p1145_p4 = por %p1465_p1, %p47_p0  ;;  %p194_p7 = scmp.lt.s32.totalorder %s1065_s24, 3 }
  0x11   : > { %p1150_p6 = por %p187_p3, %p47_p0  ;;  %s1067_s30 = smov [#allocation7]  }
  0x12   : > { %s1475_s27 = scalar_select %p1145_p4, 1, 0 }
  0x13   : > { %s1476_s28 = scalar_select %p1150_p6, 1, 0 }
  0x14   : > { %p1155_p8 = pnand %p652_p5, %p194_p7  ;;  %s206_s7 = sshll.u32 %s1067_s30, 4  ;;  %s1159_s7 = int_to_ptr.vmem [resolvable:$true] %s206_s7 }
  0x15   : > { %s1068_s9 = smov [#allocation8]   ;;  %s1069_s11 = smov [#allocation10]  }
  0x16   : > { %s1477_s29 = scalar_select %p1155_p8, 1, 0 }
  0x17   : > { %p728_p9 = pneg %p1155_p8  ;;  %s220_s10 = sshll.u32 %s1068_s9, 4  ;;  %s1170_s10 = int_to_ptr.vmem [resolvable:$true] %s220_s10 }
  0x18   : > { %s1172_s12 = sshll.u32 %s1069_s11, 4  ;;  %s1479_s2 = sld [smem:[#allocation21_spill]]  ;;  %s232_s12 = int_to_ptr.vmem [resolvable:$true] %s1172_s12 }
  0x19   : > { %p1166_p11 = pnand %p728_p9, %p1465_p1 }
  0x1b   : > { %p1182_p13 = pneg %p1166_p11 }
  0x1e   : > { %s811_s15 = scalar_lea.hbm %s1479_s2, 256 }
  0x1f   : > { %p812_p12 = scmp.ne.s32.totalorder %s1479_s2, %s811_s15  ;;  %p818_p5 = scmp.lt.u32.totalorder %s811_s15, %s1479_s2 }
  0x21   : > { %p814_p0 = pnand %p1182_p13, %p812_p12 }
  0x23   : > { %p815_p3 = pneg %p814_p0 }
  0x25   : > { %p820_p7 = pnand %p818_p5, %p815_p3 }
  0x27   : > { %823 = shalt.err (!%p820_p7)
}
  0x28   : > { %s824_s26 = scalar_lea.vmem %s1159_s7, 256  ;;  %p832_p2 = scmp.lt.s32.totalorder %s1159_s7, %s1159_s7 }
  0x29   : > { %p825_p9 = scmp.ne.s32.totalorder %s1159_s7, %s824_s26  ;;  %p833_p6 = scmp.lt.s32.totalorder %s824_s26, %s824_s26 }
  0x2b   : > { %p827_p10 = pnand %p825_p9, %p1182_p13  ;;  %p834_p12 = por %p833_p6, %p832_p2 }
  0x2d   : > { %p828_p1 = pneg %p827_p10 }
  0x2f   : > { %p835_p0 = pnand %p834_p12, %p828_p1 }
  0x31   : > { %838 = shalt.err (!%p835_p0)
}
  0x32   : > { %s1468_s30 = smov 64   ;;  %s1470_s9 = smov 4  }
  0x33   : > { %731 = dma.hbm_to_vmem [thread:$0]  (!%p1166_p11), %s1479_s2, 256, %s1159_s7, [#allocation6], %s1468_s30, %s1468_s30, %s1470_s9  }
  0x34   : > { %s1481_s3 = sld [smem:[#allocation22_spill]] }
  0x3a   : > { %s839_s16 = scalar_lea.hbm %s1481_s3, 16 }
  0x3b   : > { %p840_p1 = scmp.ne.s32.totalorder %s1481_s3, %s839_s16  ;;  %p846_p10 = scmp.lt.u32.totalorder %s839_s16, %s1481_s3 }
  0x3d   : > { %p842_p2 = pnand %p840_p1, %p1182_p13 }
  0x3f   : > { %p843_p6 = pneg %p842_p2 }
  0x41   : > { %p848_p3 = pnand %p846_p10, %p843_p6 }
  0x43   : > { %851 = shalt.err (!%p848_p3)
}
  0x44   : > { %s852_s7 = scalar_lea.vmem %s1170_s10, 16  ;;  %s859_s11 = scalar_lea.vmem %s1170_s10, 32 }
  0x45   : > { %p853_p5 = scmp.ne.s32.totalorder %s1170_s10, %s852_s7  ;;  %p860_p12 = scmp.lt.s32.totalorder %s1170_s10, %s1170_s10 }
  0x46   : > { %p861_p0 = scmp.lt.s32.totalorder %s859_s11, %s852_s7 }
  0x47   : > { %p855_p7 = pnand %p853_p5, %p1182_p13 }
  0x48   : > { %p862_p1 = por %p861_p0, %p860_p12 }
  0x49   : > { %p856_p9 = pneg %p855_p7 }
  0x4b   : > { %p863_p2 = pnand %p862_p1, %p856_p9 }
  0x4d   : > { %866 = shalt.err (!%p863_p2)
}
  0x4e   : > { %734 = dma.hbm_to_vmem [thread:$0]  (!%p1166_p11), %s1481_s3, 16, %s1170_s10, [#allocation9]  }
  0x4f   : > { %s867_s17 = scalar_lea.hbm %s1462_s4, 16 }
  0x50   : > { %p868_p6 = scmp.ne.s32.totalorder %s1462_s4, %s867_s17  ;;  %p874_p5 = scmp.lt.u32.totalorder %s867_s17, %s1462_s4 }
  0x52   : > { %p870_p10 = pnand %p868_p6, %p1182_p13 }
  0x54   : > { %p871_p3 = pneg %p870_p10 }
  0x56   : > { %p876_p7 = pnand %p874_p5, %p871_p3 }
  0x58   : > { %879 = shalt.err (!%p876_p7)
}
  0x59   : > { %s880_s11 = scalar_lea.vmem %s232_s12, 16  ;;  %s887_s10 = scalar_lea.vmem %s232_s12, 32 }
  0x5a   : > { %p881_p9 = scmp.ne.s32.totalorder %s232_s12, %s880_s11  ;;  %p888_p1 = scmp.lt.s32.totalorder %s232_s12, %s232_s12 }
  0x5b   : > { %p889_p2 = scmp.lt.s32.totalorder %s887_s10, %s880_s11 }
  0x5c   : > { %p883_p12 = pnand %p881_p9, %p1182_p13 }
  0x5d   : > { %p890_p4 = por %p889_p2, %p888_p1 }
  0x5e   : > { %p884_p0 = pneg %p883_p12 }
  0x60   : > { %p891_p8 = pnand %p890_p4, %p884_p0 }
  0x62   : > { %894 = shalt.err (!%p891_p8)
}
  0x63   : > { %737 = dma.hbm_to_vmem [thread:$0]  (!%p1166_p11), %s1462_s4, 16, %s232_s12, [#allocation9]  }
  0x64   : > { %s1072_s15 = smov [#allocation11]   ;;  %s895_s20 = scalar_lea.hbm %s1463_s5, 16 }
  0x65   : > { %s242_s16 = sshll.u32 %s1072_s15, 4  ;;  %p896_p6 = scmp.ne.s32.totalorder %s1463_s5, %s895_s20  ;;  %s243_s16 = int_to_ptr.vmem [resolvable:$true] %s242_s16 }
  0x66   : > { %p902_p10 = scmp.lt.u32.totalorder %s895_s20, %s1463_s5 }
  0x67   : > { %p898_p4 = pnand %p896_p6, %p1182_p13 }
  0x69   : > { %p899_p8 = pneg %p898_p4 }
  0x6b   : > { %p904_p3 = pnand %p902_p10, %p899_p8 }
  0x6d   : > { %907 = shalt.err (!%p904_p3)
}
  0x6e   : > { %s908_s12 = scalar_lea.vmem %s243_s16, 16  ;;  %s915_s13 = scalar_lea.vmem %s243_s16, 32 }
  0x6f   : > { %p909_p5 = scmp.ne.s32.totalorder %s243_s16, %s908_s12  ;;  %p916_p12 = scmp.lt.s32.totalorder %s243_s16, %s243_s16 }
  0x70   : > { %p917_p0 = scmp.lt.s32.totalorder %s915_s13, %s908_s12 }
  0x71   : > { %p911_p7 = pnand %p909_p5, %p1182_p13 }
  0x72   : > { %p918_p1 = por %p917_p0, %p916_p12 }
  0x73   : > { %p912_p9 = pneg %p911_p7 }
  0x75   : > { %p919_p2 = pnand %p918_p1, %p912_p9 }
  0x77   : > { %922 = shalt.err (!%p919_p2)
}
  0x78   : > { %740 = dma.hbm_to_vmem [thread:$0]  (!%p1166_p11), %s1463_s5, 16, %s243_s16, [#allocation12]  }
  0x79   : > { %s1268_s18 = sadd.s32 1, %s1065_s24   ;;  %s34_s17 = sadd.s32 1, %s1061_s23 }
  0x7a   : > { %s31_s8 = ssub.s32 %s1065_s24, %s1268_s18  ;;  %p41_p13 = scmp.ne.s32.totalorder %s1061_s23, %s1057_s22 }
  0x7b   : > { %p32_p6 = scmp.eq.s32.totalorder %s31_s8, 0  ;;  %p42_p4 = scmp.eq.s32.totalorder %s1065_s24, 0 }
  0x7c   : > { %p1482_p8 = scmp.eq.s32.totalorder %s1136_s25, 1  ;;  %p756_p3 = scmp.lt.s32.totalorder %s1065_s24, 2 }
  0x7d   : > { %s1284_s20 = scalar_select %p32_p6, %s1061_s23, %s34_s17  }
  0x7e   : > { %p1278_p10 = por %p1482_p8, %p41_p13  ;;  %p43_p5 = por %p42_p4, %p41_p13 }
  0x7f   : > { %s253_s26 = sand.u32 1, %s1061_s23   ;;  %s686_s16 = sshll.u32 %s1065_s24, 7 }
  0x80   : > { %s658_s7 = sshll.u32 %s253_s26, 3  ;;  %s1484_s0 = sld [smem:[#allocation20_spill]] }
  0x81   : > { %s257_s13 = scalar_lea.vmem [#allocation2], %s658_s7  ;;  %p1295_p11 = pnand %p756_p3, %p43_p5 }
  0x82   : > { %s264_s14 = sshll.u32 %s257_s13, 4  ;;  %s1302_s11 = scalar_lea.hbm %s1459_s1, %s686_s16  ;;  %s1293_s14 = int_to_ptr.vmem [resolvable:$true] %s264_s14 }
  0x83   : > { %s278_s10 = scalar_lea.vmem [#allocation5], %s658_s7  ;;  %s1306_s9 = scalar_lea.sflag [#allocation3], %s253_s26 }
  0x84   : > { %s1304_s30 = sshll.u32 %s278_s10, 4  ;;  %p925_p9 = pneg %p1295_p11  ;;  %s1338_s30 = int_to_ptr.vmem [resolvable:$true] %s1304_s30 }
  0x86   : > { %s1291_s12 = scalar_lea.hbm %s1484_s0, %s686_s16  ;;  %s928_s17 = scalar_lea.hbm %s1484_s0, 256 }
  0x87   : > { %s923_s13 = scalar_lea.hbm %s1291_s12, 128  ;;  %p929_p1 = scmp.lt.u32.totalorder %s1291_s12, %s1484_s0 }
  0x88   : > { %p924_p7 = scmp.ne.s32.totalorder %s1291_s12, %s923_s13  ;;  %p930_p2 = scmp.lt.u32.totalorder %s928_s17, %s923_s13 }
  0x89   : > { %p932_p6 = scmp.lt.u32.totalorder %s923_s13, %s1291_s12 }
  0x8a   : > { %p926_p12 = pnand %p925_p9, %p924_p7  ;;  %p931_p13 = por %p930_p2, %p929_p1 }
  0x8c   : > { %p927_p0 = pneg %p926_p12  ;;  %p933_p4 = por %p932_p6, %p931_p13 }
  0x8e   : > { %p934_p8 = pnand %p933_p4, %p927_p0 }
  0x90   : > { %937 = shalt.err (!%p934_p8)
}
  0x91   : > { %s938_s26 = scalar_lea.vmem %s1293_s14, 128  ;;  %s1073_s2 = smov [#allocation2]  }
  0x92   : > { %p939_p3 = scmp.ne.s32.totalorder %s1293_s14, %s938_s26  ;;  %s943_s3 = sshll.u32 %s1073_s2, 4  ;;  %s944_s3 = int_to_ptr.vmem [resolvable:$false] %s943_s3 }
  0x93   : > { %s945_s7 = scalar_lea.vmem %s944_s3, 256  ;;  %p946_p12 = scmp.lt.s32.totalorder %s1293_s14, %s944_s3 }
  0x94   : > { %p941_p5 = pnand %p939_p3, %p925_p9  ;;  %p947_p1 = scmp.lt.s32.totalorder %s945_s7, %s938_s26 }
  0x96   : > { %p942_p7 = pneg %p941_p5  ;;  %p948_p2 = por %p947_p1, %p946_p12 }
  0x98   : > { %p949_p13 = pnand %p948_p2, %p942_p7 }
  0x9a   : > { %952 = shalt.err (!%p949_p13)
}
  0x9b   : > { %s1486_s10 = smov 4   ;;  %s1487_s13 = smov 64  }
  0x9c   : > { %744 = dma.hbm_to_vmem [thread:$0]  (!%p1295_p11), %s1291_s12, 128, %s1293_s14, %s1306_s9, %s1487_s13, %s1487_s13, %s1486_s10  }
  0x9d   : > { %s274_s17 = sand.u32 1, %s1065_s24   ;;  %s953_s16 = scalar_lea.hbm %s1302_s11, 128 }
  0x9e   : > { %s1341_s8 = scalar_lea.sflag [#allocation6], %s274_s17  ;;  %p954_p0 = scmp.ne.s32.totalorder %s1302_s11, %s953_s16 }
  0x9f   : > { %s958_s3 = scalar_lea.hbm %s1459_s1, 256  ;;  %p959_p8 = scmp.lt.u32.totalorder %s1302_s11, %s1459_s1 }
  0xa0   : > { %p956_p6 = pnand %p954_p0, %p925_p9  ;;  %p960_p3 = scmp.lt.u32.totalorder %s958_s3, %s953_s16 }
  0xa1   : > { %p962_p7 = scmp.lt.u32.totalorder %s953_s16, %s1302_s11 }
  0xa2   : > { %p957_p4 = pneg %p956_p6  ;;  %p961_p5 = por %p960_p3, %p959_p8 }
  0xa4   : > { %p963_p12 = por %p962_p7, %p961_p5 }
  0xa6   : > { %p964_p1 = pnand %p963_p12, %p957_p4 }
  0xa8   : > { %967 = shalt.err (!%p964_p1)
}
  0xa9   : > { %s968_s9 = scalar_lea.vmem %s1338_s30, 128  ;;  %s1074_s12 = smov [#allocation5]  }
  0xaa   : > { %p969_p2 = scmp.ne.s32.totalorder %s1338_s30, %s968_s9  ;;  %s973_s14 = sshll.u32 %s1074_s12, 4  ;;  %s974_s14 = int_to_ptr.vmem [resolvable:$false] %s973_s14 }
  0xab   : > { %s975_s0 = scalar_lea.vmem %s974_s14, 256  ;;  %p976_p6 = scmp.lt.s32.totalorder %s1338_s30, %s974_s14 }
  0xac   : > { %p971_p13 = pnand %p969_p2, %p925_p9  ;;  %p977_p8 = scmp.lt.s32.totalorder %s975_s0, %s968_s9 }
  0xae   : > { %p972_p0 = pneg %p971_p13  ;;  %p978_p3 = por %p977_p8, %p976_p6 }
  0xb0   : > { %p979_p5 = pnand %p978_p3, %p972_p0 }
  0xb2   : > { %982 = shalt.err (!%p979_p5)
}
  0xb3   : > { %747 = dma.hbm_to_vmem [thread:$0]  (!%p1295_p11), %s1302_s11, 128, %s1338_s30, %s1341_s8, %s1487_s13, %s1487_s13, %s1486_s10  }
  0xb4   : > { %p1488_p9 = scmp.ne.s32.totalorder %s1477_s29, 0 }
  0xb5   : > { %s1373_s17 = sand.u32 (!%p1488_p9), 1, %s1057_s22   ;;  %p1489_p4 = scmp.ne.s32.totalorder (!%p1488_p9), %s1475_s27, 0 }
  0xb6   : > { %297 = sbr.rel (%p1488_p9) target bundleno = 762 (0x2fa), region = 44  ;;  %s1376_s16 = sshll.u32 (!%p1488_p9), %s1373_s17, 3 }
  0xb7   : > { %s300_s15 = scalar_lea.sflag (!%p1488_p9), [#allocation3], %s1373_s17  ;;  %s303_s26 = scalar_lea.vmem (!%p1488_p9), [#allocation2], %s1376_s16 }
  0xbd   : > { %1028 = dma.done.wait (%p1489_p4), %s300_s15, 128  }
  0xbe   : > { %1030 = vsyncadd (%p1489_p4), %s300_s15, 4294967168  ;;  %s308_s29 = sand.u32 1, %s1136_s25   ;;  %s312_s11 = scalar_lea.vmem [#allocation5], %s1376_s16 }
  0xbf   : > { %s309_s30 = scalar_lea.sflag [#allocation6], %s308_s29 }
  0xc0   : > { %1032 = dma.done.wait (%p1489_p4), %s309_s30, 128  }
  0xc1   : > { %1034 = vsyncadd (%p1489_p4), %s309_s30, 4294967168  ;;  %p1490_p11 = scmp.eq.s32.totalorder %s1136_s25, 0 }
  0xc3   : > { %1036 = dma.done.wait (%p1490_p11), [#allocation6], 256   ;;  %p1491_p7 = pmov %p1490_p11 }
  0xc5   : > { %1038 = vsyncadd (%p1491_p7), [#allocation6], 4294967040  ;;  %p1492_p12 = pmov %p1491_p7 }
  0xc6   : > { %p1493_p1 = pmov %p1491_p7 }
  0xc7   : > { %1040 = dma.done.wait (%p1492_p12), [#allocation9], 32  }
  0xc8   : > { %1042 = vsyncadd (%p1493_p1), [#allocation9], 4294967264  ;;  %p1494_p2 = pmov %p1493_p1 }
  0xc9   : > { %p1495_p13 = pmov %p1493_p1 }
  0xca   : > { %1044 = dma.done.wait (%p1494_p2), [#allocation12], 16  }
  0xcb   : > { %1046 = vsyncadd (%p1495_p13), [#allocation12], 4294967280  ;;  %v1075_v0 = vmov 0.0   ;;  %vm1076_vm0 = vmmov 0   ;;  %v804_v1 = vld [vmem:[#allocation7] sm:$0xff]   ;;  %v805_v2 = vld [vmem:[#allocation7 + $0x8] sm:$0xff]  }
  0xcc   : > { %698 = vmatprep.subr.bf16.mxu0 %v1075_v0  ;;  %702 = vmatprep.mubr.msk.bf16.mxu0 %vm1076_vm0, %v1075_v0  ;;  %v806_v3 = vld [vmem:[%s303_s26] sm:$0xff]   ;;  %vm396_vm1 = vcmask 261120   ;;  %v692_v4 = vld [vmem:[%s312_s11] sm:$0xff]   ;;  %vm500_vm2 = vcmask 257024   ;;  %s690_s27 = sshll.u32 %s1136_s25, 7  ;;  %s361_s10 = scalar_lea.vmem [#allocation13], %s1376_s16 }
  0xcd   : > { %699 = vmatpush3.bf16.msra.mxu0 %v804_v1  ;;  %v672_v5 = vld [vmem:[#allocation8] ss:$0 sm:$0xff]  ;;  %v693_v6 = vunpack.c.l.bf16 %v692_v4  ;;  %v694_v10 = vunpack.c.h.bf16 %v692_v4  ;;  %v677_v35 = vld [vmem:[#allocation10] ss:$0 sm:$0xff]  ;;  %v678_v37 = vld [vmem:[#allocation11] ss:$0 sm:$0xff]  ;;  %s1412_s3 = scalar_lea.hbm %s1464_s6, %s690_s27 }
  0xce   : > { %700 = vmatprep.subr.bf16.mxu0 %v1075_v0  ;;  %s517_s13 = sshll.u32 %s361_s10, 4  ;;  %s504_s7 = scalar_lea.sflag [#allocation4], %s1373_s17  ;;  %s1414_s13 = int_to_ptr.vmem [resolvable:$true] %s517_s13 }
  0xcf   : > { %s983_s9 = scalar_lea.vmem %s1414_s13, 128  ;;  %s1077_s25 = smov [#allocation13]  }
  0xd0   : > { %p984_p0 = scmp.ne.s32.totalorder %s1414_s13, %s983_s9  ;;  %s987_s12 = sshll.u32 %s1077_s25, 4  ;;  %s988_s12 = int_to_ptr.vmem [resolvable:$false] %s987_s12 }
  0xd1   : > { %701 = vmatpush3.bf16.msra.mxu0 %v805_v2  ;;  %s989_s14 = scalar_lea.vmem %s988_s12, 256  ;;  %p990_p3 = scmp.lt.s32.totalorder %s1414_s13, %s988_s12 }
  0xd2   : > { %p985_p6 = pnand %p984_p0, %p1278_p10  ;;  %p991_p5 = scmp.lt.s32.totalorder %s989_s14, %s983_s9 }
  0xd4   : > { %703 = vmatmul.mubr.msk.bf16.vlgmr.msra.gmra.mrb[0].mxu0 %vm396_vm1, %v806_v3  ;;  %p986_p8 = pneg %p985_p6  ;;  %p992_p9 = por %p991_p5, %p990_p3 }
  0xd6   : > { %p993_p4 = pnand %p992_p9, %p986_p8 }
 0x1a7   : > { %v434_v7 = vpop.f32.mrb[0].mxu0 }
 0x1a8   : > { %v435_v8 = vadd.f32 %v672_v5, %v434_v7  ;;  %v704_v9 = vpop.f32.mrb[1].mxu0 }
 0x1a9   : > { %v437_v11 = vpop.f32.mrb[2].mxu0 }
 0x1aa   : > { %v438_v12 = vadd.f32 %v672_v5, %v437_v11  ;;  %v705_v13 = vpop.f32.mrb[3].mxu0  ;;  %v445_v14 = vadd.f32 %v693_v6, %v435_v8 }
 0x1ac   : > { %v449_v15 = vsel %vm396_vm1, %v445_v14, 0.0  ;;  %v446_v16 = vadd.f32 %v694_v10, %v438_v12 }
 0x1ad   : > { %450 = vadd.xlane.f32.xlu0 %v449_v15 }
 0x1ae   : > { %v452_v17 = vsel %vm396_vm1, %v446_v16, 0.0 }
 0x1b1   : > { %453 = vadd.xlane.f32.xlu0 %v452_v17 }
 0x23a   : > { %v451_v18 = vpop.xlane.xlu0 %450 }
 0x23b   : > { %v456_v19 = vmul.f32 0.03125, %v451_v18 }
 0x23d   : > { %v458_v20 = vsub.f32 %v445_v14, %v456_v19 }
 0x23e   : > { %v454_v21 = vpop.xlane.xlu0 %453 }
 0x23f   : > { %v457_v22 = vmul.f32 0.03125, %v454_v21  ;;  %v460_v23 = vmul.f32 %v458_v20, %v458_v20 }
 0x241   : > { %v459_v24 = vsub.f32 %v446_v16, %v457_v22  ;;  %v462_v25 = vsel %vm396_vm1, %v460_v23, 0.0 }
 0x242   : > { %463 = vadd.xlane.f32.xlu1 %v462_v25 }
 0x243   : > { %v461_v26 = vmul.f32 %v459_v24, %v459_v24 }
 0x245   : > { %v465_v27 = vsel %vm396_vm1, %v461_v26, 0.0 }
 0x246   : > { %466 = vadd.xlane.f32.xlu1 %v465_v27 }
 0x2cf   : > { %v464_v28 = vpop.xlane.xlu1 %463 }
 0x2d0   : > { %v468_v29 = vmul.f32 0.03125, %v464_v28 }
 0x2d2   : > { %v470_v30 = vadd.f32 1e-05, %v468_v29 }
 0x2d3   : > { %v467_v31 = vpop.xlane.xlu1 %466 }
 0x2d4   : > { %807 = vrsqrt.f32 %v470_v30  ;;  %v469_v32 = vmul.f32 0.03125, %v467_v31 }
 0x2d6   : > { %v471_v33 = vadd.f32 1e-05, %v469_v32 }
 0x2d8   : > { %809 = vrsqrt.f32 %v471_v33 }
 0x2de   : > { %v808_v34 = vpop.eup %807 }
 0x2df   : > { %v474_v36 = vmul.f32 %v808_v34, %v458_v20 }
 0x2e1   : > { %v482_v38 = vmul.f32 %v677_v35, %v474_v36 }
 0x2e2   : > { %v810_v39 = vpop.eup %809 }
 0x2e3   : > { %v490_v40 = vadd.f32 %v678_v37, %v482_v38  ;;  %v475_v41 = vmul.f32 %v810_v39, %v459_v24 }
 0x2e5   : > { %v688_v42 = vpack.c.bf16 %v490_v40, %v490_v40  ;;  %v483_v43 = vmul.f32 %v677_v35, %v475_v41 }
 0x2e7   : > { %v491_v44 = vadd.f32 %v678_v37, %v483_v43  ;;  %501 = vst.msk [vmem:[%s361_s10] sm:$0xf] %vm500_vm2, %v688_v42 }
 0x2e9   : > { %v689_v45 = vpack.c.bf16 %v491_v44, %v491_v44 }
 0x2eb   : > { %502 = vst.msk [vmem:[%s361_s10 + $0x4] sm:$0xf] %vm500_vm2, %v689_v45 }
 0x2ec   : > { %996 = shalt.err (!%p993_p4)
}
 0x2ed   : > { %s997_s0 = scalar_lea.hbm %s1412_s3, 128  ;;  %s1001_s26 = scalar_lea.hbm %s1464_s6, 256 }
 0x2ee   : > { %p998_p11 = scmp.ne.s32.totalorder %s1412_s3, %s997_s0  ;;  %p1002_p1 = scmp.lt.u32.totalorder %s1412_s3, %s1464_s6 }
 0x2ef   : > { %p1003_p2 = scmp.lt.u32.totalorder %s1001_s26, %s997_s0  ;;  %p1005_p0 = scmp.lt.u32.totalorder %s997_s0, %s1412_s3 }
 0x2f0   : > { %p999_p7 = pnand %p998_p11, %p1278_p10 }
 0x2f1   : > { %p1004_p13 = por %p1003_p2, %p1002_p1 }
 0x2f2   : > { %p1000_p12 = pneg %p999_p7 }
 0x2f3   : > { %p1006_p6 = por %p1005_p0, %p1004_p13 }
 0x2f5   : > { %p1007_p8 = pnand %p1006_p6, %p1000_p12 }
 0x2f7   : > { %1010 = shalt.err (!%p1007_p8)
}
 0x2f8   : > { %s1078_s11 = smov 64   ;;  %s1079_s27 = smov 4  }
 0x2f9   : > { %726 = dma.vmem_to_hbm [thread:$0]  (%p1278_p10), %s1414_s13, 128, %s1412_s3, %s504_s7, %s1078_s11, %s1078_s11, %s1079_s27  }
 0x2fa PF: > { %s532_s10 = sand.u32 1, %s1053_s21   ;;  %p1496_p3 = scmp.ne.s32.totalorder %s1476_s28, 0 }
 0x2fb   : > { %p1497_p5 = scmp.ge.s32.totalorder %s1065_s24, 2  ;;  %s533_s8 = scalar_lea.sflag [#allocation4], %s532_s10 }
 0x2fd   : > { %p749_p9 = pnand %p1497_p5, %p1496_p3 }
 0x2ff   : > { %1048 = dma.done.wait (!%p749_p9), %s533_s8, 128  }
 0x300   : > { %1050 = vsyncadd (!%p749_p9), %s533_s8, 4294967168  ;;  %p24_p4 = scmp.ge.s32.totalorder %s1268_s18, 4   ;;  %s1498_s21 = smov %s1057_s22 }
 0x301   : > { %s1499_s22 = smov %s1061_s23  ;;  %s1500_s23 = smov %s1284_s20 }
 0x302   : > { %s1501_s24 = smov %s1268_s18  ;;  %26 = sbr.rel (!%p24_p4) target bundleno = 13 (0xd), region = 118 }
 0x309   :  { %538 = vsyncpa [#allocation3], 1 }
 0x30a   :  { %540 = vsyncpa [#allocation3 + $0x1], 1 }
 0x30b   :  { %541 = vsyncpa [#allocation6], 1 }
 0x30c   :  { %543 = vsyncpa [#allocation6 + $0x1], 1 }
 0x30d   :  { %544 = vsyncpa [#allocation9], 1 }
 0x30e   :  { %545 = vsyncpa [#allocation12], 1 }
 0x30f   :  { %546 = vsyncpa [#allocation4], 1 }
 0x310   :  { %548 = vsyncpa [#allocation4 + $0x1], 1 }

// kernel: whisper_forward.39
= control target key start
LH: loop header
LB: loop body
LE: loop exit
PB: predicated region body
PF: predicated region fallthrough
CT: control target
= control target key end

     0   :  { %8 = vsyncpa [#allocation3], 0  ;;  %s914_s0 = inlined_call_operand.hbm [shape: bf16[32,32], index: 0, kind: input, shape index: {}]   ;;  %s915_s1 = inlined_call_operand.hbm [shape: f32[1,32], index: 1, kind: input, shape index: {}]   ;;  %s916_s2 = inlined_call_operand.hbm [shape: f32[1,32], index: 2, kind: input, shape index: {}]   ;;  %s917_s3 = inlined_call_operand.hbm [shape: bf16[32,32], index: 3, kind: output, shape index: {}]  }
   0x1   :  { %10 = vsyncpa [#allocation3 + $0x1], 0 }
   0x2   :  { %11 = vsyncpa [#allocation6], 0 }
   0x3   :  { %12 = vsyncpa [#allocation4], 0 }
   0x4   :  { %14 = vsyncpa [#allocation4 + $0x1], 0  ;;  %s674_s12 = smov 0   ;;  %s676_s13 = smov 0  }
   0x5   :  { %s678_s14 = smov 0   ;;  %s680_s15 = smov 0  }
   0x6 LB: > { %s695_s16 = sadd.s32 4294967295, %s644_s15   ;;  %s383_s17 = sadd.s32 4294967294, %s644_s15   ;;  %s644_s15 = sphi %s680_s15, %s942_s15   ;;  %s640_s14 = sphi %s678_s14, %s941_s14   ;;  %s636_s13 = sphi %s676_s13, %s940_s13   ;;  %s632_s12 = sphi %s674_s12, %s939_s12  }
   0x7   : > { %s699_s18 = sadd.s32 1, %s644_s15   ;;  %s27_s19 = sadd.s32 1, %s640_s14 }
   0x8   : > { %s24_s20 = ssub.s32 %s644_s15, %s699_s18  ;;  %p34_p0 = scmp.ne.s32.totalorder %s640_s14, %s636_s13 }
   0x9   : > { %p25_p1 = scmp.eq.s32.totalorder %s24_s20, 0  ;;  %p35_p2 = scmp.eq.s32.totalorder %s644_s15, 0 }
   0xa   : > { %p40_p3 = scmp.ne.s32.totalorder %s636_s13, %s632_s12  ;;  %p918_p4 = scmp.eq.s32.totalorder %s695_s16, 0 }
   0xb   : > { %s711_s21 = scalar_select %p25_p1, %s640_s14, %s27_s19  }
   0xc   : > { %p713_p5 = por %p35_p2, %p34_p0  ;;  %p719_p6 = por %p918_p4, %p40_p3 }
   0xd   : > { %p106_p7 = scmp.eq.s32.totalorder %s695_s16, 1  ;;  %p112_p8 = scmp.eq.s32.totalorder %s383_s17, 1 }
   0xe   : > { %s924_s23 = scalar_select %p719_p6, 1, 0 }
   0xf   : > { %p384_p9 = scmp.ge.s32.totalorder %s644_s15, 1  ;;  %p119_p10 = scmp.lt.s32.totalorder %s644_s15, 3 }
  0x10   : > { %p726_p11 = por %p106_p7, %p34_p0  ;;  %p730_p12 = por %p112_p8, %p40_p3 }
  0x11   : > { %p734_p13 = pnand %p384_p9, %p119_p10  ;;  %s646_s27 = smov [#allocation5]  }
  0x12   : > { %s925_s24 = scalar_select %p726_p11, 1, 0 }
  0x13   : > { %s926_s25 = scalar_select %p730_p12, 1, 0 }
  0x14   : > { %s927_s26 = scalar_select %p734_p13, 1, 0 }
  0x15   : > { %p425_p2 = pneg %p734_p13  ;;  %s132_s28 = sshll.u32 %s646_s27, 4  ;;  %s133_s28 = int_to_ptr.vmem [resolvable:$true] %s132_s28 }
  0x16   : > { %p442_p4 = scmp.lt.s32.totalorder %s644_s15, 2  ;;  %p928_p0 = scmp.eq.s32.totalorder %s695_s16, 0 }
  0x17   : > { %s647_s4 = smov [#allocation7]   ;;  %s488_s8 = scalar_lea.hbm %s915_s1, 16 }
  0x18   : > { %p744_p7 = pnand %p425_p2, %p928_p0  ;;  %p750_p3 = pnand %p442_p4, %p713_p5 }
  0x19   : > { %s143_s5 = sshll.u32 %s647_s4, 4  ;;  %p489_p8 = scmp.ne.s32.totalorder %s915_s1, %s488_s8  ;;  %s754_s5 = int_to_ptr.vmem [resolvable:$true] %s143_s5 }
  0x1a   : > { %s930_s30 = scalar_select %p750_p3, 1, 0 }
  0x1b   : > { %p490_p9 = pneg %p744_p7  ;;  %p495_p10 = scmp.lt.u32.totalorder %s488_s8, %s915_s1 }
  0x1d   : > { %p491_p4 = pnand %p490_p9, %p489_p8 }
  0x1f   : > { %p492_p5 = pneg %p491_p4 }
  0x21   : > { %p497_p2 = pnand %p495_p10, %p492_p5 }
  0x23   : > { %500 = shalt.err (!%p497_p2)
}
  0x24   : > { %s501_s19 = scalar_lea.vmem %s133_s28, 16  ;;  %s508_s20 = scalar_lea.vmem %s133_s28, 32 }
  0x25   : > { %p502_p0 = scmp.ne.s32.totalorder %s133_s28, %s501_s19  ;;  %p509_p11 = scmp.lt.s32.totalorder %s133_s28, %s133_s28 }
  0x26   : > { %p510_p6 = scmp.lt.s32.totalorder %s508_s20, %s501_s19 }
  0x27   : > { %p504_p1 = pnand %p502_p0, %p490_p9 }
  0x28   : > { %p511_p13 = por %p510_p6, %p509_p11 }
  0x29   : > { %p505_p12 = pneg %p504_p1 }
  0x2b   : > { %p512_p3 = pnand %p511_p13, %p505_p12 }
  0x2d   : > { %515 = shalt.err (!%p512_p3)
}
  0x2e   : > { %428 = dma.hbm_to_vmem [thread:$0]  (!%p744_p7), %s915_s1, 16, %s133_s28, [#allocation6]  }
  0x2f   : > { %s154_s4 = sand.u32 1, %s640_s14   ;;  %s516_s8 = scalar_lea.hbm %s916_s2, 16 }
  0x30   : > { %p517_p1 = scmp.ne.s32.totalorder %s916_s2, %s516_s8  ;;  %p523_p12 = scmp.lt.u32.totalorder %s516_s8, %s916_s2 }
  0x32   : > { %p519_p6 = pnand %p517_p1, %p490_p9 }
  0x34   : > { %p520_p11 = pneg %p519_p6 }
  0x36   : > { %p525_p13 = pnand %p523_p12, %p520_p11 }
  0x38   : > { %528 = shalt.err (!%p525_p13)
}
  0x39   : > { %s529_s28 = scalar_lea.vmem %s754_s5, 16  ;;  %s536_s19 = scalar_lea.vmem %s754_s5, 32 }
  0x3a   : > { %p530_p3 = scmp.ne.s32.totalorder %s754_s5, %s529_s28  ;;  %p537_p5 = scmp.lt.s32.totalorder %s754_s5, %s754_s5 }
  0x3b   : > { %p538_p10 = scmp.lt.s32.totalorder %s536_s19, %s529_s28 }
  0x3c   : > { %p532_p8 = pnand %p530_p3, %p490_p9 }
  0x3d   : > { %p539_p2 = por %p538_p10, %p537_p5 }
  0x3e   : > { %p533_p4 = pneg %p532_p8 }
  0x40   : > { %p540_p0 = pnand %p539_p2, %p533_p4 }
  0x42   : > { %543 = shalt.err (!%p540_p0)
}
  0x43   : > { %431 = dma.hbm_to_vmem [thread:$0]  (!%p744_p7), %s916_s2, 16, %s754_s5, [#allocation6]  }
  0x44   : > { %s388_s27 = sshll.u32 %s154_s4, 3  ;;  %s405_s6 = sshll.u32 %s644_s15, 7 }
  0x45   : > { %s809_s9 = scalar_lea.hbm %s914_s0, %s405_s6  ;;  %s158_s29 = scalar_lea.vmem [#allocation2], %s388_s27 }
  0x46   : > { %s165_s10 = sshll.u32 %s158_s29, 4  ;;  %s813_s11 = scalar_lea.sflag [#allocation3], %s154_s4  ;;  %s811_s10 = int_to_ptr.vmem [resolvable:$true] %s165_s10 }
  0x47   : > { %s544_s17 = scalar_lea.hbm %s809_s9, 128  ;;  %p931_p7 = scmp.ne.s32.totalorder %s930_s30, 0 }
  0x48   : > { %p545_p9 = scmp.ne.s32.totalorder %s809_s9, %s544_s17  ;;  %s549_s19 = scalar_lea.hbm %s914_s0, 256 }
  0x49   : > { %p546_p1 = pneg %p931_p7  ;;  %p550_p12 = scmp.lt.u32.totalorder %s809_s9, %s914_s0 }
  0x4a   : > { %p551_p13 = scmp.lt.u32.totalorder %s549_s19, %s544_s17  ;;  %p553_p8 = scmp.lt.u32.totalorder %s544_s17, %s809_s9 }
  0x4b   : > { %p547_p6 = pnand %p546_p1, %p545_p9 }
  0x4c   : > { %p552_p3 = por %p551_p13, %p550_p12 }
  0x4d   : > { %p548_p11 = pneg %p547_p6 }
  0x4e   : > { %p554_p4 = por %p553_p8, %p552_p3 }
  0x50   : > { %p555_p5 = pnand %p554_p4, %p548_p11 }
  0x52   : > { %558 = shalt.err (!%p555_p5)
}
  0x53   : > { %s559_s4 = scalar_lea.vmem %s811_s10, 128  ;;  %s648_s27 = smov [#allocation2]  }
  0x54   : > { %p560_p10 = scmp.ne.s32.totalorder %s811_s10, %s559_s4  ;;  %s564_s6 = sshll.u32 %s648_s27, 4  ;;  %s565_s6 = int_to_ptr.vmem [resolvable:$false] %s564_s6 }
  0x55   : > { %s566_s7 = scalar_lea.vmem %s565_s6, 256  ;;  %p567_p9 = scmp.lt.s32.totalorder %s811_s10, %s565_s6 }
  0x56   : > { %p562_p2 = pnand %p560_p10, %p546_p1  ;;  %p568_p6 = scmp.lt.s32.totalorder %s566_s7, %s559_s4 }
  0x58   : > { %p563_p0 = pneg %p562_p2  ;;  %p569_p12 = por %p568_p6, %p567_p9 }
  0x5a   : > { %p570_p13 = pnand %p569_p12, %p563_p0 }
  0x5c   : > { %573 = shalt.err (!%p570_p13)
}
  0x5d   : > { %s649_s8 = smov 64   ;;  %s650_s29 = smov 4  }
  0x5e   : > { %435 = dma.hbm_to_vmem [thread:$0]  (!%p931_p7), %s809_s9, 128, %s811_s10, %s813_s11, %s649_s8, %s649_s8, %s650_s29  }
  0x5f   : > { %p932_p1 = scmp.ne.s32.totalorder %s927_s26, 0 }
  0x60   : > { %s844_s17 = sand.u32 (!%p932_p1), 1, %s636_s13   ;;  %p933_p11 = scmp.ne.s32.totalorder (!%p932_p1), %s924_s23, 0 }
  0x61   : > { %177 = sbr.rel (%p932_p1) target bundleno = 445 (0x1bd), region = 32  ;;  %s392_s5 = sshll.u32 (!%p932_p1), %s844_s17, 3 }
  0x62   : > { %s180_s28 = scalar_lea.sflag (!%p932_p1), [#allocation3], %s844_s17  ;;  %s183_s19 = scalar_lea.vmem (!%p932_p1), [#allocation2], %s392_s5 }
  0x68   : > { %619 = dma.done.wait (%p933_p11), %s180_s28, 128  }
  0x69   : > { %621 = vsyncadd (%p933_p11), %s180_s28, 4294967168  ;;  %p934_p7 = scmp.eq.s32.totalorder %s695_s16, 0 }
  0x6b   : > { %623 = dma.done.wait (%p934_p7), [#allocation6], 32   ;;  %p935_p3 = pmov %p934_p7 }
  0x6c   : > { %v410_v0 = vld [vmem:[%s183_s19] sm:$0xff]   ;;  %vm222_vm0 = vcmask 261120   ;;  %v396_v22 = vld [vmem:[#allocation5] ss:$0 sm:$0xff]  ;;  %v397_v24 = vld [vmem:[#allocation7] ss:$0 sm:$0xff] }
  0x6d   : > { %625 = vsyncadd (%p935_p3), [#allocation6], 4294967264  ;;  %v411_v1 = vunpack.c.l.bf16 %v410_v0  ;;  %v412_v2 = vunpack.c.h.bf16 %v410_v0  ;;  %vm274_vm1 = vcmask 257024   ;;  %s408_s23 = sshll.u32 %s695_s16, 7  ;;  %s213_s26 = scalar_lea.vmem [#allocation8], %s392_s5 }
  0x6e   : > { %s291_s30 = sshll.u32 %s213_s26, 4  ;;  %s868_s11 = scalar_lea.hbm %s917_s3, %s408_s23  ;;  %s870_s30 = int_to_ptr.vmem [resolvable:$true] %s291_s30 }
  0x6f   : > { %v223_v3 = vsel %vm222_vm0, %v411_v1, 0.0  ;;  %v226_v4 = vsel %vm222_vm0, %v412_v2, 0.0  ;;  %s278_s20 = scalar_lea.sflag [#allocation4], %s844_s17  ;;  %s574_s22 = scalar_lea.vmem %s870_s30, 128 }
  0x70   : > { %224 = vadd.xlane.f32.xlu0 %v223_v3  ;;  %p575_p8 = scmp.ne.s32.totalorder %s870_s30, %s574_s22  ;;  %p936_p4 = scmp.ne.s32.totalorder %s925_s24, 0 }
  0x71   : > { %s651_s16 = smov [#allocation8]  }
  0x72   : > { %p576_p5 = pnand %p575_p8, %p936_p4  ;;  %s578_s4 = sshll.u32 %s651_s16, 4  ;;  %s579_s4 = int_to_ptr.vmem [resolvable:$false] %s578_s4 }
  0x73   : > { %s580_s27 = scalar_lea.vmem %s579_s4, 256  ;;  %p581_p2 = scmp.lt.s32.totalorder %s870_s30, %s579_s4 }
  0x74   : > { %227 = vadd.xlane.f32.xlu0 %v226_v4  ;;  %p577_p10 = pneg %p576_p5  ;;  %p582_p0 = scmp.lt.s32.totalorder %s580_s27, %s574_s22 }
  0x76   : > { %p583_p9 = por %p582_p0, %p581_p2 }
  0x78   : > { %p584_p6 = pnand %p583_p9, %p577_p10 }
  0xfd   : > { %v225_v5 = vpop.xlane.xlu0 %224 }
  0xfe   : > { %v230_v6 = vmul.f32 0.03125, %v225_v5 }
 0x100   : > { %v232_v7 = vsub.f32 %v411_v1, %v230_v6 }
 0x101   : > { %v228_v8 = vpop.xlane.xlu0 %227 }
 0x102   : > { %v231_v9 = vmul.f32 0.03125, %v228_v8  ;;  %v234_v10 = vmul.f32 %v232_v7, %v232_v7 }
 0x104   : > { %v233_v11 = vsub.f32 %v412_v2, %v231_v9  ;;  %v236_v12 = vsel %vm222_vm0, %v234_v10, 0.0 }
 0x105   : > { %237 = vadd.xlane.f32.xlu1 %v236_v12 }
 0x106   : > { %v235_v13 = vmul.f32 %v233_v11, %v233_v11 }
 0x108   : > { %v239_v14 = vsel %vm222_vm0, %v235_v13, 0.0 }
 0x109   : > { %240 = vadd.xlane.f32.xlu1 %v239_v14 }
 0x192   : > { %v238_v15 = vpop.xlane.xlu1 %237 }
 0x193   : > { %v242_v16 = vmul.f32 0.03125, %v238_v15 }
 0x195   : > { %v244_v17 = vadd.f32 1e-05, %v242_v16 }
 0x196   : > { %v241_v18 = vpop.xlane.xlu1 %240 }
 0x197   : > { %484 = vrsqrt.f32 %v244_v17  ;;  %v243_v19 = vmul.f32 0.03125, %v241_v18 }
 0x199   : > { %v245_v20 = vadd.f32 1e-05, %v243_v19 }
 0x19b   : > { %486 = vrsqrt.f32 %v245_v20 }
 0x1a1   : > { %v485_v21 = vpop.eup %484 }
 0x1a2   : > { %v248_v23 = vmul.f32 %v485_v21, %v232_v7 }
 0x1a4   : > { %v256_v25 = vmul.f32 %v396_v22, %v248_v23 }
 0x1a5   : > { %v487_v26 = vpop.eup %486 }
 0x1a6   : > { %v264_v27 = vadd.f32 %v397_v24, %v256_v25  ;;  %v249_v28 = vmul.f32 %v487_v26, %v233_v11 }
 0x1a8   : > { %v406_v29 = vpack.c.bf16 %v264_v27, %v264_v27  ;;  %v257_v30 = vmul.f32 %v396_v22, %v249_v28 }
 0x1aa   : > { %v265_v31 = vadd.f32 %v397_v24, %v257_v30  ;;  %275 = vst.msk [vmem:[%s213_s26] sm:$0xf] %vm274_vm1, %v406_v29 }
 0x1ac   : > { %v407_v32 = vpack.c.bf16 %v265_v31, %v265_v31 }
 0x1ae   : > { %276 = vst.msk [vmem:[%s213_s26 + $0x4] sm:$0xf] %vm274_vm1, %v407_v32 }
 0x1af   : > { %587 = shalt.err (!%p584_p6)
}
 0x1b0   : > { %s588_s6 = scalar_lea.hbm %s868_s11, 128  ;;  %s592_s29 = scalar_lea.hbm %s917_s3, 256 }
 0x1b1   : > { %p589_p12 = scmp.ne.s32.totalorder %s868_s11, %s588_s6  ;;  %p593_p11 = scmp.lt.u32.totalorder %s868_s11, %s917_s3 }
 0x1b2   : > { %p594_p7 = scmp.lt.u32.totalorder %s592_s29, %s588_s6  ;;  %p596_p8 = scmp.lt.u32.totalorder %s588_s6, %s868_s11 }
 0x1b3   : > { %p590_p13 = pnand %p589_p12, %p936_p4 }
 0x1b4   : > { %p595_p3 = por %p594_p7, %p593_p11 }
 0x1b5   : > { %p591_p1 = pneg %p590_p13 }
 0x1b6   : > { %p597_p5 = por %p596_p8, %p595_p3 }
 0x1b8   : > { %p598_p10 = pnand %p597_p5, %p591_p1 }
 0x1ba   : > { %601 = shalt.err (!%p598_p10)
}
 0x1bb   : > { %s652_s19 = smov 64   ;;  %s653_s23 = smov 4  }
 0x1bc   : > { %423 = dma.vmem_to_hbm [thread:$0]  (%p936_p4), %s870_s30, 128, %s868_s11, %s278_s20, %s652_s19, %s652_s19, %s653_s23  }
 0x1bd PF: > { %s306_s26 = sand.u32 1, %s632_s12   ;;  %p937_p2 = scmp.ne.s32.totalorder %s926_s25, 0 }
 0x1be   : > { %p938_p0 = scmp.ge.s32.totalorder %s644_s15, 2  ;;  %s307_s9 = scalar_lea.sflag [#allocation4], %s306_s26 }
 0x1c0   : > { %p437_p9 = pnand %p938_p0, %p937_p2 }
 0x1c2   : > { %627 = dma.done.wait (!%p437_p9), %s307_s9, 128  }
 0x1c3   : > { %629 = vsyncadd (!%p437_p9), %s307_s9, 4294967168  ;;  %p17_p6 = scmp.ge.s32.totalorder %s699_s18, 4   ;;  %s939_s12 = smov %s636_s13 }
 0x1c4   : > { %s940_s13 = smov %s640_s14  ;;  %s941_s14 = smov %s711_s21 }
 0x1c5   : > { %s942_s15 = smov %s699_s18  ;;  %19 = sbr.rel (!%p17_p6) target bundleno = 6 (0x6), region = 85 }
 0x1cc   :  { %312 = vsyncpa [#allocation3], 1 }
 0x1cd   :  { %314 = vsyncpa [#allocation3 + $0x1], 1 }
 0x1ce   :  { %315 = vsyncpa [#allocation6], 1 }
 0x1cf   :  { %316 = vsyncpa [#allocation4], 1 }
 0x1d0   :  { %318 = vsyncpa [#allocation4 + $0x1], 1 }

// kernel: whisper_forward.44
= control target key start
LH: loop header
LB: loop body
LE: loop exit
PB: predicated region body
PF: predicated region fallthrough
CT: control target
= control target key end

     0   :  { %11 = vsyncpa [#allocation3], 0  ;;  %s1363_s0 = inlined_call_operand.hbm [shape: bf16[32,32], index: 0, kind: input, shape index: {}]   ;;  %s1364_s1 = inlined_call_operand.hbm [shape: bf16[32,32], index: 1, kind: input, shape index: {}]   ;;  %s1365_s2 = inlined_call_operand.hbm [shape: bf16[32,32], index: 2, kind: input, shape index: {}]   ;;  %s1366_s3 = inlined_call_operand.hbm [shape: f32[1,32], index: 3, kind: input, shape index: {}]   ;;  %s1367_s4 = inlined_call_operand.hbm [shape: bf16[32,32], index: 4, kind: output, shape index: {0}]   ;;  %s1368_s5 = inlined_call_operand.hbm [shape: bf16[32,32], index: 5, kind: output, shape index: {1}]  }
   0x1   :  { %13 = vsyncpa [#allocation3 + $0x1], 0 }
   0x2   :  { %14 = vsyncpa [#allocation6], 0 }
   0x3   :  { %15 = vsyncpa [#allocation9], 0 }
   0x4   :  { %16 = vsyncpa [#allocation4], 0 }
   0x5   :  { %18 = vsyncpa [#allocation4 + $0x1], 0 }
   0x6   :  { %19 = vsyncpa [#allocation12], 0 }
   0x7   :  { %21 = vsyncpa [#allocation12 + $0x1], 0  ;;  %s1044_s18 = smov 0   ;;  %s1046_s19 = smov 0  }
   0x8   :  { %s1048_s20 = smov 0   ;;  %s1050_s21 = smov 0  }
   0x9 LB: > { %s1065_s22 = sadd.s32 4294967295, %s1000_s21   ;;  %s622_s23 = sadd.s32 4294967294, %s1000_s21   ;;  %s1000_s21 = sphi %s1050_s21, %s1391_s21   ;;  %s996_s20 = sphi %s1048_s20, %s1390_s20   ;;  %s992_s19 = sphi %s1046_s19, %s1389_s19   ;;  %s988_s18 = sphi %s1044_s18, %s1388_s18  }
   0xa   : > { %p47_p0 = scmp.ne.s32.totalorder %s992_s19, %s988_s18  ;;  %p1369_p1 = scmp.eq.s32.totalorder %s1065_s22, 0 }
   0xb   : > { %p140_p3 = scmp.eq.s32.totalorder %s622_s23, 1  ;;  %p623_p5 = scmp.ge.s32.totalorder %s1000_s21, 1 }
   0xc   : > { %p1074_p4 = por %p1369_p1, %p47_p0  ;;  %p173_p7 = scmp.lt.s32.totalorder %s1000_s21, 3 }
   0xd   : > { %p1079_p6 = por %p140_p3, %p47_p0  ;;  %s1002_s27 = smov [#allocation5]  }
   0xe   : > { %s1372_s24 = scalar_select %p1074_p4, 1, 0 }
   0xf   : > { %s1373_s25 = scalar_select %p1079_p6, 1, 0 }
  0x10   : > { %p1084_p8 = pnand %p623_p5, %p173_p7  ;;  %s185_s28 = sshll.u32 %s1002_s27, 4  ;;  %s1088_s28 = int_to_ptr.vmem [resolvable:$true] %s185_s28 }
  0x11   : > { %s1003_s30 = smov [#allocation7]   ;;  %s1004_s7 = smov [#allocation8]  }
  0x12   : > { %s1374_s26 = scalar_select %p1084_p8, 1, 0 }
  0x13   : > { %p705_p9 = pneg %p1084_p8  ;;  %s198_s6 = sshll.u32 %s1003_s30, 4  ;;  %s1099_s6 = int_to_ptr.vmem [resolvable:$true] %s198_s6 }
  0x14   : > { %s1101_s8 = sshll.u32 %s1004_s7, 4  ;;  %s780_s11 = scalar_lea.hbm %s1364_s1, 256  ;;  %s213_s8 = int_to_ptr.vmem [resolvable:$true] %s1101_s8 }
  0x15   : > { %p1095_p11 = pnand %p705_p9, %p1369_p1  ;;  %p781_p12 = scmp.ne.s32.totalorder %s1364_s1, %s780_s11 }
  0x16   : > { %p787_p5 = scmp.lt.u32.totalorder %s780_s11, %s1364_s1 }
  0x17   : > { %p1111_p13 = pneg %p1095_p11 }
  0x19   : > { %p783_p0 = pnand %p1111_p13, %p781_p12 }
  0x1b   : > { %p784_p3 = pneg %p783_p0 }
  0x1d   : > { %p789_p7 = pnand %p787_p5, %p784_p3 }
  0x1f   : > { %792 = shalt.err (!%p789_p7)
}
  0x20   : > { %s793_s17 = scalar_lea.vmem %s1088_s28, 256  ;;  %p801_p2 = scmp.lt.s32.totalorder %s1088_s28, %s1088_s28 }
  0x21   : > { %p794_p9 = scmp.ne.s32.totalorder %s1088_s28, %s793_s17  ;;  %p802_p6 = scmp.lt.s32.totalorder %s793_s17, %s793_s17 }
  0x23   : > { %p796_p10 = pnand %p794_p9, %p1111_p13  ;;  %p803_p12 = por %p802_p6, %p801_p2 }
  0x25   : > { %p797_p1 = pneg %p796_p10 }
  0x27   : > { %p804_p0 = pnand %p803_p12, %p797_p1 }
  0x29   : > { %807 = shalt.err (!%p804_p0)
}
  0x2a   : > { %s1005_s23 = smov 64   ;;  %s1006_s27 = smov 4  }
  0x2b   : > { %708 = dma.hbm_to_vmem [thread:$0]  (!%p1095_p11), %s1364_s1, 256, %s1088_s28, [#allocation6], %s1005_s23, %s1005_s23, %s1006_s27  }
  0x2c   : > { %s808_s11 = scalar_lea.hbm %s1365_s2, 256 }
  0x2d   : > { %p809_p1 = scmp.ne.s32.totalorder %s1365_s2, %s808_s11  ;;  %p815_p10 = scmp.lt.u32.totalorder %s808_s11, %s1365_s2 }
  0x2f   : > { %p811_p2 = pnand %p809_p1, %p1111_p13 }
  0x31   : > { %p812_p6 = pneg %p811_p2 }
  0x33   : > { %p817_p3 = pnand %p815_p10, %p812_p6 }
  0x35   : > { %820 = shalt.err (!%p817_p3)
}
  0x36   : > { %s821_s28 = scalar_lea.vmem %s1099_s6, 256  ;;  %p829_p12 = scmp.lt.s32.totalorder %s1099_s6, %s1099_s6 }
  0x37   : > { %p822_p5 = scmp.ne.s32.totalorder %s1099_s6, %s821_s28  ;;  %p830_p0 = scmp.lt.s32.totalorder %s821_s28, %s821_s28 }
  0x39   : > { %p824_p7 = pnand %p822_p5, %p1111_p13  ;;  %p831_p1 = por %p830_p0, %p829_p12 }
  0x3b   : > { %p825_p9 = pneg %p824_p7 }
  0x3d   : > { %p832_p2 = pnand %p831_p1, %p825_p9 }
  0x3f   : > { %835 = shalt.err (!%p832_p2)
}
  0x40   : > { %711 = dma.hbm_to_vmem [thread:$0]  (!%p1095_p11), %s1365_s2, 256, %s1099_s6, [#allocation6], %s1005_s23, %s1005_s23, %s1006_s27  }
  0x41   : > { %s836_s10 = scalar_lea.hbm %s1366_s3, 16 }
  0x42   : > { %p837_p6 = scmp.ne.s32.totalorder %s1366_s3, %s836_s10  ;;  %p843_p5 = scmp.lt.u32.totalorder %s836_s10, %s1366_s3 }
  0x44   : > { %p839_p10 = pnand %p837_p6, %p1111_p13 }
  0x46   : > { %p840_p3 = pneg %p839_p10 }
  0x48   : > { %p845_p7 = pnand %p843_p5, %p840_p3 }
  0x4a   : > { %848 = shalt.err (!%p845_p7)
}
  0x4b   : > { %s849_s16 = scalar_lea.vmem %s213_s8, 16  ;;  %s856_s6 = scalar_lea.vmem %s213_s8, 32 }
  0x4c   : > { %p850_p9 = scmp.ne.s32.totalorder %s213_s8, %s849_s16  ;;  %p857_p1 = scmp.lt.s32.totalorder %s213_s8, %s213_s8 }
  0x4d   : > { %p858_p2 = scmp.lt.s32.totalorder %s856_s6, %s849_s16 }
  0x4e   : > { %p852_p12 = pnand %p850_p9, %p1111_p13 }
  0x4f   : > { %p859_p4 = por %p858_p2, %p857_p1 }
  0x50   : > { %p853_p0 = pneg %p852_p12 }
  0x52   : > { %p860_p8 = pnand %p859_p4, %p853_p0 }
  0x54   : > { %863 = shalt.err (!%p860_p8)
}
  0x55   : > { %714 = dma.hbm_to_vmem [thread:$0]  (!%p1095_p11), %s1366_s3, 16, %s213_s8, [#allocation9]  }
  0x56   : > { %s1181_s14 = sadd.s32 1, %s1000_s21   ;;  %s34_s29 = sadd.s32 1, %s996_s20 }
  0x57   : > { %s31_s30 = ssub.s32 %s1000_s21, %s1181_s14  ;;  %p41_p8 = scmp.ne.s32.totalorder %s996_s20, %s992_s19 }
  0x58   : > { %p32_p4 = scmp.eq.s32.totalorder %s31_s30, 0  ;;  %p42_p13 = scmp.eq.s32.totalorder %s1000_s21, 0 }
  0x59   : > { %p729_p6 = scmp.lt.s32.totalorder %s1000_s21, 2  ;;  %p1377_p3 = scmp.eq.s32.totalorder %s1065_s22, 1 }
  0x5a   : > { %s1191_s7 = scalar_select %p32_p4, %s996_s20, %s34_s29  }
  0x5b   : > { %p43_p10 = por %p42_p13, %p41_p8  ;;  %p1195_p5 = por %p1377_p3, %p41_p8 }
  0x5c   : > { %s223_s10 = sand.u32 1, %s996_s20   ;;  %s658_s11 = sshll.u32 %s1000_s21, 7 }
  0x5d   : > { %s628_s8 = sshll.u32 %s223_s10, 3  ;;  %s1204_s15 = scalar_lea.hbm %s1363_s0, %s658_s11 }
  0x5e   : > { %s227_s16 = scalar_lea.vmem [#allocation2], %s628_s8  ;;  %p1206_p11 = pnand %p729_p6, %p43_p10 }
  0x5f   : > { %s234_s6 = sshll.u32 %s227_s16, 4  ;;  %s1212_s17 = scalar_lea.sflag [#allocation3], %s223_s10  ;;  %s1210_s6 = int_to_ptr.vmem [resolvable:$true] %s234_s6 }
  0x60   : > { %s864_s30 = scalar_lea.hbm %s1204_s15, 128  ;;  %p866_p9 = pneg %p1206_p11 }
  0x61   : > { %p865_p7 = scmp.ne.s32.totalorder %s1204_s15, %s864_s30  ;;  %s869_s8 = scalar_lea.hbm %s1363_s0, 256 }
  0x62   : > { %p870_p1 = scmp.lt.u32.totalorder %s1204_s15, %s1363_s0  ;;  %p871_p2 = scmp.lt.u32.totalorder %s869_s8, %s864_s30 }
  0x63   : > { %p867_p12 = pnand %p866_p9, %p865_p7  ;;  %p873_p8 = scmp.lt.u32.totalorder %s864_s30, %s1204_s15 }
  0x64   : > { %p872_p4 = por %p871_p2, %p870_p1 }
  0x65   : > { %p868_p0 = pneg %p867_p12 }
  0x66   : > { %p874_p13 = por %p873_p8, %p872_p4 }
  0x68   : > { %p875_p6 = pnand %p874_p13, %p868_p0 }
  0x6a   : > { %878 = shalt.err (!%p875_p6)
}
  0x6b   : > { %s879_s10 = scalar_lea.vmem %s1210_s6, 128  ;;  %s1007_s16 = smov [#allocation2]  }
  0x6c   : > { %p880_p10 = scmp.ne.s32.totalorder %s1210_s6, %s879_s10  ;;  %s884_s29 = sshll.u32 %s1007_s16, 4  ;;  %s885_s29 = int_to_ptr.vmem [resolvable:$false] %s884_s29 }
  0x6d   : > { %s886_s11 = scalar_lea.vmem %s885_s29, 256  ;;  %p887_p12 = scmp.lt.s32.totalorder %s1210_s6, %s885_s29 }
  0x6e   : > { %p882_p3 = pnand %p880_p10, %p866_p9  ;;  %p888_p1 = scmp.lt.s32.totalorder %s886_s11, %s879_s10 }
  0x70   : > { %p883_p7 = pneg %p882_p3  ;;  %p889_p2 = por %p888_p1, %p887_p12 }
  0x72   : > { %p890_p4 = pnand %p889_p2, %p883_p7 }
  0x74   : > { %893 = shalt.err (!%p890_p4)
}
  0x75   : > { %718 = dma.hbm_to_vmem [thread:$0]  (!%p1206_p11), %s1204_s15, 128, %s1210_s6, %s1212_s17, %s1005_s23, %s1005_s23, %s1006_s27  }
  0x76   : > { %p1380_p9 = scmp.ne.s32.totalorder %s1374_s26, 0 }
  0x77   : > { %s1246_s30 = sand.u32 (!%p1380_p9), 1, %s992_s19   ;;  %p1381_p0 = scmp.ne.s32.totalorder (!%p1380_p9), %s1372_s24, 0 }
  0x78   : > { %246 = sbr.rel (%p1380_p9) target bundleno = 399 (0x18f), region = 36  ;;  %s1249_s8 = sshll.u32 (!%p1380_p9), %s1246_s30, 3 }
  0x79   : > { %s249_s28 = scalar_lea.sflag (!%p1380_p9), [#allocation3], %s1246_s30  ;;  %s252_s12 = scalar_lea.vmem (!%p1380_p9), [#allocation2], %s1249_s8 }
  0x7f   : > { %967 = dma.done.wait (%p1381_p0), %s249_s28, 128  }
  0x80   : > { %969 = vsyncadd (%p1381_p0), %s249_s28, 4294967168  ;;  %p1382_p11 = scmp.eq.s32.totalorder %s1065_s22, 0 }
  0x82   : > { %971 = dma.done.wait (%p1382_p11), [#allocation6], 512   ;;  %p1383_p8 = pmov %p1382_p11 }
  0x84   : > { %973 = vsyncadd (%p1383_p8), [#allocation6], 4294966784  ;;  %p1384_p13 = pmov %p1383_p8 }
  0x85   : > { %p1385_p6 = pmov %p1383_p8 }
  0x86   : > { %975 = dma.done.wait (%p1384_p13), [#allocation9], 16  }
  0x87   : > { %977 = vsyncadd (%p1385_p6), [#allocation9], 4294967280  ;;  %v1008_v0 = vmov 0.0   ;;  %vm1009_vm0 = vmmov 0   ;;  %v775_v1 = vld [vmem:[#allocation5] sm:$0xff]   ;;  %v776_v2 = vld [vmem:[#allocation7] sm:$0xff]  }
  0x88   : > { %671 = vmatprep.subr.bf16.mxu0 %v1008_v0  ;;  %679 = vmatprep.subr.bf16.mxu1 %v1008_v0  ;;  %v777_v3 = vld [vmem:[#allocation5 + $0x8] sm:$0xff]   ;;  %v778_v4 = vld [vmem:[#allocation7 + $0x8] sm:$0xff]   ;;  %vm323_vm1 = vcmask 261120   ;;  %s288_s24 = scalar_lea.vmem [#allocation10], %s1249_s8  ;;  %v644_v6 = vld [vmem:[#allocation8] ss:$0 sm:$0xff] }
  0x89   : > { %675 = vmatprep.mubr.msk.bf16.mxu0 %vm1009_vm0, %v1008_v0  ;;  %683 = vmatprep.mubr.msk.bf16.mxu1 %vm1009_vm0, %v1008_v0  ;;  %v779_v5 = vld [vmem:[%s252_s12] sm:$0xff]   ;;  %s472_s26 = sshll.u32 %s288_s24, 4  ;;  %s663_s23 = sshll.u32 %s1065_s22, 7  ;;  %vm376_vm2 = vcmask 257024   ;;  %s1267_s26 = int_to_ptr.vmem [resolvable:$true] %s472_s26 }
  0x8a   : > { %672 = vmatpush3.bf16.msra.mxu0 %v775_v1  ;;  %680 = vmatpush3.bf16.msra.mxu1 %v776_v2  ;;  %s1270_s27 = scalar_lea.vmem [#allocation11], %s1249_s8  ;;  %s1276_s22 = scalar_lea.hbm %s1367_s4, %s663_s23 }
  0x8b   : > { %673 = vmatprep.subr.bf16.mxu0 %v1008_v0  ;;  %681 = vmatprep.subr.bf16.mxu1 %v1008_v0  ;;  %s488_s15 = sshll.u32 %s1270_s27, 4  ;;  %s1283_s16 = scalar_lea.hbm %s1368_s5, %s663_s23  ;;  %s1285_s15 = int_to_ptr.vmem [resolvable:$true] %s488_s15 }
  0x8c   : > { %s454_s29 = scalar_lea.sflag [#allocation4], %s1246_s30  ;;  %s894_s11 = scalar_lea.vmem %s1267_s26, 128 }
  0x8d   : > { %p895_p10 = scmp.ne.s32.totalorder %s1267_s26, %s894_s11  ;;  %s1010_s8 = smov [#allocation10]  }
  0x8e   : > { %674 = vmatpush3.bf16.msra.mxu0 %v777_v3  ;;  %682 = vmatpush3.bf16.msra.mxu1 %v778_v4  ;;  %s898_s28 = sshll.u32 %s1010_s8, 4  ;;  %s899_s28 = int_to_ptr.vmem [resolvable:$false] %s898_s28 }
  0x8f   : > { %p896_p3 = pnand %p895_p10, %p1195_p5  ;;  %s900_s12 = scalar_lea.vmem %s899_s28, 256 }
  0x90   : > { %p901_p12 = scmp.lt.s32.totalorder %s1267_s26, %s899_s28  ;;  %p902_p1 = scmp.lt.s32.totalorder %s900_s12, %s894_s11 }
  0x91   : > { %676 = vmatmul.mubr.msk.bf16.vlgmr.msra.gmra.mrb[0].mxu0 %vm323_vm1, %v779_v5  ;;  %684 = vmatmul.mubr.msk.bf16.vlgmr.msra.gmra.mrb[0].mxu1 %vm323_vm1, %v779_v5  ;;  %p897_p7 = pneg %p896_p3 }
  0x92   : > { %p903_p2 = por %p902_p1, %p901_p12 }
  0x94   : > { %p904_p4 = pnand %p903_p2, %p897_p7 }
 0x164   : > { %v361_v7 = vpop.f32.mrb[0].mxu0  ;;  %v436_v9 = vpop.f32.mrb[0].mxu1 }
 0x165   : > { %v659_v8 = vpack.c.bf16 %v361_v7, %v361_v7  ;;  %v677_v10 = vpop.f32.mrb[1].mxu0  ;;  %v437_v11 = vadd.f32 %v644_v6, %v436_v9  ;;  %v685_v12 = vpop.f32.mrb[1].mxu1 }
 0x166   : > { %v364_v13 = vpop.f32.mrb[2].mxu0  ;;  %v439_v15 = vpop.f32.mrb[2].mxu1 }
 0x167   : > { %377 = vst.msk [vmem:[%s288_s24] sm:$0xf] %vm376_vm2, %v659_v8  ;;  %v660_v14 = vpack.c.bf16 %v364_v13, %v364_v13  ;;  %v678_v16 = vpop.f32.mrb[3].mxu0  ;;  %v661_v17 = vpack.c.bf16 %v437_v11, %v437_v11  ;;  %v440_v18 = vadd.f32 %v644_v6, %v439_v15  ;;  %v686_v19 = vpop.f32.mrb[3].mxu1 }
 0x169   : > { %378 = vst.msk [vmem:[%s288_s24 + $0x4] sm:$0xf] %vm376_vm2, %v660_v14  ;;  %451 = vst.msk [vmem:[%s1270_s27] sm:$0xf] %vm376_vm2, %v661_v17  ;;  %v662_v20 = vpack.c.bf16 %v440_v18, %v440_v18 }
 0x16a   : > { %907 = shalt.err (!%p904_p4)
}
 0x16b   : > { %s908_s24 = scalar_lea.hbm %s1276_s22, 128  ;;  %s912_s17 = scalar_lea.hbm %s1367_s4, 256 }
 0x16c   : > { %p909_p9 = scmp.ne.s32.totalorder %s1276_s22, %s908_s24  ;;  %p913_p8 = scmp.lt.u32.totalorder %s1276_s22, %s1367_s4 }
 0x16d   : > { %p914_p13 = scmp.lt.u32.totalorder %s912_s17, %s908_s24  ;;  %p916_p10 = scmp.lt.u32.totalorder %s908_s24, %s1276_s22 }
 0x16e   : > { %p910_p0 = pnand %p909_p9, %p1195_p5 }
 0x16f   : > { %p915_p6 = por %p914_p13, %p913_p8 }
 0x170   : > { %p911_p11 = pneg %p910_p0 }
 0x171   : > { %p917_p3 = por %p916_p10, %p915_p6 }
 0x173   : > { %p918_p7 = pnand %p917_p3, %p911_p11 }
 0x175   : > { %921 = shalt.err (!%p918_p7)
}
 0x176   : > { %s1011_s11 = smov 64   ;;  %s1012_s8 = smov 4   ;;  %452 = vst.msk [vmem:[%s1270_s27 + $0x4] sm:$0xf] %vm376_vm2, %v662_v20 }
 0x177   : > { %701 = dma.vmem_to_hbm [thread:$0]  (%p1195_p5), %s1267_s26, 128, %s1276_s22, %s454_s29, %s1011_s11, %s1011_s11, %s1012_s8  }
 0x178   : > { %s459_s28 = scalar_lea.sflag [#allocation12], %s1246_s30  ;;  %s922_s12 = scalar_lea.vmem %s1285_s15, 128 }
 0x179   : > { %p923_p12 = scmp.ne.s32.totalorder %s1285_s15, %s922_s12  ;;  %s1013_s24 = smov [#allocation11]  }
 0x17a   : > { %s926_s23 = sshll.u32 %s1013_s24, 4  ;;  %s927_s23 = int_to_ptr.vmem [resolvable:$false] %s926_s23 }
 0x17b   : > { %p924_p1 = pnand %p923_p12, %p1195_p5  ;;  %s928_s6 = scalar_lea.vmem %s927_s23, 256 }
 0x17c   : > { %p929_p4 = scmp.lt.s32.totalorder %s1285_s15, %s927_s23  ;;  %p930_p9 = scmp.lt.s32.totalorder %s928_s6, %s922_s12 }
 0x17d   : > { %p925_p2 = pneg %p924_p1 }
 0x17e   : > { %p931_p0 = por %p930_p9, %p929_p4 }
 0x180   : > { %p932_p11 = pnand %p931_p0, %p925_p2 }
 0x182   : > { %935 = shalt.err (!%p932_p11)
}
 0x183   : > { %s936_s26 = scalar_lea.hbm %s1283_s16, 128  ;;  %s940_s29 = scalar_lea.hbm %s1368_s5, 256 }
 0x184   : > { %p937_p8 = scmp.ne.s32.totalorder %s1283_s16, %s936_s26  ;;  %p941_p10 = scmp.lt.u32.totalorder %s1283_s16, %s1368_s5 }
 0x185   : > { %p942_p3 = scmp.lt.u32.totalorder %s940_s29, %s936_s26  ;;  %p944_p12 = scmp.lt.u32.totalorder %s936_s26, %s1283_s16 }
 0x186   : > { %p938_p13 = pnand %p937_p8, %p1195_p5 }
 0x187   : > { %p943_p7 = por %p942_p3, %p941_p10 }
 0x188   : > { %p939_p6 = pneg %p938_p13 }
 0x189   : > { %p945_p1 = por %p944_p12, %p943_p7 }
 0x18b   : > { %p946_p2 = pnand %p945_p1, %p939_p6 }
 0x18d   : > { %949 = shalt.err (!%p946_p2)
}
 0x18e   : > { %702 = dma.vmem_to_hbm [thread:$0]  (%p1195_p5), %s1285_s15, 128, %s1283_s16, %s459_s28, %s1011_s11, %s1011_s11, %s1012_s8  }
 0x18f PF: > { %s503_s10 = sand.u32 1, %s988_s18   ;;  %p1386_p4 = scmp.ne.s32.totalorder %s1373_s25, 0 }
 0x190   : > { %p1387_p9 = scmp.ge.s32.totalorder %s1000_s21, 2  ;;  %s504_s12 = scalar_lea.sflag [#allocation4], %s503_s10 }
 0x192   : > { %p720_p0 = pnand %p1387_p9, %p1386_p4 }
 0x194   : > { %979 = dma.done.wait (!%p720_p0), %s504_s12, 128  }
 0x195   : > { %981 = vsyncadd (!%p720_p0), %s504_s12, 4294967168  ;;  %s513_s9 = scalar_lea.sflag [#allocation12], %s503_s10 }
 0x196   : > { %983 = dma.done.wait (!%p720_p0), %s513_s9, 128  }
 0x197   : > { %985 = vsyncadd (!%p720_p0), %s513_s9, 4294967168  ;;  %p24_p5 = scmp.ge.s32.totalorder %s1181_s14, 4   ;;  %s1388_s18 = smov %s992_s19 }
 0x198   : > { %s1389_s19 = smov %s996_s20  ;;  %s1390_s20 = smov %s1191_s7 }
 0x199   : > { %s1391_s21 = smov %s1181_s14  ;;  %26 = sbr.rel (!%p24_p5) target bundleno = 9 (0x9), region = 110 }
 0x1a0   :  { %518 = vsyncpa [#allocation3], 1 }
 0x1a1   :  { %520 = vsyncpa [#allocation3 + $0x1], 1 }
 0x1a2   :  { %521 = vsyncpa [#allocation6], 1 }
 0x1a3   :  { %522 = vsyncpa [#allocation9], 1 }
 0x1a4   :  { %523 = vsyncpa [#allocation4], 1 }
 0x1a5   :  { %525 = vsyncpa [#allocation4 + $0x1], 1 }
 0x1a6   :  { %526 = vsyncpa [#allocation12], 1 }
 0x1a7   :  { %528 = vsyncpa [#allocation12 + $0x1], 1 }

// kernel: whisper_forward.34
= control target key start
LH: loop header
LB: loop body
LE: loop exit
PB: predicated region body
PF: predicated region fallthrough
CT: control target
= control target key end

     0   :  { %s1768_s0 = inlined_call_operand.hbm [shape: bf16[32,32], index: 0, kind: input, shape index: {}]   ;;  %s1769_s1 = inlined_call_operand.hbm [shape: bf16[32,64], index: 1, kind: input, shape index: {}]   ;;  %s1770_s2 = inlined_call_operand.hbm [shape: f32[1,64], index: 2, kind: input, shape index: {}]   ;;  %s1771_s3 = inlined_call_operand.hbm [shape: bf16[64,32], index: 3, kind: input, shape index: {}]   ;;  %s1772_s4 = inlined_call_operand.hbm [shape: f32[1,32], index: 4, kind: input, shape index: {}]   ;;  %s1773_s5 = inlined_call_operand.hbm [shape: f32[1,32], index: 5, kind: input, shape index: {}]   ;;  %s1774_s6 = inlined_call_operand.hbm [shape: f32[1,32], index: 6, kind: input, shape index: {}]   ;;  %s1775_s7 = inlined_call_operand.hbm [shape: bf16[32,32], index: 7, kind: output, shape index: {}]  }
   0x1   :  { %1784 = sst [smem:[#allocation21_spill]] %s1775_s7 }
   0x2   :  { %12 = vsyncpa [#allocation4], 0 }
   0x3   :  { %14 = vsyncpa [#allocation4 + $0x1], 0 }
   0x4   :  { %15 = vsyncpa [#allocation7], 0 }
   0x5   :  { %16 = vsyncpa [#allocation10], 0 }
   0x6   :  { %17 = vsyncpa [#allocation13], 0 }
   0x7   :  { %18 = vsyncpa [#allocation5], 0 }
   0x8   :  { %20 = vsyncpa [#allocation5 + $0x1], 0  ;;  %s1402_s24 = smov 0   ;;  %s1404_s25 = smov 0  }
   0x9   :  { %s1406_s26 = smov 0   ;;  %s1408_s27 = smov 0  }
   0xa   :  { %s1410_s28 = smov 0   ;;  %s1412_s29 = smov 0  }
   0xb LB: > { %s1776_s30 = sadd.s32 4294967295, %s1346_s29   ;;  %p834_p0 = scmp.ge.s32.totalorder %s1346_s29, 1  ;;  %s1346_s29 = sphi %s1412_s29, %s26_s29   ;;  %s1342_s28 = sphi %s1410_s28, %s1808_s28   ;;  %s1338_s27 = sphi %s1408_s27, %s1807_s27   ;;  %s1334_s26 = sphi %s1406_s26, %s1806_s26   ;;  %s1330_s25 = sphi %s1404_s25, %s1805_s25   ;;  %s1326_s24 = sphi %s1402_s24, %s1804_s24  }
   0xc   : > { %p1436_p1 = scmp.eq.s32.totalorder %s1776_s30, 0  ;;  %p236_p2 = scmp.lt.s32.totalorder %s1346_s29, 3 }
   0xd   : > { %s1348_s10 = smov [#allocation6]   ;;  %s1349_s13 = smov [#allocation9]  }
   0xe   : > { %s1785_s8 = scalar_select %p1436_p1, 1, 0 }
   0xf   : > { %p1441_p3 = pnand %p834_p0, %p236_p2  ;;  %s250_s11 = sshll.u32 %s1348_s10, 4  ;;  %s1445_s11 = int_to_ptr.vmem [resolvable:$true] %s250_s11 }
  0x10   : > { %s279_s14 = sshll.u32 %s1349_s13, 4  ;;  %s1350_s15 = smov [#allocation12]   ;;  %s1456_s14 = int_to_ptr.vmem [resolvable:$true] %s279_s14 }
  0x11   : > { %s1786_s9 = scalar_select %p1441_p3, 1, 0 }
  0x12   : > { %p938_p4 = pneg %p1441_p3  ;;  %s1458_s16 = sshll.u32 %s1350_s15, 4  ;;  %s305_s16 = int_to_ptr.vmem [resolvable:$true] %s1458_s16 }
  0x13   : > { %s1054_s19 = scalar_lea.hbm %s1769_s1, 256 }
  0x14   : > { %p1452_p6 = pnand %p938_p4, %p1436_p1  ;;  %p1055_p7 = scmp.ne.s32.totalorder %s1769_s1, %s1054_s19 }
  0x15   : > { %p1061_p11 = scmp.lt.u32.totalorder %s1054_s19, %s1769_s1 }
  0x16   : > { %p1468_p8 = pneg %p1452_p6 }
  0x18   : > { %p1057_p9 = pnand %p1468_p8, %p1055_p7 }
  0x1a   : > { %p1058_p10 = pneg %p1057_p9 }
  0x1c   : > { %p1063_p12 = pnand %p1061_p11, %p1058_p10 }
  0x1e   : > { %1066 = shalt.err (!%p1063_p12)
}
  0x1f   : > { %s1067_s13 = scalar_lea.vmem %s1445_s11, 256  ;;  %p1075_p4 = scmp.lt.s32.totalorder %s1445_s11, %s1445_s11 }
  0x20   : > { %p1068_p13 = scmp.ne.s32.totalorder %s1445_s11, %s1067_s13  ;;  %p1076_p5 = scmp.lt.s32.totalorder %s1067_s13, %s1067_s13 }
  0x22   : > { %p1070_p0 = pnand %p1068_p13, %p1468_p8  ;;  %p1077_p7 = por %p1076_p5, %p1075_p4 }
  0x24   : > { %p1071_p2 = pneg %p1070_p0 }
  0x26   : > { %p1078_p9 = pnand %p1077_p7, %p1071_p2 }
  0x28   : > { %1081 = shalt.err (!%p1078_p9)
}
  0x29   : > { %s1781_s15 = smov 64   ;;  %s1782_s17 = smov 4  }
  0x2a   : > { %941 = dma.hbm_to_vmem [thread:$0]  (!%p1452_p6), %s1769_s1, 256, %s1445_s11, [#allocation7], %s1781_s15, %s1781_s15, %s1782_s17  }
  0x2b   : > { %s1082_s23 = scalar_lea.hbm %s1771_s3, 512 }
  0x2c   : > { %p1083_p5 = scmp.ne.s32.totalorder %s1771_s3, %s1082_s23  ;;  %p1089_p12 = scmp.lt.u32.totalorder %s1082_s23, %s1771_s3 }
  0x2e   : > { %p1085_p10 = pnand %p1083_p5, %p1468_p8 }
  0x30   : > { %p1086_p11 = pneg %p1085_p10 }
  0x32   : > { %p1091_p13 = pnand %p1089_p12, %p1086_p11 }
  0x34   : > { %1094 = shalt.err (!%p1091_p13)
}
  0x35   : > { %s1095_s11 = scalar_lea.vmem %s1456_s14, 512  ;;  %p1103_p7 = scmp.lt.s32.totalorder %s1456_s14, %s1456_s14 }
  0x36   : > { %p1096_p0 = scmp.ne.s32.totalorder %s1456_s14, %s1095_s11  ;;  %p1104_p9 = scmp.lt.s32.totalorder %s1095_s11, %s1095_s11 }
  0x38   : > { %p1098_p2 = pnand %p1096_p0, %p1468_p8  ;;  %p1105_p5 = por %p1104_p9, %p1103_p7 }
  0x3a   : > { %p1099_p4 = pneg %p1098_p2 }
  0x3c   : > { %p1106_p10 = pnand %p1105_p5, %p1099_p4 }
  0x3e   : > { %1109 = shalt.err (!%p1106_p10)
}
  0x3f   : > { %947 = dma.hbm_to_vmem [thread:$0]  (!%p1452_p6), %s1771_s3, 512, %s1456_s14, [#allocation10], %s1781_s15, %s1781_s15, %s1782_s17  }
  0x40   : > { %s1110_s20 = scalar_lea.hbm %s1773_s5, 16 }
  0x41   : > { %p1111_p11 = scmp.ne.s32.totalorder %s1773_s5, %s1110_s20  ;;  %p1117_p0 = scmp.lt.u32.totalorder %s1110_s20, %s1773_s5 }
  0x43   : > { %p1113_p12 = pnand %p1111_p11, %p1468_p8 }
  0x45   : > { %p1114_p13 = pneg %p1113_p12 }
  0x47   : > { %p1119_p2 = pnand %p1117_p0, %p1114_p13 }
  0x49   : > { %1122 = shalt.err (!%p1119_p2)
}
  0x4a   : > { %s1123_s11 = scalar_lea.vmem %s305_s16, 16  ;;  %s1130_s14 = scalar_lea.vmem %s305_s16, 32 }
  0x4b   : > { %p1124_p4 = scmp.ne.s32.totalorder %s305_s16, %s1123_s11  ;;  %p1131_p5 = scmp.lt.s32.totalorder %s305_s16, %s305_s16 }
  0x4c   : > { %p1132_p10 = scmp.lt.s32.totalorder %s1130_s14, %s1123_s11 }
  0x4d   : > { %p1126_p7 = pnand %p1124_p4, %p1468_p8 }
  0x4e   : > { %p1133_p3 = por %p1132_p10, %p1131_p5 }
  0x4f   : > { %p1127_p9 = pneg %p1126_p7 }
  0x51   : > { %p1134_p1 = pnand %p1133_p3, %p1127_p9 }
  0x53   : > { %1137 = shalt.err (!%p1134_p1)
}
  0x54   : > { %953 = dma.hbm_to_vmem [thread:$0]  (!%p1452_p6), %s1773_s5, 16, %s305_s16, [#allocation13]  }
  0x55   : > { %s1353_s18 = smov [#allocation8]   ;;  %s1354_s20 = smov [#allocation11]  }
  0x56   : > { %s266_s19 = sshll.u32 %s1353_s18, 4  ;;  %s293_s21 = sshll.u32 %s1354_s20, 4  ;;  %s267_s19 = int_to_ptr.vmem [resolvable:$true] %s266_s19  ;;  %s294_s21 = int_to_ptr.vmem [resolvable:$true] %s293_s21 }
  0x57   : > { %s1138_s13 = scalar_lea.hbm %s1770_s2, 16 }
  0x58   : > { %p1139_p1 = scmp.ne.s32.totalorder %s1770_s2, %s1138_s13  ;;  %p1145_p12 = scmp.lt.u32.totalorder %s1138_s13, %s1770_s2 }
  0x5a   : > { %p1141_p3 = pnand %p1139_p1, %p1468_p8 }
  0x5c   : > { %p1142_p11 = pneg %p1141_p3 }
  0x5e   : > { %p1147_p13 = pnand %p1145_p12, %p1142_p11 }
  0x60   : > { %1150 = shalt.err (!%p1147_p13)
}
  0x61   : > { %s1151_s16 = scalar_lea.vmem %s267_s19, 16  ;;  %s1158_s30 = scalar_lea.vmem %s267_s19, 32 }
  0x62   : > { %p1152_p0 = scmp.ne.s32.totalorder %s267_s19, %s1151_s16  ;;  %p1159_p7 = scmp.lt.s32.totalorder %s267_s19, %s267_s19 }
  0x63   : > { %p1160_p9 = scmp.lt.s32.totalorder %s1158_s30, %s1151_s16 }
  0x64   : > { %p1154_p2 = pnand %p1152_p0, %p1468_p8 }
  0x65   : > { %p1161_p5 = por %p1160_p9, %p1159_p7 }
  0x66   : > { %p1155_p4 = pneg %p1154_p2 }
  0x68   : > { %p1162_p10 = pnand %p1161_p5, %p1155_p4 }
  0x6a   : > { %1165 = shalt.err (!%p1162_p10)
}
  0x6b   : > { %944 = dma.hbm_to_vmem [thread:$0]  (!%p1452_p6), %s1770_s2, 16, %s267_s19, [#allocation7]  }
  0x6c   : > { %s1166_s10 = scalar_lea.hbm %s1772_s4, 16 }
  0x6d   : > { %p1167_p1 = scmp.ne.s32.totalorder %s1772_s4, %s1166_s10  ;;  %p1173_p12 = scmp.lt.u32.totalorder %s1166_s10, %s1772_s4 }
  0x6f   : > { %p1169_p3 = pnand %p1167_p1, %p1468_p8 }
  0x71   : > { %p1170_p11 = pneg %p1169_p3 }
  0x73   : > { %p1175_p13 = pnand %p1173_p12, %p1170_p11 }
  0x75   : > { %1178 = shalt.err (!%p1175_p13)
}
  0x76   : > { %s1179_s16 = scalar_lea.vmem %s294_s21, 16  ;;  %s1186_s19 = scalar_lea.vmem %s294_s21, 32 }
  0x77   : > { %p1180_p0 = scmp.ne.s32.totalorder %s294_s21, %s1179_s16  ;;  %p1187_p7 = scmp.lt.s32.totalorder %s294_s21, %s294_s21 }
  0x78   : > { %p1188_p9 = scmp.lt.s32.totalorder %s1186_s19, %s1179_s16 }
  0x79   : > { %p1182_p2 = pnand %p1180_p0, %p1468_p8 }
  0x7a   : > { %p1189_p5 = por %p1188_p9, %p1187_p7 }
  0x7b   : > { %p1183_p4 = pneg %p1182_p2 }
  0x7d   : > { %p1190_p10 = pnand %p1189_p5, %p1183_p4 }
  0x7f   : > { %1193 = shalt.err (!%p1190_p10)
}
  0x80   : > { %950 = dma.hbm_to_vmem [thread:$0]  (!%p1452_p6), %s1772_s4, 16, %s294_s21, [#allocation10]  }
  0x81   : > { %s1355_s20 = smov [#allocation14]   ;;  %s1194_s13 = scalar_lea.hbm %s1774_s6, 16 }
  0x82   : > { %s315_s15 = sshll.u32 %s1355_s20, 4  ;;  %p1195_p1 = scmp.ne.s32.totalorder %s1774_s6, %s1194_s13  ;;  %s316_s15 = int_to_ptr.vmem [resolvable:$true] %s315_s15 }
  0x83   : > { %p1201_p12 = scmp.lt.u32.totalorder %s1194_s13, %s1774_s6 }
  0x84   : > { %p1197_p3 = pnand %p1195_p1, %p1468_p8 }
  0x86   : > { %p1198_p11 = pneg %p1197_p3 }
  0x88   : > { %p1203_p13 = pnand %p1201_p12, %p1198_p11 }
  0x8a   : > { %1206 = shalt.err (!%p1203_p13)
}
  0x8b   : > { %s1207_s21 = scalar_lea.vmem %s316_s15, 16  ;;  %s1214_s19 = scalar_lea.vmem %s316_s15, 32 }
  0x8c   : > { %p1208_p0 = scmp.ne.s32.totalorder %s316_s15, %s1207_s21  ;;  %p1215_p7 = scmp.lt.s32.totalorder %s316_s15, %s316_s15 }
  0x8d   : > { %p1216_p9 = scmp.lt.s32.totalorder %s1214_s19, %s1207_s21 }
  0x8e   : > { %p1210_p2 = pnand %p1208_p0, %p1468_p8 }
  0x8f   : > { %p1217_p5 = por %p1216_p9, %p1215_p7 }
  0x90   : > { %p1211_p4 = pneg %p1210_p2 }
  0x92   : > { %p1218_p10 = pnand %p1217_p5, %p1211_p4 }
  0x94   : > { %1221 = shalt.err (!%p1218_p10)
}
  0x95   : > { %956 = dma.hbm_to_vmem [thread:$0]  (!%p1452_p6), %s1774_s6, 16, %s316_s15, [#allocation13]  }
  0x96   : > { %s833_s22 = sadd.s32 4294967294, %s1346_s29   ;;  %s38_s20 = sadd.s32 1, %s1342_s28 }
  0x97   : > { %p40_p8 = scmp.ge.s32.totalorder %s38_s20, 2  ;;  %s45_s12 = sadd.s32 1, %s1334_s26 }
  0x98   : > { %p52_p1 = scmp.ne.s32.totalorder %s1334_s26, %s1330_s25  ;;  %p53_p3 = scmp.eq.s32.totalorder %s1346_s29, 0 }
  0x99   : > { %s1810_s20 = smov (%p40_p8, %s38_s20), 0  ;;  %p58_p12 = scmp.ne.s32.totalorder %s1330_s25, %s1326_s24 }
  0x9a   : > { %p1599_p11 = por %p53_p3, %p52_p1  ;;  %s42_s15 = ssub.s32 %s1342_s28, %s1810_s20 }
  0x9b   : > { %s1790_s10 = sadd.s32 4294967295, %s1346_s29   ;;  %p43_p13 = scmp.eq.s32.totalorder %s42_s15, 0 }
  0x9c   : > { %p223_p6 = scmp.eq.s32.totalorder %s1790_s10, 1  ;;  %p1791_p0 = scmp.ne.s32.totalorder %s1785_s8, 0 }
  0x9d   : > { %p229_p7 = scmp.eq.s32.totalorder %s833_s22, 1  ;;  %p971_p5 = scmp.lt.s32.totalorder %s1346_s29, 2 }
  0x9e   : > { %p1611_p2 = por %p1791_p0, %p58_p12  ;;  %p1615_p4 = por %p223_p6, %p52_p1 }
  0x9f   : > { %s1620_s14 = scalar_select %p43_p13, %s1334_s26, %s45_s12  }
  0xa0   : > { %s1793_s11 = scalar_select %p1615_p4, 1, 0 }
  0xa1   : > { %p1622_p9 = por %p229_p7, %p58_p12  ;;  %s326_s16 = sand.u32 1, %s1334_s26  }
  0xa2   : > { %s874_s21 = sshll.u32 %s1342_s28, 7  ;;  %s842_s19 = sshll.u32 %s326_s16, 3 }
  0xa3   : > { %s1794_s7 = scalar_select %p1622_p9, 1, 0 }
  0xa4   : > { %s1632_s15 = scalar_lea.hbm %s1768_s0, %s874_s21  ;;  %s330_s22 = scalar_lea.vmem [#allocation3], %s842_s19 }
  0xa5   : > { %s337_s12 = sshll.u32 %s330_s22, 4  ;;  %p1636_p10 = pnand %p971_p5, %p1599_p11  ;;  %s1640_s12 = int_to_ptr.vmem [resolvable:$true] %s337_s12 }
  0xa6   : > { %s1642_s17 = scalar_lea.sflag [#allocation4], %s326_s16  ;;  %s1222_s30 = scalar_lea.hbm %s1632_s15, 128 }
  0xa7   : > { %p1223_p8 = scmp.ne.s32.totalorder %s1632_s15, %s1222_s30  ;;  %p1224_p1 = pneg %p1636_p10 }
  0xa8   : > { %s1227_s19 = scalar_lea.hbm %s1768_s0, 256  ;;  %p1228_p11 = scmp.lt.u32.totalorder %s1632_s15, %s1768_s0 }
  0xa9   : > { %p1225_p3 = pnand %p1224_p1, %p1223_p8  ;;  %p1229_p6 = scmp.lt.u32.totalorder %s1227_s19, %s1222_s30 }
  0xaa   : > { %p1231_p0 = scmp.lt.u32.totalorder %s1222_s30, %s1632_s15 }
  0xab   : > { %p1226_p12 = pneg %p1225_p3  ;;  %p1230_p13 = por %p1229_p6, %p1228_p11 }
  0xad   : > { %p1232_p7 = por %p1231_p0, %p1230_p13 }
  0xaf   : > { %p1233_p5 = pnand %p1232_p7, %p1226_p12 }
  0xb1   : > { %1236 = shalt.err (!%p1233_p5)
}
  0xb2   : > { %s1237_s16 = scalar_lea.vmem %s1640_s12, 128  ;;  %s1356_s21 = smov [#allocation3]  }
  0xb3   : > { %p1238_p8 = scmp.ne.s32.totalorder %s1640_s12, %s1237_s16  ;;  %s1242_s23 = sshll.u32 %s1356_s21, 4  ;;  %s1243_s23 = int_to_ptr.vmem [resolvable:$false] %s1242_s23 }
  0xb4   : > { %s1244_s18 = scalar_lea.vmem %s1243_s23, 256  ;;  %p1245_p4 = scmp.lt.s32.totalorder %s1640_s12, %s1243_s23 }
  0xb5   : > { %p1240_p3 = pnand %p1238_p8, %p1224_p1  ;;  %p1246_p11 = scmp.lt.s32.totalorder %s1244_s18, %s1237_s16 }
  0xb7   : > { %p1241_p9 = pneg %p1240_p3  ;;  %p1247_p6 = por %p1246_p11, %p1245_p4 }
  0xb9   : > { %p1248_p13 = pnand %p1247_p6, %p1241_p9 }
  0xbb   : > { %1251 = shalt.err (!%p1248_p13)
}
  0xbc   : > { %s1796_s30 = smov 4   ;;  %s1797_s19 = smov 64  }
  0xbd   : > { %960 = dma.hbm_to_vmem [thread:$0]  (!%p1636_p10), %s1632_s15, 128, %s1640_s12, %s1642_s17, %s1797_s19, %s1797_s19, %s1796_s30  }
  0xbe   : > { %p1798_p1 = scmp.ne.s32.totalorder %s1786_s9, 0 }
  0xbf   : > { %s1676_s22 = sand.u32 (!%p1798_p1), 1, %s1330_s25  }
  0xc0   : > { %349 = sbr.rel (%p1798_p1) target bundleno = 1020 (0x3fc), region = 48  ;;  %s846_s16 = sshll.u32 (!%p1798_p1), %s1676_s22, 3 }
  0xc1   : > { %s352_s21 = scalar_lea.sflag (!%p1798_p1), [#allocation4], %s1676_s22  ;;  %s1682_s10 = scalar_lea.vmem (!%p1798_p1), [#allocation3], %s846_s16 }
  0xc7   : > { %1305 = dma.done.wait (%p1611_p2), %s352_s21, 128  }
  0xc8   : > { %1307 = vsyncadd (%p1611_p2), %s352_s21, 4294967168  ;;  %p1799_p4 = scmp.ne.s32.totalorder %s1785_s8, 0 }
  0xca   : > { %1309 = dma.done.wait (%p1799_p4), [#allocation7], 272  }
  0xcb   : > { %1311 = vsyncadd (%p1799_p4), [#allocation7], 4294967024 }
  0xcc   : > { %1313 = dma.done.wait (%p1799_p4), [#allocation10], 528  }
  0xcd   : > { %1315 = vsyncadd (%p1799_p4), [#allocation10], 4294966768 }
  0xce   : > { %1317 = dma.done.wait (%p1799_p4), [#allocation13], 32  }
  0xcf   : > { %1319 = vsyncadd (%p1799_p4), [#allocation13], 4294967264  ;;  %vm418_vm0 = vcmask 261120   ;;  %v1357_v0 = vmov 0.0   ;;  %vm1358_vm1 = vmmov 0   ;;  %v1039_v1 = vld [vmem:[#allocation6] sm:$0xff]  }
  0xd0   : > { %890 = vmatprep.subr.bf16.mxu0 %v1357_v0  ;;  %894 = vmatprep.mubr.msk.bf16.mxu0 %vm1358_vm1, %v1357_v0  ;;  %419 = vst.msk [vmem:[#allocation2] sm:$0xff] %vm418_vm0, %v1357_v0  ;;  %420 = vst.msk [vmem:[#allocation2 + $0x8] sm:$0xff] %vm418_vm0, %v1357_v0  ;;  %v1040_v2 = vld [vmem:[#allocation6 + $0x8] sm:$0xff]   ;;  %v1041_v3 = vld [vmem:[%s1682_s10] sm:$0xff]   ;;  %vm549_vm2 = vcmask 523264   ;;  %vm671_vm3 = vcmask 257024  }
  0xd1   : > { %898 = vmatprep.subr.bf16.mxu1 %v1357_v0  ;;  %906 = vmatprep.mubr.msk.bf16.mxu1 %vm1358_vm1, %v1357_v0  ;;  %v1042_v4 = vld [vmem:[#allocation9] sm:$0xff]   ;;  %v1043_v5 = vld [vmem:[#allocation9 + $0x8] sm:$0xff]   ;;  %v1044_v6 = vld [vmem:[#allocation9 + $0x10] sm:$0xff]   ;;  %s877_s8 = sshll.u32 %s1338_s27, 7  ;;  %s409_s9 = scalar_lea.vmem [#allocation15], %s846_s16 }
  0xd2   : > { %891 = vmatpush3.bf16.msra.mxu0 %v1039_v1  ;;  %899 = vmatpush3.bf16.msra.mxu1 %v1042_v4  ;;  %v1045_v7 = vld [vmem:[#allocation9 + $0x18] sm:$0xff]   ;;  %v864_v43 = vld [vmem:[#allocation11] ss:$0 sm:$0xff]  ;;  %s688_s17 = sshll.u32 %s409_s9, 4  ;;  %s1800_s12 = sld [smem:[#allocation21_spill]]  ;;  %s1719_s17 = int_to_ptr.vmem [resolvable:$true] %s688_s17 }
  0xd3   : > { %892 = vmatprep.subr.bf16.mxu0 %v1357_v0  ;;  %900 = vmatprep.subr.bf16.mxu1 %v1357_v0  ;;  %v854_v8 = vld [vmem:[#allocation8] ss:$0 sm:$0xff]  ;;  %s675_s18 = scalar_lea.sflag [#allocation5], %s1676_s22  ;;  %s1252_s30 = scalar_lea.vmem %s1719_s17, 128 }
  0xd4   : > { %v879_v42 = vld [vmem:[%s1682_s10] sm:$0xff]   ;;  %p1253_p2 = scmp.ne.s32.totalorder %s1719_s17, %s1252_s30  ;;  %p1801_p9 = scmp.ne.s32.totalorder %s1793_s11, 0 }
  0xd5   : > { %v880_v44 = vunpack.c.l.bf16 %v879_v42  ;;  %v881_v47 = vunpack.c.h.bf16 %v879_v42  ;;  %s1359_s27 = smov [#allocation15]  }
  0xd6   : > { %893 = vmatpush3.bf16.msra.mxu0 %v1040_v2  ;;  %901 = vmatpush3.bf16.msra.mxu1 %v1043_v5  ;;  %p1254_p10 = pnand %p1253_p2, %p1801_p9  ;;  %s1256_s19 = sshll.u32 %s1359_s27, 4  ;;  %s1257_s19 = int_to_ptr.vmem [resolvable:$false] %s1256_s19 }
  0xd7   : > { %902 = vmatprep.subr.bf16.mxu1 %v1357_v0  ;;  %v514_v34 = vld [vmem:[#allocation2] sm:$0xff]  ;;  %v515_v36 = vld [vmem:[#allocation2 + $0x8] sm:$0xff]  ;;  %s1258_s16 = scalar_lea.vmem %s1257_s19, 256  ;;  %p1259_p0 = scmp.lt.s32.totalorder %s1719_s17, %s1257_s19 }
  0xd8   : > { %s1717_s23 = scalar_lea.hbm %s1800_s12, %s877_s8  ;;  %p1255_p12 = pneg %p1254_p10 }
  0xd9   : > { %895 = vmatmul.mubr.msk.bf16.vlgmr.msra.gmra.mrb[0].mxu0 %vm418_vm0, %v1041_v3  ;;  %p1260_p7 = scmp.lt.s32.totalorder %s1258_s16, %s1252_s30 }
  0xda   : > { %903 = vmatpush3.bf16.msra.mxu1 %v1044_v6 }
  0xdb   : > { %904 = vmatprep.subr.bf16.mxu1 %v1357_v0  ;;  %p1261_p5 = por %p1260_p7, %p1259_p0 }
  0xdd   : > { %p1262_p8 = pnand %p1261_p5, %p1255_p12 }
  0xde   : > { %905 = vmatpush3.bf16.msra.mxu1 %v1045_v7  ;;  %v865_v7 = vld [vmem:[#allocation12] ss:$0 sm:$0xff] }
 0x1ac   : > { %v489_v9 = vpop.f32.mrb[0].mxu0 }
 0x1ad   : > { %v490_v10 = vadd.f32 %v854_v8, %v489_v9  ;;  %v896_v11 = vpop.f32.mrb[1].mxu0  ;;  %v866_v9 = vld [vmem:[#allocation14] ss:$0 sm:$0xff] }
 0x1ae   : > { %v492_v12 = vpop.f32.mrb[2].mxu0 }
 0x1af   : > { %v498_v13 = vmul.f32 0.044715, %v490_v10  ;;  %v493_v14 = vadd.f32 %v854_v8, %v492_v12  ;;  %v897_v15 = vpop.f32.mrb[3].mxu0  ;;  %v496_v28 = vmul.f32 0.5, %v490_v10 }
 0x1b1   : > { %v500_v16 = vmul.f32 %v498_v13, %v490_v10  ;;  %v499_v17 = vmul.f32 0.044715, %v493_v14  ;;  %v497_v29 = vmul.f32 0.5, %v493_v14 }
 0x1b3   : > { %v502_v18 = vmul.f32 %v500_v16, %v490_v10  ;;  %v501_v19 = vmul.f32 %v499_v17, %v493_v14 }
 0x1b5   : > { %v504_v20 = vadd.f32 %v502_v18, %v490_v10  ;;  %v503_v21 = vmul.f32 %v501_v19, %v493_v14 }
 0x1b7   : > { %v506_v22 = vmul.f32 0.7978846, %v504_v20  ;;  %v505_v23 = vadd.f32 %v503_v21, %v493_v14 }
 0x1b9   : > { %1046 = vtanh.f32 %v506_v22  ;;  %v507_v24 = vmul.f32 0.7978846, %v505_v23 }
 0x1bb   : > { %1048 = vtanh.f32 %v507_v24 }
 0x1c3   : > { %v1047_v25 = vpop.eup %1046 }
 0x1c4   : > { %v510_v26 = vadd.f32 1.0, %v1047_v25 }
 0x1c5   : > { %v1049_v27 = vpop.eup %1048 }
 0x1c6   : > { %v511_v30 = vadd.f32 1.0, %v1049_v27  ;;  %v512_v31 = vmul.f32 %v510_v26, %v496_v28 }
 0x1c8   : > { %v513_v32 = vmul.f32 %v511_v30, %v497_v29 }
 0x1ca   : > { %v516_v33 = vpack.c.bf16 %v513_v32, %v512_v31 }
 0x1cc   : > { %907 = vmatmul.mubr.msk.bf16.vlgmr.msra.gmra.mrb[0].mxu1 %vm549_vm2, %v516_v33 }
 0x29f   : > { %v587_v35 = vpop.f32.mrb[0].mxu1 }
 0x2a0   : > { %v594_v37 = vadd.f32 %v587_v35, %v514_v34  ;;  %v908_v38 = vpop.f32.mrb[1].mxu1 }
 0x2a1   : > { %v590_v39 = vpop.f32.mrb[2].mxu1 }
 0x2a2   : > { %596 = vst.msk [vmem:[#allocation2] sm:$0xff] %vm418_vm0, %v594_v37  ;;  %v595_v40 = vadd.f32 %v590_v39, %v515_v36  ;;  %v909_v41 = vpop.f32.mrb[3].mxu1 }
 0x2a4   : > { %597 = vst.msk [vmem:[#allocation2 + $0x8] sm:$0xff] %vm418_vm0, %v595_v40 }
 0x2a9   : > { %v601_v45 = vld [vmem:[#allocation2] sm:$0xff] }
 0x2aa   : > { %v610_v46 = vadd.f32 %v864_v43, %v601_v45 }
 0x2ab   : > { %v602_v48 = vld [vmem:[#allocation2 + $0x8] sm:$0xff] }
 0x2ac   : > { %v616_v49 = vadd.f32 %v880_v44, %v610_v46  ;;  %v611_v50 = vadd.f32 %v864_v43, %v602_v48 }
 0x2ae   : > { %v620_v51 = vsel %vm418_vm0, %v616_v49, 0.0  ;;  %v617_v52 = vadd.f32 %v881_v47, %v611_v50 }
 0x2af   : > { %621 = vadd.xlane.f32.xlu0 %v620_v51 }
 0x2b0   : > { %v623_v53 = vsel %vm418_vm0, %v617_v52, 0.0 }
 0x2b3   : > { %624 = vadd.xlane.f32.xlu0 %v623_v53 }
 0x33c   : > { %v622_v54 = vpop.xlane.xlu0 %621 }
 0x33d   : > { %v627_v55 = vmul.f32 0.03125, %v622_v54 }
 0x33f   : > { %v629_v56 = vsub.f32 %v616_v49, %v627_v55 }
 0x340   : > { %v625_v57 = vpop.xlane.xlu0 %624 }
 0x341   : > { %v628_v58 = vmul.f32 0.03125, %v625_v57  ;;  %v631_v59 = vmul.f32 %v629_v56, %v629_v56 }
 0x343   : > { %v630_v60 = vsub.f32 %v617_v52, %v628_v58  ;;  %v633_v61 = vsel %vm418_vm0, %v631_v59, 0.0 }
 0x344   : > { %634 = vadd.xlane.f32.xlu1 %v633_v61 }
 0x345   : > { %v632_v62 = vmul.f32 %v630_v60, %v630_v60 }
 0x347   : > { %v636_v63 = vsel %vm418_vm0, %v632_v62, 0.0 }
 0x348   : > { %637 = vadd.xlane.f32.xlu1 %v636_v63 }
 0x3d1   : > { %v635_v0 = vpop.xlane.xlu1 %634 }
 0x3d2   : > { %v639_v1 = vmul.f32 0.03125, %v635_v0 }
 0x3d4   : > { %v641_v2 = vadd.f32 1e-05, %v639_v1 }
 0x3d5   : > { %v638_v3 = vpop.xlane.xlu1 %637 }
 0x3d6   : > { %1050 = vrsqrt.f32 %v641_v2  ;;  %v640_v4 = vmul.f32 0.03125, %v638_v3 }
 0x3d8   : > { %v642_v5 = vadd.f32 1e-05, %v640_v4 }
 0x3da   : > { %1052 = vrsqrt.f32 %v642_v5 }
 0x3e0   : > { %v1051_v6 = vpop.eup %1050 }
 0x3e1   : > { %v645_v8 = vmul.f32 %v1051_v6, %v629_v56 }
 0x3e3   : > { %v653_v10 = vmul.f32 %v865_v7, %v645_v8 }
 0x3e4   : > { %v1053_v11 = vpop.eup %1052 }
 0x3e5   : > { %v661_v12 = vadd.f32 %v866_v9, %v653_v10  ;;  %v646_v13 = vmul.f32 %v1053_v11, %v630_v60 }
 0x3e7   : > { %v875_v14 = vpack.c.bf16 %v661_v12, %v661_v12  ;;  %v654_v15 = vmul.f32 %v865_v7, %v646_v13 }
 0x3e9   : > { %v662_v16 = vadd.f32 %v866_v9, %v654_v15  ;;  %672 = vst.msk [vmem:[%s409_s9] sm:$0xf] %vm671_vm3, %v875_v14 }
 0x3eb   : > { %v876_v17 = vpack.c.bf16 %v662_v16, %v662_v16 }
 0x3ed   : > { %673 = vst.msk [vmem:[%s409_s9 + $0x4] sm:$0xf] %vm671_vm3, %v876_v17 }
 0x3ee   : > { %1265 = shalt.err (!%p1262_p8)
}
 0x3ef   : > { %s1266_s21 = scalar_lea.hbm %s1717_s23, 128  ;;  %s1270_s9 = scalar_lea.hbm %s1800_s12, 256 }
 0x3f0   : > { %p1267_p3 = scmp.ne.s32.totalorder %s1717_s23, %s1266_s21  ;;  %p1271_p13 = scmp.lt.u32.totalorder %s1717_s23, %s1800_s12 }
 0x3f1   : > { %p1272_p1 = scmp.lt.u32.totalorder %s1270_s9, %s1266_s21  ;;  %p1274_p2 = scmp.lt.u32.totalorder %s1266_s21, %s1717_s23 }
 0x3f2   : > { %p1268_p11 = pnand %p1267_p3, %p1801_p9 }
 0x3f3   : > { %p1273_p4 = por %p1272_p1, %p1271_p13 }
 0x3f4   : > { %p1269_p6 = pneg %p1268_p11 }
 0x3f5   : > { %p1275_p10 = por %p1274_p2, %p1273_p4 }
 0x3f7   : > { %p1276_p12 = pnand %p1275_p10, %p1269_p6 }
 0x3f9   : > { %1279 = shalt.err (!%p1276_p12)
}
 0x3fa   : > { %s1360_s30 = smov 64   ;;  %s1361_s27 = smov 4  }
 0x3fb   : > { %936 = dma.vmem_to_hbm [thread:$0]  (%p1801_p9), %s1719_s17, 128, %s1717_s23, %s675_s18, %s1360_s30, %s1360_s30, %s1361_s27  }
 0x3fc PF: > { %s703_s19 = sand.u32 1, %s1326_s24   ;;  %p1802_p0 = scmp.ne.s32.totalorder %s1794_s7, 0 }
 0x3fd   : > { %p1803_p7 = scmp.ge.s32.totalorder %s1346_s29, 2  ;;  %s704_s16 = scalar_lea.sflag [#allocation5], %s703_s19 }
 0x3ff   : > { %p962_p5 = pnand %p1803_p7, %p1802_p0 }
 0x401   : > { %1321 = dma.done.wait (!%p962_p5), %s704_s16, 128  }
 0x402   : > { %1323 = vsyncadd (!%p962_p5), %s704_s16, 4294967168  ;;  %s26_s29 = sadd.s32 1, %s1346_s29   ;;  %s1804_s24 = smov %s1330_s25 }
 0x403   : > { %p23_p8 = scmp.ge.s32.totalorder %s26_s29, 4   ;;  %s1805_s25 = smov %s1334_s26 }
 0x404   : > { %s1806_s26 = smov %s1620_s14  ;;  %s1807_s27 = smov %s1342_s28 }
 0x405   : > { %s1808_s28 = smov %s1810_s20  ;;  %25 = sbr.rel (!%p23_p8) target bundleno = 11 (0xb), region = 128 }
 0x40c   :  { %709 = vsyncpa [#allocation4], 1 }
 0x40d   :  { %711 = vsyncpa [#allocation4 + $0x1], 1 }
 0x40e   :  { %712 = vsyncpa [#allocation7], 1 }
 0x40f   :  { %713 = vsyncpa [#allocation10], 1 }
 0x410   :  { %714 = vsyncpa [#allocation13], 1 }
 0x411   :  { %715 = vsyncpa [#allocation5], 1 }
 0x412   :  { %717 = vsyncpa [#allocation5 + $0x1], 1 }

// kernel: whisper_forward.45
= control target key start
LH: loop header
LB: loop body
LE: loop exit
PB: predicated region body
PF: predicated region fallthrough
CT: control target
= control target key end

     0   :  { %s1144_s0 = inlined_call_operand.hbm [shape: bf16[2,8,32], index: 0, kind: input, shape index: {}]   ;;  %s1145_s1 = inlined_call_operand.hbm [shape: bf16[2,16,32], index: 1, kind: input, shape index: {}]   ;;  %s1146_s2 = inlined_call_operand.hbm [shape: bf16[2,16,32], index: 2, kind: input, shape index: {}]   ;;  %s1147_s3 = inlined_call_operand.hbm [shape: bf16[2,8,32], index: 3, kind: output, shape index: {}]  }
   0x1   :  { %1155 = sst [smem:[#allocation15_spill]] %s1145_s1 }
   0x2   :  { %8 = vsyncpa [#allocation3], 0 }
   0x3   :  { %10 = vsyncpa [#allocation3 + $0x1], 0 }
   0x4   :  { %11 = vsyncpa [#allocation6], 0 }
   0x5   :  { %13 = vsyncpa [#allocation6 + $0x1], 0 }
   0x6   :  { %14 = vsyncpa [#allocation4], 0 }
   0x7   :  { %16 = vsyncpa [#allocation4 + $0x1], 0  ;;  %s876_s12 = smov 0   ;;  %s878_s13 = smov 0  }
   0x8   :  { %s880_s14 = smov 0   ;;  %s882_s15 = smov 0  }
   0x9   :  { %s884_s16 = smov 0   ;;  %s886_s17 = smov 0  }
   0xa LB: > { %1156 = sst [smem:[#allocation12_spill]] %s834_s14  ;;  %s907_s18 = sadd.s32 4294967295, %s846_s17   ;;  %s846_s17 = sphi %s886_s17, %s22_s17   ;;  %s842_s16 = sphi %s884_s16, %s1180_s16   ;;  %s838_s15 = sphi %s882_s15, %s1179_s15   ;;  %s834_s14 = sphi %s880_s14, %s1175_s14   ;;  %s830_s13 = sphi %s878_s13, %s1178_s13   ;;  %s826_s12 = sphi %s876_s12, %s1177_s12  }
   0xb   : > { %s546_s19 = sadd.s32 4294967294, %s846_s17   ;;  %s34_s20 = sadd.s32 1, %s842_s16 }
   0xc   : > { %s43_s21 = sadd.s32 1, %s834_s14  ;;  %p36_p0 = scmp.ge.s32.totalorder %s34_s20, 2 }
   0xd   : > { %p50_p1 = scmp.ne.s32.totalorder %s834_s14, %s830_s13  ;;  %p51_p2 = scmp.eq.s32.totalorder %s846_s17, 0 }
   0xe   : > { %p56_p3 = scmp.ne.s32.totalorder %s830_s13, %s826_s12  ;;  %s1182_s20 = smov (%p36_p0, %s34_s20), 0 }
   0xf   : > { %1157 = sst [smem:[#allocation13_spill]] %s1182_s20  ;;  %p919_p4 = por %p51_p2, %p50_p1 }
  0x10   : > { %p57_p5 = scmp.eq.s32.totalorder %s907_s18, 0  ;;  %s38_s23 = ssub.s32 %s842_s16, %s1182_s20 }
  0x11   : > { %p134_p6 = scmp.eq.s32.totalorder %s907_s18, 1  ;;  %p41_p7 = scmp.eq.s32.totalorder %s38_s23, 0 }
  0x12   : > { %p927_p8 = por %p57_p5, %p56_p3  ;;  %p140_p10 = scmp.eq.s32.totalorder %s546_s19, 1 }
  0x13   : > { %p931_p9 = por %p134_p6, %p50_p1  ;;  %p610_p13 = scmp.lt.s32.totalorder %s846_s17, 2 }
  0x14   : > { %s1159_s24 = scalar_select %p927_p8, 1, 0 }
  0x15   : > { %s1160_s25 = scalar_select %p931_p9, 1, 0 }
  0x16   : > { %s936_s26 = scalar_select %p41_p7, %s834_s14, %s43_s21  }
  0x17   : > { %p938_p11 = por %p140_p10, %p56_p3  ;;  %s945_s28 = sand.u32 1, %s834_s14  }
  0x18   : > { %1161 = sst [smem:[#allocation14_spill]] %s936_s26  ;;  %s179_s29 = sand.u32 1, %s846_s17  }
  0x19   : > { %s1162_s27 = scalar_select %p938_p11, 1, 0 }
  0x1a   : > { %s551_s30 = sshll.u32 %s945_s28, 3  ;;  %p951_p0 = pnand %p610_p13, %p919_p4 }
  0x1b   : > { %s570_s5 = sshll.u32 %s842_s16, 7  ;;  %s1164_s1 = sld [smem:[#allocation15_spill]] }
  0x1c   : > { %s1163_s4 = scalar_select %p951_p0, 1, 0 }
  0x1d   : > { %s183_s9 = scalar_lea.vmem [#allocation5], %s551_s30  ;;  %s967_s11 = scalar_lea.sflag [#allocation6], %s179_s29 }
  0x1e   : > { %s190_s10 = sshll.u32 %s183_s9, 4  ;;  %p973_p2 = pneg %p951_p0  ;;  %s965_s10 = int_to_ptr.vmem [resolvable:$true] %s190_s10 }
  0x21   : > { %s961_s8 = scalar_lea.hbm %s1164_s1, %s570_s5  ;;  %s675_s6 = scalar_lea.hbm %s1164_s1, 256 }
  0x22   : > { %s670_s19 = scalar_lea.hbm %s961_s8, 128  ;;  %p676_p5 = scmp.lt.u32.totalorder %s961_s8, %s1164_s1 }
  0x23   : > { %p671_p1 = scmp.ne.s32.totalorder %s961_s8, %s670_s19  ;;  %p677_p6 = scmp.lt.u32.totalorder %s675_s6, %s670_s19 }
  0x24   : > { %p679_p10 = scmp.lt.u32.totalorder %s670_s19, %s961_s8 }
  0x25   : > { %p673_p3 = pnand %p973_p2, %p671_p1  ;;  %p678_p7 = por %p677_p6, %p676_p5 }
  0x27   : > { %p674_p4 = pneg %p673_p3  ;;  %p680_p13 = por %p679_p10, %p678_p7 }
  0x29   : > { %p681_p12 = pnand %p680_p13, %p674_p4 }
  0x2b   : > { %684 = shalt.err (!%p681_p12)
}
  0x2c   : > { %s685_s29 = scalar_lea.vmem %s965_s10, 128  ;;  %s848_s22 = smov [#allocation5]  }
  0x2d   : > { %p686_p1 = scmp.ne.s32.totalorder %s965_s10, %s685_s29  ;;  %s690_s23 = sshll.u32 %s848_s22, 4  ;;  %s691_s23 = int_to_ptr.vmem [resolvable:$false] %s690_s23 }
  0x2e   : > { %s692_s7 = scalar_lea.vmem %s691_s23, 256  ;;  %p693_p9 = scmp.lt.s32.totalorder %s965_s10, %s691_s23 }
  0x2f   : > { %p688_p3 = pnand %p686_p1, %p973_p2  ;;  %p694_p8 = scmp.lt.s32.totalorder %s692_s7, %s685_s29 }
  0x31   : > { %p689_p11 = pneg %p688_p3  ;;  %p695_p5 = por %p694_p8, %p693_p9 }
  0x33   : > { %p696_p6 = pnand %p695_p5, %p689_p11 }
  0x35   : > { %699 = shalt.err (!%p696_p6)
}
  0x36   : > { %s1152_s19 = smov 64   ;;  %s850_s6 = smov 4  }
  0x37   : > { %602 = dma.hbm_to_vmem [thread:$0]  (!%p951_p0), %s961_s8, 128, %s965_s10, %s967_s11, %s1152_s19, %s1152_s19, %s850_s6  }
  0x38   : > { %s1005_s22 = scalar_lea.hbm %s1146_s2, %s570_s5  ;;  %p557_p8 = scmp.ge.s32.totalorder %s846_s17, 1 }
  0x39   : > { %s204_s23 = scalar_lea.vmem [#allocation7], %s551_s30  ;;  %p219_p9 = scmp.lt.s32.totalorder %s846_s17, 3 }
  0x3a   : > { %s211_s7 = sshll.u32 %s204_s23, 4  ;;  %s549_s20 = sshll.u32 %s945_s28, 2  ;;  %s1022_s7 = int_to_ptr.vmem [resolvable:$true] %s211_s7 }
  0x3b   : > { %p1011_p11 = pnand %p557_p8, %p219_p9  ;;  %s550_s26 = sshll.u32 %s842_s16, 6 }
  0x3c   : > { %s1020_s10 = scalar_lea.hbm %s1144_s0, %s550_s26  ;;  %s164_s30 = scalar_lea.vmem [#allocation2], %s549_s20 }
  0x3d   : > { %s1166_s1 = scalar_select %p1011_p11, 1, 0 }
  0x3e   : > { %s172_s5 = sshll.u32 %s164_s30, 4  ;;  %s161_s9 = scalar_lea.sflag [#allocation3], %s945_s28  ;;  %s173_s5 = int_to_ptr.vmem [resolvable:$true] %s172_s5 }
  0x3f   : > { %s700_s29 = scalar_lea.hbm %s1020_s10, 64  ;;  %s705_s14 = scalar_lea.hbm %s1144_s0, 128 }
  0x40   : > { %p701_p12 = scmp.ne.s32.totalorder %s1020_s10, %s700_s29  ;;  %p706_p10 = scmp.lt.u32.totalorder %s1020_s10, %s1144_s0 }
  0x41   : > { %p707_p13 = scmp.lt.u32.totalorder %s705_s14, %s700_s29  ;;  %p709_p3 = scmp.lt.u32.totalorder %s700_s29, %s1020_s10 }
  0x42   : > { %p703_p4 = pnand %p701_p12, %p973_p2 }
  0x43   : > { %p708_p1 = por %p707_p13, %p706_p10 }
  0x44   : > { %p704_p7 = pneg %p703_p4 }
  0x45   : > { %p710_p5 = por %p709_p3, %p708_p1 }
  0x47   : > { %p711_p6 = pnand %p710_p5, %p704_p7 }
  0x49   : > { %714 = shalt.err (!%p711_p6)
}
  0x4a   : > { %s715_s20 = scalar_lea.vmem %s173_s5, 64  ;;  %s851_s28 = smov [#allocation2]  }
  0x4b   : > { %p716_p8 = scmp.ne.s32.totalorder %s173_s5, %s715_s20  ;;  %s720_s30 = sshll.u32 %s851_s28, 4  ;;  %s721_s30 = int_to_ptr.vmem [resolvable:$false] %s720_s30 }
  0x4c   : > { %s722_s19 = scalar_lea.vmem %s721_s30, 128  ;;  %p723_p4 = scmp.lt.s32.totalorder %s173_s5, %s721_s30 }
  0x4d   : > { %p718_p9 = pnand %p716_p8, %p973_p2  ;;  %p724_p11 = scmp.lt.s32.totalorder %s722_s19, %s715_s20 }
  0x4f   : > { %p719_p12 = pneg %p718_p9  ;;  %p725_p0 = por %p724_p11, %p723_p4 }
  0x51   : > { %p726_p10 = pnand %p725_p0, %p719_p12 }
  0x53   : > { %729 = shalt.err (!%p726_p10)
}
  0x54   : > { %p1167_p13 = scmp.ne.s32.totalorder %s1163_s4, 0  ;;  %s730_s29 = scalar_lea.hbm %s1005_s22, 128 }
  0x55   : > { %p731_p7 = scmp.ne.s32.totalorder %s1005_s22, %s730_s29  ;;  %s735_s26 = scalar_lea.hbm %s1146_s2, 256 }
  0x56   : > { %599 = dma.hbm_to_vmem [thread:$0]  (!%p1167_p13), %s1020_s10, 64, %s173_s5, %s161_s9  }
  0x57   : > { %p733_p1 = pnand %p731_p7, %p973_p2  ;;  %p736_p0 = scmp.lt.u32.totalorder %s1005_s22, %s1146_s2 }
  0x58   : > { %p737_p11 = scmp.lt.u32.totalorder %s735_s26, %s730_s29  ;;  %p739_p6 = scmp.lt.u32.totalorder %s730_s29, %s1005_s22 }
  0x59   : > { %p734_p3 = pneg %p733_p1 }
  0x5a   : > { %p738_p5 = por %p737_p11, %p736_p0 }
  0x5c   : > { %p740_p8 = por %p739_p6, %p738_p5 }
  0x5e   : > { %p741_p9 = pnand %p740_p8, %p734_p3 }
  0x60   : > { %744 = shalt.err (!%p741_p9)
}
  0x61   : > { %s745_s10 = scalar_lea.vmem %s1022_s7, 128  ;;  %s852_s5 = smov [#allocation7]  }
  0x62   : > { %p746_p12 = scmp.ne.s32.totalorder %s1022_s7, %s745_s10  ;;  %s750_s9 = sshll.u32 %s852_s5, 4  ;;  %s751_s9 = int_to_ptr.vmem [resolvable:$false] %s750_s9 }
  0x63   : > { %s752_s28 = scalar_lea.vmem %s751_s9, 256  ;;  %p753_p7 = scmp.lt.s32.totalorder %s1022_s7, %s751_s9 }
  0x64   : > { %p748_p4 = pnand %p746_p12, %p973_p2  ;;  %p754_p1 = scmp.lt.s32.totalorder %s752_s28, %s745_s10 }
  0x66   : > { %p749_p10 = pneg %p748_p4  ;;  %p755_p0 = por %p754_p1, %p753_p7 }
  0x68   : > { %p756_p11 = pnand %p755_p0, %p749_p10 }
  0x6a   : > { %759 = shalt.err (!%p756_p11)
}
  0x6b   : > { %s1168_s30 = smov 64   ;;  %p1169_p2 = scmp.ne.s32.totalorder %s1166_s1, 0 }
  0x6c   : > { %605 = dma.hbm_to_vmem [thread:$0]  (!%p1167_p13), %s1005_s22, 128, %s1022_s7, %s967_s11, %s1168_s30, %s1168_s30, %s850_s6  }
  0x6d   : > { %223 = sbr.rel (%p1169_p2) target bundleno = 733 (0x2dd), region = 32  ;;  %s1070_s21 = sand.u32 (!%p1169_p2), 1, %s830_s13  }
  0x6e   : > { %s558_s19 = sshll.u32 (!%p1169_p2), %s1070_s21, 2  ;;  %s226_s29 = scalar_lea.sflag (!%p1169_p2), [#allocation3], %s1070_s21 }
  0x6f   : > { %s229_s4 = scalar_lea.vmem (!%p1169_p2), [#allocation2], %s558_s19  ;;  %p1170_p3 = scmp.ne.s32.totalorder (!%p1169_p2), %s1159_s24, 0 }
  0x74   : > { %813 = dma.done.wait (%p1170_p3), %s226_s29, 64  }
  0x75   : > { %815 = vsyncadd (%p1170_p3), %s226_s29, 4294967232  ;;  %s234_s1 = sand.u32 1, %s907_s18   ;;  %s559_s11 = sshll.u32 %s1070_s21, 3 }
  0x76   : > { %s235_s6 = scalar_lea.sflag [#allocation6], %s234_s1  ;;  %s238_s22 = scalar_lea.vmem [#allocation5], %s559_s11 }
  0x77   : > { %817 = dma.done.wait (%p1170_p3), %s235_s6, 256  }
  0x78   : > { %819 = vsyncadd (%p1170_p3), %s235_s6, 4294967040  ;;  %v853_v0 = vmov 0.0   ;;  %vm854_vm0 = vmmov 0   ;;  %vm289_vm1 = vcmask 261120   ;;  %v664_v1 = vld [vmem:[%s238_s22] sm:$0xff]   ;;  %v336_v4 = vlaneseq  ;;  %s247_s18 = scalar_lea.vmem [#allocation7], %s559_s11 }
  0x79   : > { %576 = vmatprep.subr.bf16.mxu0 %v853_v0  ;;  %578 = vmatprep.mubr.msk.bf16.mxu0 %vm854_vm0, %v853_v0  ;;  %v294_v2 = vsel %vm289_vm1, %v664_v1, 0  ;;  %v281_v3 = vld [vmem:[%s229_s4] sm:$0xf]  ;;  %vm340_vm3 = vcmask 130048   ;;  %s567_s24 = sshll.u32 %s838_s15, 6  ;;  %s279_s7 = scalar_lea.vmem [#allocation8], %s558_s19 }
  0x7a   : > { %582 = vmatprep.subr.bf16.mxu1 %v853_v0  ;;  %584 = vmatprep.mubr.msk.bf16.mxu1 %vm854_vm0, %v853_v0  ;;  %v337_v5 = vand.u32 127, %v336_v4  ;;  %v665_v12 = vld [vmem:[%s247_s18] sm:$0xff]   ;;  %s422_s23 = sshll.u32 %s279_s7, 4  ;;  %vm405_vm4 = vcmask 257024   ;;  %s1095_s8 = scalar_lea.hbm %s1147_s3, %s567_s24  ;;  %s1097_s23 = int_to_ptr.vmem [resolvable:$true] %s422_s23 }
  0x7b   : > { %577 = vmatpush3.bf16.xpose.msra.mxu0 %v294_v2  ;;  %583 = vmatpush3.bf16.msra.mxu1 %v665_v12  ;;  %s408_s15 = scalar_lea.sflag [#allocation4], %s1070_s21  ;;  %s760_s20 = scalar_lea.vmem %s1097_s23, 64 }
  0x7c   : > { %vm338_vm2 = vcmp.lt.s32.totalorder %v337_v5, 10  ;;  %p761_p13 = scmp.ne.s32.totalorder %s1097_s23, %s760_s20  ;;  %p1171_p5 = scmp.ne.s32.totalorder %s1160_s25, 0 }
  0x7d   : > { %s855_s10 = smov [#allocation8]  }
  0x7e   : > { %p762_p6 = pnand %p761_p13, %p1171_p5  ;;  %s764_s5 = sshll.u32 %s855_s10, 4  ;;  %s765_s5 = int_to_ptr.vmem [resolvable:$false] %s764_s5 }
  0x7f   : > { %s766_s9 = scalar_lea.vmem %s765_s5, 128  ;;  %p767_p9 = scmp.lt.s32.totalorder %s1097_s23, %s765_s5 }
  0x80   : > { %p763_p8 = pneg %p762_p6  ;;  %p768_p12 = scmp.lt.s32.totalorder %s766_s9, %s760_s20 }
  0x82   : > { %579 = vmatmul.mubr.msk.bf16.vlgmr.msra.gmra.mrb[0].mxu0 %vm289_vm1, %v281_v3  ;;  %p769_p4 = por %p768_p12, %p767_p9 }
  0x84   : > { %p770_p10 = pnand %p769_p4, %p763_p8 }
 0x155   : > { %v330_v6 = vpop.f32.mrb[0].mxu0 }
 0x156   : > { %v339_v7 = vsel %vm338_vm2, %v330_v6, -1e+30  ;;  %v580_v8 = vpop.f32.mrb[1].mxu0 }
 0x157   : > { %v333_v9 = vpop.f32.mrb[2].mxu0  ;;  %v341_v10 = vsel %vm340_vm3, %v339_v7, -inf }
 0x158   : > { %342 = vmax.xlane.f32.xlu0 %v341_v10  ;;  %v581_v11 = vpop.f32.mrb[3].mxu0 }
 0x1e5   : > { %v343_v13 = vpop.xlane.xlu0 %342 }
 0x1e6   : > { %v344_v14 = vsub.f32 %v339_v7, %v343_v13 }
 0x1e8   : > { %v345_v15 = vmul.f32 1.442695, %v344_v14 }
 0x1ea   : > { %666 = vpow2.f32 %v345_v15 }
 0x1f4   : > { %v667_v16 = vpop.eup %666 }
 0x1f5   : > { %v347_v17 = vsel %vm340_vm3, %v667_v16, 0.0  ;;  %v350_v18 = vpack.c.bf16 %v667_v16, %v667_v16 }
 0x1f6   : > { %348 = vadd.xlane.f32.xlu0 %v347_v17 }
 0x1f7   : > { %585 = vmatmul.mubr.msk.bf16.vlgmr.msra.gmra.mrb[0].mxu1 %vm340_vm3, %v350_v18 }
 0x283   : > { %v349_v19 = vpop.xlane.xlu0 %348 }
 0x284   : > { %668 = vrcp.f32 %v349_v19 }
 0x28e   : > { %v669_v20 = vpop.eup %668 }
 0x2ca   : > { %v396_v21 = vpop.f32.mrb[0].mxu1 }
 0x2cb   : > { %v403_v22 = vmul.f32 %v669_v20, %v396_v21  ;;  %v586_v23 = vpop.f32.mrb[1].mxu1 }
 0x2cc   : > { %v399_v24 = vpop.f32.mrb[2].mxu1 }
 0x2cd   : > { %v404_v25 = vpack.c.bf16 %v403_v22, %v403_v22  ;;  %v587_v26 = vpop.f32.mrb[3].mxu1 }
 0x2cf   : > { %406 = vst.msk [vmem:[%s279_s7] sm:$0xf] %vm405_vm4, %v404_v25 }
 0x2d0   : > { %773 = shalt.err (!%p770_p10)
}
 0x2d1   : > { %s774_s28 = scalar_lea.hbm %s1095_s8, 64  ;;  %s778_s19 = scalar_lea.hbm %s1147_s3, 128 }
 0x2d2   : > { %p775_p7 = scmp.ne.s32.totalorder %s1095_s8, %s774_s28  ;;  %p779_p11 = scmp.lt.u32.totalorder %s1095_s8, %s1147_s3 }
 0x2d3   : > { %p780_p2 = scmp.lt.u32.totalorder %s778_s19, %s774_s28  ;;  %p782_p13 = scmp.lt.u32.totalorder %s774_s28, %s1095_s8 }
 0x2d4   : > { %p776_p1 = pnand %p775_p7, %p1171_p5 }
 0x2d5   : > { %p781_p3 = por %p780_p2, %p779_p11 }
 0x2d6   : > { %p777_p0 = pneg %p776_p1 }
 0x2d7   : > { %p783_p6 = por %p782_p13, %p781_p3 }
 0x2d9   : > { %p784_p8 = pnand %p783_p6, %p777_p0 }
 0x2db   : > { %787 = shalt.err (!%p784_p8)
}
 0x2dc   : > { %594 = dma.vmem_to_hbm [thread:$0]  (%p1171_p5), %s1097_s23, 64, %s1095_s8, %s408_s15  }
 0x2dd PF: > { %s434_s1 = sand.u32 1, %s826_s12   ;;  %p1172_p9 = scmp.ne.s32.totalorder %s1162_s27, 0 }
 0x2de   : > { %p1173_p12 = scmp.ge.s32.totalorder %s846_s17, 2  ;;  %s435_s11 = scalar_lea.sflag [#allocation4], %s434_s1 }
 0x2e0   : > { %p607_p4 = pnand %p1173_p12, %p1172_p9 }
 0x2e2   : > { %821 = dma.done.wait (!%p607_p4), %s435_s11, 64  }
 0x2e3   : > { %823 = vsyncadd (!%p607_p4), %s435_s11, 4294967232  ;;  %s22_s17 = sadd.s32 1, %s846_s17   ;;  %s1174_s6 = sld [smem:[#allocation12_spill]] }
 0x2e4   : > { %p19_p10 = scmp.ge.s32.totalorder %s22_s17, 4   ;;  %s1175_s14 = sld [smem:[#allocation14_spill]] }
 0x2e5   : > { %s1176_s25 = sld [smem:[#allocation13_spill]]  ;;  %s1177_s12 = smov %s830_s13 }
 0x2e6   : > { %s1179_s15 = smov %s842_s16  ;;  %21 = sbr.rel (!%p19_p10) target bundleno = 10 (0xa), region = 101 }
 0x2e9   : > { %s1178_s13 = smov %s1174_s6 }
 0x2eb   : > { %s1180_s16 = smov %s1176_s25 }
 0x2ed   :  { %440 = vsyncpa [#allocation3], 1 }
 0x2ee   :  { %442 = vsyncpa [#allocation3 + $0x1], 1 }
 0x2ef   :  { %443 = vsyncpa [#allocation6], 1 }
 0x2f0   :  { %445 = vsyncpa [#allocation6 + $0x1], 1 }
 0x2f1   :  { %446 = vsyncpa [#allocation4], 1 }
 0x2f2   :  { %448 = vsyncpa [#allocation4 + $0x1], 1 }

// kernel: whisper_forward.56
= control target key start
LH: loop header
LB: loop body
LE: loop exit
PB: predicated region body
PF: predicated region fallthrough
CT: control target
= control target key end

     0   :  { %8 = vsyncpa [#allocation3], 0  ;;  %s845_s0 = inlined_call_operand.hbm [shape: bf16[16,32], index: 0, kind: input, shape index: {}]   ;;  %s846_s1 = inlined_call_operand.hbm [shape: f32[1,32], index: 1, kind: input, shape index: {}]   ;;  %s847_s2 = inlined_call_operand.hbm [shape: f32[1,32], index: 2, kind: input, shape index: {}]   ;;  %s848_s3 = inlined_call_operand.hbm [shape: bf16[16,32], index: 3, kind: output, shape index: {}]  }
   0x1   :  { %10 = vsyncpa [#allocation3 + $0x1], 0 }
   0x2   :  { %11 = vsyncpa [#allocation6], 0 }
   0x3   :  { %12 = vsyncpa [#allocation4], 0 }
   0x4   :  { %14 = vsyncpa [#allocation4 + $0x1], 0  ;;  %s619_s12 = smov 0   ;;  %s621_s13 = smov 0  }
   0x5   :  { %s623_s14 = smov 0   ;;  %s625_s15 = smov 0  }
   0x6 LB: > { %s640_s16 = sadd.s32 4294967295, %s593_s15   ;;  %s350_s17 = sadd.s32 4294967294, %s593_s15   ;;  %s593_s15 = sphi %s625_s15, %s868_s15   ;;  %s589_s14 = sphi %s623_s14, %s867_s14   ;;  %s585_s13 = sphi %s621_s13, %s866_s13   ;;  %s581_s12 = sphi %s619_s12, %s865_s12  }
   0x7   : > { %p40_p0 = scmp.ne.s32.totalorder %s585_s13, %s581_s12  ;;  %p849_p1 = scmp.eq.s32.totalorder %s640_s16, 0 }
   0x8   : > { %p112_p3 = scmp.eq.s32.totalorder %s350_s17, 1  ;;  %p351_p5 = scmp.ge.s32.totalorder %s593_s15, 1 }
   0x9   : > { %p649_p4 = por %p849_p1, %p40_p0  ;;  %p119_p7 = scmp.lt.s32.totalorder %s593_s15, 3 }
   0xa   : > { %p654_p6 = por %p112_p3, %p40_p0  ;;  %s595_s21 = smov [#allocation5]  }
   0xb   : > { %s852_s18 = scalar_select %p649_p4, 1, 0 }
   0xc   : > { %s853_s19 = scalar_select %p654_p6, 1, 0 }
   0xd   : > { %p659_p8 = pnand %p351_p5, %p119_p7  ;;  %s132_s22 = sshll.u32 %s595_s21, 4  ;;  %s133_s22 = int_to_ptr.vmem [resolvable:$true] %s132_s22 }
   0xe   : > { %s596_s23 = smov [#allocation7]   ;;  %s675_s26 = sadd.s32 1, %s593_s15  }
   0xf   : > { %s854_s20 = scalar_select %p659_p8, 1, 0 }
  0x10   : > { %p380_p10 = pneg %p659_p8  ;;  %s143_s24 = sshll.u32 %s596_s23, 4  ;;  %s672_s24 = int_to_ptr.vmem [resolvable:$true] %s143_s24 }
  0x11   : > { %s24_s27 = ssub.s32 %s593_s15, %s675_s26  ;;  %s437_s30 = scalar_lea.hbm %s846_s1, 16 }
  0x12   : > { %p668_p11 = pnand %p380_p10, %p849_p1  ;;  %p438_p12 = scmp.ne.s32.totalorder %s846_s1, %s437_s30 }
  0x13   : > { %p444_p5 = scmp.lt.u32.totalorder %s437_s30, %s846_s1 }
  0x14   : > { %p439_p13 = pneg %p668_p11 }
  0x16   : > { %p440_p0 = pnand %p439_p13, %p438_p12 }
  0x18   : > { %p441_p3 = pneg %p440_p0 }
  0x1a   : > { %p446_p7 = pnand %p444_p5, %p441_p3 }
  0x1c   : > { %449 = shalt.err (!%p446_p7)
}
  0x1d   : > { %s450_s8 = scalar_lea.vmem %s133_s22, 16  ;;  %s457_s9 = scalar_lea.vmem %s133_s22, 32 }
  0x1e   : > { %p451_p10 = scmp.ne.s32.totalorder %s133_s22, %s450_s8  ;;  %p458_p2 = scmp.lt.s32.totalorder %s133_s22, %s133_s22 }
  0x1f   : > { %p459_p6 = scmp.lt.s32.totalorder %s457_s9, %s450_s8 }
  0x20   : > { %p453_p9 = pnand %p451_p10, %p439_p13 }
  0x21   : > { %p460_p4 = por %p459_p6, %p458_p2 }
  0x22   : > { %p454_p1 = pneg %p453_p9 }
  0x24   : > { %p461_p8 = pnand %p460_p4, %p454_p1 }
  0x26   : > { %464 = shalt.err (!%p461_p8)
}
  0x27   : > { %383 = dma.hbm_to_vmem [thread:$0]  (!%p668_p11), %s846_s1, 16, %s133_s22, [#allocation6]  }
  0x28   : > { %s465_s23 = scalar_lea.hbm %s847_s2, 16 }
  0x29   : > { %p466_p9 = scmp.ne.s32.totalorder %s847_s2, %s465_s23  ;;  %p472_p4 = scmp.lt.u32.totalorder %s465_s23, %s847_s2 }
  0x2b   : > { %p468_p2 = pnand %p466_p9, %p439_p13 }
  0x2d   : > { %p469_p1 = pneg %p468_p2 }
  0x2f   : > { %p474_p6 = pnand %p472_p4, %p469_p1 }
  0x31   : > { %477 = shalt.err (!%p474_p6)
}
  0x32   : > { %s478_s22 = scalar_lea.vmem %s672_s24, 16  ;;  %s485_s5 = scalar_lea.vmem %s672_s24, 32 }
  0x33   : > { %p479_p8 = scmp.ne.s32.totalorder %s672_s24, %s478_s22  ;;  %p486_p3 = scmp.lt.s32.totalorder %s672_s24, %s672_s24 }
  0x34   : > { %p487_p5 = scmp.lt.s32.totalorder %s485_s5, %s478_s22 }
  0x35   : > { %p481_p12 = pnand %p479_p8, %p439_p13 }
  0x36   : > { %p488_p7 = por %p487_p5, %p486_p3 }
  0x37   : > { %p482_p0 = pneg %p481_p12 }
  0x39   : > { %p489_p10 = pnand %p488_p7, %p482_p0 }
  0x3b   : > { %492 = shalt.err (!%p489_p10)
}
  0x3c   : > { %386 = dma.hbm_to_vmem [thread:$0]  (!%p668_p11), %s847_s2, 16, %s672_s24, [#allocation6]  }
  0x3d   : > { %p25_p13 = scmp.eq.s32.totalorder %s24_s27, 0  ;;  %s27_s8 = sadd.s32 1, %s589_s14 }
  0x3e   : > { %p34_p9 = scmp.ne.s32.totalorder %s589_s14, %s585_s13  ;;  %p35_p2 = scmp.eq.s32.totalorder %s593_s15, 0 }
  0x3f   : > { %s735_s25 = scalar_select %p25_p13, %s589_s14, %s27_s8  }
  0x40   : > { %p36_p1 = por %p35_p2, %p34_p9  ;;  %p856_p4 = scmp.eq.s32.totalorder %s640_s16, 1 }
  0x41   : > { %p397_p8 = scmp.lt.s32.totalorder %s593_s15, 2  ;;  %s154_s10 = sand.u32 1, %s589_s14  }
  0x42   : > { %p739_p6 = por %p856_p4, %p34_p9  ;;  %s355_s11 = sshll.u32 %s154_s10, 2 }
  0x43   : > { %s356_s17 = sshll.u32 %s593_s15, 6  ;;  %s158_s27 = scalar_lea.vmem [#allocation2], %s355_s11 }
  0x44   : > { %s749_s24 = scalar_lea.hbm %s845_s0, %s356_s17  ;;  %s165_s28 = sshll.u32 %s158_s27, 4  ;;  %s751_s28 = int_to_ptr.vmem [resolvable:$true] %s165_s28 }
  0x45   : > { %p753_p11 = pnand %p397_p8, %p36_p1  ;;  %s155_s30 = scalar_lea.sflag [#allocation3], %s154_s10 }
  0x46   : > { %s493_s4 = scalar_lea.hbm %s749_s24, 64  ;;  %s498_s6 = scalar_lea.hbm %s845_s0, 128 }
  0x47   : > { %p494_p12 = scmp.ne.s32.totalorder %s749_s24, %s493_s4  ;;  %p495_p0 = pneg %p753_p11 }
  0x48   : > { %p499_p7 = scmp.lt.u32.totalorder %s749_s24, %s845_s0  ;;  %p500_p10 = scmp.lt.u32.totalorder %s498_s6, %s493_s4 }
  0x49   : > { %p496_p3 = pnand %p495_p0, %p494_p12  ;;  %p502_p9 = scmp.lt.u32.totalorder %s493_s4, %s749_s24 }
  0x4a   : > { %p501_p13 = por %p500_p10, %p499_p7 }
  0x4b   : > { %p497_p5 = pneg %p496_p3 }
  0x4c   : > { %p503_p2 = por %p502_p9, %p501_p13 }
  0x4e   : > { %p504_p1 = pnand %p503_p2, %p497_p5 }
  0x50   : > { %507 = shalt.err (!%p504_p1)
}
  0x51   : > { %s508_s10 = scalar_lea.vmem %s751_s28, 64  ;;  %s597_s11 = smov [#allocation2]  }
  0x52   : > { %p509_p4 = scmp.ne.s32.totalorder %s751_s28, %s508_s10  ;;  %s513_s17 = sshll.u32 %s597_s11, 4  ;;  %s514_s17 = int_to_ptr.vmem [resolvable:$false] %s513_s17 }
  0x53   : > { %s515_s21 = scalar_lea.vmem %s514_s17, 128  ;;  %p516_p3 = scmp.lt.s32.totalorder %s751_s28, %s514_s17 }
  0x54   : > { %p511_p8 = pnand %p509_p4, %p495_p0  ;;  %p517_p7 = scmp.lt.s32.totalorder %s515_s21, %s508_s10 }
  0x56   : > { %p512_p12 = pneg %p511_p8  ;;  %p518_p10 = por %p517_p7, %p516_p3 }
  0x58   : > { %p519_p13 = pnand %p518_p10, %p512_p12 }
  0x5a   : > { %522 = shalt.err (!%p519_p13)
}
  0x5b   : > { %390 = dma.hbm_to_vmem [thread:$0]  (!%p753_p11), %s749_s24, 64, %s751_s28, %s155_s30  }
  0x5c   : > { %p859_p5 = scmp.ne.s32.totalorder %s854_s20, 0 }
  0x5d   : > { %s785_s23 = sand.u32 (!%p859_p5), 1, %s585_s13   ;;  %p860_p0 = scmp.ne.s32.totalorder (!%p859_p5), %s852_s18, 0 }
  0x5e   : > { %174 = sbr.rel (%p859_p5) target bundleno = 437 (0x1b5), region = 32  ;;  %s358_s27 = sshll.u32 (!%p859_p5), %s785_s23, 2 }
  0x5f   : > { %s177_s4 = scalar_lea.sflag (!%p859_p5), [#allocation3], %s785_s23  ;;  %s180_s22 = scalar_lea.vmem (!%p859_p5), [#allocation2], %s358_s27 }
  0x65   : > { %568 = dma.done.wait (%p860_p0), %s177_s4, 64  }
  0x66   : > { %570 = vsyncadd (%p860_p0), %s177_s4, 4294967232  ;;  %p861_p9 = scmp.eq.s32.totalorder %s640_s16, 0 }
  0x68   : > { %572 = dma.done.wait (%p861_p9), [#allocation6], 32   ;;  %p862_p11 = pmov %p861_p9 }
  0x69   : > { %v211_v0 = vld [vmem:[%s180_s22] sm:$0xf]  ;;  %vm215_vm0 = vcmask 261120   ;;  %v362_v12 = vld [vmem:[#allocation5] ss:$0 sm:$0xff]  ;;  %s365_s18 = sshll.u32 %s640_s16, 6 }
  0x6a   : > { %574 = vsyncadd (%p862_p11), [#allocation6], 4294967264  ;;  %v212_v1 = vunpack.c.l.bf16 %v211_v0  ;;  %v363_v14 = vld [vmem:[#allocation7] ss:$0 sm:$0xff]  ;;  %s210_s20 = scalar_lea.vmem [#allocation8], %s358_s27  ;;  %vm245_vm1 = vcmask 257024   ;;  %s801_s30 = scalar_lea.hbm %s848_s3, %s365_s18 }
  0x6b   : > { %s261_s24 = sshll.u32 %s210_s20, 4  ;;  %s248_s5 = scalar_lea.sflag [#allocation4], %s785_s23  ;;  %s803_s24 = int_to_ptr.vmem [resolvable:$true] %s261_s24 }
  0x6c   : > { %v216_v2 = vsel %vm215_vm0, %v212_v1, 0.0  ;;  %s523_s6 = scalar_lea.vmem %s803_s24, 64  ;;  %s598_s16 = smov [#allocation8]  }
  0x6d   : > { %217 = vadd.xlane.f32.xlu0 %v216_v2  ;;  %p524_p2 = scmp.ne.s32.totalorder %s803_s24, %s523_s6  ;;  %s527_s7 = sshll.u32 %s598_s16, 4  ;;  %s528_s7 = int_to_ptr.vmem [resolvable:$false] %s527_s7 }
  0x6e   : > { %s529_s8 = scalar_lea.vmem %s528_s7, 128  ;;  %p530_p8 = scmp.lt.s32.totalorder %s803_s24, %s528_s7 }
  0x6f   : > { %p525_p1 = pnand %p524_p2, %p739_p6  ;;  %p531_p12 = scmp.lt.s32.totalorder %s529_s8, %s523_s6 }
  0x71   : > { %p526_p4 = pneg %p525_p1  ;;  %p532_p3 = por %p531_p12, %p530_p8 }
  0x73   : > { %p533_p7 = pnand %p532_p3, %p526_p4 }
  0xfa   : > { %v218_v3 = vpop.xlane.xlu0 %217 }
  0xfb   : > { %v220_v4 = vmul.f32 0.03125, %v218_v3 }
  0xfd   : > { %v221_v5 = vsub.f32 %v212_v1, %v220_v4 }
  0xff   : > { %v222_v6 = vmul.f32 %v221_v5, %v221_v5 }
 0x101   : > { %v223_v7 = vsel %vm215_vm0, %v222_v6, 0.0 }
 0x102   : > { %224 = vadd.xlane.f32.xlu0 %v223_v7 }
 0x18f   : > { %v225_v8 = vpop.xlane.xlu0 %224 }
 0x190   : > { %v226_v9 = vmul.f32 0.03125, %v225_v8 }
 0x192   : > { %v227_v10 = vadd.f32 1e-05, %v226_v9 }
 0x194   : > { %435 = vrsqrt.f32 %v227_v10 }
 0x19e   : > { %v436_v11 = vpop.eup %435 }
 0x19f   : > { %v229_v13 = vmul.f32 %v436_v11, %v221_v5 }
 0x1a1   : > { %v236_v15 = vmul.f32 %v362_v12, %v229_v13 }
 0x1a3   : > { %v243_v16 = vadd.f32 %v363_v14, %v236_v15 }
 0x1a5   : > { %v244_v17 = vpack.c.bf16 %v243_v16, %v243_v16 }
 0x1a7   : > { %246 = vst.msk [vmem:[%s210_s20] sm:$0xf] %vm245_vm1, %v244_v17 }
 0x1a8   : > { %536 = shalt.err (!%p533_p7)
}
 0x1a9   : > { %s537_s10 = scalar_lea.hbm %s801_s30, 64  ;;  %s541_s21 = scalar_lea.hbm %s848_s3, 128 }
 0x1aa   : > { %p538_p10 = scmp.ne.s32.totalorder %s801_s30, %s537_s10  ;;  %p542_p0 = scmp.lt.u32.totalorder %s801_s30, %s848_s3 }
 0x1ab   : > { %p543_p9 = scmp.lt.u32.totalorder %s541_s21, %s537_s10  ;;  %p545_p2 = scmp.lt.u32.totalorder %s537_s10, %s801_s30 }
 0x1ac   : > { %p539_p13 = pnand %p538_p10, %p739_p6 }
 0x1ad   : > { %p544_p11 = por %p543_p9, %p542_p0 }
 0x1ae   : > { %p540_p5 = pneg %p539_p13 }
 0x1af   : > { %p546_p1 = por %p545_p2, %p544_p11 }
 0x1b1   : > { %p547_p4 = pnand %p546_p1, %p540_p5 }
 0x1b3   : > { %550 = shalt.err (!%p547_p4)
}
 0x1b4   : > { %378 = dma.vmem_to_hbm [thread:$0]  (%p739_p6), %s803_s24, 64, %s801_s30, %s248_s5  }
 0x1b5 PF: > { %s273_s4 = sand.u32 1, %s581_s12   ;;  %p863_p8 = scmp.ne.s32.totalorder %s853_s19, 0 }
 0x1b6   : > { %p864_p12 = scmp.ge.s32.totalorder %s593_s15, 2  ;;  %s274_s22 = scalar_lea.sflag [#allocation4], %s273_s4 }
 0x1b8   : > { %p392_p3 = pnand %p864_p12, %p863_p8 }
 0x1ba   : > { %576 = dma.done.wait (!%p392_p3), %s274_s22, 64  }
 0x1bb   : > { %578 = vsyncadd (!%p392_p3), %s274_s22, 4294967232  ;;  %p17_p7 = scmp.ge.s32.totalorder %s675_s26, 4   ;;  %s865_s12 = smov %s585_s13 }
 0x1bc   : > { %s866_s13 = smov %s589_s14  ;;  %s867_s14 = smov %s735_s25 }
 0x1bd   : > { %s868_s15 = smov %s675_s26  ;;  %19 = sbr.rel (!%p17_p7) target bundleno = 6 (0x6), region = 85 }
 0x1c4   :  { %279 = vsyncpa [#allocation3], 1 }
 0x1c5   :  { %281 = vsyncpa [#allocation3 + $0x1], 1 }
 0x1c6   :  { %282 = vsyncpa [#allocation6], 1 }
 0x1c7   :  { %283 = vsyncpa [#allocation4], 1 }
 0x1c8   :  { %285 = vsyncpa [#allocation4 + $0x1], 1 }

// kernel: whisper_forward.47
= control target key start
LH: loop header
LB: loop body
LE: loop exit
PB: predicated region body
PF: predicated region fallthrough
CT: control target
= control target key end

     0   :  { %s1671_s0 = inlined_call_operand.hbm [shape: bf16[16,32], index: 0, kind: input, shape index: {}]   ;;  %s1672_s1 = inlined_call_operand.hbm [shape: bf16[32,64], index: 1, kind: input, shape index: {}]   ;;  %s1673_s2 = inlined_call_operand.hbm [shape: f32[1,64], index: 2, kind: input, shape index: {}]   ;;  %s1674_s3 = inlined_call_operand.hbm [shape: bf16[64,32], index: 3, kind: input, shape index: {}]   ;;  %s1675_s4 = inlined_call_operand.hbm [shape: f32[1,32], index: 4, kind: input, shape index: {}]   ;;  %s1676_s5 = inlined_call_operand.hbm [shape: f32[1,32], index: 5, kind: input, shape index: {}]   ;;  %s1677_s6 = inlined_call_operand.hbm [shape: f32[1,32], index: 6, kind: input, shape index: {}]   ;;  %s1678_s7 = inlined_call_operand.hbm [shape: bf16[16,32], index: 7, kind: output, shape index: {}]  }
   0x1   :  { %1685 = sst [smem:[#allocation21_spill]] %s1672_s1 }
   0x2   :  { %1686 = sst [smem:[#allocation22_spill]] %s1678_s7 }
   0x3   :  { %12 = vsyncpa [#allocation4], 0 }
   0x4   :  { %14 = vsyncpa [#allocation4 + $0x1], 0 }
   0x5   :  { %15 = vsyncpa [#allocation7], 0 }
   0x6   :  { %16 = vsyncpa [#allocation10], 0 }
   0x7   :  { %17 = vsyncpa [#allocation13], 0 }
   0x8   :  { %18 = vsyncpa [#allocation5], 0 }
   0x9   :  { %20 = vsyncpa [#allocation5 + $0x1], 0  ;;  %s1323_s24 = smov 0   ;;  %s1325_s25 = smov 0  }
   0xa   :  { %s1327_s26 = smov 0   ;;  %s1329_s27 = smov 0  }
   0xb   :  { %s1331_s28 = smov 0   ;;  %s1333_s29 = smov 0  }
   0xc LB: > { %s1679_s30 = sadd.s32 4294967295, %s1269_s29   ;;  %p777_p0 = scmp.ge.s32.totalorder %s1269_s29, 1  ;;  %s1269_s29 = sphi %s1333_s29, %s26_s29   ;;  %s1265_s28 = sphi %s1331_s28, %s1709_s28   ;;  %s1261_s27 = sphi %s1329_s27, %s1708_s27   ;;  %s1257_s26 = sphi %s1327_s26, %s1707_s26   ;;  %s1253_s25 = sphi %s1325_s25, %s1706_s25   ;;  %s1249_s24 = sphi %s1323_s24, %s1705_s24  }
   0xd   : > { %p1357_p1 = scmp.eq.s32.totalorder %s1679_s30, 0  ;;  %p236_p2 = scmp.lt.s32.totalorder %s1269_s29, 3 }
   0xe   : > { %s1271_s10 = smov [#allocation6]   ;;  %s1272_s13 = smov [#allocation9]  }
   0xf   : > { %s1687_s8 = scalar_select %p1357_p1, 1, 0 }
  0x10   : > { %p1362_p3 = pnand %p777_p0, %p236_p2  ;;  %s250_s11 = sshll.u32 %s1271_s10, 4  ;;  %s1366_s11 = int_to_ptr.vmem [resolvable:$true] %s250_s11 }
  0x11   : > { %s279_s14 = sshll.u32 %s1272_s13, 4  ;;  %s1273_s15 = smov [#allocation12]   ;;  %s1377_s14 = int_to_ptr.vmem [resolvable:$true] %s279_s14 }
  0x12   : > { %s1688_s9 = scalar_select %p1362_p3, 1, 0 }
  0x13   : > { %p868_p4 = pneg %p1362_p3  ;;  %s1379_s16 = sshll.u32 %s1273_s15, 4  ;;  %s305_s16 = int_to_ptr.vmem [resolvable:$true] %s1379_s16 }
  0x14   : > { %s1690_s1 = sld [smem:[#allocation21_spill]] }
  0x15   : > { %p1373_p6 = pnand %p868_p4, %p1357_p1 }
  0x17   : > { %p1389_p8 = pneg %p1373_p6 }
  0x1a   : > { %s977_s19 = scalar_lea.hbm %s1690_s1, 256 }
  0x1b   : > { %p978_p7 = scmp.ne.s32.totalorder %s1690_s1, %s977_s19  ;;  %p984_p11 = scmp.lt.u32.totalorder %s977_s19, %s1690_s1 }
  0x1d   : > { %p980_p9 = pnand %p1389_p8, %p978_p7 }
  0x1f   : > { %p981_p10 = pneg %p980_p9 }
  0x21   : > { %p986_p12 = pnand %p984_p11, %p981_p10 }
  0x23   : > { %989 = shalt.err (!%p986_p12)
}
  0x24   : > { %s990_s13 = scalar_lea.vmem %s1366_s11, 256  ;;  %p998_p4 = scmp.lt.s32.totalorder %s1366_s11, %s1366_s11 }
  0x25   : > { %p991_p13 = scmp.ne.s32.totalorder %s1366_s11, %s990_s13  ;;  %p999_p5 = scmp.lt.s32.totalorder %s990_s13, %s990_s13 }
  0x27   : > { %p993_p0 = pnand %p991_p13, %p1389_p8  ;;  %p1000_p7 = por %p999_p5, %p998_p4 }
  0x29   : > { %p994_p2 = pneg %p993_p0 }
  0x2b   : > { %p1001_p9 = pnand %p1000_p7, %p994_p2 }
  0x2d   : > { %1004 = shalt.err (!%p1001_p9)
}
  0x2e   : > { %s1274_s15 = smov 64   ;;  %s1275_s17 = smov 4  }
  0x2f   : > { %871 = dma.hbm_to_vmem [thread:$0]  (!%p1373_p6), %s1690_s1, 256, %s1366_s11, [#allocation7], %s1274_s15, %s1274_s15, %s1275_s17  }
  0x30   : > { %s1005_s23 = scalar_lea.hbm %s1674_s3, 512 }
  0x31   : > { %p1006_p5 = scmp.ne.s32.totalorder %s1674_s3, %s1005_s23  ;;  %p1012_p12 = scmp.lt.u32.totalorder %s1005_s23, %s1674_s3 }
  0x33   : > { %p1008_p10 = pnand %p1006_p5, %p1389_p8 }
  0x35   : > { %p1009_p11 = pneg %p1008_p10 }
  0x37   : > { %p1014_p13 = pnand %p1012_p12, %p1009_p11 }
  0x39   : > { %1017 = shalt.err (!%p1014_p13)
}
  0x3a   : > { %s1018_s11 = scalar_lea.vmem %s1377_s14, 512  ;;  %p1026_p7 = scmp.lt.s32.totalorder %s1377_s14, %s1377_s14 }
  0x3b   : > { %p1019_p0 = scmp.ne.s32.totalorder %s1377_s14, %s1018_s11  ;;  %p1027_p9 = scmp.lt.s32.totalorder %s1018_s11, %s1018_s11 }
  0x3d   : > { %p1021_p2 = pnand %p1019_p0, %p1389_p8  ;;  %p1028_p5 = por %p1027_p9, %p1026_p7 }
  0x3f   : > { %p1022_p4 = pneg %p1021_p2 }
  0x41   : > { %p1029_p10 = pnand %p1028_p5, %p1022_p4 }
  0x43   : > { %1032 = shalt.err (!%p1029_p10)
}
  0x44   : > { %877 = dma.hbm_to_vmem [thread:$0]  (!%p1373_p6), %s1674_s3, 512, %s1377_s14, [#allocation10], %s1274_s15, %s1274_s15, %s1275_s17  }
  0x45   : > { %s1033_s20 = scalar_lea.hbm %s1676_s5, 16 }
  0x46   : > { %p1034_p11 = scmp.ne.s32.totalorder %s1676_s5, %s1033_s20  ;;  %p1040_p0 = scmp.lt.u32.totalorder %s1033_s20, %s1676_s5 }
  0x48   : > { %p1036_p12 = pnand %p1034_p11, %p1389_p8 }
  0x4a   : > { %p1037_p13 = pneg %p1036_p12 }
  0x4c   : > { %p1042_p2 = pnand %p1040_p0, %p1037_p13 }
  0x4e   : > { %1045 = shalt.err (!%p1042_p2)
}
  0x4f   : > { %s1046_s11 = scalar_lea.vmem %s305_s16, 16  ;;  %s1053_s14 = scalar_lea.vmem %s305_s16, 32 }
  0x50   : > { %p1047_p4 = scmp.ne.s32.totalorder %s305_s16, %s1046_s11  ;;  %p1054_p5 = scmp.lt.s32.totalorder %s305_s16, %s305_s16 }
  0x51   : > { %p1055_p10 = scmp.lt.s32.totalorder %s1053_s14, %s1046_s11 }
  0x52   : > { %p1049_p7 = pnand %p1047_p4, %p1389_p8 }
  0x53   : > { %p1056_p3 = por %p1055_p10, %p1054_p5 }
  0x54   : > { %p1050_p9 = pneg %p1049_p7 }
  0x56   : > { %p1057_p1 = pnand %p1056_p3, %p1050_p9 }
  0x58   : > { %1060 = shalt.err (!%p1057_p1)
}
  0x59   : > { %883 = dma.hbm_to_vmem [thread:$0]  (!%p1373_p6), %s1676_s5, 16, %s305_s16, [#allocation13]  }
  0x5a   : > { %s1276_s7 = smov [#allocation8]   ;;  %s1277_s18 = smov [#allocation11]  }
  0x5b   : > { %s266_s30 = sshll.u32 %s1276_s7, 4  ;;  %s293_s19 = sshll.u32 %s1277_s18, 4  ;;  %s267_s30 = int_to_ptr.vmem [resolvable:$true] %s266_s30  ;;  %s294_s19 = int_to_ptr.vmem [resolvable:$true] %s293_s19 }
  0x5c   : > { %s1061_s23 = scalar_lea.hbm %s1673_s2, 16 }
  0x5d   : > { %p1062_p1 = scmp.ne.s32.totalorder %s1673_s2, %s1061_s23  ;;  %p1068_p12 = scmp.lt.u32.totalorder %s1061_s23, %s1673_s2 }
  0x5f   : > { %p1064_p3 = pnand %p1062_p1, %p1389_p8 }
  0x61   : > { %p1065_p11 = pneg %p1064_p3 }
  0x63   : > { %p1070_p13 = pnand %p1068_p12, %p1065_p11 }
  0x65   : > { %1073 = shalt.err (!%p1070_p13)
}
  0x66   : > { %s1074_s16 = scalar_lea.vmem %s267_s30, 16  ;;  %s1081_s15 = scalar_lea.vmem %s267_s30, 32 }
  0x67   : > { %p1075_p0 = scmp.ne.s32.totalorder %s267_s30, %s1074_s16  ;;  %p1082_p7 = scmp.lt.s32.totalorder %s267_s30, %s267_s30 }
  0x68   : > { %p1083_p9 = scmp.lt.s32.totalorder %s1081_s15, %s1074_s16 }
  0x69   : > { %p1077_p2 = pnand %p1075_p0, %p1389_p8 }
  0x6a   : > { %p1084_p5 = por %p1083_p9, %p1082_p7 }
  0x6b   : > { %p1078_p4 = pneg %p1077_p2 }
  0x6d   : > { %p1085_p10 = pnand %p1084_p5, %p1078_p4 }
  0x6f   : > { %1088 = shalt.err (!%p1085_p10)
}
  0x70   : > { %874 = dma.hbm_to_vmem [thread:$0]  (!%p1373_p6), %s1673_s2, 16, %s267_s30, [#allocation7]  }
  0x71   : > { %s1089_s21 = scalar_lea.hbm %s1675_s4, 16 }
  0x72   : > { %p1090_p1 = scmp.ne.s32.totalorder %s1675_s4, %s1089_s21  ;;  %p1096_p12 = scmp.lt.u32.totalorder %s1089_s21, %s1675_s4 }
  0x74   : > { %p1092_p3 = pnand %p1090_p1, %p1389_p8 }
  0x76   : > { %p1093_p11 = pneg %p1092_p3 }
  0x78   : > { %p1098_p13 = pnand %p1096_p12, %p1093_p11 }
  0x7a   : > { %1101 = shalt.err (!%p1098_p13)
}
  0x7b   : > { %s1102_s14 = scalar_lea.vmem %s294_s19, 16  ;;  %s1109_s30 = scalar_lea.vmem %s294_s19, 32 }
  0x7c   : > { %p1103_p0 = scmp.ne.s32.totalorder %s294_s19, %s1102_s14  ;;  %p1110_p7 = scmp.lt.s32.totalorder %s294_s19, %s294_s19 }
  0x7d   : > { %p1111_p9 = scmp.lt.s32.totalorder %s1109_s30, %s1102_s14 }
  0x7e   : > { %p1105_p2 = pnand %p1103_p0, %p1389_p8 }
  0x7f   : > { %p1112_p5 = por %p1111_p9, %p1110_p7 }
  0x80   : > { %p1106_p4 = pneg %p1105_p2 }
  0x82   : > { %p1113_p10 = pnand %p1112_p5, %p1106_p4 }
  0x84   : > { %1116 = shalt.err (!%p1113_p10)
}
  0x85   : > { %880 = dma.hbm_to_vmem [thread:$0]  (!%p1373_p6), %s1675_s4, 16, %s294_s19, [#allocation10]  }
  0x86   : > { %s1278_s17 = smov [#allocation14]   ;;  %s1117_s21 = scalar_lea.hbm %s1677_s6, 16 }
  0x87   : > { %s315_s7 = sshll.u32 %s1278_s17, 4  ;;  %p1118_p1 = scmp.ne.s32.totalorder %s1677_s6, %s1117_s21  ;;  %s316_s7 = int_to_ptr.vmem [resolvable:$true] %s315_s7 }
  0x88   : > { %p1124_p12 = scmp.lt.u32.totalorder %s1117_s21, %s1677_s6 }
  0x89   : > { %p1120_p3 = pnand %p1118_p1, %p1389_p8 }
  0x8b   : > { %p1121_p11 = pneg %p1120_p3 }
  0x8d   : > { %p1126_p13 = pnand %p1124_p12, %p1121_p11 }
  0x8f   : > { %1129 = shalt.err (!%p1126_p13)
}
  0x90   : > { %s1130_s19 = scalar_lea.vmem %s316_s7, 16  ;;  %s1137_s14 = scalar_lea.vmem %s316_s7, 32 }
  0x91   : > { %p1131_p0 = scmp.ne.s32.totalorder %s316_s7, %s1130_s19  ;;  %p1138_p7 = scmp.lt.s32.totalorder %s316_s7, %s316_s7 }
  0x92   : > { %p1139_p9 = scmp.lt.s32.totalorder %s1137_s14, %s1130_s19 }
  0x93   : > { %p1133_p2 = pnand %p1131_p0, %p1389_p8 }
  0x94   : > { %p1140_p5 = por %p1139_p9, %p1138_p7 }
  0x95   : > { %p1134_p4 = pneg %p1133_p2 }
  0x97   : > { %p1141_p10 = pnand %p1140_p5, %p1134_p4 }
  0x99   : > { %1144 = shalt.err (!%p1141_p10)
}
  0x9a   : > { %886 = dma.hbm_to_vmem [thread:$0]  (!%p1373_p6), %s1677_s6, 16, %s316_s7, [#allocation13]  }
  0x9b   : > { %s776_s22 = sadd.s32 4294967294, %s1269_s29   ;;  %s38_s15 = sadd.s32 1, %s1265_s28 }
  0x9c   : > { %p40_p8 = scmp.ge.s32.totalorder %s38_s15, 2  ;;  %s45_s12 = sadd.s32 1, %s1257_s26 }
  0x9d   : > { %p52_p1 = scmp.ne.s32.totalorder %s1257_s26, %s1253_s25  ;;  %p53_p3 = scmp.eq.s32.totalorder %s1269_s29, 0 }
  0x9e   : > { %s1711_s15 = smov (%p40_p8, %s38_s15), 0  ;;  %p58_p12 = scmp.ne.s32.totalorder %s1253_s25, %s1249_s24 }
  0x9f   : > { %p1514_p11 = por %p53_p3, %p52_p1  ;;  %s42_s7 = ssub.s32 %s1265_s28, %s1711_s15 }
  0xa0   : > { %s1693_s18 = sadd.s32 4294967295, %s1269_s29   ;;  %p43_p13 = scmp.eq.s32.totalorder %s42_s7, 0 }
  0xa1   : > { %p223_p6 = scmp.eq.s32.totalorder %s1693_s18, 1  ;;  %p1694_p0 = scmp.ne.s32.totalorder %s1687_s8, 0 }
  0xa2   : > { %p229_p7 = scmp.eq.s32.totalorder %s776_s22, 1  ;;  %p901_p5 = scmp.lt.s32.totalorder %s1269_s29, 2 }
  0xa3   : > { %p1526_p2 = por %p1694_p0, %p58_p12  ;;  %p1530_p4 = por %p223_p6, %p52_p1 }
  0xa4   : > { %s1535_s23 = scalar_select %p43_p13, %s1257_s26, %s45_s12  }
  0xa5   : > { %s1696_s21 = scalar_select %p1530_p4, 1, 0 }
  0xa6   : > { %p1537_p9 = por %p229_p7, %p58_p12  ;;  %s326_s13 = sand.u32 1, %s1257_s26  }
  0xa7   : > { %s786_s11 = sshll.u32 %s1265_s28, 6  ;;  %s785_s19 = sshll.u32 %s326_s13, 2 }
  0xa8   : > { %s1697_s10 = scalar_select %p1537_p9, 1, 0 }
  0xa9   : > { %s1547_s16 = scalar_lea.hbm %s1671_s0, %s786_s11  ;;  %s330_s22 = scalar_lea.vmem [#allocation3], %s785_s19 }
  0xaa   : > { %s337_s12 = sshll.u32 %s330_s22, 4  ;;  %p1551_p10 = pnand %p901_p5, %p1514_p11  ;;  %s1555_s12 = int_to_ptr.vmem [resolvable:$true] %s337_s12 }
  0xab   : > { %s327_s18 = scalar_lea.sflag [#allocation4], %s326_s13  ;;  %s1145_s1 = scalar_lea.hbm %s1547_s16, 64 }
  0xac   : > { %p1146_p8 = scmp.ne.s32.totalorder %s1547_s16, %s1145_s1  ;;  %p1147_p1 = pneg %p1551_p10 }
  0xad   : > { %s1150_s17 = scalar_lea.hbm %s1671_s0, 128  ;;  %p1151_p11 = scmp.lt.u32.totalorder %s1547_s16, %s1671_s0 }
  0xae   : > { %p1148_p3 = pnand %p1147_p1, %p1146_p8  ;;  %p1152_p6 = scmp.lt.u32.totalorder %s1150_s17, %s1145_s1 }
  0xaf   : > { %p1154_p0 = scmp.lt.u32.totalorder %s1145_s1, %s1547_s16 }
  0xb0   : > { %p1149_p12 = pneg %p1148_p3  ;;  %p1153_p13 = por %p1152_p6, %p1151_p11 }
  0xb2   : > { %p1155_p7 = por %p1154_p0, %p1153_p13 }
  0xb4   : > { %p1156_p5 = pnand %p1155_p7, %p1149_p12 }
  0xb6   : > { %1159 = shalt.err (!%p1156_p5)
}
  0xb7   : > { %s1160_s13 = scalar_lea.vmem %s1555_s12, 64  ;;  %s1279_s22 = smov [#allocation3]  }
  0xb8   : > { %p1161_p8 = scmp.ne.s32.totalorder %s1555_s12, %s1160_s13  ;;  %s1165_s11 = sshll.u32 %s1279_s22, 4  ;;  %s1166_s11 = int_to_ptr.vmem [resolvable:$false] %s1165_s11 }
  0xb9   : > { %s1167_s19 = scalar_lea.vmem %s1166_s11, 128  ;;  %p1168_p4 = scmp.lt.s32.totalorder %s1555_s12, %s1166_s11 }
  0xba   : > { %p1163_p3 = pnand %p1161_p8, %p1147_p1  ;;  %p1169_p11 = scmp.lt.s32.totalorder %s1167_s19, %s1160_s13 }
  0xbc   : > { %p1164_p9 = pneg %p1163_p3  ;;  %p1170_p6 = por %p1169_p11, %p1168_p4 }
  0xbe   : > { %p1171_p13 = pnand %p1170_p6, %p1164_p9 }
  0xc0   : > { %1174 = shalt.err (!%p1171_p13)
}
  0xc1   : > { %890 = dma.hbm_to_vmem [thread:$0]  (!%p1551_p10), %s1547_s16, 64, %s1555_s12, %s327_s18  }
  0xc2   : > { %p1699_p12 = scmp.ne.s32.totalorder %s1688_s9, 0 }
  0xc3   : > { %s1585_s1 = sand.u32 (!%p1699_p12), 1, %s1253_s25  }
  0xc4   : > { %346 = sbr.rel (%p1699_p12) target bundleno = 1017 (0x3f9), region = 48  ;;  %s788_s17 = sshll.u32 (!%p1699_p12), %s1585_s1, 2 }
  0xc5   : > { %s349_s14 = scalar_lea.sflag (!%p1699_p12), [#allocation4], %s1585_s1  ;;  %s1591_s30 = scalar_lea.vmem (!%p1699_p12), [#allocation3], %s788_s17 }
  0xcb   : > { %1228 = dma.done.wait (%p1526_p2), %s349_s14, 64  }
  0xcc   : > { %1230 = vsyncadd (%p1526_p2), %s349_s14, 4294967232  ;;  %p1700_p4 = scmp.ne.s32.totalorder %s1687_s8, 0 }
  0xce   : > { %1232 = dma.done.wait (%p1700_p4), [#allocation7], 272  }
  0xcf   : > { %1234 = vsyncadd (%p1700_p4), [#allocation7], 4294967024 }
  0xd0   : > { %1236 = dma.done.wait (%p1700_p4), [#allocation10], 528  }
  0xd1   : > { %1238 = vsyncadd (%p1700_p4), [#allocation10], 4294966768 }
  0xd2   : > { %1240 = dma.done.wait (%p1700_p4), [#allocation13], 32  }
  0xd3   : > { %1242 = vsyncadd (%p1700_p4), [#allocation13], 4294967264  ;;  %vm413_vm0 = vcmask 261120   ;;  %v1280_v0 = vmov 0.0   ;;  %vm1281_vm1 = vmmov 0   ;;  %v967_v1 = vld [vmem:[#allocation6] sm:$0xff]  }
  0xd4   : > { %820 = vmatprep.subr.bf16.mxu0 %v1280_v0  ;;  %824 = vmatprep.mubr.msk.bf16.mxu0 %vm1281_vm1, %v1280_v0  ;;  %414 = vst.msk [vmem:[#allocation2] sm:$0xff] %vm413_vm0, %v1280_v0  ;;  %v968_v2 = vld [vmem:[#allocation6 + $0x8] sm:$0xff]   ;;  %v415_v3 = vld [vmem:[%s1591_s30] sm:$0xf]  ;;  %v796_v8 = vld [vmem:[#allocation8] ss:$0 sm:$0xff] }
  0xd5   : > { %828 = vmatprep.subr.bf16.mxu1 %v1280_v0  ;;  %836 = vmatprep.mubr.msk.bf16.mxu1 %vm1281_vm1, %v1280_v0  ;;  %v969_v4 = vld [vmem:[#allocation9] sm:$0xff]   ;;  %v970_v5 = vld [vmem:[#allocation9 + $0x8] sm:$0xff]   ;;  %v971_v6 = vld [vmem:[#allocation9 + $0x10] sm:$0xff]   ;;  %vm526_vm2 = vcmask 523264   ;;  %s809_s8 = sshll.u32 %s1261_s27, 6  ;;  %s406_s9 = scalar_lea.vmem [#allocation15], %s788_s17 }
  0xd6   : > { %821 = vmatpush3.bf16.msra.mxu0 %v967_v1  ;;  %829 = vmatpush3.bf16.msra.mxu1 %v969_v4  ;;  %v972_v7 = vld [vmem:[#allocation9 + $0x18] sm:$0xff]   ;;  %v584_v30 = vld [vmem:[%s1591_s30] sm:$0xf]  ;;  %v805_v31 = vld [vmem:[#allocation11] ss:$0 sm:$0xff]  ;;  %s634_s20 = sshll.u32 %s406_s9, 4  ;;  %s1624_s20 = int_to_ptr.vmem [resolvable:$true] %s634_s20 }
  0xd7   : > { %822 = vmatprep.subr.bf16.mxu0 %v1280_v0  ;;  %830 = vmatprep.subr.bf16.mxu1 %v1280_v0  ;;  %v585_v32 = vunpack.c.l.bf16 %v584_v30  ;;  %v806_v46 = vld [vmem:[#allocation12] ss:$0 sm:$0xff]  ;;  %v807_v48 = vld [vmem:[#allocation14] ss:$0 sm:$0xff]  ;;  %vm618_vm3 = vcmask 257024   ;;  %s1701_s7 = sld [smem:[#allocation22_spill]] }
  0xd8   : > { %s621_s13 = scalar_lea.sflag [#allocation5], %s1585_s1  ;;  %s1175_s22 = scalar_lea.vmem %s1624_s20, 64 }
  0xd9   : > { %p1176_p2 = scmp.ne.s32.totalorder %s1624_s20, %s1175_s22  ;;  %p1702_p9 = scmp.ne.s32.totalorder %s1696_s21, 0 }
  0xda   : > { %823 = vmatpush3.bf16.msra.mxu0 %v968_v2  ;;  %831 = vmatpush3.bf16.msra.mxu1 %v970_v5  ;;  %s1282_s27 = smov [#allocation15]  }
  0xdb   : > { %832 = vmatprep.subr.bf16.mxu1 %v1280_v0  ;;  %v492_v24 = vld [vmem:[#allocation2] sm:$0xff]  ;;  %p1177_p10 = pnand %p1176_p2, %p1702_p9  ;;  %s1179_s11 = sshll.u32 %s1282_s27, 4  ;;  %s1180_s11 = int_to_ptr.vmem [resolvable:$false] %s1179_s11 }
  0xdc   : > { %s1181_s19 = scalar_lea.vmem %s1180_s11, 128  ;;  %p1182_p0 = scmp.lt.s32.totalorder %s1624_s20, %s1180_s11 }
  0xdd   : > { %825 = vmatmul.mubr.msk.bf16.vlgmr.msra.gmra.mrb[0].mxu0 %vm413_vm0, %v415_v3  ;;  %s1622_s18 = scalar_lea.hbm %s1701_s7, %s809_s8  ;;  %p1178_p1 = pneg %p1177_p10 }
  0xde   : > { %833 = vmatpush3.bf16.msra.mxu1 %v971_v6  ;;  %p1183_p7 = scmp.lt.s32.totalorder %s1181_s19, %s1175_s22 }
  0xdf   : > { %834 = vmatprep.subr.bf16.mxu1 %v1280_v0 }
  0xe0   : > { %p1184_p5 = por %p1183_p7, %p1182_p0 }
  0xe2   : > { %835 = vmatpush3.bf16.msra.mxu1 %v972_v7  ;;  %p1185_p8 = pnand %p1184_p5, %p1178_p1 }
 0x1b0   : > { %v477_v9 = vpop.f32.mrb[0].mxu0 }
 0x1b1   : > { %v478_v10 = vadd.f32 %v796_v8, %v477_v9  ;;  %v826_v11 = vpop.f32.mrb[1].mxu0 }
 0x1b2   : > { %v480_v12 = vpop.f32.mrb[2].mxu0 }
 0x1b3   : > { %v484_v13 = vmul.f32 0.044715, %v478_v10  ;;  %v827_v14 = vpop.f32.mrb[3].mxu0  ;;  %v483_v20 = vmul.f32 0.5, %v478_v10 }
 0x1b5   : > { %v485_v15 = vmul.f32 %v484_v13, %v478_v10 }
 0x1b7   : > { %v486_v16 = vmul.f32 %v485_v15, %v478_v10 }
 0x1b9   : > { %v487_v17 = vadd.f32 %v486_v16, %v478_v10 }
 0x1bb   : > { %v488_v18 = vmul.f32 0.7978846, %v487_v17 }
 0x1bd   : > { %973 = vtanh.f32 %v488_v18 }
 0x1c7   : > { %v974_v19 = vpop.eup %973 }
 0x1c8   : > { %v490_v21 = vadd.f32 1.0, %v974_v19 }
 0x1ca   : > { %v491_v22 = vmul.f32 %v490_v21, %v483_v20 }
 0x1cc   : > { %v493_v23 = vpack.c.bf16 %v491_v22, %v491_v22 }
 0x1ce   : > { %837 = vmatmul.mubr.msk.bf16.vlgmr.msra.gmra.mrb[0].mxu1 %vm526_vm2, %v493_v23 }
 0x2a1   : > { %v564_v25 = vpop.f32.mrb[0].mxu1 }
 0x2a2   : > { %v570_v26 = vadd.f32 %v564_v25, %v492_v24  ;;  %v838_v27 = vpop.f32.mrb[1].mxu1 }
 0x2a3   : > { %v567_v28 = vpop.f32.mrb[2].mxu1 }
 0x2a4   : > { %571 = vst.msk [vmem:[#allocation2] sm:$0xff] %vm413_vm0, %v570_v26  ;;  %v839_v29 = vpop.f32.mrb[3].mxu1 }
 0x2ab   : > { %v575_v33 = vld [vmem:[#allocation2] sm:$0xff] }
 0x2ac   : > { %v583_v34 = vadd.f32 %v805_v31, %v575_v33 }
 0x2ae   : > { %v586_v35 = vadd.f32 %v585_v32, %v583_v34 }
 0x2b0   : > { %v589_v36 = vsel %vm413_vm0, %v586_v35, 0.0 }
 0x2b1   : > { %590 = vadd.xlane.f32.xlu0 %v589_v36 }
 0x33e   : > { %v591_v37 = vpop.xlane.xlu0 %590 }
 0x33f   : > { %v593_v38 = vmul.f32 0.03125, %v591_v37 }
 0x341   : > { %v594_v39 = vsub.f32 %v586_v35, %v593_v38 }
 0x343   : > { %v595_v40 = vmul.f32 %v594_v39, %v594_v39 }
 0x345   : > { %v596_v41 = vsel %vm413_vm0, %v595_v40, 0.0 }
 0x346   : > { %597 = vadd.xlane.f32.xlu0 %v596_v41 }
 0x3d3   : > { %v598_v42 = vpop.xlane.xlu0 %597 }
 0x3d4   : > { %v599_v43 = vmul.f32 0.03125, %v598_v42 }
 0x3d6   : > { %v600_v44 = vadd.f32 1e-05, %v599_v43 }
 0x3d8   : > { %975 = vrsqrt.f32 %v600_v44 }
 0x3e2   : > { %v976_v45 = vpop.eup %975 }
 0x3e3   : > { %v602_v47 = vmul.f32 %v976_v45, %v594_v39 }
 0x3e5   : > { %v609_v49 = vmul.f32 %v806_v46, %v602_v47 }
 0x3e7   : > { %v616_v50 = vadd.f32 %v807_v48, %v609_v49 }
 0x3e9   : > { %v617_v51 = vpack.c.bf16 %v616_v50, %v616_v50 }
 0x3eb   : > { %619 = vst.msk [vmem:[%s406_s9] sm:$0xf] %vm618_vm3, %v617_v51 }
 0x3ec   : > { %1188 = shalt.err (!%p1185_p8)
}
 0x3ed   : > { %s1189_s1 = scalar_lea.hbm %s1622_s18, 64  ;;  %s1193_s30 = scalar_lea.hbm %s1701_s7, 128 }
 0x3ee   : > { %p1190_p3 = scmp.ne.s32.totalorder %s1622_s18, %s1189_s1  ;;  %p1194_p13 = scmp.lt.u32.totalorder %s1622_s18, %s1701_s7 }
 0x3ef   : > { %p1195_p12 = scmp.lt.u32.totalorder %s1193_s30, %s1189_s1  ;;  %p1197_p2 = scmp.lt.u32.totalorder %s1189_s1, %s1622_s18 }
 0x3f0   : > { %p1191_p11 = pnand %p1190_p3, %p1702_p9 }
 0x3f1   : > { %p1196_p4 = por %p1195_p12, %p1194_p13 }
 0x3f2   : > { %p1192_p6 = pneg %p1191_p11 }
 0x3f3   : > { %p1198_p10 = por %p1197_p2, %p1196_p4 }
 0x3f5   : > { %p1199_p1 = pnand %p1198_p10, %p1192_p6 }
 0x3f7   : > { %1202 = shalt.err (!%p1199_p1)
}
 0x3f8   : > { %866 = dma.vmem_to_hbm [thread:$0]  (%p1702_p9), %s1624_s20, 64, %s1622_s18, %s621_s13  }
 0x3f9 PF: > { %s646_s16 = sand.u32 1, %s1249_s24   ;;  %p1703_p0 = scmp.ne.s32.totalorder %s1697_s10, 0 }
 0x3fa   : > { %p1704_p7 = scmp.ge.s32.totalorder %s1269_s29, 2  ;;  %s647_s12 = scalar_lea.sflag [#allocation5], %s646_s16 }
 0x3fc   : > { %p892_p5 = pnand %p1704_p7, %p1703_p0 }
 0x3fe   : > { %1244 = dma.done.wait (!%p892_p5), %s647_s12, 64  }
 0x3ff   : > { %1246 = vsyncadd (!%p892_p5), %s647_s12, 4294967232  ;;  %s26_s29 = sadd.s32 1, %s1269_s29   ;;  %s1705_s24 = smov %s1253_s25 }
 0x400   : > { %p23_p8 = scmp.ge.s32.totalorder %s26_s29, 4   ;;  %s1706_s25 = smov %s1257_s26 }
 0x401   : > { %s1707_s26 = smov %s1535_s23  ;;  %s1708_s27 = smov %s1265_s28 }
 0x402   : > { %s1709_s28 = smov %s1711_s15  ;;  %25 = sbr.rel (!%p23_p8) target bundleno = 12 (0xc), region = 128 }
 0x409   :  { %652 = vsyncpa [#allocation4], 1 }
 0x40a   :  { %654 = vsyncpa [#allocation4 + $0x1], 1 }
 0x40b   :  { %655 = vsyncpa [#allocation7], 1 }
 0x40c   :  { %656 = vsyncpa [#allocation10], 1 }
 0x40d   :  { %657 = vsyncpa [#allocation13], 1 }
 0x40e   :  { %658 = vsyncpa [#allocation5], 1 }
 0x40f   :  { %660 = vsyncpa [#allocation5 + $0x1], 1 }

// kernel: whisper_forward.57
= control target key start
LH: loop header
LB: loop body
LE: loop exit
PB: predicated region body
PF: predicated region fallthrough
CT: control target
= control target key end

     0   :  { %s1275_s0 = inlined_call_operand.hbm [shape: bf16[16,32], index: 0, kind: input, shape index: {}]   ;;  %s1276_s1 = inlined_call_operand.hbm [shape: bf16[32,128], index: 1, kind: input, shape index: {}]   ;;  %s1277_s2 = inlined_call_operand.hbm [shape: s32[16,1], index: 2, kind: input, shape index: {}]   ;;  %s1278_s3 = inlined_call_operand.hbm [shape: bf16[16,128], index: 3, kind: output, shape index: {0}]   ;;  %s1279_s4 = inlined_call_operand.hbm [shape: f32[16,1], index: 4, kind: output, shape index: {1}]  }
   0x1   :  { %1289 = sst [smem:[#allocation21_spill]] %s1275_s0 }
   0x2   :  { %10 = vsyncpa [#allocation6], 0 }
   0x3   :  { %12 = vsyncpa [#allocation6 + $0x1], 0 }
   0x4   :  { %13 = vsyncpa [#allocation9], 0 }
   0x5   :  { %14 = vsyncpa [#allocation7], 0 }
   0x6   :  { %16 = vsyncpa [#allocation7 + $0x1], 0 }
   0x7   :  { %17 = vsyncpa [#allocation13], 0 }
   0x8   :  { %19 = vsyncpa [#allocation13 + $0x1], 0  ;;  %s976_s15 = smov 0   ;;  %s978_s16 = smov 0  }
   0x9   :  { %s980_s17 = smov 0   ;;  %s982_s18 = smov 0  }
   0xa   :  { %s984_s19 = smov 0   ;;  %s986_s20 = smov 0  }
   0xb LB: > { %1290 = sst [smem:[#allocation19_spill]] %s934_s19  ;;  %s37_s21 = sadd.s32 1, %s934_s19  ;;  %s938_s20 = sphi %s986_s20, %s25_s20   ;;  %s934_s19 = sphi %s984_s19, %s1310_s19   ;;  %s930_s18 = sphi %s982_s18, %s1309_s18   ;;  %s926_s17 = sphi %s980_s17, %s1313_s17   ;;  %s922_s16 = sphi %s978_s16, %s1312_s16   ;;  %s918_s15 = sphi %s976_s15, %s1311_s15  }
   0xc   : > { %s44_s22 = sadd.s32 1, %s926_s17  ;;  %p39_p0 = scmp.ge.s32.totalorder %s37_s21, 2 }
   0xd   : > { %p51_p1 = scmp.ne.s32.totalorder %s926_s17, %s922_s16  ;;  %p52_p2 = scmp.eq.s32.totalorder %s938_s20, 0 }
   0xe   : > { %s1315_s21 = smov (%p39_p0, %s37_s21), 0  ;;  %p660_p5 = scmp.lt.s32.totalorder %s938_s20, 2 }
   0xf   : > { %1291 = sst [smem:[#allocation20_spill]] %s1315_s21  ;;  %p53_p4 = por %p52_p2, %p51_p1 }
  0x10   : > { %s41_s23 = ssub.s32 %s934_s19, %s1315_s21  ;;  %s202_s24 = sand.u32 1, %s938_s20  }
  0x11   : > { %p42_p6 = scmp.eq.s32.totalorder %s41_s23, 0  ;;  %s204_s25 = sand.u32 1, %s926_s17  }
  0x12   : > { %s600_s26 = sshll.u32 %s934_s19, 6  ;;  %s599_s28 = sshll.u32 %s204_s25, 2 }
  0x13   : > { %s1024_s27 = scalar_select %p42_p6, %s926_s17, %s44_s22  }
  0x14   : > { %s1292_s0 = sld [smem:[#allocation21_spill]]  ;;  %p1033_p7 = pnand %p660_p5, %p53_p4 }
  0x15   : > { %s206_s7 = scalar_lea.vmem [#allocation5], %s599_s28  ;;  %s1039_s9 = scalar_lea.sflag [#allocation6], %s202_s24 }
  0x16   : > { %s1293_s6 = scalar_select %p1033_p7, 1, 0 }
  0x17   : > { %s213_s8 = sshll.u32 %s206_s7, 4  ;;  %p1283_p9 = pneg %p1033_p7  ;;  %s1037_s8 = int_to_ptr.vmem [resolvable:$true] %s213_s8 }
  0x1a   : > { %s1031_s5 = scalar_lea.hbm %s1292_s0, %s600_s26  ;;  %s733_s13 = scalar_lea.hbm %s1292_s0, 128 }
  0x1b   : > { %s728_s10 = scalar_lea.hbm %s1031_s5, 64  ;;  %p734_p12 = scmp.lt.u32.totalorder %s1031_s5, %s1292_s0 }
  0x1c   : > { %p729_p8 = scmp.ne.s32.totalorder %s1031_s5, %s728_s10  ;;  %p735_p13 = scmp.lt.u32.totalorder %s733_s13, %s728_s10 }
  0x1d   : > { %p737_p2 = scmp.lt.u32.totalorder %s728_s10, %s1031_s5 }
  0x1e   : > { %p731_p10 = pnand %p1283_p9, %p729_p8  ;;  %p736_p0 = por %p735_p13, %p734_p12 }
  0x20   : > { %p732_p11 = pneg %p731_p10  ;;  %p738_p4 = por %p737_p2, %p736_p0 }
  0x22   : > { %p739_p5 = pnand %p738_p4, %p732_p11 }
  0x24   : > { %742 = shalt.err (!%p739_p5)
}
  0x25   : > { %s743_s23 = scalar_lea.vmem %s1037_s8, 64  ;;  %s940_s24 = smov [#allocation5]  }
  0x26   : > { %p744_p6 = scmp.ne.s32.totalorder %s1037_s8, %s743_s23  ;;  %s748_s26 = sshll.u32 %s940_s24, 4  ;;  %s749_s26 = int_to_ptr.vmem [resolvable:$false] %s748_s26 }
  0x27   : > { %s750_s28 = scalar_lea.vmem %s749_s26, 128  ;;  %p751_p3 = scmp.lt.s32.totalorder %s1037_s8, %s749_s26 }
  0x28   : > { %p746_p8 = pnand %p744_p6, %p1283_p9  ;;  %p752_p12 = scmp.lt.s32.totalorder %s750_s28, %s743_s23 }
  0x2a   : > { %p747_p10 = pneg %p746_p8  ;;  %p753_p13 = por %p752_p12, %p751_p3 }
  0x2c   : > { %p754_p0 = pnand %p753_p13, %p747_p10 }
  0x2e   : > { %757 = shalt.err (!%p754_p0)
}
  0x2f   : > { %648 = dma.hbm_to_vmem [thread:$0]  (!%p1033_p7), %s1031_s5, 64, %s1037_s8, %s1039_s9  }
  0x30   : > { %s1068_s29 = sadd.s32 4294967295, %s938_s20   ;;  %s595_s30 = sadd.s32 4294967294, %s938_s20  }
  0x31   : > { %p57_p3 = scmp.ne.s32.totalorder %s922_s16, %s918_s15  ;;  %p1282_p11 = scmp.eq.s32.totalorder %s1068_s29, 0 }
  0x32   : > { %p135_p2 = scmp.eq.s32.totalorder %s1068_s29, 1  ;;  %p141_p4 = scmp.eq.s32.totalorder %s595_s30, 1 }
  0x33   : > { %p1077_p5 = por %p1282_p11, %p57_p3  ;;  %p596_p6 = scmp.ge.s32.totalorder %s938_s20, 1 }
  0x34   : > { %p1085_p8 = por %p135_p2, %p51_p1  ;;  %p1089_p10 = por %p141_p4, %p57_p3 }
  0x35   : > { %s1294_s7 = scalar_select %p1077_p5, 1, 0 }
  0x36   : > { %s1295_s5 = scalar_select %p1085_p8, 1, 0 }
  0x37   : > { %s1296_s8 = scalar_select %p1089_p10, 1, 0 }
  0x38   : > { %p174_p12 = scmp.lt.s32.totalorder %s938_s20, 3  ;;  %s601_s10 = sshll.u32 %s204_s25, 3 }
  0x39   : > { %s941_s12 = smov [#allocation8]   ;;  %s602_s14 = sshll.u32 %s934_s19, 7 }
  0x3a   : > { %p1096_p13 = pnand %p596_p6, %p174_p12  ;;  %s188_s13 = sshll.u32 %s941_s12, 4  ;;  %s1100_s13 = int_to_ptr.vmem [resolvable:$true] %s188_s13 }
  0x3b   : > { %s224_s22 = scalar_lea.vmem [#allocation10], %s601_s10  ;;  %s1114_s28 = scalar_lea.hbm %s1277_s2, %s602_s14 }
  0x3c   : > { %s1297_s11 = scalar_select %p1096_p13, 1, 0 }
  0x3d   : > { %p641_p1 = pneg %p1096_p13  ;;  %s231_s23 = sshll.u32 %s224_s22, 4  ;;  %s1116_s23 = int_to_ptr.vmem [resolvable:$true] %s231_s23 }
  0x3e   : > { %s758_s0 = scalar_lea.hbm %s1276_s1, 256 }
  0x3f   : > { %p1107_p0 = pnand %p641_p1, %p1282_p11  ;;  %p759_p3 = scmp.ne.s32.totalorder %s1276_s1, %s758_s0 }
  0x40   : > { %p765_p12 = scmp.lt.u32.totalorder %s758_s0, %s1276_s1 }
  0x41   : > { %p760_p2 = pneg %p1107_p0 }
  0x43   : > { %p761_p4 = pnand %p760_p2, %p759_p3 }
  0x45   : > { %p762_p6 = pneg %p761_p4 }
  0x47   : > { %p767_p1 = pnand %p765_p12, %p762_p6 }
  0x49   : > { %770 = shalt.err (!%p767_p1)
}
  0x4a   : > { %s771_s14 = scalar_lea.vmem %s1100_s13, 256  ;;  %p779_p8 = scmp.lt.s32.totalorder %s1100_s13, %s1100_s13 }
  0x4b   : > { %p772_p11 = scmp.ne.s32.totalorder %s1100_s13, %s771_s14  ;;  %p780_p5 = scmp.lt.s32.totalorder %s771_s14, %s771_s14 }
  0x4d   : > { %p774_p9 = pnand %p772_p11, %p760_p2  ;;  %p781_p13 = por %p780_p5, %p779_p8 }
  0x4f   : > { %p775_p10 = pneg %p774_p9 }
  0x51   : > { %p782_p7 = pnand %p781_p13, %p775_p10 }
  0x53   : > { %785 = shalt.err (!%p782_p7)
}
  0x54   : > { %s942_s21 = smov 64   ;;  %s943_s0 = smov 4  }
  0x55   : > { %644 = dma.hbm_to_vmem [thread:$0]  (!%p1107_p0), %s1276_s1, 256, %s1100_s13, [#allocation9], %s942_s21, %s942_s21, %s943_s0  }
  0x56   : > { %s786_s26 = scalar_lea.hbm %s1114_s28, 128  ;;  %p1299_p11 = scmp.ne.s32.totalorder %s1293_s6, 0 }
  0x57   : > { %p787_p9 = scmp.ne.s32.totalorder %s1114_s28, %s786_s26  ;;  %s791_s10 = scalar_lea.hbm %s1277_s2, 256 }
  0x58   : > { %p1300_p5 = pneg %p1299_p11  ;;  %p792_p10 = scmp.lt.u32.totalorder %s1114_s28, %s1277_s2 }
  0x59   : > { %p793_p13 = scmp.lt.u32.totalorder %s791_s10, %s786_s26  ;;  %p795_p2 = scmp.lt.u32.totalorder %s786_s26, %s1114_s28 }
  0x5a   : > { %p789_p8 = pnand %p787_p9, %p1300_p5 }
  0x5b   : > { %p794_p3 = por %p793_p13, %p792_p10 }
  0x5c   : > { %p790_p7 = pneg %p789_p8 }
  0x5d   : > { %p796_p4 = por %p795_p2, %p794_p3 }
  0x5f   : > { %p797_p6 = pnand %p796_p4, %p790_p7 }
  0x61   : > { %800 = shalt.err (!%p797_p6)
}
  0x62   : > { %s801_s13 = scalar_lea.vmem %s1116_s23, 128  ;;  %p1301_p12 = pmov %p1300_p5 }
  0x63   : > { %p802_p0 = scmp.ne.s32.totalorder %s1116_s23, %s801_s13  ;;  %s944_s24 = smov [#allocation10]  }
  0x64   : > { %s806_s21 = sshll.u32 %s944_s24, 4  ;;  %s807_s21 = int_to_ptr.vmem [resolvable:$false] %s806_s21 }
  0x65   : > { %p804_p1 = pnand %p802_p0, %p1301_p12  ;;  %s808_s0 = scalar_lea.vmem %s807_s21, 256 }
  0x66   : > { %p809_p5 = scmp.lt.s32.totalorder %s1116_s23, %s807_s21  ;;  %p810_p8 = scmp.lt.s32.totalorder %s808_s0, %s801_s13 }
  0x67   : > { %p805_p9 = pneg %p804_p1 }
  0x68   : > { %p811_p10 = por %p810_p8, %p809_p5 }
  0x6a   : > { %p812_p13 = pnand %p811_p10, %p805_p9 }
  0x6c   : > { %815 = shalt.err (!%p812_p13)
}
  0x6d   : > { %651 = dma.hbm_to_vmem [thread:$0]  (!%p1299_p11), %s1114_s28, 128, %s1116_s23, %s1039_s9  }
  0x6e   : > { %p1302_p7 = scmp.ne.s32.totalorder %s1297_s11, 0 }
  0x6f   : > { %s242_s19 = sand.u32 (!%p1302_p7), 1, %s1068_s29   ;;  %s1167_s25 = sand.u32 (!%p1302_p7), 1, %s922_s16  }
  0x70   : > { %240 = sbr.rel (%p1302_p7) target bundleno = 819 (0x333), region = 32  ;;  %s604_s26 = sshll.u32 (!%p1302_p7), %s1167_s25, 2 }
  0x71   : > { %s243_s30 = scalar_lea.sflag (!%p1302_p7), [#allocation6], %s242_s19  ;;  %s246_s12 = scalar_lea.vmem (!%p1302_p7), [#allocation5], %s604_s26 }
  0x72   : > { %p1303_p3 = scmp.ne.s32.totalorder (!%p1302_p7), %s1294_s7, 0 }
  0x77   : > { %897 = dma.done.wait (%p1303_p3), %s243_s30, 64  }
  0x78   : > { %899 = vsyncadd (%p1303_p3), %s243_s30, 4294967232  ;;  %p1304_p11 = scmp.eq.s32.totalorder %s1068_s29, 0 }
  0x7a   : > { %901 = dma.done.wait (%p1304_p11), [#allocation9], 256   ;;  %p1305_p2 = pmov %p1304_p11 }
  0x7b   : > { %s606_s6 = sshll.u32 %s1167_s25, 3 }
  0x7c   : > { %903 = vsyncadd (%p1305_p2), [#allocation9], 4294967040  ;;  %s259_s9 = scalar_lea.vmem [#allocation10], %s606_s6 }
  0x7d   : > { %905 = dma.done.wait (%p1303_p3), %s243_s30, 128  }
  0x7e   : > { %907 = vsyncadd (%p1303_p3), %s243_s30, 4294967168  ;;  %vm299_vm0 = vcmask 7168   ;;  %v945_v0 = vmov 0.0   ;;  %vm946_vm1 = vmmov 0   ;;  %v947_v1 = vmov 0   ;;  %v720_v2 = vld [vmem:[#allocation8] sm:$0xff]  }
  0x7f   : > { %301 = vst.msk [vmem:[#allocation3] sm:$0xff] %vm299_vm0, %v945_v0  ;;  %302 = vst.msk [vmem:[#allocation4] sm:$0xff] %vm299_vm0, %v945_v0  ;;  %621 = vmatprep.subr.bf16.mxu0 %v945_v0  ;;  %625 = vmatprep.mubr.msk.bf16.mxu0 %vm946_vm1, %v945_v0  ;;  %v721_v3 = vld [vmem:[#allocation8 + $0x8] sm:$0xff]   ;;  %v397_v4 = vld [vmem:[%s259_s9] sm:$0xff]  ;;  %vm320_vm2 = vcmask 261120   ;;  %v948_v6 = vmov -inf   ;;  %v366_v7 = vlaneseq }
  0x80   : > { %719 = vset.pattern.permute.xlu1 %v947_v1  ;;  %718 = vset.pattern.permute.xlu0 %v947_v1  ;;  %v303_v5 = vld [vmem:[%s246_s12] sm:$0xf]  ;;  %300 = vst.msk [vmem:[#allocation2] sm:$0xff] %vm299_vm0, %v948_v6  ;;  %s286_s29 = scalar_lea.vmem [#allocation11], %s604_s26  ;;  %s614_s7 = sshll.u32 %s930_s18, 6 }
  0x81   : > { %622 = vmatpush3.bf16.msra.mxu0 %v720_v2  ;;  %399 = vperm.xlu1 %719, %v397_v4   ;;  %v367_v8 = vand.u32 127, %v366_v7  ;;  %s1197_s28 = scalar_lea.hbm %s1278_s3, %s614_s7  ;;  %s438_s10 = sshll.u32 %s286_s29, 4  ;;  %s439_s10 = int_to_ptr.vmem [resolvable:$true] %s438_s10 }
  0x82   : > { %623 = vmatprep.subr.bf16.mxu0 %v945_v0  ;;  %s419_s22 = scalar_lea.sflag [#allocation7], %s1167_s25  ;;  %s816_s14 = scalar_lea.vmem %s439_s10, 64 }
  0x83   : > { %vm371_vm4 = vcmp.lt.s32.totalorder %v367_v8, 50  ;;  %p817_p4 = scmp.ne.s32.totalorder %s439_s10, %s816_s14  ;;  %p1306_p6 = scmp.ne.s32.totalorder %s1295_s5, 0 }
  0x84   : > { %s949_s13 = smov [#allocation11]  }
  0x85   : > { %624 = vmatpush3.bf16.msra.mxu0 %v721_v3  ;;  %p818_p0 = pnand %p817_p4, %p1306_p6  ;;  %s820_s24 = sshll.u32 %s949_s13, 4  ;;  %s821_s24 = int_to_ptr.vmem [resolvable:$false] %s820_s24 }
  0x86   : > { %s822_s21 = scalar_lea.vmem %s821_s24, 128  ;;  %p823_p1 = scmp.lt.s32.totalorder %s439_s10, %s821_s24 }
  0x87   : > { %v373_v17 = vld [vmem:[#allocation2] sm:$0xff]  ;;  %p819_p12 = pneg %p818_p0  ;;  %p824_p9 = scmp.lt.s32.totalorder %s822_s21, %s816_s14 }
  0x88   : > { %626 = vmatmul.mubr.msk.bf16.vlgmr.msra.gmra.mrb[0].mxu0 %vm320_vm2, %v303_v5 }
  0x89   : > { %p825_p5 = por %p824_p9, %p823_p1 }
  0x8b   : > { %p826_p8 = pnand %p825_p5, %p819_p12 }
 0x100   : > { %v400_v9 = vpop.permute.xlu1 %399 }
 0x101   : > { %vm401_vm3 = vcmp.eq.s32.totalorder %v367_v8, %v400_v9 }
 0x15b   : > { %v358_v10 = vpop.f32.mrb[0].mxu0 }
 0x15c   : > { %v364_v11 = vpack.c.bf16 %v358_v10, %v358_v10  ;;  %v627_v12 = vpop.f32.mrb[1].mxu0  ;;  %v372_v13 = vsel %vm371_vm4, %v358_v10, -1e+30  ;;  %v402_v14 = vsel %vm401_vm3, %v358_v10, 0.0 }
 0x15d   : > { %374 = vmax.xlane.f32.xlu0 %v372_v13  ;;  %v361_v15 = vpop.f32.mrb[2].mxu0 }
 0x15e   : > { %v628_v16 = vpop.f32.mrb[3].mxu0  ;;  %365 = vst [vmem:[%s286_s29] sm:$0xf] %v364_v11 }
 0x1ea   : > { %v375_v18 = vpop.xlane.xlu0 %374 }
 0x1eb   : > { %v376_v19 = vmax.f32 %v373_v17, %v375_v18 }
 0x1ed   : > { %v378_v20 = vsub.f32 %v373_v17, %v376_v19  ;;  %395 = vst.msk [vmem:[#allocation2] sm:$0xff] %vm299_vm0, %v376_v19  ;;  %384 = vperm.xlu0 %718, %v376_v19  }
 0x26c   : > { %v385_v21 = vpop.permute.xlu0 %384 }
 0x26d   : > { %v387_v22 = vsub.f32 %v372_v13, %v385_v21 }
 0x26f   : > { %v388_v23 = vmul.f32 1.442695, %v387_v22 }
 0x271   : > { %722 = vpow2.f32 %v388_v23 }
 0x27b   : > { %v723_v24 = vpop.eup %722 }
 0x27c   : > { %390 = vadd.xlane.f32.xlu1 %v723_v24 }
 0x280   : > { %403 = vadd.xlane.f32.xlu1 %v402_v14 }
 0x281   : > { %829 = shalt.err (!%p826_p8)
}
 0x282   : > { %s830_s0 = scalar_lea.hbm %s1197_s28, 64  ;;  %s834_s30 = scalar_lea.hbm %s1278_s3, 128 }
 0x283   : > { %p831_p10 = scmp.ne.s32.totalorder %s1197_s28, %s830_s0  ;;  %p835_p3 = scmp.lt.u32.totalorder %s1197_s28, %s1278_s3 }
 0x284   : > { %p836_p11 = scmp.lt.u32.totalorder %s834_s30, %s830_s0  ;;  %p838_p4 = scmp.lt.u32.totalorder %s830_s0, %s1197_s28 }
 0x285   : > { %p832_p13 = pnand %p831_p10, %p1306_p6 }
 0x286   : > { %p837_p2 = por %p836_p11, %p835_p3 }
 0x287   : > { %p833_p7 = pneg %p832_p13 }
 0x288   : > { %p839_p0 = por %p838_p4, %p837_p2 }
 0x28a   : > { %p840_p12 = pnand %p839_p0, %p833_p7 }
 0x28c   : > { %843 = shalt.err (!%p840_p12)
}
 0x28d   : > { %637 = dma.vmem_to_hbm [thread:$0]  (%p1306_p6), %s439_s10, 64, %s1197_s28, %s419_s22   ;;  %v379_v25 = vmul.f32 1.442695, %v378_v20  ;;  %v377_v27 = vld [vmem:[#allocation3] sm:$0xff]  ;;  %v396_v31 = vld [vmem:[#allocation4] sm:$0xff]  ;;  %v410_v37 = vld [vmem:[#allocation2] sm:$0xff] }
 0x28e   : > { %s615_s29 = sshll.u32 %s930_s18, 7  ;;  %s293_s7 = scalar_lea.vmem [#allocation12], %s606_s6 }
 0x28f   : > { %724 = vpow2.f32 %v379_v25  ;;  %s451_s11 = sshll.u32 %s293_s7, 4  ;;  %s1225_s10 = scalar_lea.hbm %s1279_s4, %s615_s29  ;;  %s1227_s11 = int_to_ptr.vmem [resolvable:$true] %s451_s11 }
 0x290   : > { %s424_s22 = scalar_lea.sflag [#allocation13], %s1167_s25  ;;  %s844_s18 = scalar_lea.vmem %s1227_s11, 128 }
 0x291   : > { %p845_p1 = scmp.ne.s32.totalorder %s1227_s11, %s844_s18  ;;  %s950_s6 = smov [#allocation12]  }
 0x292   : > { %s848_s14 = sshll.u32 %s950_s6, 4  ;;  %s849_s14 = int_to_ptr.vmem [resolvable:$false] %s848_s14 }
 0x293   : > { %p846_p9 = pnand %p845_p1, %p1306_p6  ;;  %s850_s13 = scalar_lea.vmem %s849_s14, 256 }
 0x294   : > { %p851_p8 = scmp.lt.s32.totalorder %s1227_s11, %s849_s14  ;;  %p852_p10 = scmp.lt.s32.totalorder %s850_s13, %s844_s18 }
 0x295   : > { %p847_p5 = pneg %p846_p9 }
 0x296   : > { %p853_p13 = por %p852_p10, %p851_p8 }
 0x298   : > { %p854_p7 = pnand %p853_p13, %p847_p5 }
 0x299   : > { %v725_v26 = vpop.eup %724 }
 0x29a   : > { %v381_v28 = vmul.f32 %v725_v26, %v377_v27 }
 0x309   : > { %v391_v29 = vpop.xlane.xlu1 %390 }
 0x30a   : > { %v392_v30 = vadd.f32 %v391_v29, %v381_v28 }
 0x30c   : > { %394 = vst.msk [vmem:[#allocation3] sm:$0xff] %vm299_vm0, %v392_v30 }
 0x30d   : > { %v404_v32 = vpop.xlane.xlu1 %403 }
 0x30e   : > { %v405_v33 = vadd.f32 %v404_v32, %v396_v31 }
 0x310   : > { %406 = vst.msk [vmem:[#allocation4] sm:$0xff] %vm299_vm0, %v405_v33 }
 0x313   : > { %v411_v34 = vld [vmem:[#allocation3] sm:$0xff] }
 0x314   : > { %726 = vlog2.f32 %v411_v34 }
 0x317   : > { %v415_v39 = vld [vmem:[#allocation4] sm:$0xff] }
 0x31e   : > { %v727_v35 = vpop.eup %726 }
 0x31f   : > { %v413_v36 = vmul.f32 0.6931472, %v727_v35 }
 0x321   : > { %v414_v38 = vadd.f32 %v413_v36, %v410_v37 }
 0x323   : > { %v416_v40 = vsub.f32 %v414_v38, %v415_v39 }
 0x325   : > { %417 = vst.msk [vmem:[%s293_s7] sm:$0xff] %vm299_vm0, %v416_v40 }
 0x326   : > { %857 = shalt.err (!%p854_p7)
}
 0x327   : > { %s858_s25 = scalar_lea.hbm %s1225_s10, 128  ;;  %s862_s0 = scalar_lea.hbm %s1279_s4, 256 }
 0x328   : > { %p859_p3 = scmp.ne.s32.totalorder %s1225_s10, %s858_s25  ;;  %p863_p4 = scmp.lt.u32.totalorder %s1225_s10, %s1279_s4 }
 0x329   : > { %p864_p0 = scmp.lt.u32.totalorder %s862_s0, %s858_s25  ;;  %p866_p1 = scmp.lt.u32.totalorder %s858_s25, %s1225_s10 }
 0x32a   : > { %p860_p11 = pnand %p859_p3, %p1306_p6 }
 0x32b   : > { %p865_p12 = por %p864_p0, %p863_p4 }
 0x32c   : > { %p861_p2 = pneg %p860_p11 }
 0x32d   : > { %p867_p9 = por %p866_p1, %p865_p12 }
 0x32f   : > { %p868_p5 = pnand %p867_p9, %p861_p2 }
 0x331   : > { %871 = shalt.err (!%p868_p5)
}
 0x332   : > { %638 = dma.vmem_to_hbm [thread:$0]  (%p1306_p6), %s1227_s11, 128, %s1225_s10, %s424_s22  }
 0x333 PF: > { %s463_s30 = sand.u32 1, %s918_s15   ;;  %p1307_p8 = scmp.ne.s32.totalorder %s1296_s8, 0 }
 0x334   : > { %p1308_p10 = scmp.ge.s32.totalorder %s938_s20, 2  ;;  %s464_s12 = scalar_lea.sflag [#allocation7], %s463_s30 }
 0x336   : > { %p653_p13 = pnand %p1308_p10, %p1307_p8 }
 0x338   : > { %909 = dma.done.wait (!%p653_p13), %s464_s12, 64  }
 0x339   : > { %911 = vsyncadd (!%p653_p13), %s464_s12, 4294967232  ;;  %s473_s9 = scalar_lea.sflag [#allocation13], %s463_s30 }
 0x33a   : > { %913 = dma.done.wait (!%p653_p13), %s473_s9, 128  }
 0x33b   : > { %915 = vsyncadd (!%p653_p13), %s473_s9, 4294967168  ;;  %s25_s20 = sadd.s32 1, %s938_s20   ;;  %s1309_s18 = sld [smem:[#allocation19_spill]] }
 0x33c   : > { %p22_p7 = scmp.ge.s32.totalorder %s25_s20, 4   ;;  %s1310_s19 = sld [smem:[#allocation20_spill]] }
 0x33d   : > { %s1311_s15 = smov %s922_s16  ;;  %s1312_s16 = smov %s926_s17 }
 0x33e   : > { %s1313_s17 = smov %s1024_s27  ;;  %24 = sbr.rel (!%p22_p7) target bundleno = 11 (0xb), region = 118 }
 0x345   :  { %478 = vsyncpa [#allocation6], 1 }
 0x346   :  { %480 = vsyncpa [#allocation6 + $0x1], 1 }
 0x347   :  { %481 = vsyncpa [#allocation9], 1 }
 0x348   :  { %482 = vsyncpa [#allocation7], 1 }
 0x349   :  { %484 = vsyncpa [#allocation7 + $0x1], 1 }
 0x34a   :  { %485 = vsyncpa [#allocation13], 1 }
 0x34b   :  { %487 = vsyncpa [#allocation13 + $0x1], 1 }

</bundles_post_ra>
